<compile_context>
chip_gen: v7x
topology: tpu7x:2x2x1
jax: 0.10.0
libtpu: 0.0.40
codegen_flags: <defaults>
</compile_context>

<pallas_src>
import functools

import numpy as np
import jax
import jax.numpy as jnp
from jax.experimental import pallas as pl
from jax.experimental.pallas import tpu as pltpu

BETA = 0.95
THRESHOLD = 1.0


def _round_up(x, m):
    return ((x + m - 1) // m) * m


# ----------------------------------------------------------------------------
# Kernel 1: conv1 current for ALL timesteps in one matmul (hoisted out of loop)
# ----------------------------------------------------------------------------
def _conv1_kernel(x_ref, w_ref, b_ref, o_ref):
    o_ref[...] = (jnp.dot(x_ref[...], w_ref[...],
                          preferred_element_type=jnp.float32) + b_ref[...])


def conv1_all_steps(cols, w1, b1):
    n, _ = cols.shape
    m = w1.shape[1]
    vmem = pl.BlockSpec(memory_space=pltpu.MemorySpace.VMEM)
    return pl.pallas_call(
        _conv1_kernel,
        out_shape=jax.ShapeDtypeStruct((n, m), jnp.float32),
        in_specs=[vmem, vmem, vmem],
        out_specs=vmem,
    )(cols, w1, b1.reshape(1, m))


# ----------------------------------------------------------------------------
# Kernel 2: fused per-timestep SNN step (grid over T, membranes in VMEM scratch)
# ----------------------------------------------------------------------------
def _fused_step_kernel(cur1_ref, p1_ref, s_ref, w2_ref, b2_ref, p2_ref,
                       wfc1_ref, bfc1_ref, wfc2_ref, bfc2_ref,
                       spk_out_ref,
                       mem1_ref, mem2_ref, mem3_ref, mem4_ref,
                       *, beta, threshold, n_taps, n_pos):
    t = pl.program_id(0)

    @pl.when(t == 0)
    def _init():                                   # init_leaky(): zero membranes
        mem1_ref[...] = jnp.zeros_like(mem1_ref)
        mem2_ref[...] = jnp.zeros_like(mem2_ref)
        mem3_ref[...] = jnp.zeros_like(mem3_ref)
        mem4_ref[...] = jnp.zeros_like(mem4_ref)

    def lif(mem_ref, cur):                         # subtract-reset Leaky (f32)
        m = mem_ref[...]
        reset = (m > threshold).astype(jnp.float32)
        m_new = beta * m + cur - reset * threshold
        mem_ref[...] = m_new
        return m_new > threshold

    # ---- conv1 current (precomputed for all T) -> LIF1 -----------------------
    spk1 = lif(mem1_ref, cur1_ref[0]).astype(jnp.bfloat16)          # (N1, C1)

    # ---- 2x2 maxpool of binary spikes == (window-sum > 0) --------------------
    pooled1 = jnp.dot(p1_ref[...], spk1, preferred_element_type=jnp.float32)
    spk1p = (pooled1 > 0.5).astype(jnp.bfloat16)                    # (N2, C1)

    # ---- conv2 as 9 shifted matmuls (no HBM im2col) ---------------------------
    n2 = p1_ref.shape[0]
    c2 = w2_ref.shape[-1]
    acc2 = jnp.zeros((n2, c2), jnp.float32)
    for tap in range(n_taps):
        shifted = jnp.dot(s_ref[tap], spk1p,
                          preferred_element_type=jnp.float32).astype(jnp.bfloat16)
        acc2 = acc2 + jnp.dot(shifted, w2_ref[tap],
                              preferred_element_type=jnp.float32)
    cur2 = acc2 + b2_ref[...]
    spk2 = lif(mem2_ref, cur2).astype(jnp.bfloat16)                 # (N2, C2)

    # ---- pool2 + NHWC-order flatten + fc1, folded into per-position matmuls ---
    bsz = p2_ref.shape[1]
    fc1p = wfc1_ref.shape[-1]
    acc3 = jnp.zeros((bsz, fc1p), jnp.float32)
    for p in range(n_pos):
        pooled = jnp.dot(p2_ref[p], spk2, preferred_element_type=jnp.float32)
        chunk = (pooled > 0.5).astype(jnp.bfloat16)                 # (B, C2)
        acc3 = acc3 + jnp.dot(chunk, wfc1_ref[p],
                              preferred_element_type=jnp.float32)
    cur3 = acc3 + bfc1_ref[...]
    spk3 = lif(mem3_ref, cur3).astype(jnp.bfloat16)                 # (B, FC1P)

    # ---- fc2 -> LIF4 ----------------------------------------------------------
    cur4 = jnp.dot(spk3, wfc2_ref[...],
                   preferred_element_type=jnp.float32) + bfc2_ref[...]
    spk4 = lif(mem4_ref, cur4)
    spk_out_ref[0] = spk4.astype(jnp.float32)                       # (B, OUTP)


# ----------------------------------------------------------------------------
# Host-side constant operators (built once; 0/1 matrices, exact in bf16)
# ----------------------------------------------------------------------------
def _pool_matrix(batch, h, w):
    """(B*h/2*w/2, B*h*w) 0/1 window-sum operator; rows/cols in (b, i, j) order."""
    h2, w2 = h // 2, w // 2
    mat = np.zeros((batch * h2 * w2, batch * h * w), np.float32)
    for b in range(batch):
        for i in range(h2):
            for j in range(w2):
                r = (b * h2 + i) * w2 + j
                for di in range(2):
                    for dj in range(2):
                        mat[r, (b * h + 2 * i + di) * w + 2 * j + dj] = 1.0
    return mat


def _shift_matrices(batch, h, w):
    """(9, N, N) 0/1 row-shift operators for a 3x3 'same' conv (zero padding)."""
    n = batch * h * w
    mats = np.zeros((9, n, n), np.float32)
    for ky in range(3):
        for kx in range(3):
            tap = ky * 3 + kx
            for b in range(batch):
                for i in range(h):
                    for j in range(w):
                        ii, jj = i + ky - 1, j + kx - 1
                        if 0 <= ii < h and 0 <= jj < w:
                            mats[tap, (b * h + i) * w + j,
                                 (b * h + ii) * w + jj] = 1.0
    return mats


def _pool2_chunks(batch, h, w):
    """(h/2*w/2, B, B*h*w) per-output-position window-sum operators."""
    h2, w2 = h // 2, w // 2
    mats = np.zeros((h2 * w2, batch, batch * h * w), np.float32)
    for i in range(h2):
        for j in range(w2):
            p = i * w2 + j
            for b in range(batch):
                for di in range(2):
                    for dj in range(2):
                        mats[p, b, (b * h + 2 * i + di) * w + 2 * j + dj] = 1.0
    return mats


def _im2col_3x3(x):
    """x: (N, H, W, C) -> (N*H*W, 9*C), tap-major / channel-minor columns."""
    n, h, w, c = x.shape
    xp = jnp.pad(x, ((0, 0), (1, 1), (1, 1), (0, 0)))
    cols = []
    for ky in range(3):
        for kx in range(3):
            cols.append(xp[:, ky:ky + h, kx:kx + w, :])
    patches = jnp.stack(cols, axis=3)                 # (N, H, W, 9, C)
    return patches.reshape(n * h * w, 9 * c)


# ----------------------------------------------------------------------------
# Parameters (deterministic synthetic init — shapes from the PyTorch __init__)
# ----------------------------------------------------------------------------
def init_params(key, input_channels=1, output_channels=10, input_size=16):
    ks = jax.random.split(key, 8)
    final_size = input_size // 4
    flat = 64 * final_size * final_size
    return {
        "w_conv1": jax.random.normal(ks[0], (3, 3, input_channels, 32), jnp.float32) * 0.3,
        "b_conv1": jax.random.normal(ks[1], (32,), jnp.float32) * 0.1,
        "w_conv2": jax.random.normal(ks[2], (3, 3, 32, 64), jnp.float32) * 0.1,
        "b_conv2": jax.random.normal(ks[3], (64,), jnp.float32) * 0.1,
        # rows follow torch's NCHW flatten order (c, i, j)
        "w_fc1":   jax.random.normal(ks[4], (flat, 100), jnp.float32) * 0.05,
        "b_fc1":   jax.random.normal(ks[5], (100,), jnp.float32) * 0.1,
        "w_fc2":   jax.random.normal(ks[6], (100, output_channels), jnp.float32) * 0.1,
        "b_fc2":   jax.random.normal(ks[7], (output_channels,), jnp.float32) * 0.1,
    }


# ----------------------------------------------------------------------------
# Forward pass (mirrors earlyTTFS.forward)
# ----------------------------------------------------------------------------
def early_ttfs_forward(params, x):
    """x: (T, B, C_in, H, W) f32 (time-major NCHW).  Returns (T, B, n_out) spikes."""
    T, B, Cin, H, W = x.shape
    H2, W2 = H // 2, W // 2
    H4, W4 = H2 // 2, W2 // 2
    C1 = params["w_conv1"].shape[-1]
    C2 = params["w_conv2"].shape[-1]
    n_hidden = params["w_fc1"].shape[1]
    n_out = params["w_fc2"].shape[1]
    FC1P = _round_up(n_hidden, 128)
    OUTP = _round_up(n_out, 128)
    N1 = B * H * W
    N2 = B * H2 * W2
    n_pos = H4 * W4

    # ---- conv1 hoisted out of the time loop: one big matmul over all T -------
    x_nhwc = jnp.transpose(x.reshape(T * B, Cin, H, W), (0, 2, 3, 1))
    cols = _im2col_3x3(x_nhwc)                                   # (T*N1, 9*Cin)
    w1 = params["w_conv1"].reshape(9 * Cin, C1)
    cur1_all = conv1_all_steps(cols, w1, params["b_conv1"]).reshape(T, N1, C1)

    # ---- constant pooling / conv-shift operators (bf16-exact 0/1) ------------
    p1 = jnp.asarray(_pool_matrix(B, H, W), jnp.bfloat16)            # (N2, N1)
    s_taps = jnp.asarray(_shift_matrices(B, H2, W2), jnp.bfloat16)   # (9, N2, N2)
    p2 = jnp.asarray(_pool2_chunks(B, H2, W2), jnp.bfloat16)         # (n_pos, B, N2)

    w2 = params["w_conv2"].reshape(9, C1, C2).astype(jnp.bfloat16)
    b2 = params["b_conv2"].reshape(1, C2).astype(jnp.float32)

    # fc1 weight: one-time row permute from torch NCHW flatten to (position, chan)
    wfc1 = params["w_fc1"].reshape(C2, n_pos, n_hidden).transpose(1, 0, 2)
    wfc1 = jnp.pad(wfc1, ((0, 0), (0, 0), (0, FC1P - n_hidden))).astype(jnp.bfloat16)
    bfc1 = jnp.pad(params["b_fc1"], (0, FC1P - n_hidden)).reshape(1, FC1P)

    wfc2 = jnp.pad(params["w_fc2"],
                   ((0, FC1P - n_hidden), (0, OUTP - n_out))).astype(jnp.bfloat16)
    bfc2 = jnp.pad(params["b_fc2"], (0, OUTP - n_out)).reshape(1, OUTP)

    kernel = functools.partial(_fused_step_kernel, beta=BETA, threshold=THRESHOLD,
                               n_taps=9, n_pos=n_pos)

    spk_padded = pl.pallas_call(
        kernel,
        out_shape=jax.ShapeDtypeStruct((T, B, OUTP), jnp.float32),
        grid=(T,),
        in_specs=[
            pl.BlockSpec((1, N1, C1), lambda t: (t, 0, 0)),       # cur1 per step
            pl.BlockSpec((N2, N1), lambda t: (0, 0)),             # pool1 operator
            pl.BlockSpec((9, N2, N2), lambda t: (0, 0, 0)),       # conv2 shifts
            pl.BlockSpec((9, C1, C2), lambda t: (0, 0, 0)),       # conv2 weights
            pl.BlockSpec((1, C2), lambda t: (0, 0)),              # conv2 bias
            pl.BlockSpec((n_pos, B, N2), lambda t: (0, 0, 0)),    # pool2 operator
            pl.BlockSpec((n_pos, C2, FC1P), lambda t: (0, 0, 0)), # fc1 weights
            pl.BlockSpec((1, FC1P), lambda t: (0, 0)),            # fc1 bias
            pl.BlockSpec((FC1P, OUTP), lambda t: (0, 0)),         # fc2 weights
            pl.BlockSpec((1, OUTP), lambda t: (0, 0)),            # fc2 bias
        ],
        out_specs=pl.BlockSpec((1, B, OUTP), lambda t: (t, 0, 0)),
        scratch_shapes=[
            pltpu.VMEM((N1, C1), jnp.float32),    # mem1
            pltpu.VMEM((N2, C2), jnp.float32),    # mem2
            pltpu.VMEM((B, FC1P), jnp.float32),   # mem3
            pltpu.VMEM((B, OUTP), jnp.float32),   # mem4
        ],
        compiler_params=pltpu.CompilerParams(
            dimension_semantics=("arbitrary",)),
    )(cur1_all, p1, s_taps, w2, b2, p2, wfc1, bfc1, wfc2, bfc2)

    # TODO(synk): PyTorch's early `break` (once every batch element has spiked)
    # makes the output length data-dependent; with static JAX shapes we run all
    # num_steps and return the full (T, B, n_out) stack.
    return spk_padded[..., :n_out]


# ----------------------------------------------------------------------------
if __name__ == "__main__":
    key = jax.random.PRNGKey(0)
    pkey, xkey = jax.random.split(key)

    T, B, C, H, W = 3, 2, 1, 16, 16                      # small shapes: input_size=16
    params = init_params(pkey, input_channels=C, output_channels=10, input_size=H)
    x = jax.random.normal(xkey, (T, B, C, H, W), jnp.float32)

    forward = jax.jit(early_ttfs_forward)
    spk_out = jax.block_until_ready(forward(params, x))

    assert spk_out.shape == (T, B, 10)
    assert spk_out.dtype == jnp.float32
    print("KERNEL_OK")
</pallas_src>

<mosaic_0001>
module attributes {stable_mosaic.version = 11 : i64} {
  func.func @_conv1_kernel(%arg0: memref<1536x9xf32, #tpu.memory_space<vmem>>, %arg1: memref<9x32xf32, #tpu.memory_space<vmem>>, %arg2: memref<1x32xf32, #tpu.memory_space<vmem>>, %arg3: memref<1536x32xf32, #tpu.memory_space<vmem>>) attributes {dimension_semantics = [], scalar_prefetch = 0 : i64, scratch_operands = 0 : i64, tpu.core_type = #tpu.core_type<tc>} {
    %c0 = arith.constant 0 : index
    %c0_0 = arith.constant 0 : index
    %0 = vector.load %arg0[%c0, %c0_0] : memref<1536x9xf32, #tpu.memory_space<vmem>>, vector<1536x9xf32>
    %c0_1 = arith.constant 0 : index
    %c0_2 = arith.constant 0 : index
    %1 = vector.load %arg1[%c0_1, %c0_2] : memref<9x32xf32, #tpu.memory_space<vmem>>, vector<9x32xf32>
    %cst = arith.constant dense<0.000000e+00> : vector<1536x32xf32>
    %2 = tpu.matmul %0, %1, %cst {dimension_numbers = #tpu.dot_dimension_numbers<[1], [0], [0], [1], [0, 0, 1, 1], [], []>} : vector<1536x9xf32>, vector<9x32xf32>, vector<1536x32xf32> -> vector<1536x32xf32>
    %c0_3 = arith.constant 0 : index
    %c0_4 = arith.constant 0 : index
    %3 = vector.load %arg2[%c0_3, %c0_4] : memref<1x32xf32, #tpu.memory_space<vmem>>, vector<1x32xf32>
    %4 = vector.broadcast %3 : vector<1x32xf32> to vector<1536x32xf32>
    %5 = arith.addf %2, %4 : vector<1536x32xf32>
    %c0_5 = arith.constant 0 : index
    %c0_6 = arith.constant 0 : index
    %6 = vector.load %arg3[%c0_5, %c0_6] : memref<1536x32xf32, #tpu.memory_space<vmem>>, vector<1536x32xf32>
    tpu.vector_store %arg3[%c0_5, %c0_6], %5 {strides = array<i32>} : memref<1536x32xf32, #tpu.memory_space<vmem>>, vector<1536x32xf32>,
    return
  }
}

module attributes {stable_mosaic.version = 11 : i64} {
  func.func @_fused_step_kernel(%arg0: i32, %arg1: memref<1x512x32xf32, #tpu.memory_space<vmem>>, %arg2: memref<128x512xbf16, #tpu.memory_space<vmem>>, %arg3: memref<9x128x128xbf16, #tpu.memory_space<vmem>>, %arg4: memref<9x32x64xbf16, #tpu.memory_space<vmem>>, %arg5: memref<1x64xf32, #tpu.memory_space<vmem>>, %arg6: memref<16x2x128xbf16, #tpu.memory_space<vmem>>, %arg7: memref<16x64x128xbf16, #tpu.memory_space<vmem>>, %arg8: memref<1x128xf32, #tpu.memory_space<vmem>>, %arg9: memref<128x128xbf16, #tpu.memory_space<vmem>>, %arg10: memref<1x128xf32, #tpu.memory_space<vmem>>, %arg11: memref<1x2x128xf32, #tpu.memory_space<vmem>>, %arg12: memref<512x32xf32, #tpu.memory_space<vmem>>, %arg13: memref<128x64xf32, #tpu.memory_space<vmem>>, %arg14: memref<2x128xf32, #tpu.memory_space<vmem>>, %arg15: memref<2x128xf32, #tpu.memory_space<vmem>>) attributes {dimension_semantics = [#tpu.dimension_semantics<arbitrary>], iteration_bounds = array<i64: 3>, scalar_prefetch = 0 : i64, scratch_operands = 4 : i64, tpu.core_type = #tpu.core_type<tc>, window_params = [{transform_indices = @transform_0, window_bounds = array<i64: 1, 512, 32>}, {pipeline_mode = #tpu.pipeline_mode<synchronous>, transform_indices = @transform_1, window_bounds = array<i64: 128, 512>}, {pipeline_mode = #tpu.pipeline_mode<synchronous>, transform_indices = @transform_2, window_bounds = array<i64: 9, 128, 128>}, {pipeline_mode = #tpu.pipeline_mode<synchronous>, transform_indices = @transform_3, window_bounds = array<i64: 9, 32, 64>}, {pipeline_mode = #tpu.pipeline_mode<synchronous>, transform_indices = @transform_4, window_bounds = array<i64: 1, 64>}, {pipeline_mode = #tpu.pipeline_mode<synchronous>, transform_indices = @transform_5, window_bounds = array<i64: 16, 2, 128>}, {pipeline_mode = #tpu.pipeline_mode<synchronous>, transform_indices = @transform_6, window_bounds = array<i64: 16, 64, 128>}, {pipeline_mode = #tpu.pipeline_mode<synchronous>, transform_indices = @transform_7, window_bounds = array<i64: 1, 128>}, {pipeline_mode = #tpu.pipeline_mode<synchronous>, transform_indices = @transform_8, window_bounds = array<i64: 128, 128>}, {pipeline_mode = #tpu.pipeline_mode<synchronous>, transform_indices = @transform_9, window_bounds = array<i64: 1, 128>}, {transform_indices = @transform_10, window_bounds = array<i64: 1, 2, 128>}]} {
    %c0_i32 = arith.constant 0 : i32
    %0 = arith.cmpi eq, %arg0, %c0_i32 : i32
    %1 = arith.extui %0 : i1 to i32
    %c0_i32_0 = arith.constant 0 : i32
    %2 = arith.cmpi ne, %1, %c0_i32_0 : i32
    scf.if %2 {
      %cst_253 = arith.constant 0.000000e+00 : f32
      %359 = vector.broadcast %cst_253 : f32 to vector<512x32xf32>
      %c0_254 = arith.constant 0 : index
      %c0_255 = arith.constant 0 : index
      %360 = vector.load %arg12[%c0_254, %c0_255] : memref<512x32xf32, #tpu.memory_space<vmem>>, vector<512x32xf32>
      tpu.vector_store %arg12[%c0_254, %c0_255], %359 {strides = array<i32>} : memref<512x32xf32, #tpu.memory_space<vmem>>, vector<512x32xf32>,
      %cst_256 = arith.constant 0.000000e+00 : f32
      %361 = vector.broadcast %cst_256 : f32 to vector<128x64xf32>
      %c0_257 = arith.constant 0 : index
      %c0_258 = arith.constant 0 : index
      %362 = vector.load %arg13[%c0_257, %c0_258] : memref<128x64xf32, #tpu.memory_space<vmem>>, vector<128x64xf32>
      tpu.vector_store %arg13[%c0_257, %c0_258], %361 {strides = array<i32>} : memref<128x64xf32, #tpu.memory_space<vmem>>, vector<128x64xf32>,
      %cst_259 = arith.constant 0.000000e+00 : f32
      %363 = vector.broadcast %cst_259 : f32 to vector<2x128xf32>
      %c0_260 = arith.constant 0 : index
      %c0_261 = arith.constant 0 : index
      %364 = vector.load %arg14[%c0_260, %c0_261] : memref<2x128xf32, #tpu.memory_space<vmem>>, vector<2x128xf32>
      tpu.vector_store %arg14[%c0_260, %c0_261], %363 {strides = array<i32>} : memref<2x128xf32, #tpu.memory_space<vmem>>, vector<2x128xf32>,
      %cst_262 = arith.constant 0.000000e+00 : f32
      %365 = vector.broadcast %cst_262 : f32 to vector<2x128xf32>
      %c0_263 = arith.constant 0 : index
      %c0_264 = arith.constant 0 : index
      %366 = vector.load %arg15[%c0_263, %c0_264] : memref<2x128xf32, #tpu.memory_space<vmem>>, vector<2x128xf32>
      tpu.vector_store %arg15[%c0_263, %c0_264], %365 {strides = array<i32>} : memref<2x128xf32, #tpu.memory_space<vmem>>, vector<2x128xf32>,
    } else {
    }
    %c0 = arith.constant 0 : index
    %c0_1 = arith.constant 0 : index
    %c0_2 = arith.constant 0 : index
    %3 = vector.load %arg1[%c0, %c0_1, %c0_2] : memref<1x512x32xf32, #tpu.memory_space<vmem>>, vector<1x512x32xf32>
    %4 = vector.shape_cast %3 : vector<1x512x32xf32> to vector<512x32xf32>
    %c0_3 = arith.constant 0 : index
    %c0_4 = arith.constant 0 : index
    %5 = vector.load %arg12[%c0_3, %c0_4] : memref<512x32xf32, #tpu.memory_space<vmem>>, vector<512x32xf32>
    %cst = arith.constant 1.000000e+00 : f32
    %6 = vector.broadcast %cst : f32 to vector<512x32xf32>
    %7 = arith.cmpf ogt, %5, %6 : vector<512x32xf32>
    %8 = arith.extui %7 : vector<512x32xi1> to vector<512x32xi32>
    %9 = arith.sitofp %8 : vector<512x32xi32> to vector<512x32xf32>
    %cst_5 = arith.constant 0.949999988 : f32
    %10 = vector.broadcast %cst_5 : f32 to vector<512x32xf32>
    %11 = arith.mulf %10, %5 : vector<512x32xf32>
    %12 = arith.addf %11, %4 : vector<512x32xf32>
    %cst_6 = arith.constant 1.000000e+00 : f32
    %13 = vector.broadcast %cst_6 : f32 to vector<512x32xf32>
    %14 = arith.mulf %9, %13 : vector<512x32xf32>
    %15 = arith.subf %12, %14 : vector<512x32xf32>
    %c0_7 = arith.constant 0 : index
    %c0_8 = arith.constant 0 : index
    %16 = vector.load %arg12[%c0_7, %c0_8] : memref<512x32xf32, #tpu.memory_space<vmem>>, vector<512x32xf32>
    tpu.vector_store %arg12[%c0_7, %c0_8], %15 {strides = array<i32>} : memref<512x32xf32, #tpu.memory_space<vmem>>, vector<512x32xf32>,
    %cst_9 = arith.constant 1.000000e+00 : f32
    %17 = vector.broadcast %cst_9 : f32 to vector<512x32xf32>
    %18 = arith.cmpf ogt, %15, %17 : vector<512x32xf32>
    %19 = arith.extui %18 : vector<512x32xi1> to vector<512x32xi32>
    %20 = arith.sitofp %19 : vector<512x32xi32> to vector<512x32xf32>
    %21 = arith.truncf %20 : vector<512x32xf32> to vector<512x32xbf16>
    %c0_10 = arith.constant 0 : index
    %c0_11 = arith.constant 0 : index
    %22 = vector.load %arg2[%c0_10, %c0_11] : memref<128x512xbf16, #tpu.memory_space<vmem>>, vector<128x512xbf16>
    %cst_12 = arith.constant dense<0.000000e+00> : vector<128x32xf32>
    %23 = tpu.matmul %22, %21, %cst_12 {dimension_numbers = #tpu.dot_dimension_numbers<[1], [0], [0], [1], [0, 0, 1, 1], [], []>} : vector<128x512xbf16>, vector<512x32xbf16>, vector<128x32xf32> -> vector<128x32xf32>
    %cst_13 = arith.constant 5.000000e-01 : f32
    %24 = vector.broadcast %cst_13 : f32 to vector<128x32xf32>
    %25 = arith.cmpf ogt, %23, %24 : vector<128x32xf32>
    %26 = arith.extui %25 : vector<128x32xi1> to vector<128x32xi32>
    %27 = arith.sitofp %26 : vector<128x32xi32> to vector<128x32xf32>
    %28 = arith.truncf %27 : vector<128x32xf32> to vector<128x32xbf16>
    %cst_14 = arith.constant 0.000000e+00 : f32
    %29 = vector.broadcast %cst_14 : f32 to vector<128x64xf32>
    %c0_15 = arith.constant 0 : index
    %c0_16 = arith.constant 0 : index
    %c0_17 = arith.constant 0 : index
    %30 = vector.load %arg3[%c0_15, %c0_16, %c0_17] : memref<9x128x128xbf16, #tpu.memory_space<vmem>>, vector<1x128x128xbf16>
    %31 = vector.shape_cast %30 : vector<1x128x128xbf16> to vector<128x128xbf16>
    %cst_18 = arith.constant dense<0.000000e+00> : vector<128x32xf32>
    %32 = tpu.matmul %31, %28, %cst_18 {dimension_numbers = #tpu.dot_dimension_numbers<[1], [0], [0], [1], [0, 0, 1, 1], [], []>} : vector<128x128xbf16>, vector<128x32xbf16>, vector<128x32xf32> -> vector<128x32xf32>
    %33 = arith.truncf %32 : vector<128x32xf32> to vector<128x32xbf16>
    %c0_19 = arith.constant 0 : index
    %c0_20 = arith.constant 0 : index
    %c0_21 = arith.constant 0 : index
    %34 = vector.load %arg4[%c0_19, %c0_20, %c0_21] : memref<9x32x64xbf16, #tpu.memory_space<vmem>>, vector<1x32x64xbf16>
    %35 = vector.shape_cast %34 : vector<1x32x64xbf16> to vector<32x64xbf16>
    %cst_22 = arith.constant dense<0.000000e+00> : vector<128x64xf32>
    %36 = tpu.matmul %33, %35, %cst_22 {dimension_numbers = #tpu.dot_dimension_numbers<[1], [0], [0], [1], [0, 0, 1, 1], [], []>} : vector<128x32xbf16>, vector<32x64xbf16>, vector<128x64xf32> -> vector<128x64xf32>
    %37 = arith.addf %29, %36 : vector<128x64xf32>
    %c1 = arith.constant 1 : index
    %c0_23 = arith.constant 0 : index
    %c0_24 = arith.constant 0 : index
    %38 = vector.load %arg3[%c1, %c0_23, %c0_24] : memref<9x128x128xbf16, #tpu.memory_space<vmem>>, vector<1x128x128xbf16>
    %39 = vector.shape_cast %38 : vector<1x128x128xbf16> to vector<128x128xbf16>
    %cst_25 = arith.constant dense<0.000000e+00> : vector<128x32xf32>
    %40 = tpu.matmul %39, %28, %cst_25 {dimension_numbers = #tpu.dot_dimension_numbers<[1], [0], [0], [1], [0, 0, 1, 1], [], []>} : vector<128x128xbf16>, vector<128x32xbf16>, vector<128x32xf32> -> vector<128x32xf32>
    %41 = arith.truncf %40 : vector<128x32xf32> to vector<128x32xbf16>
    %c1_26 = arith.constant 1 : index
    %c0_27 = arith.constant 0 : index
    %c0_28 = arith.constant 0 : index
    %42 = vector.load %arg4[%c1_26, %c0_27, %c0_28] : memref<9x32x64xbf16, #tpu.memory_space<vmem>>, vector<1x32x64xbf16>
    %43 = vector.shape_cast %42 : vector<1x32x64xbf16> to vector<32x64xbf16>
    %cst_29 = arith.constant dense<0.000000e+00> : vector<128x64xf32>
    %44 = tpu.matmul %41, %43, %cst_29 {dimension_numbers = #tpu.dot_dimension_numbers<[1], [0], [0], [1], [0, 0, 1, 1], [], []>} : vector<128x32xbf16>, vector<32x64xbf16>, vector<128x64xf32> -> vector<128x64xf32>
    %45 = arith.addf %37, %44 : vector<128x64xf32>
    %c2 = arith.constant 2 : index
    %c0_30 = arith.constant 0 : index
    %c0_31 = arith.constant 0 : index
    %46 = vector.load %arg3[%c2, %c0_30, %c0_31] : memref<9x128x128xbf16, #tpu.memory_space<vmem>>, vector<1x128x128xbf16>
    %47 = vector.shape_cast %46 : vector<1x128x128xbf16> to vector<128x128xbf16>
    %cst_32 = arith.constant dense<0.000000e+00> : vector<128x32xf32>
    %48 = tpu.matmul %47, %28, %cst_32 {dimension_numbers = #tpu.dot_dimension_numbers<[1], [0], [0], [1], [0, 0, 1, 1], [], []>} : vector<128x128xbf16>, vector<128x32xbf16>, vector<128x32xf32> -> vector<128x32xf32>
    %49 = arith.truncf %48 : vector<128x32xf32> to vector<128x32xbf16>
    %c2_33 = arith.constant 2 : index
    %c0_34 = arith.constant 0 : index
    %c0_35 = arith.constant 0 : index
    %50 = vector.load %arg4[%c2_33, %c0_34, %c0_35] : memref<9x32x64xbf16, #tpu.memory_space<vmem>>, vector<1x32x64xbf16>
    %51 = vector.shape_cast %50 : vector<1x32x64xbf16> to vector<32x64xbf16>
    %cst_36 = arith.constant dense<0.000000e+00> : vector<128x64xf32>
    %52 = tpu.matmul %49, %51, %cst_36 {dimension_numbers = #tpu.dot_dimension_numbers<[1], [0], [0], [1], [0, 0, 1, 1], [], []>} : vector<128x32xbf16>, vector<32x64xbf16>, vector<128x64xf32> -> vector<128x64xf32>
    %53 = arith.addf %45, %52 : vector<128x64xf32>
    %c3 = arith.constant 3 : index
    %c0_37 = arith.constant 0 : index
    %c0_38 = arith.constant 0 : index
    %54 = vector.load %arg3[%c3, %c0_37, %c0_38] : memref<9x128x128xbf16, #tpu.memory_space<vmem>>, vector<1x128x128xbf16>
    %55 = vector.shape_cast %54 : vector<1x128x128xbf16> to vector<128x128xbf16>
    %cst_39 = arith.constant dense<0.000000e+00> : vector<128x32xf32>
    %56 = tpu.matmul %55, %28, %cst_39 {dimension_numbers = #tpu.dot_dimension_numbers<[1], [0], [0], [1], [0, 0, 1, 1], [], []>} : vector<128x128xbf16>, vector<128x32xbf16>, vector<128x32xf32> -> vector<128x32xf32>
    %57 = arith.truncf %56 : vector<128x32xf32> to vector<128x32xbf16>
    %c3_40 = arith.constant 3 : index
    %c0_41 = arith.constant 0 : index
    %c0_42 = arith.constant 0 : index
    %58 = vector.load %arg4[%c3_40, %c0_41, %c0_42] : memref<9x32x64xbf16, #tpu.memory_space<vmem>>, vector<1x32x64xbf16>
    %59 = vector.shape_cast %58 : vector<1x32x64xbf16> to vector<32x64xbf16>
    %cst_43 = arith.constant dense<0.000000e+00> : vector<128x64xf32>
    %60 = tpu.matmul %57, %59, %cst_43 {dimension_numbers = #tpu.dot_dimension_numbers<[1], [0], [0], [1], [0, 0, 1, 1], [], []>} : vector<128x32xbf16>, vector<32x64xbf16>, vector<128x64xf32> -> vector<128x64xf32>
    %61 = arith.addf %53, %60 : vector<128x64xf32>
    %c4 = arith.constant 4 : index
    %c0_44 = arith.constant 0 : index
    %c0_45 = arith.constant 0 : index
    %62 = vector.load %arg3[%c4, %c0_44, %c0_45] : memref<9x128x128xbf16, #tpu.memory_space<vmem>>, vector<1x128x128xbf16>
    %63 = vector.shape_cast %62 : vector<1x128x128xbf16> to vector<128x128xbf16>
    %cst_46 = arith.constant dense<0.000000e+00> : vector<128x32xf32>
    %64 = tpu.matmul %63, %28, %cst_46 {dimension_numbers = #tpu.dot_dimension_numbers<[1], [0], [0], [1], [0, 0, 1, 1], [], []>} : vector<128x128xbf16>, vector<128x32xbf16>, vector<128x32xf32> -> vector<128x32xf32>
    %65 = arith.truncf %64 : vector<128x32xf32> to vector<128x32xbf16>
    %c4_47 = arith.constant 4 : index
    %c0_48 = arith.constant 0 : index
    %c0_49 = arith.constant 0 : index
    %66 = vector.load %arg4[%c4_47, %c0_48, %c0_49] : memref<9x32x64xbf16, #tpu.memory_space<vmem>>, vector<1x32x64xbf16>
    %67 = vector.shape_cast %66 : vector<1x32x64xbf16> to vector<32x64xbf16>
    %cst_50 = arith.constant dense<0.000000e+00> : vector<128x64xf32>
    %68 = tpu.matmul %65, %67, %cst_50 {dimension_numbers = #tpu.dot_dimension_numbers<[1], [0], [0], [1], [0, 0, 1, 1], [], []>} : vector<128x32xbf16>, vector<32x64xbf16>, vector<128x64xf32> -> vector<128x64xf32>
    %69 = arith.addf %61, %68 : vector<128x64xf32>
    %c5 = arith.constant 5 : index
    %c0_51 = arith.constant 0 : index
    %c0_52 = arith.constant 0 : index
    %70 = vector.load %arg3[%c5, %c0_51, %c0_52] : memref<9x128x128xbf16, #tpu.memory_space<vmem>>, vector<1x128x128xbf16>
    %71 = vector.shape_cast %70 : vector<1x128x128xbf16> to vector<128x128xbf16>
    %cst_53 = arith.constant dense<0.000000e+00> : vector<128x32xf32>
    %72 = tpu.matmul %71, %28, %cst_53 {dimension_numbers = #tpu.dot_dimension_numbers<[1], [0], [0], [1], [0, 0, 1, 1], [], []>} : vector<128x128xbf16>, vector<128x32xbf16>, vector<128x32xf32> -> vector<128x32xf32>
    %73 = arith.truncf %72 : vector<128x32xf32> to vector<128x32xbf16>
    %c5_54 = arith.constant 5 : index
    %c0_55 = arith.constant 0 : index
    %c0_56 = arith.constant 0 : index
    %74 = vector.load %arg4[%c5_54, %c0_55, %c0_56] : memref<9x32x64xbf16, #tpu.memory_space<vmem>>, vector<1x32x64xbf16>
    %75 = vector.shape_cast %74 : vector<1x32x64xbf16> to vector<32x64xbf16>
    %cst_57 = arith.constant dense<0.000000e+00> : vector<128x64xf32>
    %76 = tpu.matmul %73, %75, %cst_57 {dimension_numbers = #tpu.dot_dimension_numbers<[1], [0], [0], [1], [0, 0, 1, 1], [], []>} : vector<128x32xbf16>, vector<32x64xbf16>, vector<128x64xf32> -> vector<128x64xf32>
    %77 = arith.addf %69, %76 : vector<128x64xf32>
    %c6 = arith.constant 6 : index
    %c0_58 = arith.constant 0 : index
    %c0_59 = arith.constant 0 : index
    %78 = vector.load %arg3[%c6, %c0_58, %c0_59] : memref<9x128x128xbf16, #tpu.memory_space<vmem>>, vector<1x128x128xbf16>
    %79 = vector.shape_cast %78 : vector<1x128x128xbf16> to vector<128x128xbf16>
    %cst_60 = arith.constant dense<0.000000e+00> : vector<128x32xf32>
    %80 = tpu.matmul %79, %28, %cst_60 {dimension_numbers = #tpu.dot_dimension_numbers<[1], [0], [0], [1], [0, 0, 1, 1], [], []>} : vector<128x128xbf16>, vector<128x32xbf16>, vector<128x32xf32> -> vector<128x32xf32>
    %81 = arith.truncf %80 : vector<128x32xf32> to vector<128x32xbf16>
    %c6_61 = arith.constant 6 : index
    %c0_62 = arith.constant 0 : index
    %c0_63 = arith.constant 0 : index
    %82 = vector.load %arg4[%c6_61, %c0_62, %c0_63] : memref<9x32x64xbf16, #tpu.memory_space<vmem>>, vector<1x32x64xbf16>
    %83 = vector.shape_cast %82 : vector<1x32x64xbf16> to vector<32x64xbf16>
    %cst_64 = arith.constant dense<0.000000e+00> : vector<128x64xf32>
    %84 = tpu.matmul %81, %83, %cst_64 {dimension_numbers = #tpu.dot_dimension_numbers<[1], [0], [0], [1], [0, 0, 1, 1], [], []>} : vector<128x32xbf16>, vector<32x64xbf16>, vector<128x64xf32> -> vector<128x64xf32>
    %85 = arith.addf %77, %84 : vector<128x64xf32>
    %c7 = arith.constant 7 : index
    %c0_65 = arith.constant 0 : index
    %c0_66 = arith.constant 0 : index
    %86 = vector.load %arg3[%c7, %c0_65, %c0_66] : memref<9x128x128xbf16, #tpu.memory_space<vmem>>, vector<1x128x128xbf16>
    %87 = vector.shape_cast %86 : vector<1x128x128xbf16> to vector<128x128xbf16>
    %cst_67 = arith.constant dense<0.000000e+00> : vector<128x32xf32>
    %88 = tpu.matmul %87, %28, %cst_67 {dimension_numbers = #tpu.dot_dimension_numbers<[1], [0], [0], [1], [0, 0, 1, 1], [], []>} : vector<128x128xbf16>, vector<128x32xbf16>, vector<128x32xf32> -> vector<128x32xf32>
    %89 = arith.truncf %88 : vector<128x32xf32> to vector<128x32xbf16>
    %c7_68 = arith.constant 7 : index
    %c0_69 = arith.constant 0 : index
    %c0_70 = arith.constant 0 : index
    %90 = vector.load %arg4[%c7_68, %c0_69, %c0_70] : memref<9x32x64xbf16, #tpu.memory_space<vmem>>, vector<1x32x64xbf16>
    %91 = vector.shape_cast %90 : vector<1x32x64xbf16> to vector<32x64xbf16>
    %cst_71 = arith.constant dense<0.000000e+00> : vector<128x64xf32>
    %92 = tpu.matmul %89, %91, %cst_71 {dimension_numbers = #tpu.dot_dimension_numbers<[1], [0], [0], [1], [0, 0, 1, 1], [], []>} : vector<128x32xbf16>, vector<32x64xbf16>, vector<128x64xf32> -> vector<128x64xf32>
    %93 = arith.addf %85, %92 : vector<128x64xf32>
    %c8 = arith.constant 8 : index
    %c0_72 = arith.constant 0 : index
    %c0_73 = arith.constant 0 : index
    %94 = vector.load %arg3[%c8, %c0_72, %c0_73] : memref<9x128x128xbf16, #tpu.memory_space<vmem>>, vector<1x128x128xbf16>
    %95 = vector.shape_cast %94 : vector<1x128x128xbf16> to vector<128x128xbf16>
    %cst_74 = arith.constant dense<0.000000e+00> : vector<128x32xf32>
    %96 = tpu.matmul %95, %28, %cst_74 {dimension_numbers = #tpu.dot_dimension_numbers<[1], [0], [0], [1], [0, 0, 1, 1], [], []>} : vector<128x128xbf16>, vector<128x32xbf16>, vector<128x32xf32> -> vector<128x32xf32>
    %97 = arith.truncf %96 : vector<128x32xf32> to vector<128x32xbf16>
    %c8_75 = arith.constant 8 : index
    %c0_76 = arith.constant 0 : index
    %c0_77 = arith.constant 0 : index
    %98 = vector.load %arg4[%c8_75, %c0_76, %c0_77] : memref<9x32x64xbf16, #tpu.memory_space<vmem>>, vector<1x32x64xbf16>
    %99 = vector.shape_cast %98 : vector<1x32x64xbf16> to vector<32x64xbf16>
    %cst_78 = arith.constant dense<0.000000e+00> : vector<128x64xf32>
    %100 = tpu.matmul %97, %99, %cst_78 {dimension_numbers = #tpu.dot_dimension_numbers<[1], [0], [0], [1], [0, 0, 1, 1], [], []>} : vector<128x32xbf16>, vector<32x64xbf16>, vector<128x64xf32> -> vector<128x64xf32>
    %101 = arith.addf %93, %100 : vector<128x64xf32>
    %c0_79 = arith.constant 0 : index
    %c0_80 = arith.constant 0 : index
    %102 = vector.load %arg5[%c0_79, %c0_80] : memref<1x64xf32, #tpu.memory_space<vmem>>, vector<1x64xf32>
    %103 = vector.broadcast %102 : vector<1x64xf32> to vector<128x64xf32>
    %104 = arith.addf %101, %103 : vector<128x64xf32>
    %c0_81 = arith.constant 0 : index
    %c0_82 = arith.constant 0 : index
    %105 = vector.load %arg13[%c0_81, %c0_82] : memref<128x64xf32, #tpu.memory_space<vmem>>, vector<128x64xf32>
    %cst_83 = arith.constant 1.000000e+00 : f32
    %106 = vector.broadcast %cst_83 : f32 to vector<128x64xf32>
    %107 = arith.cmpf ogt, %105, %106 : vector<128x64xf32>
    %108 = arith.extui %107 : vector<128x64xi1> to vector<128x64xi32>
    %109 = arith.sitofp %108 : vector<128x64xi32> to vector<128x64xf32>
    %cst_84 = arith.constant 0.949999988 : f32
    %110 = vector.broadcast %cst_84 : f32 to vector<128x64xf32>
    %111 = arith.mulf %110, %105 : vector<128x64xf32>
    %112 = arith.addf %111, %104 : vector<128x64xf32>
    %cst_85 = arith.constant 1.000000e+00 : f32
    %113 = vector.broadcast %cst_85 : f32 to vector<128x64xf32>
    %114 = arith.mulf %109, %113 : vector<128x64xf32>
    %115 = arith.subf %112, %114 : vector<128x64xf32>
    %c0_86 = arith.constant 0 : index
    %c0_87 = arith.constant 0 : index
    %116 = vector.load %arg13[%c0_86, %c0_87] : memref<128x64xf32, #tpu.memory_space<vmem>>, vector<128x64xf32>
    tpu.vector_store %arg13[%c0_86, %c0_87], %115 {strides = array<i32>} : memref<128x64xf32, #tpu.memory_space<vmem>>, vector<128x64xf32>,
    %cst_88 = arith.constant 1.000000e+00 : f32
    %117 = vector.broadcast %cst_88 : f32 to vector<128x64xf32>
    %118 = arith.cmpf ogt, %115, %117 : vector<128x64xf32>
    %119 = arith.extui %118 : vector<128x64xi1> to vector<128x64xi32>
    %120 = arith.sitofp %119 : vector<128x64xi32> to vector<128x64xf32>
    %121 = arith.truncf %120 : vector<128x64xf32> to vector<128x64xbf16>
    %cst_89 = arith.constant 0.000000e+00 : f32
    %122 = vector.broadcast %cst_89 : f32 to vector<2x128xf32>
    %c0_90 = arith.constant 0 : index
    %c0_91 = arith.constant 0 : index
    %c0_92 = arith.constant 0 : index
    %123 = vector.load %arg6[%c0_90, %c0_91, %c0_92] : memref<16x2x128xbf16, #tpu.memory_space<vmem>>, vector<1x2x128xbf16>
    %124 = vector.shape_cast %123 : vector<1x2x128xbf16> to vector<2x128xbf16>
    %cst_93 = arith.constant dense<0.000000e+00> : vector<2x64xf32>
    %125 = tpu.matmul %124, %121, %cst_93 {dimension_numbers = #tpu.dot_dimension_numbers<[1], [0], [0], [1], [0, 0, 1, 1], [], []>} : vector<2x128xbf16>, vector<128x64xbf16>, vector<2x64xf32> -> vector<2x64xf32>
    %cst_94 = arith.constant 5.000000e-01 : f32
    %126 = vector.broadcast %cst_94 : f32 to vector<2x64xf32>
    %127 = arith.cmpf ogt, %125, %126 : vector<2x64xf32>
    %128 = arith.extui %127 : vector<2x64xi1> to vector<2x64xi32>
    %129 = arith.sitofp %128 : vector<2x64xi32> to vector<2x64xf32>
    %130 = arith.truncf %129 : vector<2x64xf32> to vector<2x64xbf16>
    %c0_95 = arith.constant 0 : index
    %c0_96 = arith.constant 0 : index
    %c0_97 = arith.constant 0 : index
    %131 = vector.load %arg7[%c0_95, %c0_96, %c0_97] : memref<16x64x128xbf16, #tpu.memory_space<vmem>>, vector<1x64x128xbf16>
    %132 = vector.shape_cast %131 : vector<1x64x128xbf16> to vector<64x128xbf16>
    %cst_98 = arith.constant dense<0.000000e+00> : vector<2x128xf32>
    %133 = tpu.matmul %130, %132, %cst_98 {dimension_numbers = #tpu.dot_dimension_numbers<[1], [0], [0], [1], [0, 0, 1, 1], [], []>} : vector<2x64xbf16>, vector<64x128xbf16>, vector<2x128xf32> -> vector<2x128xf32>
    %134 = arith.addf %122, %133 : vector<2x128xf32>
    %c1_99 = arith.constant 1 : index
    %c0_100 = arith.constant 0 : index
    %c0_101 = arith.constant 0 : index
    %135 = vector.load %arg6[%c1_99, %c0_100, %c0_101] : memref<16x2x128xbf16, #tpu.memory_space<vmem>>, vector<1x2x128xbf16>
    %136 = vector.shape_cast %135 : vector<1x2x128xbf16> to vector<2x128xbf16>
    %cst_102 = arith.constant dense<0.000000e+00> : vector<2x64xf32>
    %137 = tpu.matmul %136, %121, %cst_102 {dimension_numbers = #tpu.dot_dimension_numbers<[1], [0], [0], [1], [0, 0, 1, 1], [], []>} : vector<2x128xbf16>, vector<128x64xbf16>, vector<2x64xf32> -> vector<2x64xf32>
    %cst_103 = arith.constant 5.000000e-01 : f32
    %138 = vector.broadcast %cst_103 : f32 to vector<2x64xf32>
    %139 = arith.cmpf ogt, %137, %138 : vector<2x64xf32>
    %140 = arith.extui %139 : vector<2x64xi1> to vector<2x64xi32>
    %141 = arith.sitofp %140 : vector<2x64xi32> to vector<2x64xf32>
    %142 = arith.truncf %141 : vector<2x64xf32> to vector<2x64xbf16>
    %c1_104 = arith.constant 1 : index
    %c0_105 = arith.constant 0 : index
    %c0_106 = arith.constant 0 : index
    %143 = vector.load %arg7[%c1_104, %c0_105, %c0_106] : memref<16x64x128xbf16, #tpu.memory_space<vmem>>, vector<1x64x128xbf16>
    %144 = vector.shape_cast %143 : vector<1x64x128xbf16> to vector<64x128xbf16>
    %cst_107 = arith.constant dense<0.000000e+00> : vector<2x128xf32>
    %145 = tpu.matmul %142, %144, %cst_107 {dimension_numbers = #tpu.dot_dimension_numbers<[1], [0], [0], [1], [0, 0, 1, 1], [], []>} : vector<2x64xbf16>, vector<64x128xbf16>, vector<2x128xf32> -> vector<2x128xf32>
    %146 = arith.addf %134, %145 : vector<2x128xf32>
    %c2_108 = arith.constant 2 : index
    %c0_109 = arith.constant 0 : index
    %c0_110 = arith.constant 0 : index
    %147 = vector.load %arg6[%c2_108, %c0_109, %c0_110] : memref<16x2x128xbf16, #tpu.memory_space<vmem>>, vector<1x2x128xbf16>
    %148 = vector.shape_cast %147 : vector<1x2x128xbf16> to vector<2x128xbf16>
    %cst_111 = arith.constant dense<0.000000e+00> : vector<2x64xf32>
    %149 = tpu.matmul %148, %121, %cst_111 {dimension_numbers = #tpu.dot_dimension_numbers<[1], [0], [0], [1], [0, 0, 1, 1], [], []>} : vector<2x128xbf16>, vector<128x64xbf16>, vector<2x64xf32> -> vector<2x64xf32>
    %cst_112 = arith.constant 5.000000e-01 : f32
    %150 = vector.broadcast %cst_112 : f32 to vector<2x64xf32>
    %151 = arith.cmpf ogt, %149, %150 : vector<2x64xf32>
    %152 = arith.extui %151 : vector<2x64xi1> to vector<2x64xi32>
    %153 = arith.sitofp %152 : vector<2x64xi32> to vector<2x64xf32>
    %154 = arith.truncf %153 : vector<2x64xf32> to vector<2x64xbf16>
    %c2_113 = arith.constant 2 : index
    %c0_114 = arith.constant 0 : index
    %c0_115 = arith.constant 0 : index
    %155 = vector.load %arg7[%c2_113, %c0_114, %c0_115] : memref<16x64x128xbf16, #tpu.memory_space<vmem>>, vector<1x64x128xbf16>
    %156 = vector.shape_cast %155 : vector<1x64x128xbf16> to vector<64x128xbf16>
    %cst_116 = arith.constant dense<0.000000e+00> : vector<2x128xf32>
    %157 = tpu.matmul %154, %156, %cst_116 {dimension_numbers = #tpu.dot_dimension_numbers<[1], [0], [0], [1], [0, 0, 1, 1], [], []>} : vector<2x64xbf16>, vector<64x128xbf16>, vector<2x128xf32> -> vector<2x128xf32>
    %158 = arith.addf %146, %157 : vector<2x128xf32>
    %c3_117 = arith.constant 3 : index
    %c0_118 = arith.constant 0 : index
    %c0_119 = arith.constant 0 : index
    %159 = vector.load %arg6[%c3_117, %c0_118, %c0_119] : memref<16x2x128xbf16, #tpu.memory_space<vmem>>, vector<1x2x128xbf16>
    %160 = vector.shape_cast %159 : vector<1x2x128xbf16> to vector<2x128xbf16>
    %cst_120 = arith.constant dense<0.000000e+00> : vector<2x64xf32>
    %161 = tpu.matmul %160, %121, %cst_120 {dimension_numbers = #tpu.dot_dimension_numbers<[1], [0], [0], [1], [0, 0, 1, 1], [], []>} : vector<2x128xbf16>, vector<128x64xbf16>, vector<2x64xf32> -> vector<2x64xf32>
    %cst_121 = arith.constant 5.000000e-01 : f32
    %162 = vector.broadcast %cst_121 : f32 to vector<2x64xf32>
    %163 = arith.cmpf ogt, %161, %162 : vector<2x64xf32>
    %164 = arith.extui %163 : vector<2x64xi1> to vector<2x64xi32>
    %165 = arith.sitofp %164 : vector<2x64xi32> to vector<2x64xf32>
    %166 = arith.truncf %165 : vector<2x64xf32> to vector<2x64xbf16>
    %c3_122 = arith.constant 3 : index
    %c0_123 = arith.constant 0 : index
    %c0_124 = arith.constant 0 : index
    %167 = vector.load %arg7[%c3_122, %c0_123, %c0_124] : memref<16x64x128xbf16, #tpu.memory_space<vmem>>, vector<1x64x128xbf16>
    %168 = vector.shape_cast %167 : vector<1x64x128xbf16> to vector<64x128xbf16>
    %cst_125 = arith.constant dense<0.000000e+00> : vector<2x128xf32>
    %169 = tpu.matmul %166, %168, %cst_125 {dimension_numbers = #tpu.dot_dimension_numbers<[1], [0], [0], [1], [0, 0, 1, 1], [], []>} : vector<2x64xbf16>, vector<64x128xbf16>, vector<2x128xf32> -> vector<2x128xf32>
    %170 = arith.addf %158, %169 : vector<2x128xf32>
    %c4_126 = arith.constant 4 : index
    %c0_127 = arith.constant 0 : index
    %c0_128 = arith.constant 0 : index
    %171 = vector.load %arg6[%c4_126, %c0_127, %c0_128] : memref<16x2x128xbf16, #tpu.memory_space<vmem>>, vector<1x2x128xbf16>
    %172 = vector.shape_cast %171 : vector<1x2x128xbf16> to vector<2x128xbf16>
    %cst_129 = arith.constant dense<0.000000e+00> : vector<2x64xf32>
    %173 = tpu.matmul %172, %121, %cst_129 {dimension_numbers = #tpu.dot_dimension_numbers<[1], [0], [0], [1], [0, 0, 1, 1], [], []>} : vector<2x128xbf16>, vector<128x64xbf16>, vector<2x64xf32> -> vector<2x64xf32>
    %cst_130 = arith.constant 5.000000e-01 : f32
    %174 = vector.broadcast %cst_130 : f32 to vector<2x64xf32>
    %175 = arith.cmpf ogt, %173, %174 : vector<2x64xf32>
    %176 = arith.extui %175 : vector<2x64xi1> to vector<2x64xi32>
    %177 = arith.sitofp %176 : vector<2x64xi32> to vector<2x64xf32>
    %178 = arith.truncf %177 : vector<2x64xf32> to vector<2x64xbf16>
    %c4_131 = arith.constant 4 : index
    %c0_132 = arith.constant 0 : index
    %c0_133 = arith.constant 0 : index
    %179 = vector.load %arg7[%c4_131, %c0_132, %c0_133] : memref<16x64x128xbf16, #tpu.memory_space<vmem>>, vector<1x64x128xbf16>
    %180 = vector.shape_cast %179 : vector<1x64x128xbf16> to vector<64x128xbf16>
    %cst_134 = arith.constant dense<0.000000e+00> : vector<2x128xf32>
    %181 = tpu.matmul %178, %180, %cst_134 {dimension_numbers = #tpu.dot_dimension_numbers<[1], [0], [0], [1], [0, 0, 1, 1], [], []>} : vector<2x64xbf16>, vector<64x128xbf16>, vector<2x128xf32> -> vector<2x128xf32>
    %182 = arith.addf %170, %181 : vector<2x128xf32>
    %c5_135 = arith.constant 5 : index
    %c0_136 = arith.constant 0 : index
    %c0_137 = arith.constant 0 : index
    %183 = vector.load %arg6[%c5_135, %c0_136, %c0_137] : memref<16x2x128xbf16, #tpu.memory_space<vmem>>, vector<1x2x128xbf16>
    %184 = vector.shape_cast %183 : vector<1x2x128xbf16> to vector<2x128xbf16>
    %cst_138 = arith.constant dense<0.000000e+00> : vector<2x64xf32>
    %185 = tpu.matmul %184, %121, %cst_138 {dimension_numbers = #tpu.dot_dimension_numbers<[1], [0], [0], [1], [0, 0, 1, 1], [], []>} : vector<2x128xbf16>, vector<128x64xbf16>, vector<2x64xf32> -> vector<2x64xf32>
    %cst_139 = arith.constant 5.000000e-01 : f32
    %186 = vector.broadcast %cst_139 : f32 to vector<2x64xf32>
    %187 = arith.cmpf ogt, %185, %186 : vector<2x64xf32>
    %188 = arith.extui %187 : vector<2x64xi1> to vector<2x64xi32>
    %189 = arith.sitofp %188 : vector<2x64xi32> to vector<2x64xf32>
    %190 = arith.truncf %189 : vector<2x64xf32> to vector<2x64xbf16>
    %c5_140 = arith.constant 5 : index
    %c0_141 = arith.constant 0 : index
    %c0_142 = arith.constant 0 : index
    %191 = vector.load %arg7[%c5_140, %c0_141, %c0_142] : memref<16x64x128xbf16, #tpu.memory_space<vmem>>, vector<1x64x128xbf16>
    %192 = vector.shape_cast %191 : vector<1x64x128xbf16> to vector<64x128xbf16>
    %cst_143 = arith.constant dense<0.000000e+00> : vector<2x128xf32>
    %193 = tpu.matmul %190, %192, %cst_143 {dimension_numbers = #tpu.dot_dimension_numbers<[1], [0], [0], [1], [0, 0, 1, 1], [], []>} : vector<2x64xbf16>, vector<64x128xbf16>, vector<2x128xf32> -> vector<2x128xf32>
    %194 = arith.addf %182, %193 : vector<2x128xf32>
    %c6_144 = arith.constant 6 : index
    %c0_145 = arith.constant 0 : index
    %c0_146 = arith.constant 0 : index
    %195 = vector.load %arg6[%c6_144, %c0_145, %c0_146] : memref<16x2x128xbf16, #tpu.memory_space<vmem>>, vector<1x2x128xbf16>
    %196 = vector.shape_cast %195 : vector<1x2x128xbf16> to vector<2x128xbf16>
    %cst_147 = arith.constant dense<0.000000e+00> : vector<2x64xf32>
    %197 = tpu.matmul %196, %121, %cst_147 {dimension_numbers = #tpu.dot_dimension_numbers<[1], [0], [0], [1], [0, 0, 1, 1], [], []>} : vector<2x128xbf16>, vector<128x64xbf16>, vector<2x64xf32> -> vector<2x64xf32>
    %cst_148 = arith.constant 5.000000e-01 : f32
    %198 = vector.broadcast %cst_148 : f32 to vector<2x64xf32>
    %199 = arith.cmpf ogt, %197, %198 : vector<2x64xf32>
    %200 = arith.extui %199 : vector<2x64xi1> to vector<2x64xi32>
    %201 = arith.sitofp %200 : vector<2x64xi32> to vector<2x64xf32>
    %202 = arith.truncf %201 : vector<2x64xf32> to vector<2x64xbf16>
    %c6_149 = arith.constant 6 : index
    %c0_150 = arith.constant 0 : index
    %c0_151 = arith.constant 0 : index
    %203 = vector.load %arg7[%c6_149, %c0_150, %c0_151] : memref<16x64x128xbf16, #tpu.memory_space<vmem>>, vector<1x64x128xbf16>
    %204 = vector.shape_cast %203 : vector<1x64x128xbf16> to vector<64x128xbf16>
    %cst_152 = arith.constant dense<0.000000e+00> : vector<2x128xf32>
    %205 = tpu.matmul %202, %204, %cst_152 {dimension_numbers = #tpu.dot_dimension_numbers<[1], [0], [0], [1], [0, 0, 1, 1], [], []>} : vector<2x64xbf16>, vector<64x128xbf16>, vector<2x128xf32> -> vector<2x128xf32>
    %206 = arith.addf %194, %205 : vector<2x128xf32>
    %c7_153 = arith.constant 7 : index
    %c0_154 = arith.constant 0 : index
    %c0_155 = arith.constant 0 : index
    %207 = vector.load %arg6[%c7_153, %c0_154, %c0_155] : memref<16x2x128xbf16, #tpu.memory_space<vmem>>, vector<1x2x128xbf16>
    %208 = vector.shape_cast %207 : vector<1x2x128xbf16> to vector<2x128xbf16>
    %cst_156 = arith.constant dense<0.000000e+00> : vector<2x64xf32>
    %209 = tpu.matmul %208, %121, %cst_156 {dimension_numbers = #tpu.dot_dimension_numbers<[1], [0], [0], [1], [0, 0, 1, 1], [], []>} : vector<2x128xbf16>, vector<128x64xbf16>, vector<2x64xf32> -> vector<2x64xf32>
    %cst_157 = arith.constant 5.000000e-01 : f32
    %210 = vector.broadcast %cst_157 : f32 to vector<2x64xf32>
    %211 = arith.cmpf ogt, %209, %210 : vector<2x64xf32>
    %212 = arith.extui %211 : vector<2x64xi1> to vector<2x64xi32>
    %213 = arith.sitofp %212 : vector<2x64xi32> to vector<2x64xf32>
    %214 = arith.truncf %213 : vector<2x64xf32> to vector<2x64xbf16>
    %c7_158 = arith.constant 7 : index
    %c0_159 = arith.constant 0 : index
    %c0_160 = arith.constant 0 : index
    %215 = vector.load %arg7[%c7_158, %c0_159, %c0_160] : memref<16x64x128xbf16, #tpu.memory_space<vmem>>, vector<1x64x128xbf16>
    %216 = vector.shape_cast %215 : vector<1x64x128xbf16> to vector<64x128xbf16>
    %cst_161 = arith.constant dense<0.000000e+00> : vector<2x128xf32>
    %217 = tpu.matmul %214, %216, %cst_161 {dimension_numbers = #tpu.dot_dimension_numbers<[1], [0], [0], [1], [0, 0, 1, 1], [], []>} : vector<2x64xbf16>, vector<64x128xbf16>, vector<2x128xf32> -> vector<2x128xf32>
    %218 = arith.addf %206, %217 : vector<2x128xf32>
    %c8_162 = arith.constant 8 : index
    %c0_163 = arith.constant 0 : index
    %c0_164 = arith.constant 0 : index
    %219 = vector.load %arg6[%c8_162, %c0_163, %c0_164] : memref<16x2x128xbf16, #tpu.memory_space<vmem>>, vector<1x2x128xbf16>
    %220 = vector.shape_cast %219 : vector<1x2x128xbf16> to vector<2x128xbf16>
    %cst_165 = arith.constant dense<0.000000e+00> : vector<2x64xf32>
    %221 = tpu.matmul %220, %121, %cst_165 {dimension_numbers = #tpu.dot_dimension_numbers<[1], [0], [0], [1], [0, 0, 1, 1], [], []>} : vector<2x128xbf16>, vector<128x64xbf16>, vector<2x64xf32> -> vector<2x64xf32>
    %cst_166 = arith.constant 5.000000e-01 : f32
    %222 = vector.broadcast %cst_166 : f32 to vector<2x64xf32>
    %223 = arith.cmpf ogt, %221, %222 : vector<2x64xf32>
    %224 = arith.extui %223 : vector<2x64xi1> to vector<2x64xi32>
    %225 = arith.sitofp %224 : vector<2x64xi32> to vector<2x64xf32>
    %226 = arith.truncf %225 : vector<2x64xf32> to vector<2x64xbf16>
    %c8_167 = arith.constant 8 : index
    %c0_168 = arith.constant 0 : index
    %c0_169 = arith.constant 0 : index
    %227 = vector.load %arg7[%c8_167, %c0_168, %c0_169] : memref<16x64x128xbf16, #tpu.memory_space<vmem>>, vector<1x64x128xbf16>
    %228 = vector.shape_cast %227 : vector<1x64x128xbf16> to vector<64x128xbf16>
    %cst_170 = arith.constant dense<0.000000e+00> : vector<2x128xf32>
    %229 = tpu.matmul %226, %228, %cst_170 {dimension_numbers = #tpu.dot_dimension_numbers<[1], [0], [0], [1], [0, 0, 1, 1], [], []>} : vector<2x64xbf16>, vector<64x128xbf16>, vector<2x128xf32> -> vector<2x128xf32>
    %230 = arith.addf %218, %229 : vector<2x128xf32>
    %c9 = arith.constant 9 : index
    %c0_171 = arith.constant 0 : index
    %c0_172 = arith.constant 0 : index
    %231 = vector.load %arg6[%c9, %c0_171, %c0_172] : memref<16x2x128xbf16, #tpu.memory_space<vmem>>, vector<1x2x128xbf16>
    %232 = vector.shape_cast %231 : vector<1x2x128xbf16> to vector<2x128xbf16>
    %cst_173 = arith.constant dense<0.000000e+00> : vector<2x64xf32>
    %233 = tpu.matmul %232, %121, %cst_173 {dimension_numbers = #tpu.dot_dimension_numbers<[1], [0], [0], [1], [0, 0, 1, 1], [], []>} : vector<2x128xbf16>, vector<128x64xbf16>, vector<2x64xf32> -> vector<2x64xf32>
    %cst_174 = arith.constant 5.000000e-01 : f32
    %234 = vector.broadcast %cst_174 : f32 to vector<2x64xf32>
    %235 = arith.cmpf ogt, %233, %234 : vector<2x64xf32>
    %236 = arith.extui %235 : vector<2x64xi1> to vector<2x64xi32>
    %237 = arith.sitofp %236 : vector<2x64xi32> to vector<2x64xf32>
    %238 = arith.truncf %237 : vector<2x64xf32> to vector<2x64xbf16>
    %c9_175 = arith.constant 9 : index
    %c0_176 = arith.constant 0 : index
    %c0_177 = arith.constant 0 : index
    %239 = vector.load %arg7[%c9_175, %c0_176, %c0_177] : memref<16x64x128xbf16, #tpu.memory_space<vmem>>, vector<1x64x128xbf16>
    %240 = vector.shape_cast %239 : vector<1x64x128xbf16> to vector<64x128xbf16>
    %cst_178 = arith.constant dense<0.000000e+00> : vector<2x128xf32>
    %241 = tpu.matmul %238, %240, %cst_178 {dimension_numbers = #tpu.dot_dimension_numbers<[1], [0], [0], [1], [0, 0, 1, 1], [], []>} : vector<2x64xbf16>, vector<64x128xbf16>, vector<2x128xf32> -> vector<2x128xf32>
    %242 = arith.addf %230, %241 : vector<2x128xf32>
    %c10 = arith.constant 10 : index
    %c0_179 = arith.constant 0 : index
    %c0_180 = arith.constant 0 : index
    %243 = vector.load %arg6[%c10, %c0_179, %c0_180] : memref<16x2x128xbf16, #tpu.memory_space<vmem>>, vector<1x2x128xbf16>
    %244 = vector.shape_cast %243 : vector<1x2x128xbf16> to vector<2x128xbf16>
    %cst_181 = arith.constant dense<0.000000e+00> : vector<2x64xf32>
    %245 = tpu.matmul %244, %121, %cst_181 {dimension_numbers = #tpu.dot_dimension_numbers<[1], [0], [0], [1], [0, 0, 1, 1], [], []>} : vector<2x128xbf16>, vector<128x64xbf16>, vector<2x64xf32> -> vector<2x64xf32>
    %cst_182 = arith.constant 5.000000e-01 : f32
    %246 = vector.broadcast %cst_182 : f32 to vector<2x64xf32>
    %247 = arith.cmpf ogt, %245, %246 : vector<2x64xf32>
    %248 = arith.extui %247 : vector<2x64xi1> to vector<2x64xi32>
    %249 = arith.sitofp %248 : vector<2x64xi32> to vector<2x64xf32>
    %250 = arith.truncf %249 : vector<2x64xf32> to vector<2x64xbf16>
    %c10_183 = arith.constant 10 : index
    %c0_184 = arith.constant 0 : index
    %c0_185 = arith.constant 0 : index
    %251 = vector.load %arg7[%c10_183, %c0_184, %c0_185] : memref<16x64x128xbf16, #tpu.memory_space<vmem>>, vector<1x64x128xbf16>
    %252 = vector.shape_cast %251 : vector<1x64x128xbf16> to vector<64x128xbf16>
    %cst_186 = arith.constant dense<0.000000e+00> : vector<2x128xf32>
    %253 = tpu.matmul %250, %252, %cst_186 {dimension_numbers = #tpu.dot_dimension_numbers<[1], [0], [0], [1], [0, 0, 1, 1], [], []>} : vector<2x64xbf16>, vector<64x128xbf16>, vector<2x128xf32> -> vector<2x128xf32>
    %254 = arith.addf %242, %253 : vector<2x128xf32>
    %c11 = arith.constant 11 : index
    %c0_187 = arith.constant 0 : index
    %c0_188 = arith.constant 0 : index
    %255 = vector.load %arg6[%c11, %c0_187, %c0_188] : memref<16x2x128xbf16, #tpu.memory_space<vmem>>, vector<1x2x128xbf16>
    %256 = vector.shape_cast %255 : vector<1x2x128xbf16> to vector<2x128xbf16>
    %cst_189 = arith.constant dense<0.000000e+00> : vector<2x64xf32>
    %257 = tpu.matmul %256, %121, %cst_189 {dimension_numbers = #tpu.dot_dimension_numbers<[1], [0], [0], [1], [0, 0, 1, 1], [], []>} : vector<2x128xbf16>, vector<128x64xbf16>, vector<2x64xf32> -> vector<2x64xf32>
    %cst_190 = arith.constant 5.000000e-01 : f32
    %258 = vector.broadcast %cst_190 : f32 to vector<2x64xf32>
    %259 = arith.cmpf ogt, %257, %258 : vector<2x64xf32>
    %260 = arith.extui %259 : vector<2x64xi1> to vector<2x64xi32>
    %261 = arith.sitofp %260 : vector<2x64xi32> to vector<2x64xf32>
    %262 = arith.truncf %261 : vector<2x64xf32> to vector<2x64xbf16>
    %c11_191 = arith.constant 11 : index
    %c0_192 = arith.constant 0 : index
    %c0_193 = arith.constant 0 : index
    %263 = vector.load %arg7[%c11_191, %c0_192, %c0_193] : memref<16x64x128xbf16, #tpu.memory_space<vmem>>, vector<1x64x128xbf16>
    %264 = vector.shape_cast %263 : vector<1x64x128xbf16> to vector<64x128xbf16>
    %cst_194 = arith.constant dense<0.000000e+00> : vector<2x128xf32>
    %265 = tpu.matmul %262, %264, %cst_194 {dimension_numbers = #tpu.dot_dimension_numbers<[1], [0], [0], [1], [0, 0, 1, 1], [], []>} : vector<2x64xbf16>, vector<64x128xbf16>, vector<2x128xf32> -> vector<2x128xf32>
    %266 = arith.addf %254, %265 : vector<2x128xf32>
    %c12 = arith.constant 12 : index
    %c0_195 = arith.constant 0 : index
    %c0_196 = arith.constant 0 : index
    %267 = vector.load %arg6[%c12, %c0_195, %c0_196] : memref<16x2x128xbf16, #tpu.memory_space<vmem>>, vector<1x2x128xbf16>
    %268 = vector.shape_cast %267 : vector<1x2x128xbf16> to vector<2x128xbf16>
    %cst_197 = arith.constant dense<0.000000e+00> : vector<2x64xf32>
    %269 = tpu.matmul %268, %121, %cst_197 {dimension_numbers = #tpu.dot_dimension_numbers<[1], [0], [0], [1], [0, 0, 1, 1], [], []>} : vector<2x128xbf16>, vector<128x64xbf16>, vector<2x64xf32> -> vector<2x64xf32>
    %cst_198 = arith.constant 5.000000e-01 : f32
    %270 = vector.broadcast %cst_198 : f32 to vector<2x64xf32>
    %271 = arith.cmpf ogt, %269, %270 : vector<2x64xf32>
    %272 = arith.extui %271 : vector<2x64xi1> to vector<2x64xi32>
    %273 = arith.sitofp %272 : vector<2x64xi32> to vector<2x64xf32>
    %274 = arith.truncf %273 : vector<2x64xf32> to vector<2x64xbf16>
    %c12_199 = arith.constant 12 : index
    %c0_200 = arith.constant 0 : index
    %c0_201 = arith.constant 0 : index
    %275 = vector.load %arg7[%c12_199, %c0_200, %c0_201] : memref<16x64x128xbf16, #tpu.memory_space<vmem>>, vector<1x64x128xbf16>
    %276 = vector.shape_cast %275 : vector<1x64x128xbf16> to vector<64x128xbf16>
    %cst_202 = arith.constant dense<0.000000e+00> : vector<2x128xf32>
    %277 = tpu.matmul %274, %276, %cst_202 {dimension_numbers = #tpu.dot_dimension_numbers<[1], [0], [0], [1], [0, 0, 1, 1], [], []>} : vector<2x64xbf16>, vector<64x128xbf16>, vector<2x128xf32> -> vector<2x128xf32>
    %278 = arith.addf %266, %277 : vector<2x128xf32>
    %c13 = arith.constant 13 : index
    %c0_203 = arith.constant 0 : index
    %c0_204 = arith.constant 0 : index
    %279 = vector.load %arg6[%c13, %c0_203, %c0_204] : memref<16x2x128xbf16, #tpu.memory_space<vmem>>, vector<1x2x128xbf16>
    %280 = vector.shape_cast %279 : vector<1x2x128xbf16> to vector<2x128xbf16>
    %cst_205 = arith.constant dense<0.000000e+00> : vector<2x64xf32>
    %281 = tpu.matmul %280, %121, %cst_205 {dimension_numbers = #tpu.dot_dimension_numbers<[1], [0], [0], [1], [0, 0, 1, 1], [], []>} : vector<2x128xbf16>, vector<128x64xbf16>, vector<2x64xf32> -> vector<2x64xf32>
    %cst_206 = arith.constant 5.000000e-01 : f32
    %282 = vector.broadcast %cst_206 : f32 to vector<2x64xf32>
    %283 = arith.cmpf ogt, %281, %282 : vector<2x64xf32>
    %284 = arith.extui %283 : vector<2x64xi1> to vector<2x64xi32>
    %285 = arith.sitofp %284 : vector<2x64xi32> to vector<2x64xf32>
    %286 = arith.truncf %285 : vector<2x64xf32> to vector<2x64xbf16>
    %c13_207 = arith.constant 13 : index
    %c0_208 = arith.constant 0 : index
    %c0_209 = arith.constant 0 : index
    %287 = vector.load %arg7[%c13_207, %c0_208, %c0_209] : memref<16x64x128xbf16, #tpu.memory_space<vmem>>, vector<1x64x128xbf16>
    %288 = vector.shape_cast %287 : vector<1x64x128xbf16> to vector<64x128xbf16>
    %cst_210 = arith.constant dense<0.000000e+00> : vector<2x128xf32>
    %289 = tpu.matmul %286, %288, %cst_210 {dimension_numbers = #tpu.dot_dimension_numbers<[1], [0], [0], [1], [0, 0, 1, 1], [], []>} : vector<2x64xbf16>, vector<64x128xbf16>, vector<2x128xf32> -> vector<2x128xf32>
    %290 = arith.addf %278, %289 : vector<2x128xf32>
    %c14 = arith.constant 14 : index
    %c0_211 = arith.constant 0 : index
    %c0_212 = arith.constant 0 : index
    %291 = vector.load %arg6[%c14, %c0_211, %c0_212] : memref<16x2x128xbf16, #tpu.memory_space<vmem>>, vector<1x2x128xbf16>
    %292 = vector.shape_cast %291 : vector<1x2x128xbf16> to vector<2x128xbf16>
    %cst_213 = arith.constant dense<0.000000e+00> : vector<2x64xf32>
    %293 = tpu.matmul %292, %121, %cst_213 {dimension_numbers = #tpu.dot_dimension_numbers<[1], [0], [0], [1], [0, 0, 1, 1], [], []>} : vector<2x128xbf16>, vector<128x64xbf16>, vector<2x64xf32> -> vector<2x64xf32>
    %cst_214 = arith.constant 5.000000e-01 : f32
    %294 = vector.broadcast %cst_214 : f32 to vector<2x64xf32>
    %295 = arith.cmpf ogt, %293, %294 : vector<2x64xf32>
    %296 = arith.extui %295 : vector<2x64xi1> to vector<2x64xi32>
    %297 = arith.sitofp %296 : vector<2x64xi32> to vector<2x64xf32>
    %298 = arith.truncf %297 : vector<2x64xf32> to vector<2x64xbf16>
    %c14_215 = arith.constant 14 : index
    %c0_216 = arith.constant 0 : index
    %c0_217 = arith.constant 0 : index
    %299 = vector.load %arg7[%c14_215, %c0_216, %c0_217] : memref<16x64x128xbf16, #tpu.memory_space<vmem>>, vector<1x64x128xbf16>
    %300 = vector.shape_cast %299 : vector<1x64x128xbf16> to vector<64x128xbf16>
    %cst_218 = arith.constant dense<0.000000e+00> : vector<2x128xf32>
    %301 = tpu.matmul %298, %300, %cst_218 {dimension_numbers = #tpu.dot_dimension_numbers<[1], [0], [0], [1], [0, 0, 1, 1], [], []>} : vector<2x64xbf16>, vector<64x128xbf16>, vector<2x128xf32> -> vector<2x128xf32>
    %302 = arith.addf %290, %301 : vector<2x128xf32>
    %c15 = arith.constant 15 : index
    %c0_219 = arith.constant 0 : index
    %c0_220 = arith.constant 0 : index
    %303 = vector.load %arg6[%c15, %c0_219, %c0_220] : memref<16x2x128xbf16, #tpu.memory_space<vmem>>, vector<1x2x128xbf16>
    %304 = vector.shape_cast %303 : vector<1x2x128xbf16> to vector<2x128xbf16>
    %cst_221 = arith.constant dense<0.000000e+00> : vector<2x64xf32>
    %305 = tpu.matmul %304, %121, %cst_221 {dimension_numbers = #tpu.dot_dimension_numbers<[1], [0], [0], [1], [0, 0, 1, 1], [], []>} : vector<2x128xbf16>, vector<128x64xbf16>, vector<2x64xf32> -> vector<2x64xf32>
    %cst_222 = arith.constant 5.000000e-01 : f32
    %306 = vector.broadcast %cst_222 : f32 to vector<2x64xf32>
    %307 = arith.cmpf ogt, %305, %306 : vector<2x64xf32>
    %308 = arith.extui %307 : vector<2x64xi1> to vector<2x64xi32>
    %309 = arith.sitofp %308 : vector<2x64xi32> to vector<2x64xf32>
    %310 = arith.truncf %309 : vector<2x64xf32> to vector<2x64xbf16>
    %c15_223 = arith.constant 15 : index
    %c0_224 = arith.constant 0 : index
    %c0_225 = arith.constant 0 : index
    %311 = vector.load %arg7[%c15_223, %c0_224, %c0_225] : memref<16x64x128xbf16, #tpu.memory_space<vmem>>, vector<1x64x128xbf16>
    %312 = vector.shape_cast %311 : vector<1x64x128xbf16> to vector<64x128xbf16>
    %cst_226 = arith.constant dense<0.000000e+00> : vector<2x128xf32>
    %313 = tpu.matmul %310, %312, %cst_226 {dimension_numbers = #tpu.dot_dimension_numbers<[1], [0], [0], [1], [0, 0, 1, 1], [], []>} : vector<2x64xbf16>, vector<64x128xbf16>, vector<2x128xf32> -> vector<2x128xf32>
    %314 = arith.addf %302, %313 : vector<2x128xf32>
    %c0_227 = arith.constant 0 : index
    %c0_228 = arith.constant 0 : index
    %315 = vector.load %arg8[%c0_227, %c0_228] : memref<1x128xf32, #tpu.memory_space<vmem>>, vector<1x128xf32>
    %316 = vector.broadcast %315 : vector<1x128xf32> to vector<2x128xf32>
    %317 = arith.addf %314, %316 : vector<2x128xf32>
    %c0_229 = arith.constant 0 : index
    %c0_230 = arith.constant 0 : index
    %318 = vector.load %arg14[%c0_229, %c0_230] : memref<2x128xf32, #tpu.memory_space<vmem>>, vector<2x128xf32>
    %cst_231 = arith.constant 1.000000e+00 : f32
    %319 = vector.broadcast %cst_231 : f32 to vector<2x128xf32>
    %320 = arith.cmpf ogt, %318, %319 : vector<2x128xf32>
    %321 = arith.extui %320 : vector<2x128xi1> to vector<2x128xi32>
    %322 = arith.sitofp %321 : vector<2x128xi32> to vector<2x128xf32>
    %cst_232 = arith.constant 0.949999988 : f32
    %323 = vector.broadcast %cst_232 : f32 to vector<2x128xf32>
    %324 = arith.mulf %323, %318 : vector<2x128xf32>
    %325 = arith.addf %324, %317 : vector<2x128xf32>
    %cst_233 = arith.constant 1.000000e+00 : f32
    %326 = vector.broadcast %cst_233 : f32 to vector<2x128xf32>
    %327 = arith.mulf %322, %326 : vector<2x128xf32>
    %328 = arith.subf %325, %327 : vector<2x128xf32>
    %c0_234 = arith.constant 0 : index
    %c0_235 = arith.constant 0 : index
    %329 = vector.load %arg14[%c0_234, %c0_235] : memref<2x128xf32, #tpu.memory_space<vmem>>, vector<2x128xf32>
    tpu.vector_store %arg14[%c0_234, %c0_235], %328 {strides = array<i32>} : memref<2x128xf32, #tpu.memory_space<vmem>>, vector<2x128xf32>,
    %cst_236 = arith.constant 1.000000e+00 : f32
    %330 = vector.broadcast %cst_236 : f32 to vector<2x128xf32>
    %331 = arith.cmpf ogt, %328, %330 : vector<2x128xf32>
    %332 = arith.extui %331 : vector<2x128xi1> to vector<2x128xi32>
    %333 = arith.sitofp %332 : vector<2x128xi32> to vector<2x128xf32>
    %334 = arith.truncf %333 : vector<2x128xf32> to vector<2x128xbf16>
    %c0_237 = arith.constant 0 : index
    %c0_238 = arith.constant 0 : index
    %335 = vector.load %arg9[%c0_237, %c0_238] : memref<128x128xbf16, #tpu.memory_space<vmem>>, vector<128x128xbf16>
    %cst_239 = arith.constant dense<0.000000e+00> : vector<2x128xf32>
    %336 = tpu.matmul %334, %335, %cst_239 {dimension_numbers = #tpu.dot_dimension_numbers<[1], [0], [0], [1], [0, 0, 1, 1], [], []>} : vector<2x128xbf16>, vector<128x128xbf16>, vector<2x128xf32> -> vector<2x128xf32>
    %c0_240 = arith.constant 0 : index
    %c0_241 = arith.constant 0 : index
    %337 = vector.load %arg10[%c0_240, %c0_241] : memref<1x128xf32, #tpu.memory_space<vmem>>, vector<1x128xf32>
    %338 = vector.broadcast %337 : vector<1x128xf32> to vector<2x128xf32>
    %339 = arith.addf %336, %338 : vector<2x128xf32>
    %c0_242 = arith.constant 0 : index
    %c0_243 = arith.constant 0 : index
    %340 = vector.load %arg15[%c0_242, %c0_243] : memref<2x128xf32, #tpu.memory_space<vmem>>, vector<2x128xf32>
    %cst_244 = arith.constant 1.000000e+00 : f32
    %341 = vector.broadcast %cst_244 : f32 to vector<2x128xf32>
    %342 = arith.cmpf ogt, %340, %341 : vector<2x128xf32>
    %343 = arith.extui %342 : vector<2x128xi1> to vector<2x128xi32>
    %344 = arith.sitofp %343 : vector<2x128xi32> to vector<2x128xf32>
    %cst_245 = arith.constant 0.949999988 : f32
    %345 = vector.broadcast %cst_245 : f32 to vector<2x128xf32>
    %346 = arith.mulf %345, %340 : vector<2x128xf32>
    %347 = arith.addf %346, %339 : vector<2x128xf32>
    %cst_246 = arith.constant 1.000000e+00 : f32
    %348 = vector.broadcast %cst_246 : f32 to vector<2x128xf32>
    %349 = arith.mulf %344, %348 : vector<2x128xf32>
    %350 = arith.subf %347, %349 : vector<2x128xf32>
    %c0_247 = arith.constant 0 : index
    %c0_248 = arith.constant 0 : index
    %351 = vector.load %arg15[%c0_247, %c0_248] : memref<2x128xf32, #tpu.memory_space<vmem>>, vector<2x128xf32>
    tpu.vector_store %arg15[%c0_247, %c0_248], %350 {strides = array<i32>} : memref<2x128xf32, #tpu.memory_space<vmem>>, vector<2x128xf32>,
    %cst_249 = arith.constant 1.000000e+00 : f32
    %352 = vector.broadcast %cst_249 : f32 to vector<2x128xf32>
    %353 = arith.cmpf ogt, %350, %352 : vector<2x128xf32>
    %354 = arith.extui %353 : vector<2x128xi1> to vector<2x128xi32>
    %355 = arith.sitofp %354 : vector<2x128xi32> to vector<2x128xf32>
    %c0_250 = arith.constant 0 : index
    %c0_251 = arith.constant 0 : index
    %c0_252 = arith.constant 0 : index
    %356 = vector.load %arg11[%c0_250, %c0_251, %c0_252] : memref<1x2x128xf32, #tpu.memory_space<vmem>>, vector<1x2x128xf32>
    %357 = vector.shape_cast %356 : vector<1x2x128xf32> to vector<2x128xf32>
    %358 = vector.shape_cast %355 : vector<2x128xf32> to vector<1x2x128xf32>
    tpu.vector_store %arg11[%c0_250, %c0_251, %c0_252], %358 {strides = array<i32>} : memref<1x2x128xf32, #tpu.memory_space<vmem>>, vector<1x2x128xf32>,
    return
  }
  func.func @transform_0(%arg0: i32) -> (i32, i32, i32) {
    %c0_i32 = arith.constant 0 : i32
    %c0_i32_0 = arith.constant 0 : i32
    %c0_i32_1 = arith.constant 0 : i32
    return %arg0, %c0_i32, %c0_i32_0 : i32, i32, i32
  }
  func.func @transform_1(%arg0: i32) -> (i32, i32) {
    %c0_i32 = arith.constant 0 : i32
    %c0_i32_0 = arith.constant 0 : i32
    %c0_i32_1 = arith.constant 0 : i32
    return %c0_i32, %c0_i32_0 : i32, i32
  }
  func.func @transform_2(%arg0: i32) -> (i32, i32, i32) {
    %c0_i32 = arith.constant 0 : i32
    %c0_i32_0 = arith.constant 0 : i32
    %c0_i32_1 = arith.constant 0 : i32
    %c0_i32_2 = arith.constant 0 : i32
    return %c0_i32, %c0_i32_0, %c0_i32_1 : i32, i32, i32
  }
  func.func @transform_3(%arg0: i32) -> (i32, i32, i32) {
    %c0_i32 = arith.constant 0 : i32
    %c0_i32_0 = arith.constant 0 : i32
    %c0_i32_1 = arith.constant 0 : i32
    %c0_i32_2 = arith.constant 0 : i32
    return %c0_i32, %c0_i32_0, %c0_i32_1 : i32, i32, i32
  }
  func.func @transform_4(%arg0: i32) -> (i32, i32) {
    %c0_i32 = arith.constant 0 : i32
    %c0_i32_0 = arith.constant 0 : i32
    %c0_i32_1 = arith.constant 0 : i32
    return %c0_i32, %c0_i32_0 : i32, i32
  }
  func.func @transform_5(%arg0: i32) -> (i32, i32, i32) {
    %c0_i32 = arith.constant 0 : i32
    %c0_i32_0 = arith.constant 0 : i32
    %c0_i32_1 = arith.constant 0 : i32
    %c0_i32_2 = arith.constant 0 : i32
    return %c0_i32, %c0_i32_0, %c0_i32_1 : i32, i32, i32
  }
  func.func @transform_6(%arg0: i32) -> (i32, i32, i32) {
    %c0_i32 = arith.constant 0 : i32
    %c0_i32_0 = arith.constant 0 : i32
    %c0_i32_1 = arith.constant 0 : i32
    %c0_i32_2 = arith.constant 0 : i32
    return %c0_i32, %c0_i32_0, %c0_i32_1 : i32, i32, i32
  }
  func.func @transform_7(%arg0: i32) -> (i32, i32) {
    %c0_i32 = arith.constant 0 : i32
    %c0_i32_0 = arith.constant 0 : i32
    %c0_i32_1 = arith.constant 0 : i32
    return %c0_i32, %c0_i32_0 : i32, i32
  }
  func.func @transform_8(%arg0: i32) -> (i32, i32) {
    %c0_i32 = arith.constant 0 : i32
    %c0_i32_0 = arith.constant 0 : i32
    %c0_i32_1 = arith.constant 0 : i32
    return %c0_i32, %c0_i32_0 : i32, i32
  }
  func.func @transform_9(%arg0: i32) -> (i32, i32) {
    %c0_i32 = arith.constant 0 : i32
    %c0_i32_0 = arith.constant 0 : i32
    %c0_i32_1 = arith.constant 0 : i32
    return %c0_i32, %c0_i32_0 : i32, i32
  }
  func.func @transform_10(%arg0: i32) -> (i32, i32, i32) {
    %c0_i32 = arith.constant 0 : i32
    %c0_i32_0 = arith.constant 0 : i32
    %c0_i32_1 = arith.constant 0 : i32
    return %arg0, %c0_i32, %c0_i32_0 : i32, i32, i32
  }
}

</mosaic_0001>

<bundles_post_ra>
// kernel: early_ttfs_forward.2
= control target key start
LH: loop header
LB: loop body
LE: loop exit
PB: predicated region body
PF: predicated region fallthrough
CT: control target
= control target key end

     0   :  { %vm792_vm0 = vcmask 1040384   ;;  %vm215_vm1 = vcmask 72704   ;;  %vm2708_vm2 = vmmov 1   ;;  %vm1821_vm4 = vcmask 261120   ;;  %s4449_s1 = inlined_call_operand.vmem [shape: f32[9,32], index: 1, kind: input, shape index: {}]   ;;  %s4450_s0 = inlined_call_operand.vmem [shape: f32[1536,9], index: 0, kind: input, shape index: {}]   ;;  %s4451_s2 = inlined_call_operand.vmem [shape: f32[1,32], index: 2, kind: input, shape index: {}]   ;;  %s4452_s3 = inlined_call_operand.vmem [shape: f32[1536,32], index: 3, kind: output, shape index: {}]  }
   0x1   :  { %v206_v0 = vld [vmem:[%s4449_s1] sm:$0xff]  ;;  %v207_v1 = vld [vmem:[%s4449_s1 + $0x8] sm:$0x1]  ;;  %vm2699_vm3 = vmpackc.low %vm792_vm0, %vm2708_vm2 }
   0x2   :  { %v2698_v2 = vpack.c.bf16 %v207_v1, %v206_v0  ;;  %v14_v3 = vld [vmem:[%s4450_s0] sm:$0xff]  ;;  %v15_v5 = vld [vmem:[%s4450_s0 + $0x8] sm:$0xff]  ;;  %v16_v7 = vld [vmem:[%s4450_s0 + $0x10] sm:$0xff] }
   0x3   :  { %v110_v4 = vld [vmem:[%s4450_s0 + $0x300] sm:$0xff]  ;;  %2410 = vmatprep.mubr.msk.f32.mxu0 %vm215_vm1, %v14_v3  ;;  %v111_v6 = vld [vmem:[%s4450_s0 + $0x308] sm:$0xff]  ;;  %v112_v8 = vld [vmem:[%s4450_s0 + $0x310] sm:$0xff] }
   0x4   :  { %2554 = vmatprep.mubr.msk.f32.mxu1 %vm215_vm1, %v110_v4  ;;  %2700 = vmatprep.subr.msk.bf16.mxu0 %vm2699_vm3, %v2698_v2  ;;  %v17_v9 = vld [vmem:[%s4450_s0 + $0x18] sm:$0xff]  ;;  %v18_v11 = vld [vmem:[%s4450_s0 + $0x20] sm:$0xff]  ;;  %v19_v13 = vld [vmem:[%s4450_s0 + $0x28] sm:$0xff] }
   0x5   :  { %2704 = vmatprep.subr.msk.bf16.mxu1 %vm2699_vm3, %v2698_v2  ;;  %2703 = vmatpush3.bf16.msk.msra.mxu0 %vm2699_vm3, %v2698_v2  ;;  %v113_v10 = vld [vmem:[%s4450_s0 + $0x318] sm:$0xff]  ;;  %v114_v12 = vld [vmem:[%s4450_s0 + $0x320] sm:$0xff]  ;;  %v115_v14 = vld [vmem:[%s4450_s0 + $0x328] sm:$0xff] }
   0x6   :  { %2705 = vmatpush3.bf16.msk.msra.mxu1 %vm2699_vm3, %v2698_v2  ;;  %v20_v15 = vld [vmem:[%s4450_s0 + $0x30] sm:$0xff]  ;;  %v21_v17 = vld [vmem:[%s4450_s0 + $0x38] sm:$0xff]  ;;  %v22_v19 = vld [vmem:[%s4450_s0 + $0x40] sm:$0xff] }
   0x7   :  { %v116_v16 = vld [vmem:[%s4450_s0 + $0x330] sm:$0xff]  ;;  %v117_v18 = vld [vmem:[%s4450_s0 + $0x338] sm:$0xff]  ;;  %v118_v20 = vld [vmem:[%s4450_s0 + $0x340] sm:$0xff] }
   0x8   :  { %2411 = vmatmul.mubr.msk.f32.vlgmr.msra.gmra.mrb[0].mxu0 %vm215_vm1, %v15_v5  ;;  %v23_v21 = vld [vmem:[%s4450_s0 + $0x48] sm:$0xff]  ;;  %v24_v23 = vld [vmem:[%s4450_s0 + $0x50] sm:$0xff]  ;;  %v25_v25 = vld [vmem:[%s4450_s0 + $0x58] sm:$0xff] }
   0x9   :  { %2555 = vmatmul.mubr.msk.f32.vlgmr.msra.gmra.mrb[0].mxu1 %vm215_vm1, %v111_v6  ;;  %2413 = vmatprep.mubr.msk.f32.mxu0 %vm215_vm1, %v16_v7  ;;  %v119_v22 = vld [vmem:[%s4450_s0 + $0x348] sm:$0xff]  ;;  %v120_v24 = vld [vmem:[%s4450_s0 + $0x350] sm:$0xff]  ;;  %v121_v26 = vld [vmem:[%s4450_s0 + $0x358] sm:$0xff] }
   0xa   :  { %2557 = vmatprep.mubr.msk.f32.mxu1 %vm215_vm1, %v112_v8  ;;  %v26_v27 = vld [vmem:[%s4450_s0 + $0x60] sm:$0xff]  ;;  %v27_v29 = vld [vmem:[%s4450_s0 + $0x68] sm:$0xff]  ;;  %v28_v31 = vld [vmem:[%s4450_s0 + $0x70] sm:$0xff] }
   0xb   :  { %v122_v28 = vld [vmem:[%s4450_s0 + $0x360] sm:$0xff]  ;;  %v123_v30 = vld [vmem:[%s4450_s0 + $0x368] sm:$0xff]  ;;  %v124_v32 = vld [vmem:[%s4450_s0 + $0x370] sm:$0xff] }
   0xc   :  { %2414 = vmatmul.mubr.msk.f32.gmra.mrb[2].mxu0 %vm215_vm1, %v17_v9  ;;  %v29_v33 = vld [vmem:[%s4450_s0 + $0x78] sm:$0xff]  ;;  %v30_v35 = vld [vmem:[%s4450_s0 + $0x80] sm:$0xff]  ;;  %v31_v37 = vld [vmem:[%s4450_s0 + $0x88] sm:$0xff] }
   0xd   :  { %2558 = vmatmul.mubr.msk.f32.gmra.mrb[2].mxu1 %vm215_vm1, %v113_v10  ;;  %2416 = vmatprep.mubr.msk.f32.mxu0 %vm215_vm1, %v18_v11  ;;  %v125_v34 = vld [vmem:[%s4450_s0 + $0x378] sm:$0xff]  ;;  %v126_v36 = vld [vmem:[%s4450_s0 + $0x380] sm:$0xff]  ;;  %v127_v38 = vld [vmem:[%s4450_s0 + $0x388] sm:$0xff] }
   0xe   :  { %2560 = vmatprep.mubr.msk.f32.mxu1 %vm215_vm1, %v114_v12  ;;  %v32_v39 = vld [vmem:[%s4450_s0 + $0x90] sm:$0xff]  ;;  %v33_v41 = vld [vmem:[%s4450_s0 + $0x98] sm:$0xff]  ;;  %v34_v43 = vld [vmem:[%s4450_s0 + $0xa0] sm:$0xff] }
   0xf   :  { %v128_v40 = vld [vmem:[%s4450_s0 + $0x390] sm:$0xff]  ;;  %v129_v42 = vld [vmem:[%s4450_s0 + $0x398] sm:$0xff]  ;;  %v130_v44 = vld [vmem:[%s4450_s0 + $0x3a0] sm:$0xff] }
  0x10   :  { %2417 = vmatmul.mubr.msk.f32.gmra.mrb[4].mxu0 %vm215_vm1, %v19_v13  ;;  %v35_v45 = vld [vmem:[%s4450_s0 + $0xa8] sm:$0xff]  ;;  %v36_v47 = vld [vmem:[%s4450_s0 + $0xb0] sm:$0xff]  ;;  %v37_v49 = vld [vmem:[%s4450_s0 + $0xb8] sm:$0xff] }
  0x11   :  { %2561 = vmatmul.mubr.msk.f32.gmra.mrb[4].mxu1 %vm215_vm1, %v115_v14  ;;  %2419 = vmatprep.mubr.msk.f32.mxu0 %vm215_vm1, %v20_v15  ;;  %v131_v46 = vld [vmem:[%s4450_s0 + $0x3a8] sm:$0xff]  ;;  %v132_v48 = vld [vmem:[%s4450_s0 + $0x3b0] sm:$0xff]  ;;  %v133_v50 = vld [vmem:[%s4450_s0 + $0x3b8] sm:$0xff] }
  0x12   :  { %2563 = vmatprep.mubr.msk.f32.mxu1 %vm215_vm1, %v116_v16  ;;  %v38_v51 = vld [vmem:[%s4450_s0 + $0xc0] sm:$0xff]  ;;  %v39_v53 = vld [vmem:[%s4450_s0 + $0xc8] sm:$0xff]  ;;  %v40_v55 = vld [vmem:[%s4450_s0 + $0xd0] sm:$0xff] }
  0x13   :  { %v134_v52 = vld [vmem:[%s4450_s0 + $0x3c0] sm:$0xff]  ;;  %v135_v54 = vld [vmem:[%s4450_s0 + $0x3c8] sm:$0xff]  ;;  %v136_v56 = vld [vmem:[%s4450_s0 + $0x3d0] sm:$0xff] }
  0x14   :  { %2420 = vmatmul.mubr.msk.f32.gmra.mrb[6].mxu0 %vm215_vm1, %v21_v17  ;;  %v41_v57 = vld [vmem:[%s4450_s0 + $0xd8] sm:$0xff]  ;;  %v42_v59 = vld [vmem:[%s4450_s0 + $0xe0] sm:$0xff]  ;;  %v43_v61 = vld [vmem:[%s4450_s0 + $0xe8] sm:$0xff] }
  0x15   :  { %2564 = vmatmul.mubr.msk.f32.gmra.mrb[6].mxu1 %vm215_vm1, %v117_v18  ;;  %2422 = vmatprep.mubr.msk.f32.mxu0 %vm215_vm1, %v22_v19  ;;  %v137_v58 = vld [vmem:[%s4450_s0 + $0x3d8] sm:$0xff]  ;;  %v138_v60 = vld [vmem:[%s4450_s0 + $0x3e0] sm:$0xff]  ;;  %v139_v62 = vld [vmem:[%s4450_s0 + $0x3e8] sm:$0xff] }
  0x16   :  { %2566 = vmatprep.mubr.msk.f32.mxu1 %vm215_vm1, %v118_v20  ;;  %v44_v63 = vld [vmem:[%s4450_s0 + $0xf0] sm:$0xff]  ;;  %v45_v1 = vld [vmem:[%s4450_s0 + $0xf8] sm:$0xff]  ;;  %v46_v3 = vld [vmem:[%s4450_s0 + $0x100] sm:$0xff] }
  0x17   :  { %v140_v0 = vld [vmem:[%s4450_s0 + $0x3f0] sm:$0xff]  ;;  %v141_v2 = vld [vmem:[%s4450_s0 + $0x3f8] sm:$0xff]  ;;  %v142_v4 = vld [vmem:[%s4450_s0 + $0x400] sm:$0xff] }
  0x18   :  { %2423 = vmatmul.mubr.msk.f32.gmra.mrb[8].mxu0 %vm215_vm1, %v23_v21  ;;  %v47_v5 = vld [vmem:[%s4450_s0 + $0x108] sm:$0xff]  ;;  %v48_v7 = vld [vmem:[%s4450_s0 + $0x110] sm:$0xff]  ;;  %v49_v9 = vld [vmem:[%s4450_s0 + $0x118] sm:$0xff] }
  0x19   :  { %2567 = vmatmul.mubr.msk.f32.gmra.mrb[8].mxu1 %vm215_vm1, %v119_v22  ;;  %2425 = vmatprep.mubr.msk.f32.mxu0 %vm215_vm1, %v24_v23  ;;  %v143_v6 = vld [vmem:[%s4450_s0 + $0x408] sm:$0xff]  ;;  %v144_v8 = vld [vmem:[%s4450_s0 + $0x410] sm:$0xff]  ;;  %v145_v10 = vld [vmem:[%s4450_s0 + $0x418] sm:$0xff] }
  0x1a   :  { %2569 = vmatprep.mubr.msk.f32.mxu1 %vm215_vm1, %v120_v24  ;;  %v50_v11 = vld [vmem:[%s4450_s0 + $0x120] sm:$0xff]  ;;  %v51_v13 = vld [vmem:[%s4450_s0 + $0x128] sm:$0xff]  ;;  %v52_v15 = vld [vmem:[%s4450_s0 + $0x130] sm:$0xff] }
  0x1b   :  { %v146_v12 = vld [vmem:[%s4450_s0 + $0x420] sm:$0xff]  ;;  %v147_v14 = vld [vmem:[%s4450_s0 + $0x428] sm:$0xff]  ;;  %v148_v16 = vld [vmem:[%s4450_s0 + $0x430] sm:$0xff] }
  0x1c   :  { %2426 = vmatmul.mubr.msk.f32.gmra.mrb[10].mxu0 %vm215_vm1, %v25_v25  ;;  %v53_v17 = vld [vmem:[%s4450_s0 + $0x138] sm:$0xff]  ;;  %v54_v19 = vld [vmem:[%s4450_s0 + $0x140] sm:$0xff]  ;;  %v55_v21 = vld [vmem:[%s4450_s0 + $0x148] sm:$0xff] }
  0x1d   :  { %2570 = vmatmul.mubr.msk.f32.gmra.mrb[10].mxu1 %vm215_vm1, %v121_v26  ;;  %2428 = vmatprep.mubr.msk.f32.mxu0 %vm215_vm1, %v26_v27  ;;  %v149_v18 = vld [vmem:[%s4450_s0 + $0x438] sm:$0xff]  ;;  %v150_v20 = vld [vmem:[%s4450_s0 + $0x440] sm:$0xff]  ;;  %v151_v22 = vld [vmem:[%s4450_s0 + $0x448] sm:$0xff] }
  0x1e   :  { %2572 = vmatprep.mubr.msk.f32.mxu1 %vm215_vm1, %v122_v28  ;;  %v56_v23 = vld [vmem:[%s4450_s0 + $0x150] sm:$0xff]  ;;  %v57_v25 = vld [vmem:[%s4450_s0 + $0x158] sm:$0xff]  ;;  %v58_v27 = vld [vmem:[%s4450_s0 + $0x160] sm:$0xff] }
  0x1f   :  { %v152_v24 = vld [vmem:[%s4450_s0 + $0x450] sm:$0xff]  ;;  %v153_v26 = vld [vmem:[%s4450_s0 + $0x458] sm:$0xff]  ;;  %v154_v28 = vld [vmem:[%s4450_s0 + $0x460] sm:$0xff] }
  0x20   :  { %2429 = vmatmul.mubr.msk.f32.gmra.mrb[12].mxu0 %vm215_vm1, %v27_v29  ;;  %v59_v29 = vld [vmem:[%s4450_s0 + $0x168] sm:$0xff] }
  0x21   :  { %2573 = vmatmul.mubr.msk.f32.gmra.mrb[12].mxu1 %vm215_vm1, %v123_v30  ;;  %2431 = vmatprep.mubr.msk.f32.mxu0 %vm215_vm1, %v28_v31  ;;  %v155_v30 = vld [vmem:[%s4450_s0 + $0x468] sm:$0xff]  ;;  %v60_v31 = vld [vmem:[%s4450_s0 + $0x170] sm:$0xff] }
  0x22   :  { %2575 = vmatprep.mubr.msk.f32.mxu1 %vm215_vm1, %v124_v32  ;;  %v156_v32 = vld [vmem:[%s4450_s0 + $0x470] sm:$0xff] }
  0x24   :  { %2432 = vmatmul.mubr.msk.f32.gmra.mrb[14].mxu0 %vm215_vm1, %v29_v33  ;;  %v61_v33 = vld [vmem:[%s4450_s0 + $0x178] sm:$0xff] }
  0x25   :  { %2576 = vmatmul.mubr.msk.f32.gmra.mrb[14].mxu1 %vm215_vm1, %v125_v34  ;;  %2434 = vmatprep.mubr.msk.f32.mxu0 %vm215_vm1, %v30_v35  ;;  %v157_v34 = vld [vmem:[%s4450_s0 + $0x478] sm:$0xff]  ;;  %v62_v35 = vld [vmem:[%s4450_s0 + $0x180] sm:$0xff] }
  0x26   :  { %2578 = vmatprep.mubr.msk.f32.mxu1 %vm215_vm1, %v126_v36  ;;  %v158_v36 = vld [vmem:[%s4450_s0 + $0x480] sm:$0xff] }
  0x28   :  { %2435 = vmatmul.mubr.msk.f32.gmra.mrb[16].mxu0 %vm215_vm1, %v31_v37  ;;  %v63_v37 = vld [vmem:[%s4450_s0 + $0x188] sm:$0xff] }
  0x29   :  { %2579 = vmatmul.mubr.msk.f32.gmra.mrb[16].mxu1 %vm215_vm1, %v127_v38  ;;  %2437 = vmatprep.mubr.msk.f32.mxu0 %vm215_vm1, %v32_v39  ;;  %v159_v38 = vld [vmem:[%s4450_s0 + $0x488] sm:$0xff]  ;;  %v64_v39 = vld [vmem:[%s4450_s0 + $0x190] sm:$0xff] }
  0x2a   :  { %2581 = vmatprep.mubr.msk.f32.mxu1 %vm215_vm1, %v128_v40  ;;  %v160_v40 = vld [vmem:[%s4450_s0 + $0x490] sm:$0xff] }
  0x2c   :  { %2438 = vmatmul.mubr.msk.f32.gmra.mrb[18].mxu0 %vm215_vm1, %v33_v41  ;;  %v65_v41 = vld [vmem:[%s4450_s0 + $0x198] sm:$0xff] }
  0x2d   :  { %2582 = vmatmul.mubr.msk.f32.gmra.mrb[18].mxu1 %vm215_vm1, %v129_v42  ;;  %2440 = vmatprep.mubr.msk.f32.mxu0 %vm215_vm1, %v34_v43  ;;  %v161_v42 = vld [vmem:[%s4450_s0 + $0x498] sm:$0xff]  ;;  %v66_v43 = vld [vmem:[%s4450_s0 + $0x1a0] sm:$0xff] }
  0x2e   :  { %2584 = vmatprep.mubr.msk.f32.mxu1 %vm215_vm1, %v130_v44  ;;  %v162_v44 = vld [vmem:[%s4450_s0 + $0x4a0] sm:$0xff] }
  0x30   :  { %2441 = vmatmul.mubr.msk.f32.gmra.mrb[20].mxu0 %vm215_vm1, %v35_v45  ;;  %v67_v45 = vld [vmem:[%s4450_s0 + $0x1a8] sm:$0xff] }
  0x31   :  { %2585 = vmatmul.mubr.msk.f32.gmra.mrb[20].mxu1 %vm215_vm1, %v131_v46  ;;  %2443 = vmatprep.mubr.msk.f32.mxu0 %vm215_vm1, %v36_v47  ;;  %v163_v46 = vld [vmem:[%s4450_s0 + $0x4a8] sm:$0xff]  ;;  %v68_v47 = vld [vmem:[%s4450_s0 + $0x1b0] sm:$0xff] }
  0x32   :  { %2587 = vmatprep.mubr.msk.f32.mxu1 %vm215_vm1, %v132_v48  ;;  %v164_v48 = vld [vmem:[%s4450_s0 + $0x4b0] sm:$0xff] }
  0x34   :  { %2444 = vmatmul.mubr.msk.f32.gmra.mrb[22].mxu0 %vm215_vm1, %v37_v49  ;;  %v69_v49 = vld [vmem:[%s4450_s0 + $0x1b8] sm:$0xff] }
  0x35   :  { %2588 = vmatmul.mubr.msk.f32.gmra.mrb[22].mxu1 %vm215_vm1, %v133_v50  ;;  %2446 = vmatprep.mubr.msk.f32.mxu0 %vm215_vm1, %v38_v51  ;;  %v165_v50 = vld [vmem:[%s4450_s0 + $0x4b8] sm:$0xff]  ;;  %v70_v51 = vld [vmem:[%s4450_s0 + $0x1c0] sm:$0xff] }
  0x36   :  { %2590 = vmatprep.mubr.msk.f32.mxu1 %vm215_vm1, %v134_v52  ;;  %v166_v52 = vld [vmem:[%s4450_s0 + $0x4c0] sm:$0xff] }
  0x38   :  { %2447 = vmatmul.mubr.msk.f32.gmra.mrb[24].mxu0 %vm215_vm1, %v39_v53  ;;  %v71_v53 = vld [vmem:[%s4450_s0 + $0x1c8] sm:$0xff] }
  0x39   :  { %2591 = vmatmul.mubr.msk.f32.gmra.mrb[24].mxu1 %vm215_vm1, %v135_v54  ;;  %2449 = vmatprep.mubr.msk.f32.mxu0 %vm215_vm1, %v40_v55  ;;  %v167_v54 = vld [vmem:[%s4450_s0 + $0x4c8] sm:$0xff]  ;;  %v72_v55 = vld [vmem:[%s4450_s0 + $0x1d0] sm:$0xff] }
  0x3a   :  { %2593 = vmatprep.mubr.msk.f32.mxu1 %vm215_vm1, %v136_v56  ;;  %v168_v56 = vld [vmem:[%s4450_s0 + $0x4d0] sm:$0xff] }
  0x3c   :  { %2450 = vmatmul.mubr.msk.f32.gmra.mrb[26].mxu0 %vm215_vm1, %v41_v57  ;;  %v73_v57 = vld [vmem:[%s4450_s0 + $0x1d8] sm:$0xff] }
  0x3d   :  { %2594 = vmatmul.mubr.msk.f32.gmra.mrb[26].mxu1 %vm215_vm1, %v137_v58  ;;  %2452 = vmatprep.mubr.msk.f32.mxu0 %vm215_vm1, %v42_v59  ;;  %v169_v58 = vld [vmem:[%s4450_s0 + $0x4d8] sm:$0xff]  ;;  %v74_v59 = vld [vmem:[%s4450_s0 + $0x1e0] sm:$0xff] }
  0x3e   :  { %2596 = vmatprep.mubr.msk.f32.mxu1 %vm215_vm1, %v138_v60  ;;  %v170_v60 = vld [vmem:[%s4450_s0 + $0x4e0] sm:$0xff] }
  0x40   :  { %2453 = vmatmul.mubr.msk.f32.gmra.mrb[28].mxu0 %vm215_vm1, %v43_v61  ;;  %v75_v61 = vld [vmem:[%s4450_s0 + $0x1e8] sm:$0xff] }
  0x41   :  { %2597 = vmatmul.mubr.msk.f32.gmra.mrb[28].mxu1 %vm215_vm1, %v139_v62  ;;  %2455 = vmatprep.mubr.msk.f32.mxu0 %vm215_vm1, %v44_v63  ;;  %v171_v62 = vld [vmem:[%s4450_s0 + $0x4e8] sm:$0xff]  ;;  %v76_v63 = vld [vmem:[%s4450_s0 + $0x1f0] sm:$0xff] }
  0x42   :  { %2599 = vmatprep.mubr.msk.f32.mxu1 %vm215_vm1, %v140_v0  ;;  %v172_v0 = vld [vmem:[%s4450_s0 + $0x4f0] sm:$0xff] }
  0x44   :  { %2456 = vmatmul.mubr.msk.f32.gmra.mrb[30].mxu0 %vm215_vm1, %v45_v1  ;;  %v77_v1 = vld [vmem:[%s4450_s0 + $0x1f8] sm:$0xff] }
  0x45   :  { %2600 = vmatmul.mubr.msk.f32.gmra.mrb[30].mxu1 %vm215_vm1, %v141_v2  ;;  %2458 = vmatprep.mubr.msk.f32.mxu0 %vm215_vm1, %v46_v3  ;;  %v173_v2 = vld [vmem:[%s4450_s0 + $0x4f8] sm:$0xff]  ;;  %v78_v3 = vld [vmem:[%s4450_s0 + $0x200] sm:$0xff] }
  0x46   :  { %2602 = vmatprep.mubr.msk.f32.mxu1 %vm215_vm1, %v142_v4  ;;  %v174_v4 = vld [vmem:[%s4450_s0 + $0x500] sm:$0xff] }
  0x48   :  { %2459 = vmatmul.mubr.msk.f32.gmra.mrb[32].mxu0 %vm215_vm1, %v47_v5  ;;  %v79_v5 = vld [vmem:[%s4450_s0 + $0x208] sm:$0xff] }
  0x49   :  { %2603 = vmatmul.mubr.msk.f32.gmra.mrb[32].mxu1 %vm215_vm1, %v143_v6  ;;  %2461 = vmatprep.mubr.msk.f32.mxu0 %vm215_vm1, %v48_v7  ;;  %v175_v6 = vld [vmem:[%s4450_s0 + $0x508] sm:$0xff]  ;;  %v80_v7 = vld [vmem:[%s4450_s0 + $0x210] sm:$0xff] }
  0x4a   :  { %2605 = vmatprep.mubr.msk.f32.mxu1 %vm215_vm1, %v144_v8  ;;  %v176_v8 = vld [vmem:[%s4450_s0 + $0x510] sm:$0xff] }
  0x4c   :  { %2462 = vmatmul.mubr.msk.f32.gmra.mrb[34].mxu0 %vm215_vm1, %v49_v9  ;;  %v81_v9 = vld [vmem:[%s4450_s0 + $0x218] sm:$0xff] }
  0x4d   :  { %2606 = vmatmul.mubr.msk.f32.gmra.mrb[34].mxu1 %vm215_vm1, %v145_v10  ;;  %2464 = vmatprep.mubr.msk.f32.mxu0 %vm215_vm1, %v50_v11  ;;  %v177_v10 = vld [vmem:[%s4450_s0 + $0x518] sm:$0xff]  ;;  %v82_v11 = vld [vmem:[%s4450_s0 + $0x220] sm:$0xff] }
  0x4e   :  { %2608 = vmatprep.mubr.msk.f32.mxu1 %vm215_vm1, %v146_v12  ;;  %v178_v12 = vld [vmem:[%s4450_s0 + $0x520] sm:$0xff] }
  0x50   :  { %2465 = vmatmul.mubr.msk.f32.gmra.mrb[36].mxu0 %vm215_vm1, %v51_v13  ;;  %v83_v13 = vld [vmem:[%s4450_s0 + $0x228] sm:$0xff] }
  0x51   :  { %2609 = vmatmul.mubr.msk.f32.gmra.mrb[36].mxu1 %vm215_vm1, %v147_v14  ;;  %2467 = vmatprep.mubr.msk.f32.mxu0 %vm215_vm1, %v52_v15  ;;  %v179_v14 = vld [vmem:[%s4450_s0 + $0x528] sm:$0xff]  ;;  %v84_v15 = vld [vmem:[%s4450_s0 + $0x230] sm:$0xff] }
  0x52   :  { %2611 = vmatprep.mubr.msk.f32.mxu1 %vm215_vm1, %v148_v16  ;;  %v180_v16 = vld [vmem:[%s4450_s0 + $0x530] sm:$0xff] }
  0x54   :  { %2468 = vmatmul.mubr.msk.f32.gmra.mrb[38].mxu0 %vm215_vm1, %v53_v17  ;;  %v85_v17 = vld [vmem:[%s4450_s0 + $0x238] sm:$0xff] }
  0x55   :  { %2612 = vmatmul.mubr.msk.f32.gmra.mrb[38].mxu1 %vm215_vm1, %v149_v18  ;;  %2470 = vmatprep.mubr.msk.f32.mxu0 %vm215_vm1, %v54_v19  ;;  %v181_v18 = vld [vmem:[%s4450_s0 + $0x538] sm:$0xff]  ;;  %v86_v19 = vld [vmem:[%s4450_s0 + $0x240] sm:$0xff] }
  0x56   :  { %2614 = vmatprep.mubr.msk.f32.mxu1 %vm215_vm1, %v150_v20  ;;  %v182_v20 = vld [vmem:[%s4450_s0 + $0x540] sm:$0xff] }
  0x58   :  { %2471 = vmatmul.mubr.msk.f32.gmra.mrb[40].mxu0 %vm215_vm1, %v55_v21  ;;  %v87_v21 = vld [vmem:[%s4450_s0 + $0x248] sm:$0xff] }
  0x59   :  { %2615 = vmatmul.mubr.msk.f32.gmra.mrb[40].mxu1 %vm215_vm1, %v151_v22  ;;  %2473 = vmatprep.mubr.msk.f32.mxu0 %vm215_vm1, %v56_v23  ;;  %v183_v22 = vld [vmem:[%s4450_s0 + $0x548] sm:$0xff]  ;;  %v88_v23 = vld [vmem:[%s4450_s0 + $0x250] sm:$0xff] }
  0x5a   :  { %2617 = vmatprep.mubr.msk.f32.mxu1 %vm215_vm1, %v152_v24  ;;  %v184_v24 = vld [vmem:[%s4450_s0 + $0x550] sm:$0xff] }
  0x5c   :  { %2474 = vmatmul.mubr.msk.f32.gmra.mrb[42].mxu0 %vm215_vm1, %v57_v25  ;;  %v89_v25 = vld [vmem:[%s4450_s0 + $0x258] sm:$0xff] }
  0x5d   :  { %2618 = vmatmul.mubr.msk.f32.gmra.mrb[42].mxu1 %vm215_vm1, %v153_v26  ;;  %2476 = vmatprep.mubr.msk.f32.mxu0 %vm215_vm1, %v58_v27  ;;  %v185_v26 = vld [vmem:[%s4450_s0 + $0x558] sm:$0xff]  ;;  %v90_v27 = vld [vmem:[%s4450_s0 + $0x260] sm:$0xff] }
  0x5e   :  { %2620 = vmatprep.mubr.msk.f32.mxu1 %vm215_vm1, %v154_v28  ;;  %v186_v28 = vld [vmem:[%s4450_s0 + $0x560] sm:$0xff] }
  0x60   :  { %2477 = vmatmul.mubr.msk.f32.gmra.mrb[44].mxu0 %vm215_vm1, %v59_v29  ;;  %v91_v29 = vld [vmem:[%s4450_s0 + $0x268] sm:$0xff] }
  0x61   :  { %2621 = vmatmul.mubr.msk.f32.gmra.mrb[44].mxu1 %vm215_vm1, %v155_v30  ;;  %2479 = vmatprep.mubr.msk.f32.mxu0 %vm215_vm1, %v60_v31  ;;  %v187_v30 = vld [vmem:[%s4450_s0 + $0x568] sm:$0xff]  ;;  %v92_v31 = vld [vmem:[%s4450_s0 + $0x270] sm:$0xff] }
  0x62   :  { %2623 = vmatprep.mubr.msk.f32.mxu1 %vm215_vm1, %v156_v32  ;;  %v188_v32 = vld [vmem:[%s4450_s0 + $0x570] sm:$0xff] }
  0x64   :  { %2480 = vmatmul.mubr.msk.f32.gmra.mrb[46].mxu0 %vm215_vm1, %v61_v33  ;;  %v93_v33 = vld [vmem:[%s4450_s0 + $0x278] sm:$0xff] }
  0x65   :  { %2624 = vmatmul.mubr.msk.f32.gmra.mrb[46].mxu1 %vm215_vm1, %v157_v34  ;;  %2482 = vmatprep.mubr.msk.f32.mxu0 %vm215_vm1, %v62_v35  ;;  %v189_v34 = vld [vmem:[%s4450_s0 + $0x578] sm:$0xff]  ;;  %v94_v35 = vld [vmem:[%s4450_s0 + $0x280] sm:$0xff] }
  0x66   :  { %2626 = vmatprep.mubr.msk.f32.mxu1 %vm215_vm1, %v158_v36  ;;  %v190_v36 = vld [vmem:[%s4450_s0 + $0x580] sm:$0xff] }
  0x68   :  { %2483 = vmatmul.mubr.msk.f32.gmra.mrb[48].mxu0 %vm215_vm1, %v63_v37  ;;  %v95_v37 = vld [vmem:[%s4450_s0 + $0x288] sm:$0xff] }
  0x69   :  { %2627 = vmatmul.mubr.msk.f32.gmra.mrb[48].mxu1 %vm215_vm1, %v159_v38  ;;  %2485 = vmatprep.mubr.msk.f32.mxu0 %vm215_vm1, %v64_v39  ;;  %v191_v38 = vld [vmem:[%s4450_s0 + $0x588] sm:$0xff]  ;;  %v96_v39 = vld [vmem:[%s4450_s0 + $0x290] sm:$0xff] }
  0x6a   :  { %2629 = vmatprep.mubr.msk.f32.mxu1 %vm215_vm1, %v160_v40  ;;  %v192_v40 = vld [vmem:[%s4450_s0 + $0x590] sm:$0xff] }
  0x6c   :  { %2486 = vmatmul.mubr.msk.f32.gmra.mrb[50].mxu0 %vm215_vm1, %v65_v41  ;;  %v97_v41 = vld [vmem:[%s4450_s0 + $0x298] sm:$0xff] }
  0x6d   :  { %2630 = vmatmul.mubr.msk.f32.gmra.mrb[50].mxu1 %vm215_vm1, %v161_v42  ;;  %2488 = vmatprep.mubr.msk.f32.mxu0 %vm215_vm1, %v66_v43  ;;  %v193_v42 = vld [vmem:[%s4450_s0 + $0x598] sm:$0xff]  ;;  %v98_v43 = vld [vmem:[%s4450_s0 + $0x2a0] sm:$0xff] }
  0x6e   :  { %2632 = vmatprep.mubr.msk.f32.mxu1 %vm215_vm1, %v162_v44  ;;  %v194_v44 = vld [vmem:[%s4450_s0 + $0x5a0] sm:$0xff] }
  0x70   :  { %2489 = vmatmul.mubr.msk.f32.gmra.mrb[52].mxu0 %vm215_vm1, %v67_v45  ;;  %v99_v45 = vld [vmem:[%s4450_s0 + $0x2a8] sm:$0xff] }
  0x71   :  { %2633 = vmatmul.mubr.msk.f32.gmra.mrb[52].mxu1 %vm215_vm1, %v163_v46  ;;  %2491 = vmatprep.mubr.msk.f32.mxu0 %vm215_vm1, %v68_v47  ;;  %v195_v46 = vld [vmem:[%s4450_s0 + $0x5a8] sm:$0xff]  ;;  %v100_v47 = vld [vmem:[%s4450_s0 + $0x2b0] sm:$0xff] }
  0x72   :  { %2635 = vmatprep.mubr.msk.f32.mxu1 %vm215_vm1, %v164_v48  ;;  %v196_v48 = vld [vmem:[%s4450_s0 + $0x5b0] sm:$0xff] }
  0x74   :  { %2492 = vmatmul.mubr.msk.f32.gmra.mrb[54].mxu0 %vm215_vm1, %v69_v49  ;;  %v101_v49 = vld [vmem:[%s4450_s0 + $0x2b8] sm:$0xff] }
  0x75   :  { %2636 = vmatmul.mubr.msk.f32.gmra.mrb[54].mxu1 %vm215_vm1, %v165_v50  ;;  %2494 = vmatprep.mubr.msk.f32.mxu0 %vm215_vm1, %v70_v51  ;;  %v197_v50 = vld [vmem:[%s4450_s0 + $0x5b8] sm:$0xff]  ;;  %v102_v51 = vld [vmem:[%s4450_s0 + $0x2c0] sm:$0xff] }
  0x76   :  { %2638 = vmatprep.mubr.msk.f32.mxu1 %vm215_vm1, %v166_v52  ;;  %v198_v52 = vld [vmem:[%s4450_s0 + $0x5c0] sm:$0xff] }
  0x78   :  { %2495 = vmatmul.mubr.msk.f32.gmra.mrb[56].mxu0 %vm215_vm1, %v71_v53  ;;  %v103_v53 = vld [vmem:[%s4450_s0 + $0x2c8] sm:$0xff] }
  0x79   :  { %2639 = vmatmul.mubr.msk.f32.gmra.mrb[56].mxu1 %vm215_vm1, %v167_v54  ;;  %2497 = vmatprep.mubr.msk.f32.mxu0 %vm215_vm1, %v72_v55  ;;  %v199_v54 = vld [vmem:[%s4450_s0 + $0x5c8] sm:$0xff]  ;;  %v104_v55 = vld [vmem:[%s4450_s0 + $0x2d0] sm:$0xff] }
  0x7a   :  { %2641 = vmatprep.mubr.msk.f32.mxu1 %vm215_vm1, %v168_v56  ;;  %v200_v56 = vld [vmem:[%s4450_s0 + $0x5d0] sm:$0xff] }
  0x7c   :  { %2498 = vmatmul.mubr.msk.f32.gmra.mrb[58].mxu0 %vm215_vm1, %v73_v57  ;;  %v105_v57 = vld [vmem:[%s4450_s0 + $0x2d8] sm:$0xff] }
  0x7d   :  { %2642 = vmatmul.mubr.msk.f32.gmra.mrb[58].mxu1 %vm215_vm1, %v169_v58  ;;  %2500 = vmatprep.mubr.msk.f32.mxu0 %vm215_vm1, %v74_v59  ;;  %v201_v58 = vld [vmem:[%s4450_s0 + $0x5d8] sm:$0xff]  ;;  %v106_v59 = vld [vmem:[%s4450_s0 + $0x2e0] sm:$0xff] }
  0x7e   :  { %2644 = vmatprep.mubr.msk.f32.mxu1 %vm215_vm1, %v170_v60  ;;  %v202_v60 = vld [vmem:[%s4450_s0 + $0x5e0] sm:$0xff] }
  0x80   :  { %2501 = vmatmul.mubr.msk.f32.gmra.mrb[60].mxu0 %vm215_vm1, %v75_v61  ;;  %v107_v61 = vld [vmem:[%s4450_s0 + $0x2e8] sm:$0xff] }
  0x81   :  { %2645 = vmatmul.mubr.msk.f32.gmra.mrb[60].mxu1 %vm215_vm1, %v171_v62  ;;  %2503 = vmatprep.mubr.msk.f32.mxu0 %vm215_vm1, %v76_v63  ;;  %v203_v62 = vld [vmem:[%s4450_s0 + $0x5e8] sm:$0xff]  ;;  %v108_v63 = vld [vmem:[%s4450_s0 + $0x2f0] sm:$0xff] }
  0x82   :  { %2647 = vmatprep.mubr.msk.f32.mxu1 %vm215_vm1, %v172_v0  ;;  %v204_v0 = vld [vmem:[%s4450_s0 + $0x5f0] sm:$0xff] }
  0x84   :  { %2504 = vmatmul.mubr.msk.f32.gmra.mrb[62].mxu0 %vm215_vm1, %v77_v1  ;;  %v109_v1 = vld [vmem:[%s4450_s0 + $0x2f8] sm:$0xff] }
  0x85   :  { %2648 = vmatmul.mubr.msk.f32.gmra.mrb[62].mxu1 %vm215_vm1, %v173_v2  ;;  %2506 = vmatprep.mubr.msk.f32.mxu0 %vm215_vm1, %v78_v3  ;;  %v205_v2 = vld [vmem:[%s4450_s0 + $0x5f8] sm:$0xff]  ;;  %v3506_v3 = vld [vmem:[%s4451_s2] ss:$0 sm:$0xff] }
  0x86   :  { %2650 = vmatprep.mubr.msk.f32.mxu1 %vm215_vm1, %v174_v4 }
  0x88   :  { %2507 = vmatmul.mubr.msk.f32.gmra.mrb[64].mxu0 %vm215_vm1, %v79_v5 }
  0x89   :  { %2651 = vmatmul.mubr.msk.f32.gmra.mrb[64].mxu1 %vm215_vm1, %v175_v6  ;;  %2509 = vmatprep.mubr.msk.f32.mxu0 %vm215_vm1, %v80_v7 }
  0x8a   :  { %2653 = vmatprep.mubr.msk.f32.mxu1 %vm215_vm1, %v176_v8 }
  0x8c   :  { %2510 = vmatmul.mubr.msk.f32.gmra.mrb[66].mxu0 %vm215_vm1, %v81_v9 }
  0x8d   :  { %2654 = vmatmul.mubr.msk.f32.gmra.mrb[66].mxu1 %vm215_vm1, %v177_v10  ;;  %2512 = vmatprep.mubr.msk.f32.mxu0 %vm215_vm1, %v82_v11 }
  0x8e   :  { %2656 = vmatprep.mubr.msk.f32.mxu1 %vm215_vm1, %v178_v12 }
  0x90   :  { %2513 = vmatmul.mubr.msk.f32.gmra.mrb[68].mxu0 %vm215_vm1, %v83_v13 }
  0x91   :  { %2657 = vmatmul.mubr.msk.f32.gmra.mrb[68].mxu1 %vm215_vm1, %v179_v14  ;;  %2515 = vmatprep.mubr.msk.f32.mxu0 %vm215_vm1, %v84_v15 }
  0x92   :  { %2659 = vmatprep.mubr.msk.f32.mxu1 %vm215_vm1, %v180_v16 }
  0x94   :  { %2516 = vmatmul.mubr.msk.f32.gmra.mrb[70].mxu0 %vm215_vm1, %v85_v17 }
  0x95   :  { %2660 = vmatmul.mubr.msk.f32.gmra.mrb[70].mxu1 %vm215_vm1, %v181_v18  ;;  %2518 = vmatprep.mubr.msk.f32.mxu0 %vm215_vm1, %v86_v19 }
  0x96   :  { %2662 = vmatprep.mubr.msk.f32.mxu1 %vm215_vm1, %v182_v20 }
  0x98   :  { %2519 = vmatmul.mubr.msk.f32.gmra.mrb[72].mxu0 %vm215_vm1, %v87_v21 }
  0x99   :  { %2663 = vmatmul.mubr.msk.f32.gmra.mrb[72].mxu1 %vm215_vm1, %v183_v22  ;;  %2521 = vmatprep.mubr.msk.f32.mxu0 %vm215_vm1, %v88_v23 }
  0x9a   :  { %2665 = vmatprep.mubr.msk.f32.mxu1 %vm215_vm1, %v184_v24 }
  0x9c   :  { %2522 = vmatmul.mubr.msk.f32.gmra.mrb[74].mxu0 %vm215_vm1, %v89_v25 }
  0x9d   :  { %2666 = vmatmul.mubr.msk.f32.gmra.mrb[74].mxu1 %vm215_vm1, %v185_v26  ;;  %2524 = vmatprep.mubr.msk.f32.mxu0 %vm215_vm1, %v90_v27 }
  0x9e   :  { %2668 = vmatprep.mubr.msk.f32.mxu1 %vm215_vm1, %v186_v28 }
  0xa0   :  { %2525 = vmatmul.mubr.msk.f32.gmra.mrb[76].mxu0 %vm215_vm1, %v91_v29 }
  0xa1   :  { %2669 = vmatmul.mubr.msk.f32.gmra.mrb[76].mxu1 %vm215_vm1, %v187_v30  ;;  %2527 = vmatprep.mubr.msk.f32.mxu0 %vm215_vm1, %v92_v31 }
  0xa2   :  { %2671 = vmatprep.mubr.msk.f32.mxu1 %vm215_vm1, %v188_v32 }
  0xa4   :  { %2528 = vmatmul.mubr.msk.f32.gmra.mrb[78].mxu0 %vm215_vm1, %v93_v33 }
  0xa5   :  { %2672 = vmatmul.mubr.msk.f32.gmra.mrb[78].mxu1 %vm215_vm1, %v189_v34  ;;  %2530 = vmatprep.mubr.msk.f32.mxu0 %vm215_vm1, %v94_v35 }
  0xa6   :  { %2674 = vmatprep.mubr.msk.f32.mxu1 %vm215_vm1, %v190_v36 }
  0xa8   :  { %2531 = vmatmul.mubr.msk.f32.gmra.mrb[80].mxu0 %vm215_vm1, %v95_v37 }
  0xa9   :  { %2675 = vmatmul.mubr.msk.f32.gmra.mrb[80].mxu1 %vm215_vm1, %v191_v38  ;;  %2533 = vmatprep.mubr.msk.f32.mxu0 %vm215_vm1, %v96_v39 }
  0xaa   :  { %2677 = vmatprep.mubr.msk.f32.mxu1 %vm215_vm1, %v192_v40 }
  0xac   :  { %2534 = vmatmul.mubr.msk.f32.gmra.mrb[82].mxu0 %vm215_vm1, %v97_v41 }
  0xad   :  { %2678 = vmatmul.mubr.msk.f32.gmra.mrb[82].mxu1 %vm215_vm1, %v193_v42  ;;  %2536 = vmatprep.mubr.msk.f32.mxu0 %vm215_vm1, %v98_v43 }
  0xae   :  { %2680 = vmatprep.mubr.msk.f32.mxu1 %vm215_vm1, %v194_v44 }
  0xb0   :  { %2537 = vmatmul.mubr.msk.f32.gmra.mrb[84].mxu0 %vm215_vm1, %v99_v45 }
  0xb1   :  { %2681 = vmatmul.mubr.msk.f32.gmra.mrb[84].mxu1 %vm215_vm1, %v195_v46  ;;  %2539 = vmatprep.mubr.msk.f32.mxu0 %vm215_vm1, %v100_v47 }
  0xb2   :  { %2683 = vmatprep.mubr.msk.f32.mxu1 %vm215_vm1, %v196_v48 }
  0xb4   :  { %2540 = vmatmul.mubr.msk.f32.gmra.mrb[86].mxu0 %vm215_vm1, %v101_v49 }
  0xb5   :  { %2684 = vmatmul.mubr.msk.f32.gmra.mrb[86].mxu1 %vm215_vm1, %v197_v50  ;;  %2542 = vmatprep.mubr.msk.f32.mxu0 %vm215_vm1, %v102_v51 }
  0xb6   :  { %2686 = vmatprep.mubr.msk.f32.mxu1 %vm215_vm1, %v198_v52 }
  0xb8   :  { %2543 = vmatmul.mubr.msk.f32.gmra.mrb[88].mxu0 %vm215_vm1, %v103_v53 }
  0xb9   :  { %2687 = vmatmul.mubr.msk.f32.gmra.mrb[88].mxu1 %vm215_vm1, %v199_v54  ;;  %2545 = vmatprep.mubr.msk.f32.mxu0 %vm215_vm1, %v104_v55 }
  0xba   :  { %2689 = vmatprep.mubr.msk.f32.mxu1 %vm215_vm1, %v200_v56 }
  0xbc   :  { %2546 = vmatmul.mubr.msk.f32.gmra.mrb[90].mxu0 %vm215_vm1, %v105_v57 }
  0xbd   :  { %2690 = vmatmul.mubr.msk.f32.gmra.mrb[90].mxu1 %vm215_vm1, %v201_v58  ;;  %2548 = vmatprep.mubr.msk.f32.mxu0 %vm215_vm1, %v106_v59 }
  0xbe   :  { %2692 = vmatprep.mubr.msk.f32.mxu1 %vm215_vm1, %v202_v60 }
  0xc0   :  { %2549 = vmatmul.mubr.msk.f32.gmra.mrb[92].mxu0 %vm215_vm1, %v107_v61 }
  0xc1   :  { %2693 = vmatmul.mubr.msk.f32.gmra.mrb[92].mxu1 %vm215_vm1, %v203_v62  ;;  %2551 = vmatprep.mubr.msk.f32.mxu0 %vm215_vm1, %v108_v63 }
  0xc2   :  { %2695 = vmatprep.mubr.msk.f32.mxu1 %vm215_vm1, %v204_v0 }
  0xc4   :  { %2552 = vmatmul.mubr.msk.f32.gmra.mrb[94].mxu0 %vm215_vm1, %v109_v1 }
  0xc5   :  { %2696 = vmatmul.mubr.msk.f32.gmra.mrb[94].mxu1 %vm215_vm1, %v205_v2 }
  0xdb   :  { %v2412_v4 = vpop.f32.mrb[0].mxu0 }
  0xdc   :  { %v2556_v5 = vpop.f32.mrb[0].mxu1  ;;  %v868_v6 = vadd.f32 %v2412_v4, %v3506_v3  ;;  %v862_v8 = vpop.f32.mrb[1].mxu0 }
  0xdd   :  { %v1348_v7 = vadd.f32 %v2556_v5, %v3506_v3  ;;  %v1342_v9 = vpop.f32.mrb[1].mxu1  ;;  %v863_v10 = vadd.f32 %v3506_v3, %v862_v8 }
  0xde   :  { %v1343_v11 = vadd.f32 %v3506_v3, %v1342_v9  ;;  %1823 = vst.msk [vmem:[%s4452_s3 + $0x8] sm:$0xff] %vm1821_vm4, %v868_v6 }
  0xdf   :  { %1919 = vst.msk [vmem:[%s4452_s3 + $0x308] sm:$0xff] %vm1821_vm4, %v1348_v7  ;;  %1822 = vst.msk [vmem:[%s4452_s3] sm:$0xff] %vm1821_vm4, %v863_v10  ;;  %v2415_v12 = vpop.f32.mrb[2].mxu0 }
  0xe0   :  { %1918 = vst.msk [vmem:[%s4452_s3 + $0x300] sm:$0xff] %vm1821_vm4, %v1343_v11  ;;  %v2559_v13 = vpop.f32.mrb[2].mxu1  ;;  %v878_v14 = vadd.f32 %v2415_v12, %v3506_v3  ;;  %v872_v16 = vpop.f32.mrb[3].mxu0 }
  0xe1   :  { %v1358_v15 = vadd.f32 %v2559_v13, %v3506_v3  ;;  %v1352_v17 = vpop.f32.mrb[3].mxu1  ;;  %v873_v18 = vadd.f32 %v3506_v3, %v872_v16 }
  0xe2   :  { %v1353_v19 = vadd.f32 %v3506_v3, %v1352_v17  ;;  %1825 = vst.msk [vmem:[%s4452_s3 + $0x18] sm:$0xff] %vm1821_vm4, %v878_v14 }
  0xe3   :  { %1921 = vst.msk [vmem:[%s4452_s3 + $0x318] sm:$0xff] %vm1821_vm4, %v1358_v15  ;;  %1824 = vst.msk [vmem:[%s4452_s3 + $0x10] sm:$0xff] %vm1821_vm4, %v873_v18  ;;  %v2418_v20 = vpop.f32.mrb[4].mxu0 }
  0xe4   :  { %1920 = vst.msk [vmem:[%s4452_s3 + $0x310] sm:$0xff] %vm1821_vm4, %v1353_v19  ;;  %v2562_v21 = vpop.f32.mrb[4].mxu1  ;;  %v888_v22 = vadd.f32 %v2418_v20, %v3506_v3  ;;  %v882_v24 = vpop.f32.mrb[5].mxu0 }
  0xe5   :  { %v1368_v23 = vadd.f32 %v2562_v21, %v3506_v3  ;;  %v1362_v25 = vpop.f32.mrb[5].mxu1  ;;  %v883_v26 = vadd.f32 %v3506_v3, %v882_v24 }
  0xe6   :  { %v1363_v27 = vadd.f32 %v3506_v3, %v1362_v25  ;;  %1827 = vst.msk [vmem:[%s4452_s3 + $0x28] sm:$0xff] %vm1821_vm4, %v888_v22 }
  0xe7   :  { %1923 = vst.msk [vmem:[%s4452_s3 + $0x328] sm:$0xff] %vm1821_vm4, %v1368_v23  ;;  %1826 = vst.msk [vmem:[%s4452_s3 + $0x20] sm:$0xff] %vm1821_vm4, %v883_v26  ;;  %v2421_v28 = vpop.f32.mrb[6].mxu0 }
  0xe8   :  { %1922 = vst.msk [vmem:[%s4452_s3 + $0x320] sm:$0xff] %vm1821_vm4, %v1363_v27  ;;  %v2565_v29 = vpop.f32.mrb[6].mxu1  ;;  %v898_v30 = vadd.f32 %v2421_v28, %v3506_v3  ;;  %v892_v32 = vpop.f32.mrb[7].mxu0 }
  0xe9   :  { %v1378_v31 = vadd.f32 %v2565_v29, %v3506_v3  ;;  %v1372_v33 = vpop.f32.mrb[7].mxu1  ;;  %v893_v34 = vadd.f32 %v3506_v3, %v892_v32 }
  0xea   :  { %v1373_v35 = vadd.f32 %v3506_v3, %v1372_v33  ;;  %1829 = vst.msk [vmem:[%s4452_s3 + $0x38] sm:$0xff] %vm1821_vm4, %v898_v30 }
  0xeb   :  { %1925 = vst.msk [vmem:[%s4452_s3 + $0x338] sm:$0xff] %vm1821_vm4, %v1378_v31  ;;  %1828 = vst.msk [vmem:[%s4452_s3 + $0x30] sm:$0xff] %vm1821_vm4, %v893_v34  ;;  %v2424_v36 = vpop.f32.mrb[8].mxu0 }
  0xec   :  { %1924 = vst.msk [vmem:[%s4452_s3 + $0x330] sm:$0xff] %vm1821_vm4, %v1373_v35  ;;  %v2568_v37 = vpop.f32.mrb[8].mxu1  ;;  %v908_v38 = vadd.f32 %v2424_v36, %v3506_v3  ;;  %v902_v40 = vpop.f32.mrb[9].mxu0 }
  0xed   :  { %v1388_v39 = vadd.f32 %v2568_v37, %v3506_v3  ;;  %v1382_v41 = vpop.f32.mrb[9].mxu1  ;;  %v903_v42 = vadd.f32 %v3506_v3, %v902_v40 }
  0xee   :  { %v1383_v43 = vadd.f32 %v3506_v3, %v1382_v41  ;;  %1831 = vst.msk [vmem:[%s4452_s3 + $0x48] sm:$0xff] %vm1821_vm4, %v908_v38 }
  0xef   :  { %1927 = vst.msk [vmem:[%s4452_s3 + $0x348] sm:$0xff] %vm1821_vm4, %v1388_v39  ;;  %1830 = vst.msk [vmem:[%s4452_s3 + $0x40] sm:$0xff] %vm1821_vm4, %v903_v42  ;;  %v2427_v44 = vpop.f32.mrb[10].mxu0 }
  0xf0   :  { %1926 = vst.msk [vmem:[%s4452_s3 + $0x340] sm:$0xff] %vm1821_vm4, %v1383_v43  ;;  %v2571_v45 = vpop.f32.mrb[10].mxu1  ;;  %v918_v46 = vadd.f32 %v2427_v44, %v3506_v3  ;;  %v912_v48 = vpop.f32.mrb[11].mxu0 }
  0xf1   :  { %v1398_v47 = vadd.f32 %v2571_v45, %v3506_v3  ;;  %v1392_v49 = vpop.f32.mrb[11].mxu1  ;;  %v913_v50 = vadd.f32 %v3506_v3, %v912_v48 }
  0xf2   :  { %v1393_v51 = vadd.f32 %v3506_v3, %v1392_v49  ;;  %1833 = vst.msk [vmem:[%s4452_s3 + $0x58] sm:$0xff] %vm1821_vm4, %v918_v46 }
  0xf3   :  { %1929 = vst.msk [vmem:[%s4452_s3 + $0x358] sm:$0xff] %vm1821_vm4, %v1398_v47  ;;  %1832 = vst.msk [vmem:[%s4452_s3 + $0x50] sm:$0xff] %vm1821_vm4, %v913_v50  ;;  %v2430_v52 = vpop.f32.mrb[12].mxu0 }
  0xf4   :  { %1928 = vst.msk [vmem:[%s4452_s3 + $0x350] sm:$0xff] %vm1821_vm4, %v1393_v51  ;;  %v2574_v53 = vpop.f32.mrb[12].mxu1  ;;  %v928_v54 = vadd.f32 %v2430_v52, %v3506_v3  ;;  %v922_v56 = vpop.f32.mrb[13].mxu0 }
  0xf5   :  { %v1408_v55 = vadd.f32 %v2574_v53, %v3506_v3  ;;  %v1402_v57 = vpop.f32.mrb[13].mxu1  ;;  %v923_v58 = vadd.f32 %v3506_v3, %v922_v56 }
  0xf6   :  { %v1403_v59 = vadd.f32 %v3506_v3, %v1402_v57  ;;  %1835 = vst.msk [vmem:[%s4452_s3 + $0x68] sm:$0xff] %vm1821_vm4, %v928_v54 }
  0xf7   :  { %1931 = vst.msk [vmem:[%s4452_s3 + $0x368] sm:$0xff] %vm1821_vm4, %v1408_v55  ;;  %1834 = vst.msk [vmem:[%s4452_s3 + $0x60] sm:$0xff] %vm1821_vm4, %v923_v58  ;;  %v2433_v60 = vpop.f32.mrb[14].mxu0 }
  0xf8   :  { %1930 = vst.msk [vmem:[%s4452_s3 + $0x360] sm:$0xff] %vm1821_vm4, %v1403_v59  ;;  %v2577_v61 = vpop.f32.mrb[14].mxu1  ;;  %v938_v62 = vadd.f32 %v2433_v60, %v3506_v3  ;;  %v932_v0 = vpop.f32.mrb[15].mxu0 }
  0xf9   :  { %v1418_v63 = vadd.f32 %v2577_v61, %v3506_v3  ;;  %v1412_v1 = vpop.f32.mrb[15].mxu1  ;;  %v933_v2 = vadd.f32 %v3506_v3, %v932_v0 }
  0xfa   :  { %v1413_v4 = vadd.f32 %v3506_v3, %v1412_v1  ;;  %1837 = vst.msk [vmem:[%s4452_s3 + $0x78] sm:$0xff] %vm1821_vm4, %v938_v62 }
  0xfb   :  { %1933 = vst.msk [vmem:[%s4452_s3 + $0x378] sm:$0xff] %vm1821_vm4, %v1418_v63  ;;  %1836 = vst.msk [vmem:[%s4452_s3 + $0x70] sm:$0xff] %vm1821_vm4, %v933_v2  ;;  %v2436_v5 = vpop.f32.mrb[16].mxu0 }
  0xfc   :  { %1932 = vst.msk [vmem:[%s4452_s3 + $0x370] sm:$0xff] %vm1821_vm4, %v1413_v4  ;;  %v2580_v6 = vpop.f32.mrb[16].mxu1  ;;  %v948_v7 = vadd.f32 %v2436_v5, %v3506_v3  ;;  %v942_v9 = vpop.f32.mrb[17].mxu0 }
  0xfd   :  { %v1428_v8 = vadd.f32 %v2580_v6, %v3506_v3  ;;  %v1422_v10 = vpop.f32.mrb[17].mxu1  ;;  %v943_v11 = vadd.f32 %v3506_v3, %v942_v9 }
  0xfe   :  { %v1423_v12 = vadd.f32 %v3506_v3, %v1422_v10  ;;  %1839 = vst.msk [vmem:[%s4452_s3 + $0x88] sm:$0xff] %vm1821_vm4, %v948_v7 }
  0xff   :  { %1935 = vst.msk [vmem:[%s4452_s3 + $0x388] sm:$0xff] %vm1821_vm4, %v1428_v8  ;;  %1838 = vst.msk [vmem:[%s4452_s3 + $0x80] sm:$0xff] %vm1821_vm4, %v943_v11  ;;  %v2439_v13 = vpop.f32.mrb[18].mxu0 }
 0x100   :  { %1934 = vst.msk [vmem:[%s4452_s3 + $0x380] sm:$0xff] %vm1821_vm4, %v1423_v12  ;;  %v2583_v14 = vpop.f32.mrb[18].mxu1  ;;  %v958_v15 = vadd.f32 %v2439_v13, %v3506_v3  ;;  %v952_v17 = vpop.f32.mrb[19].mxu0 }
 0x101   :  { %v1438_v16 = vadd.f32 %v2583_v14, %v3506_v3  ;;  %v1432_v18 = vpop.f32.mrb[19].mxu1  ;;  %v953_v19 = vadd.f32 %v3506_v3, %v952_v17 }
 0x102   :  { %v1433_v20 = vadd.f32 %v3506_v3, %v1432_v18  ;;  %1841 = vst.msk [vmem:[%s4452_s3 + $0x98] sm:$0xff] %vm1821_vm4, %v958_v15 }
 0x103   :  { %1937 = vst.msk [vmem:[%s4452_s3 + $0x398] sm:$0xff] %vm1821_vm4, %v1438_v16  ;;  %1840 = vst.msk [vmem:[%s4452_s3 + $0x90] sm:$0xff] %vm1821_vm4, %v953_v19  ;;  %v2442_v21 = vpop.f32.mrb[20].mxu0 }
 0x104   :  { %1936 = vst.msk [vmem:[%s4452_s3 + $0x390] sm:$0xff] %vm1821_vm4, %v1433_v20  ;;  %v2586_v22 = vpop.f32.mrb[20].mxu1  ;;  %v968_v23 = vadd.f32 %v2442_v21, %v3506_v3  ;;  %v962_v25 = vpop.f32.mrb[21].mxu0 }
 0x105   :  { %v1448_v24 = vadd.f32 %v2586_v22, %v3506_v3  ;;  %v1442_v26 = vpop.f32.mrb[21].mxu1  ;;  %v963_v27 = vadd.f32 %v3506_v3, %v962_v25 }
 0x106   :  { %v1443_v28 = vadd.f32 %v3506_v3, %v1442_v26  ;;  %1843 = vst.msk [vmem:[%s4452_s3 + $0xa8] sm:$0xff] %vm1821_vm4, %v968_v23 }
 0x107   :  { %1939 = vst.msk [vmem:[%s4452_s3 + $0x3a8] sm:$0xff] %vm1821_vm4, %v1448_v24  ;;  %1842 = vst.msk [vmem:[%s4452_s3 + $0xa0] sm:$0xff] %vm1821_vm4, %v963_v27  ;;  %v2445_v29 = vpop.f32.mrb[22].mxu0 }
 0x108   :  { %1938 = vst.msk [vmem:[%s4452_s3 + $0x3a0] sm:$0xff] %vm1821_vm4, %v1443_v28  ;;  %v2589_v30 = vpop.f32.mrb[22].mxu1  ;;  %v978_v31 = vadd.f32 %v2445_v29, %v3506_v3  ;;  %v972_v33 = vpop.f32.mrb[23].mxu0 }
 0x109   :  { %v1458_v32 = vadd.f32 %v2589_v30, %v3506_v3  ;;  %v1452_v34 = vpop.f32.mrb[23].mxu1  ;;  %v973_v35 = vadd.f32 %v3506_v3, %v972_v33 }
 0x10a   :  { %v1453_v36 = vadd.f32 %v3506_v3, %v1452_v34  ;;  %1845 = vst.msk [vmem:[%s4452_s3 + $0xb8] sm:$0xff] %vm1821_vm4, %v978_v31 }
 0x10b   :  { %1941 = vst.msk [vmem:[%s4452_s3 + $0x3b8] sm:$0xff] %vm1821_vm4, %v1458_v32  ;;  %1844 = vst.msk [vmem:[%s4452_s3 + $0xb0] sm:$0xff] %vm1821_vm4, %v973_v35  ;;  %v2448_v37 = vpop.f32.mrb[24].mxu0 }
 0x10c   :  { %1940 = vst.msk [vmem:[%s4452_s3 + $0x3b0] sm:$0xff] %vm1821_vm4, %v1453_v36  ;;  %v2592_v38 = vpop.f32.mrb[24].mxu1  ;;  %v988_v39 = vadd.f32 %v2448_v37, %v3506_v3  ;;  %v982_v41 = vpop.f32.mrb[25].mxu0 }
 0x10d   :  { %v1468_v40 = vadd.f32 %v2592_v38, %v3506_v3  ;;  %v1462_v42 = vpop.f32.mrb[25].mxu1  ;;  %v983_v43 = vadd.f32 %v3506_v3, %v982_v41 }
 0x10e   :  { %v1463_v44 = vadd.f32 %v3506_v3, %v1462_v42  ;;  %1847 = vst.msk [vmem:[%s4452_s3 + $0xc8] sm:$0xff] %vm1821_vm4, %v988_v39 }
 0x10f   :  { %1943 = vst.msk [vmem:[%s4452_s3 + $0x3c8] sm:$0xff] %vm1821_vm4, %v1468_v40  ;;  %1846 = vst.msk [vmem:[%s4452_s3 + $0xc0] sm:$0xff] %vm1821_vm4, %v983_v43  ;;  %v2451_v45 = vpop.f32.mrb[26].mxu0 }
 0x110   :  { %1942 = vst.msk [vmem:[%s4452_s3 + $0x3c0] sm:$0xff] %vm1821_vm4, %v1463_v44  ;;  %v2595_v46 = vpop.f32.mrb[26].mxu1  ;;  %v998_v47 = vadd.f32 %v2451_v45, %v3506_v3  ;;  %v992_v49 = vpop.f32.mrb[27].mxu0 }
 0x111   :  { %v1478_v48 = vadd.f32 %v2595_v46, %v3506_v3  ;;  %v1472_v50 = vpop.f32.mrb[27].mxu1  ;;  %v993_v51 = vadd.f32 %v3506_v3, %v992_v49 }
 0x112   :  { %v1473_v52 = vadd.f32 %v3506_v3, %v1472_v50  ;;  %1849 = vst.msk [vmem:[%s4452_s3 + $0xd8] sm:$0xff] %vm1821_vm4, %v998_v47 }
 0x113   :  { %1945 = vst.msk [vmem:[%s4452_s3 + $0x3d8] sm:$0xff] %vm1821_vm4, %v1478_v48  ;;  %1848 = vst.msk [vmem:[%s4452_s3 + $0xd0] sm:$0xff] %vm1821_vm4, %v993_v51  ;;  %v2454_v53 = vpop.f32.mrb[28].mxu0 }
 0x114   :  { %1944 = vst.msk [vmem:[%s4452_s3 + $0x3d0] sm:$0xff] %vm1821_vm4, %v1473_v52  ;;  %v2598_v54 = vpop.f32.mrb[28].mxu1  ;;  %v1008_v55 = vadd.f32 %v2454_v53, %v3506_v3  ;;  %v1002_v57 = vpop.f32.mrb[29].mxu0 }
 0x115   :  { %v1488_v56 = vadd.f32 %v2598_v54, %v3506_v3  ;;  %v1482_v58 = vpop.f32.mrb[29].mxu1  ;;  %v1003_v59 = vadd.f32 %v3506_v3, %v1002_v57 }
 0x116   :  { %v1483_v60 = vadd.f32 %v3506_v3, %v1482_v58  ;;  %1851 = vst.msk [vmem:[%s4452_s3 + $0xe8] sm:$0xff] %vm1821_vm4, %v1008_v55 }
 0x117   :  { %1947 = vst.msk [vmem:[%s4452_s3 + $0x3e8] sm:$0xff] %vm1821_vm4, %v1488_v56  ;;  %1850 = vst.msk [vmem:[%s4452_s3 + $0xe0] sm:$0xff] %vm1821_vm4, %v1003_v59  ;;  %v2457_v61 = vpop.f32.mrb[30].mxu0 }
 0x118   :  { %1946 = vst.msk [vmem:[%s4452_s3 + $0x3e0] sm:$0xff] %vm1821_vm4, %v1483_v60  ;;  %v2601_v62 = vpop.f32.mrb[30].mxu1  ;;  %v1018_v63 = vadd.f32 %v2457_v61, %v3506_v3  ;;  %v1012_v1 = vpop.f32.mrb[31].mxu0 }
 0x119   :  { %v1498_v0 = vadd.f32 %v2601_v62, %v3506_v3  ;;  %v1492_v2 = vpop.f32.mrb[31].mxu1  ;;  %v1013_v4 = vadd.f32 %v3506_v3, %v1012_v1 }
 0x11a   :  { %v1493_v5 = vadd.f32 %v3506_v3, %v1492_v2  ;;  %1853 = vst.msk [vmem:[%s4452_s3 + $0xf8] sm:$0xff] %vm1821_vm4, %v1018_v63 }
 0x11b   :  { %1949 = vst.msk [vmem:[%s4452_s3 + $0x3f8] sm:$0xff] %vm1821_vm4, %v1498_v0  ;;  %1852 = vst.msk [vmem:[%s4452_s3 + $0xf0] sm:$0xff] %vm1821_vm4, %v1013_v4  ;;  %v2460_v6 = vpop.f32.mrb[32].mxu0 }
 0x11c   :  { %1948 = vst.msk [vmem:[%s4452_s3 + $0x3f0] sm:$0xff] %vm1821_vm4, %v1493_v5  ;;  %v2604_v7 = vpop.f32.mrb[32].mxu1  ;;  %v1028_v8 = vadd.f32 %v2460_v6, %v3506_v3  ;;  %v1022_v10 = vpop.f32.mrb[33].mxu0 }
 0x11d   :  { %v1508_v9 = vadd.f32 %v2604_v7, %v3506_v3  ;;  %v1502_v11 = vpop.f32.mrb[33].mxu1  ;;  %v1023_v12 = vadd.f32 %v3506_v3, %v1022_v10 }
 0x11e   :  { %v1503_v13 = vadd.f32 %v3506_v3, %v1502_v11  ;;  %1855 = vst.msk [vmem:[%s4452_s3 + $0x108] sm:$0xff] %vm1821_vm4, %v1028_v8 }
 0x11f   :  { %1951 = vst.msk [vmem:[%s4452_s3 + $0x408] sm:$0xff] %vm1821_vm4, %v1508_v9  ;;  %1854 = vst.msk [vmem:[%s4452_s3 + $0x100] sm:$0xff] %vm1821_vm4, %v1023_v12  ;;  %v2463_v14 = vpop.f32.mrb[34].mxu0 }
 0x120   :  { %1950 = vst.msk [vmem:[%s4452_s3 + $0x400] sm:$0xff] %vm1821_vm4, %v1503_v13  ;;  %v2607_v15 = vpop.f32.mrb[34].mxu1  ;;  %v1038_v16 = vadd.f32 %v2463_v14, %v3506_v3  ;;  %v1032_v18 = vpop.f32.mrb[35].mxu0 }
 0x121   :  { %v1518_v17 = vadd.f32 %v2607_v15, %v3506_v3  ;;  %v1512_v19 = vpop.f32.mrb[35].mxu1  ;;  %v1033_v20 = vadd.f32 %v3506_v3, %v1032_v18 }
 0x122   :  { %v1513_v21 = vadd.f32 %v3506_v3, %v1512_v19  ;;  %1857 = vst.msk [vmem:[%s4452_s3 + $0x118] sm:$0xff] %vm1821_vm4, %v1038_v16 }
 0x123   :  { %1953 = vst.msk [vmem:[%s4452_s3 + $0x418] sm:$0xff] %vm1821_vm4, %v1518_v17  ;;  %1856 = vst.msk [vmem:[%s4452_s3 + $0x110] sm:$0xff] %vm1821_vm4, %v1033_v20  ;;  %v2466_v22 = vpop.f32.mrb[36].mxu0 }
 0x124   :  { %1952 = vst.msk [vmem:[%s4452_s3 + $0x410] sm:$0xff] %vm1821_vm4, %v1513_v21  ;;  %v2610_v23 = vpop.f32.mrb[36].mxu1  ;;  %v1048_v24 = vadd.f32 %v2466_v22, %v3506_v3  ;;  %v1042_v26 = vpop.f32.mrb[37].mxu0 }
 0x125   :  { %v1528_v25 = vadd.f32 %v2610_v23, %v3506_v3  ;;  %v1522_v27 = vpop.f32.mrb[37].mxu1  ;;  %v1043_v28 = vadd.f32 %v3506_v3, %v1042_v26 }
 0x126   :  { %v1523_v29 = vadd.f32 %v3506_v3, %v1522_v27  ;;  %1859 = vst.msk [vmem:[%s4452_s3 + $0x128] sm:$0xff] %vm1821_vm4, %v1048_v24 }
 0x127   :  { %1955 = vst.msk [vmem:[%s4452_s3 + $0x428] sm:$0xff] %vm1821_vm4, %v1528_v25  ;;  %1858 = vst.msk [vmem:[%s4452_s3 + $0x120] sm:$0xff] %vm1821_vm4, %v1043_v28  ;;  %v2469_v30 = vpop.f32.mrb[38].mxu0 }
 0x128   :  { %1954 = vst.msk [vmem:[%s4452_s3 + $0x420] sm:$0xff] %vm1821_vm4, %v1523_v29  ;;  %v2613_v31 = vpop.f32.mrb[38].mxu1  ;;  %v1058_v32 = vadd.f32 %v2469_v30, %v3506_v3  ;;  %v1052_v34 = vpop.f32.mrb[39].mxu0 }
 0x129   :  { %v1538_v33 = vadd.f32 %v2613_v31, %v3506_v3  ;;  %v1532_v35 = vpop.f32.mrb[39].mxu1  ;;  %v1053_v36 = vadd.f32 %v3506_v3, %v1052_v34 }
 0x12a   :  { %v1533_v37 = vadd.f32 %v3506_v3, %v1532_v35  ;;  %1861 = vst.msk [vmem:[%s4452_s3 + $0x138] sm:$0xff] %vm1821_vm4, %v1058_v32 }
 0x12b   :  { %1957 = vst.msk [vmem:[%s4452_s3 + $0x438] sm:$0xff] %vm1821_vm4, %v1538_v33  ;;  %1860 = vst.msk [vmem:[%s4452_s3 + $0x130] sm:$0xff] %vm1821_vm4, %v1053_v36  ;;  %v2472_v38 = vpop.f32.mrb[40].mxu0 }
 0x12c   :  { %1956 = vst.msk [vmem:[%s4452_s3 + $0x430] sm:$0xff] %vm1821_vm4, %v1533_v37  ;;  %v2616_v39 = vpop.f32.mrb[40].mxu1  ;;  %v1068_v40 = vadd.f32 %v2472_v38, %v3506_v3  ;;  %v1062_v42 = vpop.f32.mrb[41].mxu0 }
 0x12d   :  { %v1548_v41 = vadd.f32 %v2616_v39, %v3506_v3  ;;  %v1542_v43 = vpop.f32.mrb[41].mxu1  ;;  %v1063_v44 = vadd.f32 %v3506_v3, %v1062_v42 }
 0x12e   :  { %v1543_v45 = vadd.f32 %v3506_v3, %v1542_v43  ;;  %1863 = vst.msk [vmem:[%s4452_s3 + $0x148] sm:$0xff] %vm1821_vm4, %v1068_v40 }
 0x12f   :  { %1959 = vst.msk [vmem:[%s4452_s3 + $0x448] sm:$0xff] %vm1821_vm4, %v1548_v41  ;;  %1862 = vst.msk [vmem:[%s4452_s3 + $0x140] sm:$0xff] %vm1821_vm4, %v1063_v44  ;;  %v2475_v46 = vpop.f32.mrb[42].mxu0 }
 0x130   :  { %1958 = vst.msk [vmem:[%s4452_s3 + $0x440] sm:$0xff] %vm1821_vm4, %v1543_v45  ;;  %v2619_v47 = vpop.f32.mrb[42].mxu1  ;;  %v1078_v48 = vadd.f32 %v2475_v46, %v3506_v3  ;;  %v1072_v50 = vpop.f32.mrb[43].mxu0 }
 0x131   :  { %v1558_v49 = vadd.f32 %v2619_v47, %v3506_v3  ;;  %v1552_v51 = vpop.f32.mrb[43].mxu1  ;;  %v1073_v52 = vadd.f32 %v3506_v3, %v1072_v50 }
 0x132   :  { %v1553_v53 = vadd.f32 %v3506_v3, %v1552_v51  ;;  %1865 = vst.msk [vmem:[%s4452_s3 + $0x158] sm:$0xff] %vm1821_vm4, %v1078_v48 }
 0x133   :  { %1961 = vst.msk [vmem:[%s4452_s3 + $0x458] sm:$0xff] %vm1821_vm4, %v1558_v49  ;;  %1864 = vst.msk [vmem:[%s4452_s3 + $0x150] sm:$0xff] %vm1821_vm4, %v1073_v52  ;;  %v2478_v54 = vpop.f32.mrb[44].mxu0 }
 0x134   :  { %1960 = vst.msk [vmem:[%s4452_s3 + $0x450] sm:$0xff] %vm1821_vm4, %v1553_v53  ;;  %v2622_v55 = vpop.f32.mrb[44].mxu1  ;;  %v1088_v56 = vadd.f32 %v2478_v54, %v3506_v3  ;;  %v1082_v58 = vpop.f32.mrb[45].mxu0 }
 0x135   :  { %v1568_v57 = vadd.f32 %v2622_v55, %v3506_v3  ;;  %v1562_v59 = vpop.f32.mrb[45].mxu1  ;;  %v1083_v60 = vadd.f32 %v3506_v3, %v1082_v58 }
 0x136   :  { %v1563_v61 = vadd.f32 %v3506_v3, %v1562_v59  ;;  %1867 = vst.msk [vmem:[%s4452_s3 + $0x168] sm:$0xff] %vm1821_vm4, %v1088_v56 }
 0x137   :  { %1963 = vst.msk [vmem:[%s4452_s3 + $0x468] sm:$0xff] %vm1821_vm4, %v1568_v57  ;;  %1866 = vst.msk [vmem:[%s4452_s3 + $0x160] sm:$0xff] %vm1821_vm4, %v1083_v60  ;;  %v2481_v62 = vpop.f32.mrb[46].mxu0 }
 0x138   :  { %1962 = vst.msk [vmem:[%s4452_s3 + $0x460] sm:$0xff] %vm1821_vm4, %v1563_v61  ;;  %v2625_v63 = vpop.f32.mrb[46].mxu1  ;;  %v1098_v0 = vadd.f32 %v2481_v62, %v3506_v3  ;;  %v1092_v2 = vpop.f32.mrb[47].mxu0 }
 0x139   :  { %v1578_v1 = vadd.f32 %v2625_v63, %v3506_v3  ;;  %v1572_v4 = vpop.f32.mrb[47].mxu1  ;;  %v1093_v5 = vadd.f32 %v3506_v3, %v1092_v2 }
 0x13a   :  { %v1573_v6 = vadd.f32 %v3506_v3, %v1572_v4  ;;  %1869 = vst.msk [vmem:[%s4452_s3 + $0x178] sm:$0xff] %vm1821_vm4, %v1098_v0 }
 0x13b   :  { %1965 = vst.msk [vmem:[%s4452_s3 + $0x478] sm:$0xff] %vm1821_vm4, %v1578_v1  ;;  %1868 = vst.msk [vmem:[%s4452_s3 + $0x170] sm:$0xff] %vm1821_vm4, %v1093_v5  ;;  %v2484_v7 = vpop.f32.mrb[48].mxu0 }
 0x13c   :  { %1964 = vst.msk [vmem:[%s4452_s3 + $0x470] sm:$0xff] %vm1821_vm4, %v1573_v6  ;;  %v2628_v8 = vpop.f32.mrb[48].mxu1  ;;  %v1108_v9 = vadd.f32 %v2484_v7, %v3506_v3  ;;  %v1102_v11 = vpop.f32.mrb[49].mxu0 }
 0x13d   :  { %v1588_v10 = vadd.f32 %v2628_v8, %v3506_v3  ;;  %v1582_v12 = vpop.f32.mrb[49].mxu1  ;;  %v1103_v13 = vadd.f32 %v3506_v3, %v1102_v11 }
 0x13e   :  { %v1583_v14 = vadd.f32 %v3506_v3, %v1582_v12  ;;  %1871 = vst.msk [vmem:[%s4452_s3 + $0x188] sm:$0xff] %vm1821_vm4, %v1108_v9 }
 0x13f   :  { %1967 = vst.msk [vmem:[%s4452_s3 + $0x488] sm:$0xff] %vm1821_vm4, %v1588_v10  ;;  %1870 = vst.msk [vmem:[%s4452_s3 + $0x180] sm:$0xff] %vm1821_vm4, %v1103_v13  ;;  %v2487_v15 = vpop.f32.mrb[50].mxu0 }
 0x140   :  { %1966 = vst.msk [vmem:[%s4452_s3 + $0x480] sm:$0xff] %vm1821_vm4, %v1583_v14  ;;  %v2631_v16 = vpop.f32.mrb[50].mxu1  ;;  %v1118_v17 = vadd.f32 %v2487_v15, %v3506_v3  ;;  %v1112_v19 = vpop.f32.mrb[51].mxu0 }
 0x141   :  { %v1598_v18 = vadd.f32 %v2631_v16, %v3506_v3  ;;  %v1592_v20 = vpop.f32.mrb[51].mxu1  ;;  %v1113_v21 = vadd.f32 %v3506_v3, %v1112_v19 }
 0x142   :  { %v1593_v22 = vadd.f32 %v3506_v3, %v1592_v20  ;;  %1873 = vst.msk [vmem:[%s4452_s3 + $0x198] sm:$0xff] %vm1821_vm4, %v1118_v17 }
 0x143   :  { %1969 = vst.msk [vmem:[%s4452_s3 + $0x498] sm:$0xff] %vm1821_vm4, %v1598_v18  ;;  %1872 = vst.msk [vmem:[%s4452_s3 + $0x190] sm:$0xff] %vm1821_vm4, %v1113_v21  ;;  %v2490_v23 = vpop.f32.mrb[52].mxu0 }
 0x144   :  { %1968 = vst.msk [vmem:[%s4452_s3 + $0x490] sm:$0xff] %vm1821_vm4, %v1593_v22  ;;  %v2634_v24 = vpop.f32.mrb[52].mxu1  ;;  %v1128_v25 = vadd.f32 %v2490_v23, %v3506_v3  ;;  %v1122_v27 = vpop.f32.mrb[53].mxu0 }
 0x145   :  { %v1608_v26 = vadd.f32 %v2634_v24, %v3506_v3  ;;  %v1602_v28 = vpop.f32.mrb[53].mxu1  ;;  %v1123_v29 = vadd.f32 %v3506_v3, %v1122_v27 }
 0x146   :  { %v1603_v30 = vadd.f32 %v3506_v3, %v1602_v28  ;;  %1875 = vst.msk [vmem:[%s4452_s3 + $0x1a8] sm:$0xff] %vm1821_vm4, %v1128_v25 }
 0x147   :  { %1971 = vst.msk [vmem:[%s4452_s3 + $0x4a8] sm:$0xff] %vm1821_vm4, %v1608_v26  ;;  %1874 = vst.msk [vmem:[%s4452_s3 + $0x1a0] sm:$0xff] %vm1821_vm4, %v1123_v29  ;;  %v2493_v31 = vpop.f32.mrb[54].mxu0 }
 0x148   :  { %1970 = vst.msk [vmem:[%s4452_s3 + $0x4a0] sm:$0xff] %vm1821_vm4, %v1603_v30  ;;  %v2637_v32 = vpop.f32.mrb[54].mxu1  ;;  %v1138_v33 = vadd.f32 %v2493_v31, %v3506_v3  ;;  %v1132_v35 = vpop.f32.mrb[55].mxu0 }
 0x149   :  { %v1618_v34 = vadd.f32 %v2637_v32, %v3506_v3  ;;  %v1612_v36 = vpop.f32.mrb[55].mxu1  ;;  %v1133_v37 = vadd.f32 %v3506_v3, %v1132_v35 }
 0x14a   :  { %v1613_v38 = vadd.f32 %v3506_v3, %v1612_v36  ;;  %1877 = vst.msk [vmem:[%s4452_s3 + $0x1b8] sm:$0xff] %vm1821_vm4, %v1138_v33 }
 0x14b   :  { %1973 = vst.msk [vmem:[%s4452_s3 + $0x4b8] sm:$0xff] %vm1821_vm4, %v1618_v34  ;;  %1876 = vst.msk [vmem:[%s4452_s3 + $0x1b0] sm:$0xff] %vm1821_vm4, %v1133_v37  ;;  %v2496_v39 = vpop.f32.mrb[56].mxu0 }
 0x14c   :  { %1972 = vst.msk [vmem:[%s4452_s3 + $0x4b0] sm:$0xff] %vm1821_vm4, %v1613_v38  ;;  %v2640_v40 = vpop.f32.mrb[56].mxu1  ;;  %v1148_v41 = vadd.f32 %v2496_v39, %v3506_v3  ;;  %v1142_v43 = vpop.f32.mrb[57].mxu0 }
 0x14d   :  { %v1628_v42 = vadd.f32 %v2640_v40, %v3506_v3  ;;  %v1622_v44 = vpop.f32.mrb[57].mxu1  ;;  %v1143_v45 = vadd.f32 %v3506_v3, %v1142_v43 }
 0x14e   :  { %v1623_v46 = vadd.f32 %v3506_v3, %v1622_v44  ;;  %1879 = vst.msk [vmem:[%s4452_s3 + $0x1c8] sm:$0xff] %vm1821_vm4, %v1148_v41 }
 0x14f   :  { %1975 = vst.msk [vmem:[%s4452_s3 + $0x4c8] sm:$0xff] %vm1821_vm4, %v1628_v42  ;;  %1878 = vst.msk [vmem:[%s4452_s3 + $0x1c0] sm:$0xff] %vm1821_vm4, %v1143_v45  ;;  %v2499_v47 = vpop.f32.mrb[58].mxu0 }
 0x150   :  { %1974 = vst.msk [vmem:[%s4452_s3 + $0x4c0] sm:$0xff] %vm1821_vm4, %v1623_v46  ;;  %v2643_v48 = vpop.f32.mrb[58].mxu1  ;;  %v1158_v49 = vadd.f32 %v2499_v47, %v3506_v3  ;;  %v1152_v51 = vpop.f32.mrb[59].mxu0 }
 0x151   :  { %v1638_v50 = vadd.f32 %v2643_v48, %v3506_v3  ;;  %v1632_v52 = vpop.f32.mrb[59].mxu1  ;;  %v1153_v53 = vadd.f32 %v3506_v3, %v1152_v51 }
 0x152   :  { %v1633_v54 = vadd.f32 %v3506_v3, %v1632_v52  ;;  %1881 = vst.msk [vmem:[%s4452_s3 + $0x1d8] sm:$0xff] %vm1821_vm4, %v1158_v49 }
 0x153   :  { %1977 = vst.msk [vmem:[%s4452_s3 + $0x4d8] sm:$0xff] %vm1821_vm4, %v1638_v50  ;;  %1880 = vst.msk [vmem:[%s4452_s3 + $0x1d0] sm:$0xff] %vm1821_vm4, %v1153_v53  ;;  %v2502_v55 = vpop.f32.mrb[60].mxu0 }
 0x154   :  { %1976 = vst.msk [vmem:[%s4452_s3 + $0x4d0] sm:$0xff] %vm1821_vm4, %v1633_v54  ;;  %v2646_v56 = vpop.f32.mrb[60].mxu1  ;;  %v1168_v57 = vadd.f32 %v2502_v55, %v3506_v3  ;;  %v1162_v59 = vpop.f32.mrb[61].mxu0 }
 0x155   :  { %v1648_v58 = vadd.f32 %v2646_v56, %v3506_v3  ;;  %v1642_v60 = vpop.f32.mrb[61].mxu1  ;;  %v1163_v61 = vadd.f32 %v3506_v3, %v1162_v59 }
 0x156   :  { %v1643_v62 = vadd.f32 %v3506_v3, %v1642_v60  ;;  %1883 = vst.msk [vmem:[%s4452_s3 + $0x1e8] sm:$0xff] %vm1821_vm4, %v1168_v57 }
 0x157   :  { %1979 = vst.msk [vmem:[%s4452_s3 + $0x4e8] sm:$0xff] %vm1821_vm4, %v1648_v58  ;;  %1882 = vst.msk [vmem:[%s4452_s3 + $0x1e0] sm:$0xff] %vm1821_vm4, %v1163_v61  ;;  %v2505_v63 = vpop.f32.mrb[62].mxu0 }
 0x158   :  { %1978 = vst.msk [vmem:[%s4452_s3 + $0x4e0] sm:$0xff] %vm1821_vm4, %v1643_v62  ;;  %v2649_v0 = vpop.f32.mrb[62].mxu1  ;;  %v1178_v1 = vadd.f32 %v2505_v63, %v3506_v3  ;;  %v1172_v4 = vpop.f32.mrb[63].mxu0 }
 0x159   :  { %v1658_v2 = vadd.f32 %v2649_v0, %v3506_v3  ;;  %v1652_v5 = vpop.f32.mrb[63].mxu1  ;;  %v1173_v6 = vadd.f32 %v3506_v3, %v1172_v4 }
 0x15a   :  { %v1653_v7 = vadd.f32 %v3506_v3, %v1652_v5  ;;  %1885 = vst.msk [vmem:[%s4452_s3 + $0x1f8] sm:$0xff] %vm1821_vm4, %v1178_v1 }
 0x15b   :  { %1981 = vst.msk [vmem:[%s4452_s3 + $0x4f8] sm:$0xff] %vm1821_vm4, %v1658_v2  ;;  %1884 = vst.msk [vmem:[%s4452_s3 + $0x1f0] sm:$0xff] %vm1821_vm4, %v1173_v6  ;;  %v2508_v8 = vpop.f32.mrb[64].mxu0 }
 0x15c   :  { %1980 = vst.msk [vmem:[%s4452_s3 + $0x4f0] sm:$0xff] %vm1821_vm4, %v1653_v7  ;;  %v2652_v9 = vpop.f32.mrb[64].mxu1  ;;  %v1188_v10 = vadd.f32 %v2508_v8, %v3506_v3  ;;  %v1182_v12 = vpop.f32.mrb[65].mxu0 }
 0x15d   :  { %v1668_v11 = vadd.f32 %v2652_v9, %v3506_v3  ;;  %v1662_v13 = vpop.f32.mrb[65].mxu1  ;;  %v1183_v14 = vadd.f32 %v3506_v3, %v1182_v12 }
 0x15e   :  { %v1663_v15 = vadd.f32 %v3506_v3, %v1662_v13  ;;  %1887 = vst.msk [vmem:[%s4452_s3 + $0x208] sm:$0xff] %vm1821_vm4, %v1188_v10 }
 0x15f   :  { %1983 = vst.msk [vmem:[%s4452_s3 + $0x508] sm:$0xff] %vm1821_vm4, %v1668_v11  ;;  %1886 = vst.msk [vmem:[%s4452_s3 + $0x200] sm:$0xff] %vm1821_vm4, %v1183_v14  ;;  %v2511_v16 = vpop.f32.mrb[66].mxu0 }
 0x160   :  { %1982 = vst.msk [vmem:[%s4452_s3 + $0x500] sm:$0xff] %vm1821_vm4, %v1663_v15  ;;  %v2655_v17 = vpop.f32.mrb[66].mxu1  ;;  %v1198_v18 = vadd.f32 %v2511_v16, %v3506_v3  ;;  %v1192_v20 = vpop.f32.mrb[67].mxu0 }
 0x161   :  { %v1678_v19 = vadd.f32 %v2655_v17, %v3506_v3  ;;  %v1672_v21 = vpop.f32.mrb[67].mxu1  ;;  %v1193_v22 = vadd.f32 %v3506_v3, %v1192_v20 }
 0x162   :  { %v1673_v23 = vadd.f32 %v3506_v3, %v1672_v21  ;;  %1889 = vst.msk [vmem:[%s4452_s3 + $0x218] sm:$0xff] %vm1821_vm4, %v1198_v18 }
 0x163   :  { %1985 = vst.msk [vmem:[%s4452_s3 + $0x518] sm:$0xff] %vm1821_vm4, %v1678_v19  ;;  %1888 = vst.msk [vmem:[%s4452_s3 + $0x210] sm:$0xff] %vm1821_vm4, %v1193_v22  ;;  %v2514_v24 = vpop.f32.mrb[68].mxu0 }
 0x164   :  { %1984 = vst.msk [vmem:[%s4452_s3 + $0x510] sm:$0xff] %vm1821_vm4, %v1673_v23  ;;  %v2658_v25 = vpop.f32.mrb[68].mxu1  ;;  %v1208_v26 = vadd.f32 %v2514_v24, %v3506_v3  ;;  %v1202_v28 = vpop.f32.mrb[69].mxu0 }
 0x165   :  { %v1688_v27 = vadd.f32 %v2658_v25, %v3506_v3  ;;  %v1682_v29 = vpop.f32.mrb[69].mxu1  ;;  %v1203_v30 = vadd.f32 %v3506_v3, %v1202_v28 }
 0x166   :  { %v1683_v31 = vadd.f32 %v3506_v3, %v1682_v29  ;;  %1891 = vst.msk [vmem:[%s4452_s3 + $0x228] sm:$0xff] %vm1821_vm4, %v1208_v26 }
 0x167   :  { %1987 = vst.msk [vmem:[%s4452_s3 + $0x528] sm:$0xff] %vm1821_vm4, %v1688_v27  ;;  %1890 = vst.msk [vmem:[%s4452_s3 + $0x220] sm:$0xff] %vm1821_vm4, %v1203_v30  ;;  %v2517_v32 = vpop.f32.mrb[70].mxu0 }
 0x168   :  { %1986 = vst.msk [vmem:[%s4452_s3 + $0x520] sm:$0xff] %vm1821_vm4, %v1683_v31  ;;  %v2661_v33 = vpop.f32.mrb[70].mxu1  ;;  %v1218_v34 = vadd.f32 %v2517_v32, %v3506_v3  ;;  %v1212_v36 = vpop.f32.mrb[71].mxu0  ;;  %v2707_v31 = vld [vmem:[%s4451_s2] ss:$0 sm:$0xff] }
 0x169   :  { %v1698_v35 = vadd.f32 %v2661_v33, %v3506_v3  ;;  %v1692_v37 = vpop.f32.mrb[71].mxu1  ;;  %v1213_v38 = vadd.f32 %v3506_v3, %v1212_v36 }
 0x16a   :  { %v1693_v39 = vadd.f32 %v3506_v3, %v1692_v37  ;;  %1893 = vst.msk [vmem:[%s4452_s3 + $0x238] sm:$0xff] %vm1821_vm4, %v1218_v34 }
 0x16b   :  { %1989 = vst.msk [vmem:[%s4452_s3 + $0x538] sm:$0xff] %vm1821_vm4, %v1698_v35  ;;  %1892 = vst.msk [vmem:[%s4452_s3 + $0x230] sm:$0xff] %vm1821_vm4, %v1213_v38  ;;  %v2520_v40 = vpop.f32.mrb[72].mxu0 }
 0x16c   :  { %1988 = vst.msk [vmem:[%s4452_s3 + $0x530] sm:$0xff] %vm1821_vm4, %v1693_v39  ;;  %v2664_v41 = vpop.f32.mrb[72].mxu1  ;;  %v1228_v42 = vadd.f32 %v2520_v40, %v3506_v3  ;;  %v1222_v44 = vpop.f32.mrb[73].mxu0 }
 0x16d   :  { %v1708_v43 = vadd.f32 %v2664_v41, %v3506_v3  ;;  %v1702_v45 = vpop.f32.mrb[73].mxu1  ;;  %v1223_v46 = vadd.f32 %v3506_v3, %v1222_v44 }
 0x16e   :  { %v1703_v47 = vadd.f32 %v3506_v3, %v1702_v45  ;;  %1895 = vst.msk [vmem:[%s4452_s3 + $0x248] sm:$0xff] %vm1821_vm4, %v1228_v42 }
 0x16f   :  { %1991 = vst.msk [vmem:[%s4452_s3 + $0x548] sm:$0xff] %vm1821_vm4, %v1708_v43  ;;  %1894 = vst.msk [vmem:[%s4452_s3 + $0x240] sm:$0xff] %vm1821_vm4, %v1223_v46  ;;  %v2523_v48 = vpop.f32.mrb[74].mxu0 }
 0x170   :  { %1990 = vst.msk [vmem:[%s4452_s3 + $0x540] sm:$0xff] %vm1821_vm4, %v1703_v47  ;;  %v2667_v49 = vpop.f32.mrb[74].mxu1  ;;  %v1238_v50 = vadd.f32 %v2523_v48, %v3506_v3  ;;  %v1232_v52 = vpop.f32.mrb[75].mxu0 }
 0x171   :  { %v1718_v51 = vadd.f32 %v2667_v49, %v3506_v3  ;;  %v1712_v53 = vpop.f32.mrb[75].mxu1  ;;  %v1233_v54 = vadd.f32 %v3506_v3, %v1232_v52 }
 0x172   :  { %v1713_v55 = vadd.f32 %v3506_v3, %v1712_v53  ;;  %1897 = vst.msk [vmem:[%s4452_s3 + $0x258] sm:$0xff] %vm1821_vm4, %v1238_v50 }
 0x173   :  { %1993 = vst.msk [vmem:[%s4452_s3 + $0x558] sm:$0xff] %vm1821_vm4, %v1718_v51  ;;  %1896 = vst.msk [vmem:[%s4452_s3 + $0x250] sm:$0xff] %vm1821_vm4, %v1233_v54  ;;  %v2526_v56 = vpop.f32.mrb[76].mxu0 }
 0x174   :  { %1992 = vst.msk [vmem:[%s4452_s3 + $0x550] sm:$0xff] %vm1821_vm4, %v1713_v55  ;;  %v2670_v57 = vpop.f32.mrb[76].mxu1  ;;  %v1248_v58 = vadd.f32 %v2526_v56, %v3506_v3  ;;  %v1242_v60 = vpop.f32.mrb[77].mxu0 }
 0x175   :  { %v1728_v59 = vadd.f32 %v2670_v57, %v3506_v3  ;;  %v1722_v61 = vpop.f32.mrb[77].mxu1  ;;  %v1243_v62 = vadd.f32 %v3506_v3, %v1242_v60 }
 0x176   :  { %v1723_v63 = vadd.f32 %v3506_v3, %v1722_v61  ;;  %1899 = vst.msk [vmem:[%s4452_s3 + $0x268] sm:$0xff] %vm1821_vm4, %v1248_v58 }
 0x177   :  { %1995 = vst.msk [vmem:[%s4452_s3 + $0x568] sm:$0xff] %vm1821_vm4, %v1728_v59  ;;  %1898 = vst.msk [vmem:[%s4452_s3 + $0x260] sm:$0xff] %vm1821_vm4, %v1243_v62  ;;  %v2529_v0 = vpop.f32.mrb[78].mxu0 }
 0x178   :  { %1994 = vst.msk [vmem:[%s4452_s3 + $0x560] sm:$0xff] %vm1821_vm4, %v1723_v63  ;;  %v2673_v1 = vpop.f32.mrb[78].mxu1  ;;  %v1258_v2 = vadd.f32 %v2529_v0, %v3506_v3  ;;  %v1252_v5 = vpop.f32.mrb[79].mxu0 }
 0x179   :  { %v1738_v4 = vadd.f32 %v2673_v1, %v3506_v3  ;;  %v1732_v6 = vpop.f32.mrb[79].mxu1  ;;  %v1253_v7 = vadd.f32 %v3506_v3, %v1252_v5 }
 0x17a   :  { %v1733_v8 = vadd.f32 %v3506_v3, %v1732_v6  ;;  %1901 = vst.msk [vmem:[%s4452_s3 + $0x278] sm:$0xff] %vm1821_vm4, %v1258_v2 }
 0x17b   :  { %1997 = vst.msk [vmem:[%s4452_s3 + $0x578] sm:$0xff] %vm1821_vm4, %v1738_v4  ;;  %1900 = vst.msk [vmem:[%s4452_s3 + $0x270] sm:$0xff] %vm1821_vm4, %v1253_v7  ;;  %v2532_v9 = vpop.f32.mrb[80].mxu0 }
 0x17c   :  { %1996 = vst.msk [vmem:[%s4452_s3 + $0x570] sm:$0xff] %vm1821_vm4, %v1733_v8  ;;  %v2676_v10 = vpop.f32.mrb[80].mxu1  ;;  %v1268_v11 = vadd.f32 %v2532_v9, %v3506_v3  ;;  %v1262_v13 = vpop.f32.mrb[81].mxu0 }
 0x17d   :  { %v1748_v12 = vadd.f32 %v2676_v10, %v3506_v3  ;;  %v1742_v14 = vpop.f32.mrb[81].mxu1  ;;  %v1263_v15 = vadd.f32 %v3506_v3, %v1262_v13 }
 0x17e   :  { %v1743_v16 = vadd.f32 %v3506_v3, %v1742_v14  ;;  %1903 = vst.msk [vmem:[%s4452_s3 + $0x288] sm:$0xff] %vm1821_vm4, %v1268_v11 }
 0x17f   :  { %1999 = vst.msk [vmem:[%s4452_s3 + $0x588] sm:$0xff] %vm1821_vm4, %v1748_v12  ;;  %1902 = vst.msk [vmem:[%s4452_s3 + $0x280] sm:$0xff] %vm1821_vm4, %v1263_v15  ;;  %v2535_v17 = vpop.f32.mrb[82].mxu0 }
 0x180   :  { %1998 = vst.msk [vmem:[%s4452_s3 + $0x580] sm:$0xff] %vm1821_vm4, %v1743_v16  ;;  %v2679_v18 = vpop.f32.mrb[82].mxu1  ;;  %v1278_v19 = vadd.f32 %v2535_v17, %v3506_v3  ;;  %v1272_v21 = vpop.f32.mrb[83].mxu0 }
 0x181   :  { %v1758_v20 = vadd.f32 %v2679_v18, %v3506_v3  ;;  %v1752_v22 = vpop.f32.mrb[83].mxu1  ;;  %v1273_v23 = vadd.f32 %v3506_v3, %v1272_v21 }
 0x182   :  { %v1753_v24 = vadd.f32 %v3506_v3, %v1752_v22  ;;  %1905 = vst.msk [vmem:[%s4452_s3 + $0x298] sm:$0xff] %vm1821_vm4, %v1278_v19 }
 0x183   :  { %2001 = vst.msk [vmem:[%s4452_s3 + $0x598] sm:$0xff] %vm1821_vm4, %v1758_v20  ;;  %1904 = vst.msk [vmem:[%s4452_s3 + $0x290] sm:$0xff] %vm1821_vm4, %v1273_v23  ;;  %v2538_v25 = vpop.f32.mrb[84].mxu0 }
 0x184   :  { %2000 = vst.msk [vmem:[%s4452_s3 + $0x590] sm:$0xff] %vm1821_vm4, %v1753_v24  ;;  %v2682_v26 = vpop.f32.mrb[84].mxu1  ;;  %v1288_v27 = vadd.f32 %v2538_v25, %v3506_v3  ;;  %v1282_v29 = vpop.f32.mrb[85].mxu0 }
 0x185   :  { %v1768_v28 = vadd.f32 %v2682_v26, %v3506_v3  ;;  %v1762_v30 = vpop.f32.mrb[85].mxu1  ;;  %v1283_v32 = vadd.f32 %v2707_v31, %v1282_v29 }
 0x186   :  { %v1763_v33 = vadd.f32 %v2707_v31, %v1762_v30  ;;  %1907 = vst.msk [vmem:[%s4452_s3 + $0x2a8] sm:$0xff] %vm1821_vm4, %v1288_v27 }
 0x187   :  { %2003 = vst.msk [vmem:[%s4452_s3 + $0x5a8] sm:$0xff] %vm1821_vm4, %v1768_v28  ;;  %1906 = vst.msk [vmem:[%s4452_s3 + $0x2a0] sm:$0xff] %vm1821_vm4, %v1283_v32  ;;  %v2541_v3 = vpop.f32.mrb[86].mxu0 }
 0x188   :  { %2002 = vst.msk [vmem:[%s4452_s3 + $0x5a0] sm:$0xff] %vm1821_vm4, %v1763_v33  ;;  %v2685_v34 = vpop.f32.mrb[86].mxu1  ;;  %v1298_v35 = vadd.f32 %v2707_v31, %v2541_v3  ;;  %v1292_v37 = vpop.f32.mrb[87].mxu0 }
 0x189   :  { %v1778_v36 = vadd.f32 %v2707_v31, %v2685_v34  ;;  %v1772_v38 = vpop.f32.mrb[87].mxu1  ;;  %v1293_v39 = vadd.f32 %v2707_v31, %v1292_v37 }
 0x18a   :  { %v1773_v40 = vadd.f32 %v2707_v31, %v1772_v38  ;;  %1909 = vst.msk [vmem:[%s4452_s3 + $0x2b8] sm:$0xff] %vm1821_vm4, %v1298_v35 }
 0x18b   :  { %2005 = vst.msk [vmem:[%s4452_s3 + $0x5b8] sm:$0xff] %vm1821_vm4, %v1778_v36  ;;  %1908 = vst.msk [vmem:[%s4452_s3 + $0x2b0] sm:$0xff] %vm1821_vm4, %v1293_v39  ;;  %v2544_v41 = vpop.f32.mrb[88].mxu0 }
 0x18c   :  { %2004 = vst.msk [vmem:[%s4452_s3 + $0x5b0] sm:$0xff] %vm1821_vm4, %v1773_v40  ;;  %v2688_v42 = vpop.f32.mrb[88].mxu1  ;;  %v1308_v43 = vadd.f32 %v2707_v31, %v2544_v41  ;;  %v1302_v45 = vpop.f32.mrb[89].mxu0 }
 0x18d   :  { %v1788_v44 = vadd.f32 %v2707_v31, %v2688_v42  ;;  %v1782_v46 = vpop.f32.mrb[89].mxu1  ;;  %v1303_v47 = vadd.f32 %v2707_v31, %v1302_v45 }
 0x18e   :  { %v1783_v48 = vadd.f32 %v2707_v31, %v1782_v46  ;;  %1911 = vst.msk [vmem:[%s4452_s3 + $0x2c8] sm:$0xff] %vm1821_vm4, %v1308_v43 }
 0x18f   :  { %2007 = vst.msk [vmem:[%s4452_s3 + $0x5c8] sm:$0xff] %vm1821_vm4, %v1788_v44  ;;  %1910 = vst.msk [vmem:[%s4452_s3 + $0x2c0] sm:$0xff] %vm1821_vm4, %v1303_v47  ;;  %v2547_v49 = vpop.f32.mrb[90].mxu0 }
 0x190   :  { %2006 = vst.msk [vmem:[%s4452_s3 + $0x5c0] sm:$0xff] %vm1821_vm4, %v1783_v48  ;;  %v2691_v50 = vpop.f32.mrb[90].mxu1  ;;  %v1318_v51 = vadd.f32 %v2707_v31, %v2547_v49  ;;  %v1312_v53 = vpop.f32.mrb[91].mxu0 }
 0x191   :  { %v1798_v52 = vadd.f32 %v2707_v31, %v2691_v50  ;;  %v1792_v54 = vpop.f32.mrb[91].mxu1  ;;  %v1313_v55 = vadd.f32 %v2707_v31, %v1312_v53 }
 0x192   :  { %v1793_v56 = vadd.f32 %v2707_v31, %v1792_v54  ;;  %1913 = vst.msk [vmem:[%s4452_s3 + $0x2d8] sm:$0xff] %vm1821_vm4, %v1318_v51 }
 0x193   :  { %2009 = vst.msk [vmem:[%s4452_s3 + $0x5d8] sm:$0xff] %vm1821_vm4, %v1798_v52  ;;  %1912 = vst.msk [vmem:[%s4452_s3 + $0x2d0] sm:$0xff] %vm1821_vm4, %v1313_v55  ;;  %v2550_v57 = vpop.f32.mrb[92].mxu0 }
 0x194   :  { %2008 = vst.msk [vmem:[%s4452_s3 + $0x5d0] sm:$0xff] %vm1821_vm4, %v1793_v56  ;;  %v2694_v58 = vpop.f32.mrb[92].mxu1  ;;  %v1328_v59 = vadd.f32 %v2707_v31, %v2550_v57  ;;  %v1322_v61 = vpop.f32.mrb[93].mxu0 }
 0x195   :  { %v1808_v60 = vadd.f32 %v2707_v31, %v2694_v58  ;;  %v1802_v62 = vpop.f32.mrb[93].mxu1  ;;  %v1323_v63 = vadd.f32 %v2707_v31, %v1322_v61 }
 0x196   :  { %v1803_v0 = vadd.f32 %v2707_v31, %v1802_v62  ;;  %1915 = vst.msk [vmem:[%s4452_s3 + $0x2e8] sm:$0xff] %vm1821_vm4, %v1328_v59 }
 0x197   :  { %2011 = vst.msk [vmem:[%s4452_s3 + $0x5e8] sm:$0xff] %vm1821_vm4, %v1808_v60  ;;  %1914 = vst.msk [vmem:[%s4452_s3 + $0x2e0] sm:$0xff] %vm1821_vm4, %v1323_v63  ;;  %v2553_v1 = vpop.f32.mrb[94].mxu0 }
 0x198   :  { %2010 = vst.msk [vmem:[%s4452_s3 + $0x5e0] sm:$0xff] %vm1821_vm4, %v1803_v0  ;;  %v2697_v2 = vpop.f32.mrb[94].mxu1  ;;  %v1338_v4 = vadd.f32 %v2707_v31, %v2553_v1  ;;  %v1332_v6 = vpop.f32.mrb[95].mxu0 }
 0x199   :  { %v1818_v5 = vadd.f32 %v2707_v31, %v2697_v2  ;;  %v1812_v7 = vpop.f32.mrb[95].mxu1  ;;  %v1333_v8 = vadd.f32 %v2707_v31, %v1332_v6 }
 0x19a   :  { %v1813_v9 = vadd.f32 %v2707_v31, %v1812_v7  ;;  %1917 = vst.msk [vmem:[%s4452_s3 + $0x2f8] sm:$0xff] %vm1821_vm4, %v1338_v4 }
 0x19b   :  { %2013 = vst.msk [vmem:[%s4452_s3 + $0x5f8] sm:$0xff] %vm1821_vm4, %v1818_v5  ;;  %1916 = vst.msk [vmem:[%s4452_s3 + $0x2f0] sm:$0xff] %vm1821_vm4, %v1333_v8 }
 0x19c   :  { %2012 = vst.msk [vmem:[%s4452_s3 + $0x5f0] sm:$0xff] %vm1821_vm4, %v1813_v9 }

// kernel: early_ttfs_forward.3
= control target key start
LH: loop header
LB: loop body
LE: loop exit
PB: predicated region body
PF: predicated region fallthrough
CT: control target
= control target key end

     0   :  { %15 = vsyncpa [#allocation7], 0  ;;  %s12807_s0 = inlined_call_operand.vmem [shape: f32[3,512,32], index: 0, kind: input, shape index: {}]   ;;  %s12808_s1 = inlined_call_operand.vmem [shape: bf16[128,512], index: 1, kind: input, shape index: {}]   ;;  %s12809_s2 = inlined_call_operand.vmem [shape: bf16[9,128,128], index: 2, kind: input, shape index: {}]   ;;  %s12810_s3 = inlined_call_operand.vmem [shape: bf16[9,32,64], index: 3, kind: input, shape index: {}]   ;;  %s12811_s4 = inlined_call_operand.vmem [shape: f32[1,64], index: 4, kind: input, shape index: {}]   ;;  %s12812_s5 = inlined_call_operand.vmem [shape: bf16[16,2,128], index: 5, kind: input, shape index: {}]   ;;  %s12813_s6 = inlined_call_operand.vmem [shape: bf16[16,64,128], index: 6, kind: input, shape index: {}]   ;;  %s12814_s7 = inlined_call_operand.vmem [shape: f32[1,128], index: 7, kind: input, shape index: {}]   ;;  %s12815_s8 = inlined_call_operand.vmem [shape: bf16[128,128], index: 8, kind: input, shape index: {}]   ;;  %s12816_s9 = inlined_call_operand.vmem [shape: f32[1,128], index: 9, kind: input, shape index: {}]   ;;  %s12817_s10 = inlined_call_operand.hbm [shape: f32[3,2,128], index: 10, kind: output, shape index: {}]  }
   0x1   :  { %17 = vsyncpa [#allocation7 + $0x1], 0  ;;  %s10315_s13 = smov 0   ;;  %s10317_s14 = smov 0  }
   0x2   :  { %s10319_s15 = smov 0   ;;  %s10321_s16 = smov 0  }
   0x3 LB: > { %s10336_s17 = sadd.s32 4294967295, %s10253_s16   ;;  %s6960_s18 = sadd.s32 4294967294, %s10253_s16   ;;  %s10253_s16 = sphi %s10321_s16, %s12859_s16   ;;  %s10249_s15 = sphi %s10319_s15, %s12858_s15   ;;  %s10245_s14 = sphi %s10317_s14, %s12857_s14   ;;  %s10241_s13 = sphi %s10315_s13, %s12856_s13  }
   0x4   : > { %s10340_s19 = sadd.s32 1, %s10253_s16   ;;  %s245_s20 = sadd.s32 1, %s10249_s15 }
   0x5   : > { %s242_s21 = ssub.s32 %s10253_s16, %s10340_s19  ;;  %p255_p0 = scmp.ne.s32.totalorder %s10249_s15, %s10245_s14 }
   0x6   : > { %p243_p1 = scmp.eq.s32.totalorder %s242_s21, 0  ;;  %p256_p2 = scmp.eq.s32.totalorder %s10336_s17, 2 }
   0x7   : > { %p261_p3 = scmp.ne.s32.totalorder %s10245_s14, %s10241_s13  ;;  %p262_p4 = scmp.eq.s32.totalorder %s6960_s18, 2 }
   0x8   : > { %s10351_s22 = scalar_select %p243_p1, %s10249_s15, %s245_s20  }
   0x9   : > { %p10353_p5 = por %p256_p2, %p255_p0  ;;  %p10357_p6 = por %p262_p4, %p261_p3 }
   0xa   : > { %p6963_p7 = scmp.ge.s32.totalorder %s10253_s16, 1  ;;  %p315_p8 = scmp.lt.s32.totalorder %s10253_s16, 4 }
   0xc   : > { %p316_p9 = pnand %p6963_p7, %p315_p8 }
   0xd   : > { %s12818_s25 = sand.u32 (!%p316_p9), 1, %s10245_s14   ;;  %p353_p10 = scmp.lt.s32.totalorder (!%p316_p9), %s10336_s17, 2 }
   0xe   : > { %319 = sbr.rel (%p316_p9) target bundleno = 5355 (0x14eb), region = 60  ;;  %s10367_s26 = sshll.u32 (!%p316_p9), %s12818_s25, 1 }
   0xf   : > { %p6967_p11 = scmp.ne.s32.totalorder (!%p316_p9), %s10336_s17, 0 }
  0x15   : > { %s354_s27 = scalar_select %p353_p10, %s10336_s17, 2 }
  0x16   : > { %362 = sbr.rel (%p6967_p11) target bundleno = 64 (0x40), region = 64  ;;  %vm363_vm0 = vcmask (!%p6967_p11), 261120   ;;  %vm428_vm1 = vcmask (!%p6967_p11), 523264   ;;  %v10255_v0 = vmov (!%p6967_p11), 0.0  }
  0x17   : > { %s8214_s28 = sshll.u32 %s354_s27, 9  ;;  %364 = vst.msk [vmem:[#allocation2] sm:$0xff] (!%p6967_p11), %vm363_vm0, %v10255_v0  ;;  %365 = vst.msk [vmem:[#allocation2 + $0x8] sm:$0xff] (!%p6967_p11), %vm363_vm0, %v10255_v0 }
  0x18   : > { %s10373_s11 = scalar_lea.vmem %s12807_s0, %s8214_s28  ;;  %366 = vst.msk [vmem:[#allocation2 + $0x10] sm:$0xff] (!%p6967_p11), %vm363_vm0, %v10255_v0  ;;  %367 = vst.msk [vmem:[#allocation2 + $0x18] sm:$0xff] (!%p6967_p11), %vm363_vm0, %v10255_v0 }
  0x19   : > { %368 = vst.msk [vmem:[#allocation2 + $0x20] sm:$0xff] (!%p6967_p11), %vm363_vm0, %v10255_v0  ;;  %369 = vst.msk [vmem:[#allocation2 + $0x28] sm:$0xff] (!%p6967_p11), %vm363_vm0, %v10255_v0 }
  0x1a   : > { %370 = vst.msk [vmem:[#allocation2 + $0x30] sm:$0xff] (!%p6967_p11), %vm363_vm0, %v10255_v0  ;;  %371 = vst.msk [vmem:[#allocation2 + $0x38] sm:$0xff] (!%p6967_p11), %vm363_vm0, %v10255_v0 }
  0x1b   : > { %372 = vst.msk [vmem:[#allocation2 + $0x40] sm:$0xff] (!%p6967_p11), %vm363_vm0, %v10255_v0  ;;  %373 = vst.msk [vmem:[#allocation2 + $0x48] sm:$0xff] (!%p6967_p11), %vm363_vm0, %v10255_v0 }
  0x1c   : > { %374 = vst.msk [vmem:[#allocation2 + $0x50] sm:$0xff] (!%p6967_p11), %vm363_vm0, %v10255_v0  ;;  %375 = vst.msk [vmem:[#allocation2 + $0x58] sm:$0xff] (!%p6967_p11), %vm363_vm0, %v10255_v0 }
  0x1d   : > { %376 = vst.msk [vmem:[#allocation2 + $0x60] sm:$0xff] %vm363_vm0, %v10255_v0  ;;  %377 = vst.msk [vmem:[#allocation2 + $0x68] sm:$0xff] %vm363_vm0, %v10255_v0 }
  0x1e   : > { %378 = vst.msk [vmem:[#allocation2 + $0x70] sm:$0xff] %vm363_vm0, %v10255_v0  ;;  %379 = vst.msk [vmem:[#allocation2 + $0x78] sm:$0xff] %vm363_vm0, %v10255_v0 }
  0x1f   : > { %380 = vst.msk [vmem:[#allocation2 + $0x80] sm:$0xff] %vm363_vm0, %v10255_v0  ;;  %381 = vst.msk [vmem:[#allocation2 + $0x88] sm:$0xff] %vm363_vm0, %v10255_v0 }
  0x20   : > { %382 = vst.msk [vmem:[#allocation2 + $0x90] sm:$0xff] %vm363_vm0, %v10255_v0  ;;  %383 = vst.msk [vmem:[#allocation2 + $0x98] sm:$0xff] %vm363_vm0, %v10255_v0 }
  0x21   : > { %384 = vst.msk [vmem:[#allocation2 + $0xa0] sm:$0xff] %vm363_vm0, %v10255_v0  ;;  %385 = vst.msk [vmem:[#allocation2 + $0xa8] sm:$0xff] %vm363_vm0, %v10255_v0 }
  0x22   : > { %386 = vst.msk [vmem:[#allocation2 + $0xb0] sm:$0xff] %vm363_vm0, %v10255_v0  ;;  %387 = vst.msk [vmem:[#allocation2 + $0xb8] sm:$0xff] %vm363_vm0, %v10255_v0 }
  0x23   : > { %388 = vst.msk [vmem:[#allocation2 + $0xc0] sm:$0xff] %vm363_vm0, %v10255_v0  ;;  %389 = vst.msk [vmem:[#allocation2 + $0xc8] sm:$0xff] %vm363_vm0, %v10255_v0 }
  0x24   : > { %390 = vst.msk [vmem:[#allocation2 + $0xd0] sm:$0xff] %vm363_vm0, %v10255_v0  ;;  %391 = vst.msk [vmem:[#allocation2 + $0xd8] sm:$0xff] %vm363_vm0, %v10255_v0 }
  0x25   : > { %392 = vst.msk [vmem:[#allocation2 + $0xe0] sm:$0xff] %vm363_vm0, %v10255_v0  ;;  %393 = vst.msk [vmem:[#allocation2 + $0xe8] sm:$0xff] %vm363_vm0, %v10255_v0 }
  0x26   : > { %394 = vst.msk [vmem:[#allocation2 + $0xf0] sm:$0xff] %vm363_vm0, %v10255_v0  ;;  %395 = vst.msk [vmem:[#allocation2 + $0xf8] sm:$0xff] %vm363_vm0, %v10255_v0 }
  0x27   : > { %396 = vst.msk [vmem:[#allocation2 + $0x100] sm:$0xff] %vm363_vm0, %v10255_v0  ;;  %397 = vst.msk [vmem:[#allocation2 + $0x108] sm:$0xff] %vm363_vm0, %v10255_v0 }
  0x28   : > { %398 = vst.msk [vmem:[#allocation2 + $0x110] sm:$0xff] %vm363_vm0, %v10255_v0  ;;  %399 = vst.msk [vmem:[#allocation2 + $0x118] sm:$0xff] %vm363_vm0, %v10255_v0 }
  0x29   : > { %400 = vst.msk [vmem:[#allocation2 + $0x120] sm:$0xff] %vm363_vm0, %v10255_v0  ;;  %401 = vst.msk [vmem:[#allocation2 + $0x128] sm:$0xff] %vm363_vm0, %v10255_v0 }
  0x2a   : > { %402 = vst.msk [vmem:[#allocation2 + $0x130] sm:$0xff] %vm363_vm0, %v10255_v0  ;;  %403 = vst.msk [vmem:[#allocation2 + $0x138] sm:$0xff] %vm363_vm0, %v10255_v0 }
  0x2b   : > { %404 = vst.msk [vmem:[#allocation2 + $0x140] sm:$0xff] %vm363_vm0, %v10255_v0  ;;  %405 = vst.msk [vmem:[#allocation2 + $0x148] sm:$0xff] %vm363_vm0, %v10255_v0 }
  0x2c   : > { %406 = vst.msk [vmem:[#allocation2 + $0x150] sm:$0xff] %vm363_vm0, %v10255_v0  ;;  %407 = vst.msk [vmem:[#allocation2 + $0x158] sm:$0xff] %vm363_vm0, %v10255_v0 }
  0x2d   : > { %408 = vst.msk [vmem:[#allocation2 + $0x160] sm:$0xff] %vm363_vm0, %v10255_v0  ;;  %409 = vst.msk [vmem:[#allocation2 + $0x168] sm:$0xff] %vm363_vm0, %v10255_v0 }
  0x2e   : > { %410 = vst.msk [vmem:[#allocation2 + $0x170] sm:$0xff] %vm363_vm0, %v10255_v0  ;;  %411 = vst.msk [vmem:[#allocation2 + $0x178] sm:$0xff] %vm363_vm0, %v10255_v0 }
  0x2f   : > { %412 = vst.msk [vmem:[#allocation2 + $0x180] sm:$0xff] %vm363_vm0, %v10255_v0  ;;  %413 = vst.msk [vmem:[#allocation2 + $0x188] sm:$0xff] %vm363_vm0, %v10255_v0 }
  0x30   : > { %414 = vst.msk [vmem:[#allocation2 + $0x190] sm:$0xff] %vm363_vm0, %v10255_v0  ;;  %415 = vst.msk [vmem:[#allocation2 + $0x198] sm:$0xff] %vm363_vm0, %v10255_v0 }
  0x31   : > { %416 = vst.msk [vmem:[#allocation2 + $0x1a0] sm:$0xff] %vm363_vm0, %v10255_v0  ;;  %417 = vst.msk [vmem:[#allocation2 + $0x1a8] sm:$0xff] %vm363_vm0, %v10255_v0 }
  0x32   : > { %418 = vst.msk [vmem:[#allocation2 + $0x1b0] sm:$0xff] %vm363_vm0, %v10255_v0  ;;  %419 = vst.msk [vmem:[#allocation2 + $0x1b8] sm:$0xff] %vm363_vm0, %v10255_v0 }
  0x33   : > { %420 = vst.msk [vmem:[#allocation2 + $0x1c0] sm:$0xff] %vm363_vm0, %v10255_v0  ;;  %421 = vst.msk [vmem:[#allocation2 + $0x1c8] sm:$0xff] %vm363_vm0, %v10255_v0 }
  0x34   : > { %422 = vst.msk [vmem:[#allocation2 + $0x1d0] sm:$0xff] %vm363_vm0, %v10255_v0  ;;  %423 = vst.msk [vmem:[#allocation2 + $0x1d8] sm:$0xff] %vm363_vm0, %v10255_v0 }
  0x35   : > { %424 = vst.msk [vmem:[#allocation2 + $0x1e0] sm:$0xff] %vm363_vm0, %v10255_v0  ;;  %425 = vst.msk [vmem:[#allocation2 + $0x1e8] sm:$0xff] %vm363_vm0, %v10255_v0 }
  0x36   : > { %426 = vst.msk [vmem:[#allocation2 + $0x1f0] sm:$0xff] %vm363_vm0, %v10255_v0  ;;  %427 = vst.msk [vmem:[#allocation2 + $0x1f8] sm:$0xff] %vm363_vm0, %v10255_v0 }
  0x37   : > { %445 = vst [vmem:[#allocation4] sm:$0x3] %v10255_v0  ;;  %446 = vst [vmem:[#allocation5] sm:$0x3] %v10255_v0 }
  0x38   : > { %429 = vst.msk [vmem:[#allocation3] sm:$0xff] %vm428_vm1, %v10255_v0  ;;  %430 = vst.msk [vmem:[#allocation3 + $0x8] sm:$0xff] %vm428_vm1, %v10255_v0 }
  0x39   : > { %431 = vst.msk [vmem:[#allocation3 + $0x10] sm:$0xff] %vm428_vm1, %v10255_v0  ;;  %432 = vst.msk [vmem:[#allocation3 + $0x18] sm:$0xff] %vm428_vm1, %v10255_v0 }
  0x3a   : > { %433 = vst.msk [vmem:[#allocation3 + $0x20] sm:$0xff] %vm428_vm1, %v10255_v0  ;;  %434 = vst.msk [vmem:[#allocation3 + $0x28] sm:$0xff] %vm428_vm1, %v10255_v0 }
  0x3b   : > { %435 = vst.msk [vmem:[#allocation3 + $0x30] sm:$0xff] %vm428_vm1, %v10255_v0  ;;  %436 = vst.msk [vmem:[#allocation3 + $0x38] sm:$0xff] %vm428_vm1, %v10255_v0 }
  0x3c   : > { %437 = vst.msk [vmem:[#allocation3 + $0x40] sm:$0xff] %vm428_vm1, %v10255_v0  ;;  %438 = vst.msk [vmem:[#allocation3 + $0x48] sm:$0xff] %vm428_vm1, %v10255_v0 }
  0x3d   : > { %439 = vst.msk [vmem:[#allocation3 + $0x50] sm:$0xff] %vm428_vm1, %v10255_v0  ;;  %440 = vst.msk [vmem:[#allocation3 + $0x58] sm:$0xff] %vm428_vm1, %v10255_v0 }
  0x3e   : > { %441 = vst.msk [vmem:[#allocation3 + $0x60] sm:$0xff] %vm428_vm1, %v10255_v0  ;;  %442 = vst.msk [vmem:[#allocation3 + $0x68] sm:$0xff] %vm428_vm1, %v10255_v0 }
  0x3f   : > { %443 = vst.msk [vmem:[#allocation3 + $0x70] sm:$0xff] %vm428_vm1, %v10255_v0  ;;  %444 = vst.msk [vmem:[#allocation3 + $0x78] sm:$0xff] %vm428_vm1, %v10255_v0 }
  0x40 PF: > { %v463_v1 = vld [vmem:[%s10373_s11 + $0x80] sm:$0xff]  ;;  %v464_v3 = vld [vmem:[%s10373_s11 + $0x88] sm:$0xff]  ;;  %v10256_v6 = vmov 0.0   ;;  %vm959_vm4 = vcmask 261120   ;;  %v10257_v38 = vmov 1.0|1.0  }
  0x41   : > { %v527_v2 = vld [vmem:[#allocation2 + $0x80] sm:$0xff]  ;;  %v528_v4 = vld [vmem:[#allocation2 + $0x88] sm:$0xff]  ;;  %v529_v46 = vld [vmem:[#allocation2 + $0x90] sm:$0xff]  ;;  %s8211_s18 = sshll.u32 %s10336_s17, 5  ;;  %s12853_s20 = scalar_lea.vmem [#allocation6], %s10367_s26 }
  0x42   : > { %vm591_vm2 = vcmp.gt.f32.partialorder %v527_v2, 1.0  ;;  %v783_v5 = vmul.f32 0.95, %v527_v2  ;;  %vm592_vm3 = vcmp.gt.f32.partialorder %v528_v4, 1.0  ;;  %v784_v8 = vmul.f32 0.95, %v528_v4  ;;  %s12760_s12 = scalar_lea.hbm %s12817_s10, %s8211_s18  ;;  %s12854_s28 = smov %s12853_s20 }
  0x43   : > { %v6984_v7 = vsel %vm591_vm2, 1.0, %v10256_v6  ;;  %v6985_v9 = vsel %vm592_vm3, 1.0, %v10256_v6  ;;  %v495_v11 = vld [vmem:[%s10373_s11 + $0x180] sm:$0xff]  ;;  %v560_v13 = vld [vmem:[#allocation2 + $0x188] sm:$0xff]  ;;  %v530_v47 = vld [vmem:[#allocation2 + $0x98] sm:$0xff]  ;;  %vm593_vm1 = vcmp.gt.f32.partialorder %v529_v46, 1.0 }
  0x44   : > { %v847_v10 = vadd.f32 %v783_v5, %v463_v1  ;;  %v559_v12 = vld [vmem:[#allocation2 + $0x180] sm:$0xff]  ;;  %v848_v14 = vadd.f32 %v784_v8, %v464_v3  ;;  %v496_v15 = vld [vmem:[%s10373_s11 + $0x188] sm:$0xff]  ;;  %vm624_vm6 = vcmp.gt.f32.partialorder %v560_v13, 1.0  ;;  %v816_v20 = vmul.f32 0.95, %v560_v13  ;;  %v465_v50 = vld [vmem:[%s10373_s11 + $0x90] sm:$0xff] }
  0x45   : > { %vm623_vm5 = vcmp.gt.f32.partialorder %v559_v12, 1.0  ;;  %v815_v16 = vmul.f32 0.95, %v559_v12  ;;  %v7017_v19 = vsel %vm624_vm6, 1.0, %v10256_v6  ;;  %v511_v21 = vld [vmem:[#allocation2] sm:$0xff]  ;;  %v512_v22 = vld [vmem:[#allocation2 + $0x8] sm:$0xff] }
  0x46   : > { %v911_v17 = vsub.f32 %v847_v10, %v6984_v7  ;;  %v7016_v18 = vsel %vm623_vm5, 1.0, %v10256_v6  ;;  %v912_v23 = vsub.f32 %v848_v14, %v6985_v9  ;;  %vm575_vm7 = vcmp.gt.f32.partialorder %v511_v21, 1.0  ;;  %v543_v25 = vld [vmem:[#allocation2 + $0x100] sm:$0xff]  ;;  %v448_v28 = vld [vmem:[%s10373_s11 + $0x8] sm:$0xff]  ;;  %v466_v53 = vld [vmem:[%s10373_s11 + $0x98] sm:$0xff]  ;;  %s6901_s21 = sshll.u32 %s12853_s20, 4  ;;  %s12762_s21 = int_to_ptr.vmem [resolvable:$true] %s6901_s21 }
  0x47   : > { %v879_v24 = vadd.f32 %v815_v16, %v495_v11  ;;  %vm576_vm8 = vcmp.gt.f32.partialorder %v512_v22, 1.0  ;;  %v880_v26 = vadd.f32 %v816_v20, %v496_v15  ;;  %v447_v27 = vld [vmem:[%s10373_s11] sm:$0xff]  ;;  %v6968_v29 = vsel %vm575_vm7, 1.0, %v10256_v6  ;;  %v544_v35 = vld [vmem:[#allocation2 + $0x108] sm:$0xff]  ;;  %v561_v56 = vld [vmem:[#allocation2 + $0x190] sm:$0xff]  ;;  %s12855_s17 = sand.u32 1, %s10245_s14  }
  0x48   : > { %976 = vst.msk [vmem:[#allocation2 + $0x80] sm:$0xff] %vm959_vm4, %v911_v17  ;;  %vm1040_vm9 = vcmp.gt.f32.partialorder %v911_v17, 1.0  ;;  %v6969_v30 = vsel %vm576_vm8, 1.0, %v10256_v6  ;;  %v479_v31 = vld [vmem:[%s10373_s11 + $0x100] sm:$0xff]  ;;  %977 = vst.msk [vmem:[#allocation2 + $0x88] sm:$0xff] %vm959_vm4, %v912_v23  ;;  %vm1041_vm10 = vcmp.gt.f32.partialorder %v912_v23, 1.0 }
  0x49   : > { %v943_v32 = vsub.f32 %v879_v24, %v7016_v18  ;;  %v767_v33 = vmul.f32 0.95, %v511_v21  ;;  %v768_v34 = vmul.f32 0.95, %v512_v22  ;;  %vm7144_vm11 = vmpackc.low %vm1041_vm10, %vm1040_vm9  ;;  %v944_v36 = vsub.f32 %v880_v26, %v7017_v19  ;;  %v480_v41 = vld [vmem:[%s10373_s11 + $0x108] sm:$0xff]  ;;  %v562_v57 = vld [vmem:[#allocation2 + $0x198] sm:$0xff] }
  0x4a   : > { %vm607_vm12 = vcmp.gt.f32.partialorder %v543_v25, 1.0  ;;  %vm608_vm13 = vcmp.gt.f32.partialorder %v544_v35, 1.0  ;;  %v799_v37 = vmul.f32 0.95, %v543_v25  ;;  %8215 = vmatprep.subr.msk.bf16.mxu0 %vm7144_vm11, %v10257_v38  ;;  %v800_v44 = vmul.f32 0.95, %v544_v35 }
  0x4b   : > { %1008 = vst.msk [vmem:[#allocation2 + $0x180] sm:$0xff] %vm959_vm4, %v943_v32  ;;  %vm1072_vm14 = vcmp.gt.f32.partialorder %v943_v32, 1.0  ;;  %v831_v39 = vadd.f32 %v767_v33, %v447_v27  ;;  %v832_v40 = vadd.f32 %v768_v34, %v448_v28  ;;  %v7000_v42 = vsel %vm607_vm12, 1.0, %v10256_v6  ;;  %1009 = vst.msk [vmem:[#allocation2 + $0x188] sm:$0xff] %vm959_vm4, %v944_v36  ;;  %v497_v61 = vld [vmem:[%s10373_s11 + $0x190] sm:$0xff]  ;;  %v498_v0 = vld [vmem:[%s10373_s11 + $0x198] sm:$0xff] }
  0x4c   : > { %vm1073_vm15 = vcmp.gt.f32.partialorder %v944_v36, 1.0  ;;  %v7001_v43 = vsel %vm608_vm13, 1.0, %v10256_v6  ;;  %v863_v45 = vadd.f32 %v799_v37, %v479_v31  ;;  %vm594_vm2 = vcmp.gt.f32.partialorder %v530_v47, 1.0  ;;  %v513_v3 = vld [vmem:[#allocation2 + $0x10] sm:$0xff]  ;;  %v514_v4 = vld [vmem:[#allocation2 + $0x18] sm:$0xff]  ;;  %v531_v31 = vld [vmem:[#allocation2 + $0xa0] sm:$0xff] }
  0x4d   : > { %vm7176_vm0 = vmpackc.low %vm1073_vm15, %vm1072_vm14  ;;  %v895_v48 = vsub.f32 %v831_v39, %v6968_v29  ;;  %v896_v49 = vsub.f32 %v832_v40, %v6969_v30  ;;  %v864_v51 = vadd.f32 %v800_v44, %v480_v41  ;;  %v6986_v54 = vsel %vm593_vm1, 1.0, %v10256_v6  ;;  %v449_v10 = vld [vmem:[%s10373_s11 + $0x10] sm:$0xff]  ;;  %v450_v14 = vld [vmem:[%s10373_s11 + $0x18] sm:$0xff]  ;;  %s6888_s29 = scalar_lea.sflag [#allocation7], %s12855_s17  ;;  %s10191_s30 = scalar_lea.vmem %s12762_s21, 32 }
  0x4e   : > { %8279 = vmatprep.subr.msk.bf16.mxu1 %vm7176_vm0, %v10257_v38  ;;  %v927_v52 = vsub.f32 %v863_v45, %v7000_v42  ;;  %v6987_v55 = vsel %vm594_vm2, 1.0, %v10256_v6  ;;  %v785_v58 = vmul.f32 0.95, %v529_v46  ;;  %v786_v59 = vmul.f32 0.95, %v530_v47  ;;  %v545_v17 = vld [vmem:[#allocation2 + $0x110] sm:$0xff]  ;;  %p10192_p12 = scmp.ne.s32.totalorder %s12762_s21, %s10191_s30 }
  0x4f   : > { %960 = vst.msk [vmem:[#allocation2] sm:$0xff] %vm959_vm4, %v895_v48  ;;  %961 = vst.msk [vmem:[#allocation2 + $0x8] sm:$0xff] %vm959_vm4, %v896_v49  ;;  %vm1024_vm3 = vcmp.gt.f32.partialorder %v895_v48, 1.0  ;;  %vm1025_vm5 = vcmp.gt.f32.partialorder %v896_v49, 1.0  ;;  %v928_v60 = vsub.f32 %v864_v51, %v7001_v43  ;;  %vm625_vm8 = vcmp.gt.f32.partialorder %v561_v56, 1.0  ;;  %v546_v19 = vld [vmem:[#allocation2 + $0x118] sm:$0xff] }
  0x50   : > { %vm7128_vm6 = vmpackc.low %vm1025_vm5, %vm1024_vm3  ;;  %992 = vst.msk [vmem:[#allocation2 + $0x100] sm:$0xff] %vm959_vm4, %v927_v52  ;;  %vm1056_vm7 = vcmp.gt.f32.partialorder %v927_v52, 1.0  ;;  %vm626_vm9 = vcmp.gt.f32.partialorder %v562_v57, 1.0  ;;  %v849_v62 = vadd.f32 %v785_v58, %v465_v50  ;;  %v850_v63 = vadd.f32 %v786_v59, %v466_v53  ;;  %v481_v23 = vld [vmem:[%s10373_s11 + $0x110] sm:$0xff]  ;;  %v482_v25 = vld [vmem:[%s10373_s11 + $0x118] sm:$0xff]  ;;  %p10193_p13 = pnand %p10192_p12, %p10353_p5 }
  0x51   : > { %8216 = vmatpush3.bf16.msk.msra.mxu0 %vm7128_vm6, %v10257_v38  ;;  %v7018_v1 = vsel %vm625_vm8, 1.0, %v10256_v6  ;;  %v7019_v2 = vsel %vm626_vm9, 1.0, %v10256_v6  ;;  %993 = vst.msk [vmem:[#allocation2 + $0x108] sm:$0xff] %vm959_vm4, %v928_v60  ;;  %vm1057_vm10 = vcmp.gt.f32.partialorder %v928_v60, 1.0  ;;  %v817_v5 = vmul.f32 0.95, %v561_v56 }
  0x52   : > { %v818_v7 = vmul.f32 0.95, %v562_v57  ;;  %vm577_vm11 = vcmp.gt.f32.partialorder %v513_v3, 1.0  ;;  %vm7160_vm12 = vmpackc.low %vm1057_vm10, %vm1056_vm7  ;;  %v913_v8 = vsub.f32 %v849_v62, %v6986_v54  ;;  %v914_v9 = vsub.f32 %v850_v63, %v6987_v55  ;;  %v532_v32 = vld [vmem:[#allocation2 + $0xa8] sm:$0xff]  ;;  %v563_v35 = vld [vmem:[#allocation2 + $0x1a0] sm:$0xff]  ;;  %p10194_p0 = pneg %p10193_p13 }
  0x53   : > { %vm578_vm13 = vcmp.gt.f32.partialorder %v514_v4, 1.0  ;;  %v6970_v11 = vsel %vm577_vm11, 1.0, %v10256_v6  ;;  %8280 = vmatpush3.bf16.msk.msra.mxu1 %vm7160_vm12, %v10257_v38  ;;  %v881_v12 = vadd.f32 %v817_v5, %v497_v61  ;;  %v769_v16 = vmul.f32 0.95, %v513_v3  ;;  %v467_v37 = vld [vmem:[%s10373_s11 + $0xa0] sm:$0xff]  ;;  %v468_v39 = vld [vmem:[%s10373_s11 + $0xa8] sm:$0xff] }
  0x54   : > { %v882_v13 = vadd.f32 %v818_v7, %v498_v0  ;;  %v6971_v15 = vsel %vm578_vm13, 1.0, %v10256_v6  ;;  %978 = vst.msk [vmem:[#allocation2 + $0x90] sm:$0xff] %vm959_vm4, %v913_v8  ;;  %979 = vst.msk [vmem:[#allocation2 + $0x98] sm:$0xff] %vm959_vm4, %v914_v9  ;;  %vm1042_vm14 = vcmp.gt.f32.partialorder %v913_v8, 1.0  ;;  %vm1043_vm15 = vcmp.gt.f32.partialorder %v914_v9, 1.0  ;;  %v499_v42 = vld [vmem:[%s10373_s11 + $0x1a0] sm:$0xff] }
  0x55   : > { %v770_v18 = vmul.f32 0.95, %v514_v4  ;;  %vm609_vm0 = vcmp.gt.f32.partialorder %v545_v17, 1.0  ;;  %vm7146_vm1 = vmpackc.low %vm1043_vm15, %vm1042_vm14  ;;  %v945_v20 = vsub.f32 %v881_v12, %v7018_v1  ;;  %v833_v22 = vadd.f32 %v769_v16, %v449_v10  ;;  %v564_v46 = vld [vmem:[#allocation2 + $0x1a8] sm:$0xff]  ;;  %v515_v56 = vld [vmem:[#allocation2 + $0x20] sm:$0xff] }
  0x56   : > { %v946_v21 = vsub.f32 %v882_v13, %v7019_v2  ;;  %vm610_vm2 = vcmp.gt.f32.partialorder %v546_v19, 1.0  ;;  %8217 = vmatprep.subr.msk.bf16.mxu0 %vm7146_vm1, %v10257_v38  ;;  %v7002_v26 = vsel %vm609_vm0, 1.0, %v10256_v6  ;;  %v801_v28 = vmul.f32 0.95, %v545_v17  ;;  %v500_v51 = vld [vmem:[%s10373_s11 + $0x1a8] sm:$0xff]  ;;  %v451_v60 = vld [vmem:[%s10373_s11 + $0x20] sm:$0xff] }
  0x57   : > { %v834_v24 = vadd.f32 %v770_v18, %v450_v14  ;;  %v7003_v27 = vsel %vm610_vm2, 1.0, %v10256_v6  ;;  %1010 = vst.msk [vmem:[#allocation2 + $0x190] sm:$0xff] %vm959_vm4, %v945_v20  ;;  %vm1074_vm3 = vcmp.gt.f32.partialorder %v945_v20, 1.0  ;;  %v897_v29 = vsub.f32 %v833_v22, %v6970_v11  ;;  %v516_v57 = vld [vmem:[#allocation2 + $0x28] sm:$0xff]  ;;  %v547_v2 = vld [vmem:[#allocation2 + $0x120] sm:$0xff]  ;;  %v533_v14 = vld [vmem:[#allocation2 + $0xb0] sm:$0xff] }
  0x58   : > { %1011 = vst.msk [vmem:[#allocation2 + $0x198] sm:$0xff] %vm959_vm4, %v946_v21  ;;  %vm1075_vm5 = vcmp.gt.f32.partialorder %v946_v21, 1.0  ;;  %v802_v30 = vmul.f32 0.95, %v546_v19  ;;  %v865_v34 = vadd.f32 %v801_v28, %v481_v23  ;;  %vm595_vm7 = vcmp.gt.f32.partialorder %v531_v31, 1.0  ;;  %v452_v63 = vld [vmem:[%s10373_s11 + $0x28] sm:$0xff] }
  0x59   : > { %vm7178_vm6 = vmpackc.low %vm1075_vm5, %vm1074_vm3  ;;  %v898_v33 = vsub.f32 %v834_v24, %v6971_v15  ;;  %vm596_vm8 = vcmp.gt.f32.partialorder %v532_v32, 1.0  ;;  %962 = vst.msk [vmem:[#allocation2 + $0x10] sm:$0xff] %vm959_vm4, %v897_v29  ;;  %vm1026_vm9 = vcmp.gt.f32.partialorder %v897_v29, 1.0  ;;  %v6988_v40 = vsel %vm595_vm7, 1.0, %v10256_v6  ;;  %v548_v3 = vld [vmem:[#allocation2 + $0x128] sm:$0xff]  ;;  %v483_v8 = vld [vmem:[%s10373_s11 + $0x120] sm:$0xff] }
  0x5a   : > { %8281 = vmatprep.subr.msk.bf16.mxu1 %vm7178_vm6, %v10257_v38  ;;  %v866_v36 = vadd.f32 %v802_v30, %v482_v25  ;;  %v6989_v41 = vsel %vm596_vm8, 1.0, %v10256_v6  ;;  %v929_v43 = vsub.f32 %v865_v34, %v7002_v26  ;;  %v787_v44 = vmul.f32 0.95, %v531_v31  ;;  %v484_v11 = vld [vmem:[%s10373_s11 + $0x128] sm:$0xff]  ;;  %v534_v15 = vld [vmem:[#allocation2 + $0xb8] sm:$0xff]  ;;  %v469_v20 = vld [vmem:[%s10373_s11 + $0xb0] sm:$0xff] }
  0x5b   : > { %963 = vst.msk [vmem:[#allocation2 + $0x18] sm:$0xff] %vm959_vm4, %v898_v33  ;;  %vm1027_vm10 = vcmp.gt.f32.partialorder %v898_v33, 1.0  ;;  %v788_v45 = vmul.f32 0.95, %v532_v32  ;;  %vm627_vm12 = vcmp.gt.f32.partialorder %v563_v35, 1.0  ;;  %vm628_vm13 = vcmp.gt.f32.partialorder %v564_v46, 1.0 }
  0x5c   : > { %vm7130_vm11 = vmpackc.low %vm1027_vm10, %vm1026_vm9  ;;  %v930_v47 = vsub.f32 %v866_v36, %v7003_v27  ;;  %v819_v48 = vmul.f32 0.95, %v563_v35  ;;  %994 = vst.msk [vmem:[#allocation2 + $0x110] sm:$0xff] %vm959_vm4, %v929_v43  ;;  %vm1058_vm14 = vcmp.gt.f32.partialorder %v929_v43, 1.0  ;;  %v851_v49 = vadd.f32 %v787_v44, %v467_v37  ;;  %v470_v24 = vld [vmem:[%s10373_s11 + $0xb8] sm:$0xff]  ;;  %v565_v27 = vld [vmem:[#allocation2 + $0x1b0] sm:$0xff] }
  0x5d   : > { %8218 = vmatpush3.bf16.msk.msra.mxu0 %vm7130_vm11, %v10257_v38  ;;  %v852_v50 = vadd.f32 %v788_v45, %v468_v39  ;;  %v7020_v52 = vsel %vm627_vm12, 1.0, %v10256_v6  ;;  %v7021_v53 = vsel %vm628_vm13, 1.0, %v10256_v6  ;;  %v820_v54 = vmul.f32 0.95, %v564_v46  ;;  %v566_v29 = vld [vmem:[#allocation2 + $0x1b8] sm:$0xff]  ;;  %v501_v33 = vld [vmem:[%s10373_s11 + $0x1b0] sm:$0xff] }
  0x5e   : > { %995 = vst.msk [vmem:[#allocation2 + $0x118] sm:$0xff] %vm959_vm4, %v930_v47  ;;  %vm1059_vm15 = vcmp.gt.f32.partialorder %v930_v47, 1.0  ;;  %v883_v55 = vadd.f32 %v819_v48, %v499_v42  ;;  %v915_v58 = vsub.f32 %v851_v49, %v6988_v40  ;;  %vm579_vm1 = vcmp.gt.f32.partialorder %v515_v56, 1.0  ;;  %v502_v35 = vld [vmem:[%s10373_s11 + $0x1b8] sm:$0xff]  ;;  %v517_v42 = vld [vmem:[#allocation2 + $0x30] sm:$0xff] }
  0x5f   : > { %vm7162_vm0 = vmpackc.low %vm1059_vm15, %vm1058_vm14  ;;  %v916_v59 = vsub.f32 %v852_v50, %v6989_v41  ;;  %vm580_vm2 = vcmp.gt.f32.partialorder %v516_v57, 1.0  ;;  %v884_v61 = vadd.f32 %v820_v54, %v500_v51  ;;  %v6972_v0 = vsel %vm579_vm1, 1.0, %v10256_v6  ;;  %v518_v43 = vld [vmem:[#allocation2 + $0x38] sm:$0xff]  ;;  %v549_v46 = vld [vmem:[#allocation2 + $0x130] sm:$0xff] }
  0x60   : > { %8282 = vmatpush3.bf16.msk.msra.mxu1 %vm7162_vm0, %v10257_v38  ;;  %v947_v62 = vsub.f32 %v883_v55, %v7020_v52  ;;  %v6973_v1 = vsel %vm580_vm2, 1.0, %v10256_v6  ;;  %980 = vst.msk [vmem:[#allocation2 + $0xa0] sm:$0xff] %vm959_vm4, %v915_v58  ;;  %vm1044_vm3 = vcmp.gt.f32.partialorder %v915_v58, 1.0  ;;  %v771_v4 = vmul.f32 0.95, %v515_v56  ;;  %v453_v48 = vld [vmem:[%s10373_s11 + $0x30] sm:$0xff] }
  0x61   : > { %981 = vst.msk [vmem:[#allocation2 + $0xa8] sm:$0xff] %vm959_vm4, %v916_v59  ;;  %vm1045_vm5 = vcmp.gt.f32.partialorder %v916_v59, 1.0  ;;  %v772_v5 = vmul.f32 0.95, %v516_v57  ;;  %v948_v7 = vsub.f32 %v884_v61, %v7021_v53  ;;  %vm611_vm8 = vcmp.gt.f32.partialorder %v547_v2, 1.0  ;;  %v454_v49 = vld [vmem:[%s10373_s11 + $0x38] sm:$0xff] }
  0x62   : > { %vm7148_vm6 = vmpackc.low %vm1045_vm5, %vm1044_vm3  ;;  %1012 = vst.msk [vmem:[#allocation2 + $0x1a0] sm:$0xff] %vm959_vm4, %v947_v62  ;;  %vm1076_vm7 = vcmp.gt.f32.partialorder %v947_v62, 1.0  ;;  %vm612_vm9 = vcmp.gt.f32.partialorder %v548_v3, 1.0  ;;  %v835_v9 = vadd.f32 %v771_v4, %v451_v60  ;;  %v7004_v12 = vsel %vm611_vm8, 1.0, %v10256_v6  ;;  %v485_v52 = vld [vmem:[%s10373_s11 + $0x130] sm:$0xff]  ;;  %v550_v56 = vld [vmem:[#allocation2 + $0x138] sm:$0xff] }
  0x63   : > { %8219 = vmatprep.subr.msk.bf16.mxu0 %vm7148_vm6, %v10257_v38  ;;  %v836_v10 = vadd.f32 %v772_v5, %v452_v63  ;;  %v7005_v13 = vsel %vm612_vm9, 1.0, %v10256_v6  ;;  %1013 = vst.msk [vmem:[#allocation2 + $0x1a8] sm:$0xff] %vm959_vm4, %v948_v7  ;;  %vm1077_vm10 = vcmp.gt.f32.partialorder %v948_v7, 1.0  ;;  %v803_v16 = vmul.f32 0.95, %v547_v2  ;;  %v486_v61 = vld [vmem:[%s10373_s11 + $0x138] sm:$0xff] }
  0x64   : > { %v804_v17 = vmul.f32 0.95, %v548_v3  ;;  %vm597_vm11 = vcmp.gt.f32.partialorder %v533_v14, 1.0  ;;  %vm7180_vm12 = vmpackc.low %vm1077_vm10, %vm1076_vm7  ;;  %v899_v18 = vsub.f32 %v835_v9, %v6972_v0  ;;  %vm598_vm13 = vcmp.gt.f32.partialorder %v534_v15, 1.0  ;;  %v535_v2 = vld [vmem:[#allocation2 + $0xc0] sm:$0xff]  ;;  %v536_v3 = vld [vmem:[#allocation2 + $0xc8] sm:$0xff] }
  0x65   : > { %v900_v19 = vsub.f32 %v836_v10, %v6973_v1  ;;  %v6990_v21 = vsel %vm597_vm11, 1.0, %v10256_v6  ;;  %8283 = vmatprep.subr.msk.bf16.mxu1 %vm7180_vm12, %v10257_v38  ;;  %v867_v22 = vadd.f32 %v803_v16, %v483_v8  ;;  %v6991_v25 = vsel %vm598_vm13, 1.0, %v10256_v6  ;;  %v471_v7 = vld [vmem:[%s10373_s11 + $0xc0] sm:$0xff]  ;;  %v472_v10 = vld [vmem:[%s10373_s11 + $0xc8] sm:$0xff] }
  0x66   : > { %v868_v23 = vadd.f32 %v804_v17, %v484_v11  ;;  %v789_v26 = vmul.f32 0.95, %v533_v14  ;;  %964 = vst.msk [vmem:[#allocation2 + $0x20] sm:$0xff] %vm959_vm4, %v899_v18  ;;  %vm1028_vm14 = vcmp.gt.f32.partialorder %v899_v18, 1.0  ;;  %v790_v28 = vmul.f32 0.95, %v534_v15 }
  0x67   : > { %965 = vst.msk [vmem:[#allocation2 + $0x28] sm:$0xff] %vm959_vm4, %v900_v19  ;;  %vm1029_vm15 = vcmp.gt.f32.partialorder %v900_v19, 1.0  ;;  %vm629_vm0 = vcmp.gt.f32.partialorder %v565_v27, 1.0  ;;  %v931_v30 = vsub.f32 %v867_v22, %v7004_v12  ;;  %vm630_vm2 = vcmp.gt.f32.partialorder %v566_v29, 1.0  ;;  %v568_v14 = vld [vmem:[#allocation2 + $0x1c8] sm:$0xff]  ;;  %v503_v18 = vld [vmem:[%s10373_s11 + $0x1c0] sm:$0xff] }
  0x68   : > { %vm7132_vm1 = vmpackc.low %vm1029_vm15, %vm1028_vm14  ;;  %v932_v31 = vsub.f32 %v868_v23, %v7005_v13  ;;  %v853_v32 = vadd.f32 %v789_v26, %v469_v20  ;;  %v854_v34 = vadd.f32 %v790_v28, %v470_v24  ;;  %v7022_v36 = vsel %vm629_vm0, 1.0, %v10256_v6  ;;  %v567_v13 = vld [vmem:[#allocation2 + $0x1c0] sm:$0xff] }
  0x69   : > { %8220 = vmatpush3.bf16.msk.msra.mxu0 %vm7132_vm1, %v10257_v38  ;;  %v7023_v37 = vsel %vm630_vm2, 1.0, %v10256_v6  ;;  %v821_v39 = vmul.f32 0.95, %v565_v27  ;;  %996 = vst.msk [vmem:[#allocation2 + $0x120] sm:$0xff] %vm959_vm4, %v931_v30  ;;  %vm1060_vm3 = vcmp.gt.f32.partialorder %v931_v30, 1.0  ;;  %vm581_vm7 = vcmp.gt.f32.partialorder %v517_v42, 1.0 }
  0x6a   : > { %997 = vst.msk [vmem:[#allocation2 + $0x128] sm:$0xff] %vm959_vm4, %v932_v31  ;;  %vm1061_vm5 = vcmp.gt.f32.partialorder %v932_v31, 1.0  ;;  %v917_v40 = vsub.f32 %v853_v32, %v6990_v21  ;;  %v822_v41 = vmul.f32 0.95, %v566_v29  ;;  %v918_v44 = vsub.f32 %v854_v34, %v6991_v25  ;;  %v504_v21 = vld [vmem:[%s10373_s11 + $0x1c8] sm:$0xff]  ;;  %v519_v24 = vld [vmem:[#allocation2 + $0x40] sm:$0xff] }
  0x6b   : > { %vm7164_vm6 = vmpackc.low %vm1061_vm5, %vm1060_vm3  ;;  %v885_v45 = vadd.f32 %v821_v39, %v501_v33  ;;  %vm582_vm8 = vcmp.gt.f32.partialorder %v518_v43, 1.0  ;;  %v6974_v50 = vsel %vm581_vm7, 1.0, %v10256_v6  ;;  %v773_v54 = vmul.f32 0.95, %v517_v42  ;;  %v520_v25 = vld [vmem:[#allocation2 + $0x48] sm:$0xff]  ;;  %v455_v30 = vld [vmem:[%s10373_s11 + $0x40] sm:$0xff] }
  0x6c   : > { %8284 = vmatpush3.bf16.msk.msra.mxu1 %vm7164_vm6, %v10257_v38  ;;  %982 = vst.msk [vmem:[#allocation2 + $0xb0] sm:$0xff] %vm959_vm4, %v917_v40  ;;  %vm1046_vm9 = vcmp.gt.f32.partialorder %v917_v40, 1.0  ;;  %v886_v47 = vadd.f32 %v822_v41, %v502_v35  ;;  %v6975_v51 = vsel %vm582_vm8, 1.0, %v10256_v6  ;;  %983 = vst.msk [vmem:[#allocation2 + $0xb8] sm:$0xff] %vm959_vm4, %v918_v44  ;;  %vm1047_vm10 = vcmp.gt.f32.partialorder %v918_v44, 1.0  ;;  %v456_v34 = vld [vmem:[%s10373_s11 + $0x48] sm:$0xff] }
  0x6d   : > { %v949_v53 = vsub.f32 %v885_v45, %v7022_v36  ;;  %v774_v55 = vmul.f32 0.95, %v518_v43  ;;  %vm7150_vm11 = vmpackc.low %vm1047_vm10, %vm1046_vm9  ;;  %vm613_vm12 = vcmp.gt.f32.partialorder %v549_v46, 1.0  ;;  %vm614_vm13 = vcmp.gt.f32.partialorder %v550_v56, 1.0  ;;  %v552_v40 = vld [vmem:[#allocation2 + $0x148] sm:$0xff]  ;;  %v487_v44 = vld [vmem:[%s10373_s11 + $0x140] sm:$0xff] }
  0x6e   : > { %v950_v57 = vsub.f32 %v886_v47, %v7023_v37  ;;  %v805_v58 = vmul.f32 0.95, %v549_v46  ;;  %8221 = vmatprep.subr.msk.bf16.mxu0 %vm7150_vm11, %v10257_v38  ;;  %v837_v59 = vadd.f32 %v773_v54, %v453_v48  ;;  %v7006_v62 = vsel %vm613_vm12, 1.0, %v10256_v6  ;;  %v551_v37 = vld [vmem:[#allocation2 + $0x140] sm:$0xff]  ;;  %v488_v46 = vld [vmem:[%s10373_s11 + $0x148] sm:$0xff] }
  0x6f   : > { %1014 = vst.msk [vmem:[#allocation2 + $0x1b0] sm:$0xff] %vm959_vm4, %v949_v53  ;;  %vm1078_vm14 = vcmp.gt.f32.partialorder %v949_v53, 1.0  ;;  %v838_v60 = vadd.f32 %v774_v55, %v454_v49  ;;  %v7007_v63 = vsel %vm614_vm13, 1.0, %v10256_v6  ;;  %v806_v0 = vmul.f32 0.95, %v550_v56  ;;  %v538_v53 = vld [vmem:[#allocation2 + $0xd8] sm:$0xff] }
  0x70   : > { %1015 = vst.msk [vmem:[#allocation2 + $0x1b8] sm:$0xff] %vm959_vm4, %v950_v57  ;;  %vm1079_vm15 = vcmp.gt.f32.partialorder %v950_v57, 1.0  ;;  %v869_v1 = vadd.f32 %v805_v58, %v485_v52  ;;  %v901_v4 = vsub.f32 %v837_v59, %v6974_v50  ;;  %vm599_vm1 = vcmp.gt.f32.partialorder %v535_v2, 1.0  ;;  %v537_v52 = vld [vmem:[#allocation2 + $0xd0] sm:$0xff]  ;;  %v474_v59 = vld [vmem:[%s10373_s11 + $0xd8] sm:$0xff] }
  0x71   : > { %vm7182_vm0 = vmpackc.low %vm1079_vm15, %vm1078_vm14  ;;  %v902_v5 = vsub.f32 %v838_v60, %v6975_v51  ;;  %vm600_vm2 = vcmp.gt.f32.partialorder %v536_v3, 1.0  ;;  %v870_v8 = vadd.f32 %v806_v0, %v486_v61  ;;  %v6992_v11 = vsel %vm599_vm1, 1.0, %v10256_v6  ;;  %v569_v56 = vld [vmem:[#allocation2 + $0x1d0] sm:$0xff] }
  0x72   : > { %8285 = vmatprep.subr.msk.bf16.mxu1 %vm7182_vm0, %v10257_v38  ;;  %v933_v9 = vsub.f32 %v869_v1, %v7006_v62  ;;  %v6993_v12 = vsel %vm600_vm2, 1.0, %v10256_v6  ;;  %966 = vst.msk [vmem:[#allocation2 + $0x30] sm:$0xff] %vm959_vm4, %v901_v4  ;;  %vm1030_vm3 = vcmp.gt.f32.partialorder %v901_v4, 1.0  ;;  %v791_v15 = vmul.f32 0.95, %v535_v2  ;;  %v473_v58 = vld [vmem:[%s10373_s11 + $0xd0] sm:$0xff] }
  0x73   : > { %967 = vst.msk [vmem:[#allocation2 + $0x38] sm:$0xff] %vm959_vm4, %v902_v5  ;;  %vm1031_vm5 = vcmp.gt.f32.partialorder %v902_v5, 1.0  ;;  %v792_v16 = vmul.f32 0.95, %v536_v3  ;;  %v934_v17 = vsub.f32 %v870_v8, %v7007_v63  ;;  %vm631_vm8 = vcmp.gt.f32.partialorder %v567_v13, 1.0  ;;  %v505_v62 = vld [vmem:[%s10373_s11 + $0x1d0] sm:$0xff] }
  0x74   : > { %vm7134_vm6 = vmpackc.low %vm1031_vm5, %vm1030_vm3  ;;  %998 = vst.msk [vmem:[#allocation2 + $0x130] sm:$0xff] %vm959_vm4, %v933_v9  ;;  %vm1062_vm7 = vcmp.gt.f32.partialorder %v933_v9, 1.0  ;;  %vm632_vm9 = vcmp.gt.f32.partialorder %v568_v14, 1.0  ;;  %v855_v19 = vadd.f32 %v791_v15, %v471_v7  ;;  %v7024_v22 = vsel %vm631_vm8, 1.0, %v10256_v6  ;;  %v570_v2 = vld [vmem:[#allocation2 + $0x1d8] sm:$0xff]  ;;  %v521_v15 = vld [vmem:[#allocation2 + $0x50] sm:$0xff] }
  0x75   : > { %8222 = vmatpush3.bf16.msk.msra.mxu0 %vm7134_vm6, %v10257_v38  ;;  %v856_v20 = vadd.f32 %v792_v16, %v472_v10  ;;  %v7025_v23 = vsel %vm632_vm9, 1.0, %v10256_v6  ;;  %999 = vst.msk [vmem:[#allocation2 + $0x138] sm:$0xff] %vm959_vm4, %v934_v17  ;;  %vm1063_vm10 = vcmp.gt.f32.partialorder %v934_v17, 1.0  ;;  %v823_v26 = vmul.f32 0.95, %v567_v13  ;;  %v506_v8 = vld [vmem:[%s10373_s11 + $0x1d8] sm:$0xff] }
  0x76   : > { %v824_v27 = vmul.f32 0.95, %v568_v14  ;;  %vm583_vm11 = vcmp.gt.f32.partialorder %v519_v24, 1.0  ;;  %vm7166_vm12 = vmpackc.low %vm1063_vm10, %vm1062_vm7  ;;  %v919_v28 = vsub.f32 %v855_v19, %v6992_v11  ;;  %vm584_vm13 = vcmp.gt.f32.partialorder %v520_v25, 1.0  ;;  %v457_v13 = vld [vmem:[%s10373_s11 + $0x50] sm:$0xff]  ;;  %v458_v14 = vld [vmem:[%s10373_s11 + $0x58] sm:$0xff] }
  0x77   : > { %v920_v29 = vsub.f32 %v856_v20, %v6993_v12  ;;  %v6976_v31 = vsel %vm583_vm11, 1.0, %v10256_v6  ;;  %8286 = vmatpush3.bf16.msk.msra.mxu1 %vm7166_vm12, %v10257_v38  ;;  %v887_v32 = vadd.f32 %v823_v26, %v503_v18  ;;  %v6977_v35 = vsel %vm584_vm13, 1.0, %v10256_v6  ;;  %v522_v16 = vld [vmem:[#allocation2 + $0x58] sm:$0xff]  ;;  %v553_v19 = vld [vmem:[#allocation2 + $0x150] sm:$0xff] }
  0x78   : > { %v888_v33 = vadd.f32 %v824_v27, %v504_v21  ;;  %v775_v36 = vmul.f32 0.95, %v519_v24  ;;  %984 = vst.msk [vmem:[#allocation2 + $0xc0] sm:$0xff] %vm959_vm4, %v919_v28  ;;  %vm1048_vm14 = vcmp.gt.f32.partialorder %v919_v28, 1.0  ;;  %v776_v39 = vmul.f32 0.95, %v520_v25 }
  0x79   : > { %985 = vst.msk [vmem:[#allocation2 + $0xc8] sm:$0xff] %vm959_vm4, %v920_v29  ;;  %vm1049_vm15 = vcmp.gt.f32.partialorder %v920_v29, 1.0  ;;  %vm615_vm0 = vcmp.gt.f32.partialorder %v551_v37, 1.0  ;;  %v951_v41 = vsub.f32 %v887_v32, %v7024_v22  ;;  %vm616_vm2 = vcmp.gt.f32.partialorder %v552_v40, 1.0  ;;  %v9983_v20 = vld [vmem:[%s12808_s1 + $0x4] ss:$16 sps:$4 sm:$0xff]  }
  0x7a   : > { %vm7152_vm1 = vmpackc.low %vm1049_vm15, %vm1048_vm14  ;;  %v952_v42 = vsub.f32 %v888_v33, %v7025_v23  ;;  %v839_v43 = vadd.f32 %v775_v36, %v455_v30  ;;  %v840_v45 = vadd.f32 %v776_v39, %v456_v34  ;;  %v7008_v47 = vsel %vm615_vm0, 1.0, %v10256_v6  ;;  %v554_v25 = vld [vmem:[#allocation2 + $0x158] sm:$0xff]  ;;  %v489_v28 = vld [vmem:[%s10373_s11 + $0x150] sm:$0xff]  ;;  %1472 = vmatprep.mubr.bf16.mxu0 %v9983_v20 }
  0x7b   : > { %8223 = vmatprep.subr.msk.bf16.mxu0 %vm7152_vm1, %v10257_v38  ;;  %v7009_v48 = vsel %vm616_vm2, 1.0, %v10256_v6  ;;  %v807_v49 = vmul.f32 0.95, %v551_v37  ;;  %1016 = vst.msk [vmem:[#allocation2 + $0x1c0] sm:$0xff] %vm959_vm4, %v951_v41  ;;  %vm1080_vm3 = vcmp.gt.f32.partialorder %v951_v41, 1.0  ;;  %vm601_vm7 = vcmp.gt.f32.partialorder %v537_v52, 1.0 }
  0x7c   : > { %1017 = vst.msk [vmem:[#allocation2 + $0x1c8] sm:$0xff] %vm959_vm4, %v952_v42  ;;  %vm1081_vm5 = vcmp.gt.f32.partialorder %v952_v42, 1.0  ;;  %v903_v50 = vsub.f32 %v839_v43, %v6976_v31  ;;  %v808_v51 = vmul.f32 0.95, %v552_v40  ;;  %v904_v54 = vsub.f32 %v840_v45, %v6977_v35  ;;  %v490_v29 = vld [vmem:[%s10373_s11 + $0x158] sm:$0xff]  ;;  %v539_v30 = vld [vmem:[#allocation2 + $0xe0] sm:$0xff] }
  0x7d   : > { %vm7184_vm6 = vmpackc.low %vm1081_vm5, %vm1080_vm3  ;;  %v871_v55 = vadd.f32 %v807_v49, %v487_v44  ;;  %vm602_vm8 = vcmp.gt.f32.partialorder %v538_v53, 1.0  ;;  %v6994_v60 = vsel %vm601_vm7, 1.0, %v10256_v6  ;;  %v793_v0 = vmul.f32 0.95, %v537_v52  ;;  %v9986_v32 = vld [vmem:[%s12808_s1 + $0xc] ss:$16 sps:$4 sm:$0xff]  }
  0x7e   : > { %8287 = vmatprep.subr.msk.bf16.mxu1 %vm7184_vm6, %v10257_v38  ;;  %968 = vst.msk [vmem:[#allocation2 + $0x40] sm:$0xff] %vm959_vm4, %v903_v50  ;;  %vm1032_vm9 = vcmp.gt.f32.partialorder %v903_v50, 1.0  ;;  %v872_v57 = vadd.f32 %v808_v51, %v488_v46  ;;  %v6995_v61 = vsel %vm602_vm8, 1.0, %v10256_v6  ;;  %969 = vst.msk [vmem:[#allocation2 + $0x48] sm:$0xff] %vm959_vm4, %v904_v54  ;;  %vm1033_vm10 = vcmp.gt.f32.partialorder %v904_v54, 1.0  ;;  %v540_v37 = vld [vmem:[#allocation2 + $0xe8] sm:$0xff]  ;;  %1569 = vmatprep.mubr.bf16.mxu1 %v9986_v32 }
  0x7f   : > { %v935_v63 = vsub.f32 %v871_v55, %v7008_v47  ;;  %v794_v1 = vmul.f32 0.95, %v538_v53  ;;  %vm7136_vm11 = vmpackc.low %vm1033_vm10, %vm1032_vm9  ;;  %vm633_vm12 = vcmp.gt.f32.partialorder %v569_v56, 1.0  ;;  %vm634_vm13 = vcmp.gt.f32.partialorder %v570_v2, 1.0  ;;  %v475_v43 = vld [vmem:[%s10373_s11 + $0xe0] sm:$0xff]  ;;  %v476_v44 = vld [vmem:[%s10373_s11 + $0xe8] sm:$0xff] }
  0x80   : > { %v936_v3 = vsub.f32 %v872_v57, %v7009_v48  ;;  %v825_v4 = vmul.f32 0.95, %v569_v56  ;;  %8224 = vmatpush3.bf16.msk.msra.mxu0 %vm7136_vm11, %v10257_v38  ;;  %v857_v5 = vadd.f32 %v793_v0, %v473_v58  ;;  %v7026_v9 = vsel %vm633_vm12, 1.0, %v10256_v6  ;;  %v507_v50 = vld [vmem:[%s10373_s11 + $0x1e0] sm:$0xff]  ;;  %v572_v52 = vld [vmem:[#allocation2 + $0x1e8] sm:$0xff] }
  0x81   : > { %1000 = vst.msk [vmem:[#allocation2 + $0x140] sm:$0xff] %vm959_vm4, %v935_v63  ;;  %vm1064_vm14 = vcmp.gt.f32.partialorder %v935_v63, 1.0  ;;  %v858_v7 = vadd.f32 %v794_v1, %v474_v59  ;;  %v7027_v10 = vsel %vm634_vm13, 1.0, %v10256_v6  ;;  %v826_v11 = vmul.f32 0.95, %v570_v2  ;;  %v571_v51 = vld [vmem:[#allocation2 + $0x1e0] sm:$0xff] }
  0x82   : > { %1001 = vst.msk [vmem:[#allocation2 + $0x148] sm:$0xff] %vm959_vm4, %v936_v3  ;;  %vm1065_vm15 = vcmp.gt.f32.partialorder %v936_v3, 1.0  ;;  %v889_v12 = vadd.f32 %v825_v4, %v505_v62  ;;  %v921_v17 = vsub.f32 %v857_v5, %v6994_v60  ;;  %vm585_vm1 = vcmp.gt.f32.partialorder %v521_v15, 1.0  ;;  %v508_v57 = vld [vmem:[%s10373_s11 + $0x1e8] sm:$0xff]  ;;  %v459_v0 = vld [vmem:[%s10373_s11 + $0x60] sm:$0xff] }
  0x83   : > { %vm7168_vm0 = vmpackc.low %vm1065_vm15, %vm1064_vm14  ;;  %v922_v18 = vsub.f32 %v858_v7, %v6995_v61  ;;  %vm586_vm2 = vcmp.gt.f32.partialorder %v522_v16, 1.0  ;;  %v890_v21 = vadd.f32 %v826_v11, %v506_v8  ;;  %v6978_v23 = vsel %vm585_vm1, 1.0, %v10256_v6  ;;  %v523_v1 = vld [vmem:[#allocation2 + $0x60] sm:$0xff]  ;;  %v524_v2 = vld [vmem:[#allocation2 + $0x68] sm:$0xff] }
  0x84   : > { %8288 = vmatpush3.bf16.msk.msra.mxu1 %vm7168_vm0, %v10257_v38  ;;  %v953_v22 = vsub.f32 %v889_v12, %v7026_v9  ;;  %v6979_v24 = vsel %vm586_vm2, 1.0, %v10256_v6  ;;  %986 = vst.msk [vmem:[#allocation2 + $0xd0] sm:$0xff] %vm959_vm4, %v921_v17  ;;  %vm1050_vm3 = vcmp.gt.f32.partialorder %v921_v17, 1.0  ;;  %v777_v26 = vmul.f32 0.95, %v521_v15  ;;  %v460_v5 = vld [vmem:[%s10373_s11 + $0x68] sm:$0xff] }
  0x85   : > { %987 = vst.msk [vmem:[#allocation2 + $0xd8] sm:$0xff] %vm959_vm4, %v922_v18  ;;  %vm1051_vm5 = vcmp.gt.f32.partialorder %v922_v18, 1.0  ;;  %v778_v27 = vmul.f32 0.95, %v522_v16  ;;  %v954_v31 = vsub.f32 %v890_v21, %v7027_v10  ;;  %vm617_vm8 = vcmp.gt.f32.partialorder %v553_v19, 1.0  ;;  %v555_v7 = vld [vmem:[#allocation2 + $0x160] sm:$0xff] }
  0x86   : > { %vm7154_vm6 = vmpackc.low %vm1051_vm5, %vm1050_vm3  ;;  %1018 = vst.msk [vmem:[#allocation2 + $0x1d0] sm:$0xff] %vm959_vm4, %v953_v22  ;;  %vm1082_vm7 = vcmp.gt.f32.partialorder %v953_v22, 1.0  ;;  %vm618_vm9 = vcmp.gt.f32.partialorder %v554_v25, 1.0  ;;  %v841_v33 = vadd.f32 %v777_v26, %v457_v13  ;;  %v7010_v35 = vsel %vm617_vm8, 1.0, %v10256_v6  ;;  %v491_v11 = vld [vmem:[%s10373_s11 + $0x160] sm:$0xff]  ;;  %v556_v12 = vld [vmem:[#allocation2 + $0x168] sm:$0xff] }
  0x87   : > { %8225 = vmatprep.subr.msk.bf16.mxu0 %vm7154_vm6, %v10257_v38  ;;  %v842_v34 = vadd.f32 %v778_v27, %v458_v14  ;;  %v7011_v36 = vsel %vm618_vm9, 1.0, %v10256_v6  ;;  %1019 = vst.msk [vmem:[#allocation2 + $0x1d8] sm:$0xff] %vm959_vm4, %v954_v31  ;;  %vm1083_vm10 = vcmp.gt.f32.partialorder %v954_v31, 1.0  ;;  %v809_v39 = vmul.f32 0.95, %v553_v19  ;;  %v492_v20 = vld [vmem:[%s10373_s11 + $0x168] sm:$0xff] }
  0x88   : > { %v810_v40 = vmul.f32 0.95, %v554_v25  ;;  %vm603_vm11 = vcmp.gt.f32.partialorder %v539_v30, 1.0  ;;  %vm7186_vm12 = vmpackc.low %vm1083_vm10, %vm1082_vm7  ;;  %v905_v41 = vsub.f32 %v841_v33, %v6978_v23  ;;  %vm604_vm13 = vcmp.gt.f32.partialorder %v540_v37, 1.0  ;;  %v477_v25 = vld [vmem:[%s10373_s11 + $0xf0] sm:$0xff]  ;;  %v478_v26 = vld [vmem:[%s10373_s11 + $0xf8] sm:$0xff] }
  0x89   : > { %v906_v42 = vsub.f32 %v842_v34, %v6979_v24  ;;  %v6996_v45 = vsel %vm603_vm11, 1.0, %v10256_v6  ;;  %8289 = vmatprep.subr.msk.bf16.mxu1 %vm7186_vm12, %v10257_v38  ;;  %v873_v46 = vadd.f32 %v809_v39, %v489_v28  ;;  %v6997_v48 = vsel %vm604_vm13, 1.0, %v10256_v6  ;;  %v541_v27 = vld [vmem:[#allocation2 + $0xf0] sm:$0xff]  ;;  %v542_v28 = vld [vmem:[#allocation2 + $0xf8] sm:$0xff] }
  0x8a   : > { %v874_v47 = vadd.f32 %v810_v40, %v490_v29  ;;  %v795_v49 = vmul.f32 0.95, %v539_v30  ;;  %970 = vst.msk [vmem:[#allocation2 + $0x50] sm:$0xff] %vm959_vm4, %v905_v41  ;;  %vm1034_vm14 = vcmp.gt.f32.partialorder %v905_v41, 1.0  ;;  %v796_v53 = vmul.f32 0.95, %v540_v37 }
  0x8b   : > { %971 = vst.msk [vmem:[#allocation2 + $0x58] sm:$0xff] %vm959_vm4, %v906_v42  ;;  %vm1035_vm15 = vcmp.gt.f32.partialorder %v906_v42, 1.0  ;;  %vm635_vm0 = vcmp.gt.f32.partialorder %v571_v51, 1.0  ;;  %v937_v54 = vsub.f32 %v873_v46, %v7010_v35  ;;  %vm636_vm2 = vcmp.gt.f32.partialorder %v572_v52, 1.0  ;;  %v573_v31 = vld [vmem:[#allocation2 + $0x1f0] sm:$0xff]  ;;  %v510_v41 = vld [vmem:[%s10373_s11 + $0x1f8] sm:$0xff] }
  0x8c   : > { %vm7138_vm1 = vmpackc.low %vm1035_vm15, %vm1034_vm14  ;;  %v938_v55 = vsub.f32 %v874_v47, %v7011_v36  ;;  %v859_v56 = vadd.f32 %v795_v49, %v475_v43  ;;  %v860_v58 = vadd.f32 %v796_v53, %v476_v44  ;;  %v7028_v59 = vsel %vm635_vm0, 1.0, %v10256_v6  ;;  %v574_v36 = vld [vmem:[#allocation2 + $0x1f8] sm:$0xff]  ;;  %v509_v40 = vld [vmem:[%s10373_s11 + $0x1f0] sm:$0xff] }
  0x8d   : > { %8226 = vmatpush3.bf16.msk.msra.mxu0 %vm7138_vm1, %v10257_v38  ;;  %v7029_v60 = vsel %vm636_vm2, 1.0, %v10256_v6  ;;  %v827_v61 = vmul.f32 0.95, %v571_v51  ;;  %1002 = vst.msk [vmem:[#allocation2 + $0x150] sm:$0xff] %vm959_vm4, %v937_v54  ;;  %vm1066_vm3 = vcmp.gt.f32.partialorder %v937_v54, 1.0  ;;  %vm587_vm7 = vcmp.gt.f32.partialorder %v523_v1, 1.0 }
  0x8e   : > { %1003 = vst.msk [vmem:[#allocation2 + $0x158] sm:$0xff] %vm959_vm4, %v938_v55  ;;  %vm1067_vm5 = vcmp.gt.f32.partialorder %v938_v55, 1.0  ;;  %v923_v62 = vsub.f32 %v859_v56, %v6996_v45  ;;  %v828_v63 = vmul.f32 0.95, %v572_v52  ;;  %v924_v3 = vsub.f32 %v860_v58, %v6997_v48  ;;  %v525_v43 = vld [vmem:[#allocation2 + $0x70] sm:$0xff]  ;;  %v526_v49 = vld [vmem:[#allocation2 + $0x78] sm:$0xff] }
  0x8f   : > { %vm7170_vm6 = vmpackc.low %vm1067_vm5, %vm1066_vm3  ;;  %v891_v4 = vadd.f32 %v827_v61, %v507_v50  ;;  %vm588_vm8 = vcmp.gt.f32.partialorder %v524_v2, 1.0  ;;  %v6980_v9 = vsel %vm587_vm7, 1.0, %v10256_v6  ;;  %v779_v14 = vmul.f32 0.95, %v523_v1  ;;  %v461_v48 = vld [vmem:[%s10373_s11 + $0x70] sm:$0xff]  ;;  %v462_v54 = vld [vmem:[%s10373_s11 + $0x78] sm:$0xff] }
  0x90   : > { %8290 = vmatpush3.bf16.msk.msra.mxu1 %vm7170_vm6, %v10257_v38  ;;  %988 = vst.msk [vmem:[#allocation2 + $0xe0] sm:$0xff] %vm959_vm4, %v923_v62  ;;  %vm1052_vm9 = vcmp.gt.f32.partialorder %v923_v62, 1.0  ;;  %v892_v8 = vadd.f32 %v828_v63, %v508_v57  ;;  %v6981_v10 = vsel %vm588_vm8, 1.0, %v10256_v6  ;;  %989 = vst.msk [vmem:[#allocation2 + $0xe8] sm:$0xff] %vm959_vm4, %v924_v3  ;;  %vm1053_vm10 = vcmp.gt.f32.partialorder %v924_v3, 1.0  ;;  %v558_v61 = vld [vmem:[#allocation2 + $0x178] sm:$0xff] }
  0x91   : > { %v955_v13 = vsub.f32 %v891_v4, %v7028_v59  ;;  %v780_v15 = vmul.f32 0.95, %v524_v2  ;;  %vm7156_vm11 = vmpackc.low %vm1053_vm10, %vm1052_vm9  ;;  %vm619_vm12 = vcmp.gt.f32.partialorder %v555_v7, 1.0  ;;  %vm620_vm13 = vcmp.gt.f32.partialorder %v556_v12, 1.0  ;;  %v493_v2 = vld [vmem:[%s10373_s11 + $0x170] sm:$0xff]  ;;  %v494_v4 = vld [vmem:[%s10373_s11 + $0x178] sm:$0xff] }
  0x92   : > { %v956_v16 = vsub.f32 %v892_v8, %v7029_v60  ;;  %v811_v17 = vmul.f32 0.95, %v555_v7  ;;  %8227 = vmatprep.subr.msk.bf16.mxu0 %vm7156_vm11, %v10257_v38  ;;  %v843_v18 = vadd.f32 %v779_v14, %v459_v0  ;;  %v7012_v21 = vsel %vm619_vm12, 1.0, %v10256_v6  ;;  %v557_v60 = vld [vmem:[#allocation2 + $0x170] sm:$0xff]  ;;  %s10259_s11 = smov [#allocation6]  }
  0x93   : > { %1020 = vst.msk [vmem:[#allocation2 + $0x1e0] sm:$0xff] %vm959_vm4, %v955_v13  ;;  %vm1084_vm14 = vcmp.gt.f32.partialorder %v955_v13, 1.0  ;;  %v844_v19 = vadd.f32 %v780_v15, %v460_v5  ;;  %v7013_v22 = vsel %vm620_vm13, 1.0, %v10256_v6  ;;  %v812_v23 = vmul.f32 0.95, %v556_v12  ;;  %s10195_s20 = sshll.u32 %s10259_s11, 4  ;;  %s10196_s20 = int_to_ptr.vmem [resolvable:$false] %s10195_s20 }
  0x94   : > { %1021 = vst.msk [vmem:[#allocation2 + $0x1e8] sm:$0xff] %vm959_vm4, %v956_v16  ;;  %vm1085_vm15 = vcmp.gt.f32.partialorder %v956_v16, 1.0  ;;  %v875_v24 = vadd.f32 %v811_v17, %v491_v11  ;;  %v907_v29 = vsub.f32 %v843_v18, %v6980_v9  ;;  %vm605_vm1 = vcmp.gt.f32.partialorder %v541_v27, 1.0  ;;  %v9981_v16 = vld [vmem:[%s12808_s1] ss:$16 sps:$4 sm:$0xff]   ;;  %s10197_s18 = scalar_lea.vmem %s10196_s20, 64  ;;  %p10198_p1 = scmp.lt.s32.totalorder %s12762_s21, %s10196_s20 }
  0x95   : > { %vm7188_vm0 = vmpackc.low %vm1085_vm15, %vm1084_vm14  ;;  %v908_v30 = vsub.f32 %v844_v19, %v6981_v10  ;;  %vm606_vm2 = vcmp.gt.f32.partialorder %v542_v28, 1.0  ;;  %v876_v32 = vadd.f32 %v812_v23, %v492_v20  ;;  %v6998_v34 = vsel %vm605_vm1, 1.0, %v10256_v6  ;;  %v9984_v17 = vld [vmem:[%s12808_s1 + $0x8] ss:$16 sps:$4 sm:$0xff]   ;;  %v9987_v18 = vld [vmem:[%s12808_s1 + $0x24] ss:$16 sps:$4 sm:$0xff]   ;;  %p10199_p2 = scmp.lt.s32.totalorder %s10197_s18, %s10191_s30 }
  0x96   : > { %8291 = vmatprep.subr.msk.bf16.mxu1 %vm7188_vm0, %v10257_v38  ;;  %v939_v33 = vsub.f32 %v875_v24, %v7012_v21  ;;  %v6999_v35 = vsel %vm606_vm2, 1.0, %v10256_v6  ;;  %972 = vst.msk [vmem:[#allocation2 + $0x60] sm:$0xff] %vm959_vm4, %v907_v29  ;;  %vm1036_vm3 = vcmp.gt.f32.partialorder %v907_v29, 1.0  ;;  %v797_v37 = vmul.f32 0.95, %v541_v27 }
  0x97   : > { %973 = vst.msk [vmem:[#allocation2 + $0x68] sm:$0xff] %vm959_vm4, %v908_v30  ;;  %vm1037_vm5 = vcmp.gt.f32.partialorder %v908_v30, 1.0  ;;  %v798_v39 = vmul.f32 0.95, %v542_v28  ;;  %v940_v42 = vsub.f32 %v876_v32, %v7013_v22  ;;  %vm637_vm8 = vcmp.gt.f32.partialorder %v573_v31, 1.0  ;;  %p10200_p3 = por %p10199_p2, %p10198_p1 }
  0x98   : > { %vm7140_vm6 = vmpackc.low %vm1037_vm5, %vm1036_vm3  ;;  %1004 = vst.msk [vmem:[#allocation2 + $0x160] sm:$0xff] %vm959_vm4, %v939_v33  ;;  %vm1068_vm7 = vcmp.gt.f32.partialorder %v939_v33, 1.0  ;;  %vm638_vm9 = vcmp.gt.f32.partialorder %v574_v36, 1.0  ;;  %v861_v44 = vadd.f32 %v797_v37, %v477_v25  ;;  %v7030_v46 = vsel %vm637_vm8, 1.0, %v10256_v6  ;;  %v9989_v19 = vld [vmem:[%s12808_s1 + $0x2c] ss:$16 sps:$4 sm:$0xff]  }
  0x99   : > { %8228 = vmatpush3.bf16.msk.msra.mxu0 %vm7140_vm6, %v10257_v38  ;;  %v862_v45 = vadd.f32 %v798_v39, %v478_v26  ;;  %v7031_v47 = vsel %vm638_vm9, 1.0, %v10256_v6  ;;  %1005 = vst.msk [vmem:[#allocation2 + $0x168] sm:$0xff] %vm959_vm4, %v940_v42  ;;  %vm1069_vm10 = vcmp.gt.f32.partialorder %v940_v42, 1.0  ;;  %v829_v50 = vmul.f32 0.95, %v573_v31  ;;  %p10201_p4 = pnand %p10200_p3, %p10194_p0 }
  0x9a   : > { %v830_v51 = vmul.f32 0.95, %v574_v36  ;;  %vm589_vm11 = vcmp.gt.f32.partialorder %v525_v43, 1.0  ;;  %vm7172_vm12 = vmpackc.low %vm1069_vm10, %vm1068_vm7  ;;  %v925_v52 = vsub.f32 %v861_v44, %v6998_v34  ;;  %vm590_vm13 = vcmp.gt.f32.partialorder %v526_v49, 1.0  ;;  %v9991_v20 = vld [vmem:[%s12808_s1 + $0x20] ss:$16 sps:$4 sm:$0xff]  }
  0x9b   : > { %v926_v53 = vsub.f32 %v862_v45, %v6999_v35  ;;  %v6982_v55 = vsel %vm589_vm11, 1.0, %v10256_v6  ;;  %8292 = vmatpush3.bf16.msk.msra.mxu1 %vm7172_vm12, %v10257_v38  ;;  %v893_v56 = vadd.f32 %v829_v50, %v509_v40  ;;  %v6983_v58 = vsel %vm590_vm13, 1.0, %v10256_v6  ;;  %v9993_v21 = vld [vmem:[%s12808_s1 + $0x44] ss:$16 sps:$4 sm:$0xff]   ;;  %v9992_v22 = vld [vmem:[%s12808_s1 + $0x28] ss:$16 sps:$4 sm:$0xff]  }
  0x9c   : > { %v894_v57 = vadd.f32 %v830_v51, %v510_v41  ;;  %v781_v59 = vmul.f32 0.95, %v525_v43  ;;  %990 = vst.msk [vmem:[#allocation2 + $0xf0] sm:$0xff] %vm959_vm4, %v925_v52  ;;  %vm1054_vm14 = vcmp.gt.f32.partialorder %v925_v52, 1.0  ;;  %v782_v62 = vmul.f32 0.95, %v526_v49 }
  0x9d   : > { %991 = vst.msk [vmem:[#allocation2 + $0xf8] sm:$0xff] %vm959_vm4, %v926_v53  ;;  %vm1055_vm15 = vcmp.gt.f32.partialorder %v926_v53, 1.0  ;;  %vm621_vm0 = vcmp.gt.f32.partialorder %v557_v60, 1.0  ;;  %v957_v63 = vsub.f32 %v893_v56, %v7030_v46  ;;  %vm622_vm2 = vcmp.gt.f32.partialorder %v558_v61, 1.0  ;;  %v9995_v23 = vld [vmem:[%s12808_s1 + $0x4c] ss:$16 sps:$4 sm:$0xff]  }
  0x9e   : > { %vm7158_vm1 = vmpackc.low %vm1055_vm15, %vm1054_vm14  ;;  %v958_v0 = vsub.f32 %v894_v57, %v7031_v47  ;;  %v845_v1 = vadd.f32 %v781_v59, %v461_v48  ;;  %v846_v3 = vadd.f32 %v782_v62, %v462_v54  ;;  %v7014_v5 = vsel %vm621_vm0, 1.0, %v10256_v6  ;;  %v9997_v24 = vld [vmem:[%s12808_s1 + $0x40] ss:$16 sps:$4 sm:$0xff]   ;;  %v9999_v25 = vld [vmem:[%s12808_s1 + $0x64] ss:$16 sps:$4 sm:$0xff]  }
  0x9f   : > { %8229 = vmatprep.subr.msk.bf16.mxu0 %vm7158_vm1, %v10257_v38  ;;  %v813_v7 = vmul.f32 0.95, %v557_v60  ;;  %1022 = vst.msk [vmem:[#allocation2 + $0x1f0] sm:$0xff] %vm959_vm4, %v957_v63  ;;  %vm1086_vm3 = vcmp.gt.f32.partialorder %v957_v63, 1.0  ;;  %v814_v9 = vmul.f32 0.95, %v558_v61 }
  0xa0   : > { %1023 = vst.msk [vmem:[#allocation2 + $0x1f8] sm:$0xff] %vm959_vm4, %v958_v0  ;;  %vm1087_vm5 = vcmp.gt.f32.partialorder %v958_v0, 1.0  ;;  %v909_v8 = vsub.f32 %v845_v1, %v6982_v55  ;;  %v910_v10 = vsub.f32 %v846_v3, %v6983_v58  ;;  %v7015_v11 = vsel %vm622_vm2, 1.0, %v10256_v6  ;;  %v9998_v26 = vld [vmem:[%s12808_s1 + $0x48] ss:$16 sps:$4 sm:$0xff]   ;;  %v10029_v47 = vld [vmem:[%s12809_s2 + $0x40] sm:$0xff]  }
  0xa1   : > { %vm7190_vm6 = vmpackc.low %vm1087_vm5, %vm1086_vm3  ;;  %v877_v12 = vadd.f32 %v813_v7, %v493_v2  ;;  %v878_v13 = vadd.f32 %v814_v9, %v494_v4  ;;  %v10001_v27 = vld [vmem:[%s12808_s1 + $0x6c] ss:$16 sps:$4 sm:$0xff]   ;;  %v10003_v28 = vld [vmem:[%s12808_s1 + $0x60] ss:$16 sps:$4 sm:$0xff]  }
  0xa2   : > { %8293 = vmatprep.subr.msk.bf16.mxu1 %vm7190_vm6, %v10257_v38  ;;  %974 = vst.msk [vmem:[#allocation2 + $0x70] sm:$0xff] %vm959_vm4, %v909_v8  ;;  %vm1038_vm7 = vcmp.gt.f32.partialorder %v909_v8, 1.0  ;;  %975 = vst.msk [vmem:[#allocation2 + $0x78] sm:$0xff] %vm959_vm4, %v910_v10  ;;  %vm1039_vm8 = vcmp.gt.f32.partialorder %v910_v10, 1.0  ;;  %v10005_v29 = vld [vmem:[%s12808_s1 + $0x84] ss:$16 sps:$4 sm:$0xff]  }
  0xa3   : > { %v941_v14 = vsub.f32 %v877_v12, %v7014_v5  ;;  %vm7142_vm9 = vmpackc.low %vm1039_vm8, %vm1038_vm7  ;;  %v942_v15 = vsub.f32 %v878_v13, %v7015_v11  ;;  %v10004_v30 = vld [vmem:[%s12808_s1 + $0x68] ss:$16 sps:$4 sm:$0xff]   ;;  %v10007_v31 = vld [vmem:[%s12808_s1 + $0x8c] ss:$16 sps:$4 sm:$0xff]  }
  0xa4   : > { %8230 = vmatpush3.bf16.msk.msra.mxu0 %vm7142_vm9, %v10257_v38  ;;  %v10009_v32 = vld [vmem:[%s12808_s1 + $0x80] ss:$16 sps:$4 sm:$0xff]   ;;  %v10011_v33 = vld [vmem:[%s12808_s1 + $0xa4] ss:$16 sps:$4 sm:$0xff]   ;;  %v10010_v34 = vld [vmem:[%s12808_s1 + $0x88] ss:$16 sps:$4 sm:$0xff]  }
  0xa5   : > { %1006 = vst.msk [vmem:[#allocation2 + $0x170] sm:$0xff] %vm959_vm4, %v941_v14  ;;  %vm1070_vm10 = vcmp.gt.f32.partialorder %v941_v14, 1.0  ;;  %1007 = vst.msk [vmem:[#allocation2 + $0x178] sm:$0xff] %vm959_vm4, %v942_v15  ;;  %vm1071_vm11 = vcmp.gt.f32.partialorder %v942_v15, 1.0  ;;  %v10013_v35 = vld [vmem:[%s12808_s1 + $0xac] ss:$16 sps:$4 sm:$0xff]  }
  0xa6   : > { %vm7174_vm12 = vmpackc.low %vm1071_vm11, %vm1070_vm10  ;;  %v10015_v36 = vld [vmem:[%s12808_s1 + $0xa0] ss:$16 sps:$4 sm:$0xff]   ;;  %v10017_v37 = vld [vmem:[%s12808_s1 + $0xc4] ss:$16 sps:$4 sm:$0xff]  }
  0xa7   : > { %8294 = vmatpush3.bf16.msk.msra.mxu1 %vm7174_vm12, %v10257_v38  ;;  %1473 = vmatmul.mubr.bf16.vlgmr.msra.gmra.mrb[0].mxu0 %v9981_v16  ;;  %v10016_v39 = vld [vmem:[%s12808_s1 + $0xa8] ss:$16 sps:$4 sm:$0xff]   ;;  %v10019_v40 = vld [vmem:[%s12808_s1 + $0xcc] ss:$16 sps:$4 sm:$0xff]   ;;  %v10021_v41 = vld [vmem:[%s12808_s1 + $0xc0] ss:$16 sps:$4 sm:$0xff]  }
  0xa8   : > { %1480 = vmatprep.mubr.bf16.mxu0 %v9987_v18  ;;  %v10023_v42 = vld [vmem:[%s12808_s1 + $0xe4] ss:$16 sps:$4 sm:$0xff]   ;;  %v10022_v43 = vld [vmem:[%s12808_s1 + $0xc8] ss:$16 sps:$4 sm:$0xff]   ;;  %v10025_v44 = vld [vmem:[%s12808_s1 + $0xec] ss:$16 sps:$4 sm:$0xff]  }
  0xa9   : > { %v10027_v45 = vld [vmem:[%s12808_s1 + $0xe0] ss:$16 sps:$4 sm:$0xff]   ;;  %v10028_v46 = vld [vmem:[%s12808_s1 + $0xe8] ss:$16 sps:$4 sm:$0xff]  }
  0xaa   : > { %1570 = vmatmul.mubr.bf16.vlgmr.msra.gmra.mrb[0].mxu1 %v9984_v17  ;;  %v10037_v48 = vld [vmem:[%s12809_s2] sm:$0xff]   ;;  %v10094_v5 = vld [vmem:[%s12809_s2 + $0x1e8] sm:$0xff]  }
  0xab   : > { %1577 = vmatprep.mubr.bf16.mxu1 %v9989_v19 }
  0xaf   : > { %1481 = vmatmul.mubr.bf16.gmra.mrb[4].mxu0 %v9991_v20 }
  0xb0   : > { %1488 = vmatprep.mubr.bf16.mxu0 %v9993_v21  ;;  %v10095_v21 = vld [vmem:[%s12809_s2 + $0x1f0] sm:$0xff]  }
  0xb2   : > { %1578 = vmatmul.mubr.bf16.gmra.mrb[4].mxu1 %v9992_v22 }
  0xb3   : > { %1585 = vmatprep.mubr.bf16.mxu1 %v9995_v23 }
  0xb7   : > { %1489 = vmatmul.mubr.bf16.gmra.mrb[8].mxu0 %v9997_v24 }
  0xb8   : > { %1496 = vmatprep.mubr.bf16.mxu0 %v9999_v25 }
  0xba   : > { %1586 = vmatmul.mubr.bf16.gmra.mrb[8].mxu1 %v9998_v26 }
  0xbb   : > { %1593 = vmatprep.mubr.bf16.mxu1 %v10001_v27 }
  0xbf   : > { %1497 = vmatmul.mubr.bf16.gmra.mrb[12].mxu0 %v10003_v28 }
  0xc0   : > { %1504 = vmatprep.mubr.bf16.mxu0 %v10005_v29 }
  0xc2   : > { %1594 = vmatmul.mubr.bf16.gmra.mrb[12].mxu1 %v10004_v30 }
  0xc3   : > { %1601 = vmatprep.mubr.bf16.mxu1 %v10007_v31 }
  0xc7   : > { %1505 = vmatmul.mubr.bf16.gmra.mrb[16].mxu0 %v10009_v32 }
  0xc8   : > { %1512 = vmatprep.mubr.bf16.mxu0 %v10011_v33 }
  0xca   : > { %1602 = vmatmul.mubr.bf16.gmra.mrb[16].mxu1 %v10010_v34 }
  0xcb   : > { %1609 = vmatprep.mubr.bf16.mxu1 %v10013_v35 }
  0xcf   : > { %1513 = vmatmul.mubr.bf16.gmra.mrb[20].mxu0 %v10015_v36 }
  0xd0   : > { %1520 = vmatprep.mubr.bf16.mxu0 %v10017_v37 }
  0xd2   : > { %1610 = vmatmul.mubr.bf16.gmra.mrb[20].mxu1 %v10016_v39 }
  0xd3   : > { %1617 = vmatprep.mubr.bf16.mxu1 %v10019_v40 }
  0xd7   : > { %1521 = vmatmul.mubr.bf16.gmra.mrb[24].mxu0 %v10021_v41 }
  0xd8   : > { %1528 = vmatprep.mubr.bf16.mxu0 %v10023_v42 }
  0xda   : > { %1618 = vmatmul.mubr.bf16.gmra.mrb[24].mxu1 %v10022_v43 }
  0xdb   : > { %1625 = vmatprep.mubr.bf16.mxu1 %v10025_v44 }
  0xdf   : > { %1529 = vmatmul.mubr.bf16.gmra.mrb[28].mxu0 %v10027_v45 }
  0xe0   : > { %8826 = vmatprep.mubr.bf16.mxu0 %v10037_v48 }
  0xe2   : > { %1626 = vmatmul.mubr.bf16.gmra.mrb[28].mxu1 %v10028_v46 }
  0xe3   : > { %8858 = vmatprep.mubr.bf16.mxu1 %v10029_v47 }
 0x17a   : > { %v8231_v49 = vpop.f32.mrb[0].mxu0 }
 0x17b   : > { %v8232_v50 = vpop.f32.mrb[1].mxu0 }
 0x17c   : > { %v8233_v51 = vadd.f32 %v8232_v50, %v8231_v49  ;;  %v8234_v52 = vpop.f32.mrb[2].mxu0 }
 0x17d   : > { %v8295_v53 = vpop.f32.mrb[0].mxu1  ;;  %v8235_v54 = vpop.f32.mrb[3].mxu0 }
 0x17e   : > { %v8296_v55 = vpop.f32.mrb[1].mxu1  ;;  %v8236_v56 = vadd.f32 %v8235_v54, %v8234_v52 }
 0x17f   : > { %v8297_v57 = vadd.f32 %v8296_v55, %v8295_v53  ;;  %v8298_v58 = vpop.f32.mrb[2].mxu1 }
 0x180   : > { %v8299_v59 = vpop.f32.mrb[3].mxu1 }
 0x181   : > { %v1572_v60 = vadd.f32 %v8297_v57, %v8233_v51  ;;  %v8300_v61 = vadd.f32 %v8299_v59, %v8298_v58 }
 0x182   : > { %v8237_v62 = vpop.f32.mrb[4].mxu0 }
 0x183   : > { %v1575_v63 = vadd.f32 %v8300_v61, %v8236_v56  ;;  %v8238_v0 = vpop.f32.mrb[5].mxu0  ;;  %vm1634_vm13 = vcmp.gt.f32.partialorder %v1572_v60, 0.5 }
 0x184   : > { %v8239_v1 = vadd.f32 %v8238_v0, %v8237_v62  ;;  %v8240_v2 = vpop.f32.mrb[6].mxu0 }
 0x185   : > { %vm1635_vm14 = vcmp.gt.f32.partialorder %v1575_v63, 0.5  ;;  %v8301_v3 = vpop.f32.mrb[4].mxu1  ;;  %v8241_v4 = vpop.f32.mrb[7].mxu0 }
 0x186   : > { %vm10870_vm15 = vmpackc.low %vm1635_vm14, %vm1634_vm13  ;;  %v8302_v7 = vpop.f32.mrb[5].mxu1  ;;  %v8242_v8 = vadd.f32 %v8241_v4, %v8240_v2 }
 0x187   : > { %v8303_v9 = vadd.f32 %v8302_v7, %v8301_v3  ;;  %v8304_v10 = vpop.f32.mrb[6].mxu1  ;;  %8810 = vmatprep.subr.msk.bf16.mxu0 %vm10870_vm15, %v10257_v38  ;;  %8842 = vmatprep.subr.msk.bf16.mxu1 %vm10870_vm15, %v10257_v38 }
 0x188   : > { %v8305_v11 = vpop.f32.mrb[7].mxu1  ;;  %8811 = vmatpush3.bf16.msk.msra.mxu0 %vm10870_vm15, %v10257_v38  ;;  %8843 = vmatpush3.bf16.msk.msra.mxu1 %vm10870_vm15, %v10257_v38 }
 0x189   : > { %v1580_v12 = vadd.f32 %v8303_v9, %v8239_v1  ;;  %v8306_v13 = vadd.f32 %v8305_v11, %v8304_v10 }
 0x18a   : > { %v8243_v14 = vpop.f32.mrb[8].mxu0 }
 0x18b   : > { %v1583_v15 = vadd.f32 %v8306_v13, %v8242_v8  ;;  %v8244_v16 = vpop.f32.mrb[9].mxu0  ;;  %vm1636_vm0 = vcmp.gt.f32.partialorder %v1580_v12, 0.5 }
 0x18c   : > { %v8245_v17 = vadd.f32 %v8244_v16, %v8243_v14  ;;  %v8246_v18 = vpop.f32.mrb[10].mxu0 }
 0x18d   : > { %vm1637_vm1 = vcmp.gt.f32.partialorder %v1583_v15, 0.5  ;;  %v8307_v19 = vpop.f32.mrb[8].mxu1  ;;  %v8247_v20 = vpop.f32.mrb[11].mxu0 }
 0x18e   : > { %vm10886_vm2 = vmpackc.low %vm1637_vm1, %vm1636_vm0  ;;  %v8308_v22 = vpop.f32.mrb[9].mxu1  ;;  %v8248_v23 = vadd.f32 %v8247_v20, %v8246_v18  ;;  %v10098_v20 = vld [vmem:[%s12809_s2 + $0x200] sm:$0xff]  }
 0x18f   : > { %v8309_v24 = vadd.f32 %v8308_v22, %v8307_v19  ;;  %v8310_v25 = vpop.f32.mrb[10].mxu1  ;;  %8812 = vmatprep.subr.msk.bf16.mxu0 %vm10886_vm2, %v10257_v38  ;;  %8844 = vmatprep.subr.msk.bf16.mxu1 %vm10886_vm2, %v10257_v38 }
 0x190   : > { %v8311_v26 = vpop.f32.mrb[11].mxu1  ;;  %8813 = vmatpush3.bf16.msk.msra.mxu0 %vm10886_vm2, %v10257_v38  ;;  %8845 = vmatpush3.bf16.msk.msra.mxu1 %vm10886_vm2, %v10257_v38 }
 0x191   : > { %v1588_v27 = vadd.f32 %v8309_v24, %v8245_v17  ;;  %v8312_v28 = vadd.f32 %v8311_v26, %v8310_v25 }
 0x192   : > { %v8249_v29 = vpop.f32.mrb[12].mxu0 }
 0x193   : > { %v1591_v30 = vadd.f32 %v8312_v28, %v8248_v23  ;;  %v8250_v31 = vpop.f32.mrb[13].mxu0  ;;  %vm1638_vm3 = vcmp.gt.f32.partialorder %v1588_v27, 0.5 }
 0x194   : > { %v8251_v32 = vadd.f32 %v8250_v31, %v8249_v29  ;;  %v8252_v33 = vpop.f32.mrb[14].mxu0 }
 0x195   : > { %vm1639_vm5 = vcmp.gt.f32.partialorder %v1591_v30, 0.5  ;;  %v8313_v34 = vpop.f32.mrb[12].mxu1  ;;  %v8253_v35 = vpop.f32.mrb[15].mxu0 }
 0x196   : > { %vm10902_vm6 = vmpackc.low %vm1639_vm5, %vm1638_vm3  ;;  %v8314_v37 = vpop.f32.mrb[13].mxu1  ;;  %v8254_v39 = vadd.f32 %v8253_v35, %v8252_v33 }
 0x197   : > { %v8315_v40 = vadd.f32 %v8314_v37, %v8313_v34  ;;  %v8316_v41 = vpop.f32.mrb[14].mxu1  ;;  %8814 = vmatprep.subr.msk.bf16.mxu0 %vm10902_vm6, %v10257_v38  ;;  %8846 = vmatprep.subr.msk.bf16.mxu1 %vm10902_vm6, %v10257_v38  ;;  %v11557_v37 = vld [vmem:[%s12810_s3 + $0x20] sm:$0xff]  }
 0x198   : > { %v8317_v42 = vpop.f32.mrb[15].mxu1  ;;  %8815 = vmatpush3.bf16.msk.msra.mxu0 %vm10902_vm6, %v10257_v38  ;;  %8847 = vmatpush3.bf16.msk.msra.mxu1 %vm10902_vm6, %v10257_v38 }
 0x199   : > { %v1596_v43 = vadd.f32 %v8315_v40, %v8251_v32  ;;  %v8318_v44 = vadd.f32 %v8317_v42, %v8316_v41 }
 0x19a   : > { %v8255_v45 = vpop.f32.mrb[16].mxu0 }
 0x19b   : > { %v1599_v46 = vadd.f32 %v8318_v44, %v8254_v39  ;;  %v8256_v47 = vpop.f32.mrb[17].mxu0  ;;  %vm1640_vm7 = vcmp.gt.f32.partialorder %v1596_v43, 0.5 }
 0x19c   : > { %v8257_v48 = vadd.f32 %v8256_v47, %v8255_v45  ;;  %v8258_v49 = vpop.f32.mrb[18].mxu0 }
 0x19d   : > { %vm1641_vm8 = vcmp.gt.f32.partialorder %v1599_v46, 0.5  ;;  %v8319_v50 = vpop.f32.mrb[16].mxu1  ;;  %v8259_v51 = vpop.f32.mrb[19].mxu0 }
 0x19e   : > { %vm10918_vm9 = vmpackc.low %vm1641_vm8, %vm1640_vm7  ;;  %v8320_v53 = vpop.f32.mrb[17].mxu1  ;;  %v8260_v54 = vadd.f32 %v8259_v51, %v8258_v49  ;;  %v10038_v49 = vld [vmem:[%s12809_s2 + $0x8] sm:$0xff]   ;;  %v10041_v51 = vld [vmem:[%s12809_s2 + $0x10] sm:$0xff]  }
 0x19f   : > { %v8321_v55 = vadd.f32 %v8320_v53, %v8319_v50  ;;  %v8322_v56 = vpop.f32.mrb[18].mxu1  ;;  %8816 = vmatprep.subr.msk.bf16.mxu0 %vm10918_vm9, %v10257_v38  ;;  %8848 = vmatprep.subr.msk.bf16.mxu1 %vm10918_vm9, %v10257_v38  ;;  %v10031_v50 = vld [vmem:[%s12809_s2 + $0x50] sm:$0xff]   ;;  %v10032_v53 = vld [vmem:[%s12809_s2 + $0x58] sm:$0xff]  }
 0x1a0   : > { %v8323_v57 = vpop.f32.mrb[19].mxu1  ;;  %8817 = vmatpush3.bf16.msk.msra.mxu0 %vm10918_vm9, %v10257_v38  ;;  %8849 = vmatpush3.bf16.msk.msra.mxu1 %vm10918_vm9, %v10257_v38 }
 0x1a1   : > { %v1604_v58 = vadd.f32 %v8321_v55, %v8257_v48  ;;  %v8324_v59 = vadd.f32 %v8323_v57, %v8322_v56  ;;  %v10030_v48 = vld [vmem:[%s12809_s2 + $0x48] sm:$0xff]   ;;  %v10033_v55 = vld [vmem:[%s12809_s2 + $0x60] sm:$0xff]  }
 0x1a2   : > { %v8261_v60 = vpop.f32.mrb[20].mxu0  ;;  %v10045_v56 = vld [vmem:[%s12809_s2 + $0x20] sm:$0xff]   ;;  %v10034_v57 = vld [vmem:[%s12809_s2 + $0x68] sm:$0xff]  }
 0x1a3   : > { %v1607_v61 = vadd.f32 %v8324_v59, %v8260_v54  ;;  %v8262_v62 = vpop.f32.mrb[21].mxu0  ;;  %vm1642_vm10 = vcmp.gt.f32.partialorder %v1604_v58, 0.5  ;;  %v10042_v54 = vld [vmem:[%s12809_s2 + $0x18] sm:$0xff]   ;;  %v10046_v58 = vld [vmem:[%s12809_s2 + $0x28] sm:$0xff]   ;;  %v10035_v59 = vld [vmem:[%s12809_s2 + $0x70] sm:$0xff]  }
 0x1a4   : > { %v8263_v63 = vadd.f32 %v8262_v62, %v8261_v60  ;;  %v8264_v0 = vpop.f32.mrb[22].mxu0  ;;  %v10049_v60 = vld [vmem:[%s12809_s2 + $0x30] sm:$0xff]   ;;  %v10050_v62 = vld [vmem:[%s12809_s2 + $0x38] sm:$0xff]  }
 0x1a5   : > { %vm1643_vm11 = vcmp.gt.f32.partialorder %v1607_v61, 0.5  ;;  %v8325_v1 = vpop.f32.mrb[20].mxu1  ;;  %v8265_v2 = vpop.f32.mrb[23].mxu0  ;;  %v10036_v61 = vld [vmem:[%s12809_s2 + $0x78] sm:$0xff]  }
 0x1a6   : > { %vm10934_vm12 = vmpackc.low %vm1643_vm11, %vm1642_vm10  ;;  %v8326_v4 = vpop.f32.mrb[21].mxu1  ;;  %v8266_v7 = vadd.f32 %v8265_v2, %v8264_v0  ;;  %v10040_v0 = vld [vmem:[%s12809_s2 + $0x88] sm:$0xff]   ;;  %v10044_v2 = vld [vmem:[%s12809_s2 + $0x98] sm:$0xff]   ;;  %vm4707_vm11 = vcmask 523264  }
 0x1a7   : > { %v8327_v8 = vadd.f32 %v8326_v4, %v8325_v1  ;;  %v8328_v9 = vpop.f32.mrb[22].mxu1  ;;  %8818 = vmatprep.subr.msk.bf16.mxu0 %vm10934_vm12, %v10257_v38  ;;  %8850 = vmatprep.subr.msk.bf16.mxu1 %vm10934_vm12, %v10257_v38  ;;  %v10043_v1 = vld [vmem:[%s12809_s2 + $0x90] sm:$0xff]   ;;  %v10047_v4 = vld [vmem:[%s12809_s2 + $0xa0] sm:$0xff]  }
 0x1a8   : > { %v8329_v10 = vpop.f32.mrb[23].mxu1  ;;  %8819 = vmatpush3.bf16.msk.msra.mxu0 %vm10934_vm12, %v10257_v38  ;;  %8851 = vmatpush3.bf16.msk.msra.mxu1 %vm10934_vm12, %v10257_v38 }
 0x1a9   : > { %v1612_v11 = vadd.f32 %v8327_v8, %v8263_v63  ;;  %v8330_v12 = vadd.f32 %v8329_v10, %v8328_v9  ;;  %v10039_v63 = vld [vmem:[%s12809_s2 + $0x80] sm:$0xff]   ;;  %v10051_v8 = vld [vmem:[%s12809_s2 + $0xb0] sm:$0xff]   ;;  %v10052_v9 = vld [vmem:[%s12809_s2 + $0xb8] sm:$0xff]  }
 0x1aa   : > { %v8267_v13 = vpop.f32.mrb[24].mxu0  ;;  %v10053_v10 = vld [vmem:[%s12809_s2 + $0xc0] sm:$0xff]  }
 0x1ab   : > { %v1615_v14 = vadd.f32 %v8330_v12, %v8266_v7  ;;  %v8268_v15 = vpop.f32.mrb[25].mxu0  ;;  %vm1644_vm13 = vcmp.gt.f32.partialorder %v1612_v11, 0.5  ;;  %v10048_v7 = vld [vmem:[%s12809_s2 + $0xa8] sm:$0xff]   ;;  %v10055_v12 = vld [vmem:[%s12809_s2 + $0xd0] sm:$0xff]  }
 0x1ac   : > { %v8269_v16 = vadd.f32 %v8268_v15, %v8267_v13  ;;  %v8270_v17 = vpop.f32.mrb[26].mxu0  ;;  %v10054_v11 = vld [vmem:[%s12809_s2 + $0xc8] sm:$0xff]   ;;  %v10085_v13 = vld [vmem:[%s12810_s3 + $0x10] sm:$0xff]   ;;  %v10057_v15 = vld [vmem:[%s12809_s2 + $0xe0] sm:$0xff]  }
 0x1ad   : > { %vm1645_vm14 = vcmp.gt.f32.partialorder %v1615_v14, 0.5  ;;  %v8331_v18 = vpop.f32.mrb[24].mxu1  ;;  %v8271_v19 = vpop.f32.mrb[27].mxu0  ;;  %v10056_v14 = vld [vmem:[%s12809_s2 + $0xd8] sm:$0xff]  }
 0x1ae   : > { %vm10950_vm0 = vmpackc.low %vm1645_vm14, %vm1644_vm13  ;;  %v8332_v22 = vpop.f32.mrb[25].mxu1  ;;  %v8272_v23 = vadd.f32 %v8271_v19, %v8270_v17  ;;  %v10059_v17 = vld [vmem:[%s12809_s2 + $0xf0] sm:$0xff]   ;;  %v10060_v19 = vld [vmem:[%s12809_s2 + $0xf8] sm:$0xff]  }
 0x1af   : > { %v8333_v24 = vadd.f32 %v8332_v22, %v8331_v18  ;;  %v8334_v25 = vpop.f32.mrb[26].mxu1  ;;  %8820 = vmatprep.subr.msk.bf16.mxu0 %vm10950_vm0, %v10257_v38  ;;  %8852 = vmatprep.subr.msk.bf16.mxu1 %vm10950_vm0, %v10257_v38  ;;  %v10088_v18 = vld [vmem:[%s12810_s3 + $0x18] sm:$0xff]   ;;  %v10061_v22 = vld [vmem:[%s12809_s2 + $0x100] sm:$0xff]  }
 0x1b0   : > { %v8335_v26 = vpop.f32.mrb[27].mxu1  ;;  %8821 = vmatpush3.bf16.msk.msra.mxu0 %vm10950_vm0, %v10257_v38  ;;  %8853 = vmatpush3.bf16.msk.msra.mxu1 %vm10950_vm0, %v10257_v38 }
 0x1b1   : > { %v1620_v27 = vadd.f32 %v8333_v24, %v8269_v16  ;;  %v8336_v28 = vadd.f32 %v8335_v26, %v8334_v25  ;;  %v10058_v16 = vld [vmem:[%s12809_s2 + $0xe8] sm:$0xff]   ;;  %v10063_v24 = vld [vmem:[%s12809_s2 + $0x110] sm:$0xff]   ;;  %v11253_v25 = vld [vmem:[%s12810_s3] sm:$0xff]  }
 0x1b2   : > { %v8273_v29 = vpop.f32.mrb[28].mxu0  ;;  %v10064_v26 = vld [vmem:[%s12809_s2 + $0x118] sm:$0xff]  }
 0x1b3   : > { %v1623_v30 = vadd.f32 %v8336_v28, %v8272_v23  ;;  %v8274_v31 = vpop.f32.mrb[29].mxu0  ;;  %vm1646_vm1 = vcmp.gt.f32.partialorder %v1620_v27, 0.5  ;;  %v10062_v23 = vld [vmem:[%s12809_s2 + $0x108] sm:$0xff]   ;;  %v10065_v27 = vld [vmem:[%s12809_s2 + $0x120] sm:$0xff]  }
 0x1b4   : > { %v8275_v32 = vadd.f32 %v8274_v31, %v8273_v29  ;;  %v8276_v33 = vpop.f32.mrb[30].mxu0  ;;  %v10066_v28 = vld [vmem:[%s12809_s2 + $0x128] sm:$0xff]   ;;  %v10067_v29 = vld [vmem:[%s12809_s2 + $0x130] sm:$0xff]   ;;  %v10069_v31 = vld [vmem:[%s12809_s2 + $0x140] sm:$0xff]  }
 0x1b5   : > { %vm1647_vm3 = vcmp.gt.f32.partialorder %v1623_v30, 0.5  ;;  %v8337_v34 = vpop.f32.mrb[28].mxu1  ;;  %v8277_v35 = vpop.f32.mrb[31].mxu0  ;;  %v10068_v30 = vld [vmem:[%s12809_s2 + $0x138] sm:$0xff]  }
 0x1b6   : > { %vm10966_vm5 = vmpackc.low %vm1647_vm3, %vm1646_vm1  ;;  %v8338_v39 = vpop.f32.mrb[29].mxu1  ;;  %v8278_v40 = vadd.f32 %v8277_v35, %v8276_v33  ;;  %v10071_v33 = vld [vmem:[%s12809_s2 + $0x150] sm:$0xff]   ;;  %v10073_v35 = vld [vmem:[%s12809_s2 + $0x160] sm:$0xff]  }
 0x1b7   : > { %v8339_v41 = vadd.f32 %v8338_v39, %v8337_v34  ;;  %v8340_v42 = vpop.f32.mrb[30].mxu1  ;;  %8822 = vmatprep.subr.msk.bf16.mxu0 %vm10966_vm5, %v10257_v38  ;;  %8854 = vmatprep.subr.msk.bf16.mxu1 %vm10966_vm5, %v10257_v38  ;;  %v10072_v34 = vld [vmem:[%s12809_s2 + $0x158] sm:$0xff]   ;;  %v10074_v39 = vld [vmem:[%s12809_s2 + $0x168] sm:$0xff]  }
 0x1b8   : > { %v8341_v43 = vpop.f32.mrb[31].mxu1  ;;  %8823 = vmatpush3.bf16.msk.msra.mxu0 %vm10966_vm5, %v10257_v38  ;;  %8855 = vmatpush3.bf16.msk.msra.mxu1 %vm10966_vm5, %v10257_v38 }
 0x1b9   : > { %v1628_v44 = vadd.f32 %v8339_v41, %v8275_v32  ;;  %v8342_v45 = vadd.f32 %v8341_v43, %v8340_v42  ;;  %v10070_v32 = vld [vmem:[%s12809_s2 + $0x148] sm:$0xff]   ;;  %v10076_v41 = vld [vmem:[%s12809_s2 + $0x178] sm:$0xff]   ;;  %v10077_v42 = vld [vmem:[%s12809_s2 + $0x180] sm:$0xff]  }
 0x1ba   : > { %v10078_v43 = vld [vmem:[%s12809_s2 + $0x188] sm:$0xff]  }
 0x1bb   : > { %v1631_v46 = vadd.f32 %v8342_v45, %v8278_v40  ;;  %vm1648_vm7 = vcmp.gt.f32.partialorder %v1628_v44, 0.5  ;;  %v10075_v40 = vld [vmem:[%s12809_s2 + $0x170] sm:$0xff]   ;;  %v10080_v45 = vld [vmem:[%s12809_s2 + $0x198] sm:$0xff]  }
 0x1bc   : > { %v10079_v44 = vld [vmem:[%s12809_s2 + $0x190] sm:$0xff]  }
 0x1bd   : > { %vm1649_vm8 = vcmp.gt.f32.partialorder %v1631_v46, 0.5  ;;  %v10081_v46 = vld [vmem:[%s12809_s2 + $0x1a0] sm:$0xff]  }
 0x1be   : > { %vm10982_vm10 = vmpackc.low %vm1649_vm8, %vm1648_vm7 }
 0x1bf   : > { %8824 = vmatprep.subr.msk.bf16.mxu0 %vm10982_vm10, %v10257_v38  ;;  %8856 = vmatprep.subr.msk.bf16.mxu1 %vm10982_vm10, %v10257_v38 }
 0x1c0   : > { %8825 = vmatpush3.bf16.msk.msra.mxu0 %vm10982_vm10, %v10257_v38  ;;  %8857 = vmatpush3.bf16.msk.msra.mxu1 %vm10982_vm10, %v10257_v38 }
 0x1c1   : > { %8914 = vmatprep.subr.msk.bf16.mxu1 %vm10870_vm15, %v10257_v38  ;;  %8874 = vmatprep.subr.bf16.mxu0 %v10085_v13 }
 0x1c3   : > { %8859 = vmatmul.mubr.bf16.vlgmr.msra.gmra.mrb[32].mxu1 %v10030_v48  ;;  %8827 = vmatmul.mubr.bf16.vlgmr.msra.gmra.mrb[32].mxu0 %v10038_v49  ;;  %v10082_v48 = vld [vmem:[%s12809_s2 + $0x1a8] sm:$0xff]   ;;  %v10083_v49 = vld [vmem:[%s12809_s2 + $0x1b0] sm:$0xff]  }
 0x1c4   : > { %8915 = vmatpush3.bf16.msk.msra.mxu1 %vm10870_vm15, %v10257_v38  ;;  %8862 = vmatprep.mubr.bf16.mxu1 %v10031_v50  ;;  %v10084_v50 = vld [vmem:[%s12809_s2 + $0x1b8] sm:$0xff]  }
 0x1c5   : > { %8916 = vmatprep.subr.msk.bf16.mxu1 %vm10886_vm2, %v10257_v38  ;;  %8830 = vmatprep.mubr.bf16.mxu0 %v10041_v51  ;;  %v10086_v51 = vld [vmem:[%s12809_s2 + $0x1c0] sm:$0xff]  }
 0x1c6   : > { %8875 = vmatpush3.bf16.msra.mxu0 %v10085_v13 }
 0x1c7   : > { %8876 = vmatprep.subr.bf16.mxu0 %v10088_v18 }
 0x1c8   : > { %8917 = vmatpush3.bf16.msk.msra.mxu1 %vm10886_vm2, %v10257_v38 }
 0x1c9   : > { %8918 = vmatprep.subr.msk.bf16.mxu1 %vm10902_vm6, %v10257_v38 }
 0x1ca   : > { %8877 = vmatpush3.bf16.msra.mxu0 %v10088_v18 }
 0x1cb   : > { %8863 = vmatmul.mubr.bf16.gmra.mrb[36].mxu1 %v10032_v53  ;;  %8831 = vmatmul.mubr.bf16.gmra.mrb[36].mxu0 %v10042_v54  ;;  %v10087_v53 = vld [vmem:[%s12809_s2 + $0x1c8] sm:$0xff]   ;;  %v10090_v54 = vld [vmem:[%s12809_s2 + $0x1d0] sm:$0xff]  }
 0x1cc   : > { %8919 = vmatpush3.bf16.msk.msra.mxu1 %vm10902_vm6, %v10257_v38  ;;  %8866 = vmatprep.mubr.bf16.mxu1 %v10033_v55  ;;  %v10091_v55 = vld [vmem:[%s12809_s2 + $0x1d8] sm:$0xff]  }
 0x1cd   : > { %8920 = vmatprep.subr.msk.bf16.mxu1 %vm10918_vm9, %v10257_v38  ;;  %8834 = vmatprep.mubr.bf16.mxu0 %v10045_v56  ;;  %v10093_v56 = vld [vmem:[%s12809_s2 + $0x1e0] sm:$0xff]  }
 0x1ce   : > { %8894 = vmatprep.subr.bf16.mxu0 %v11253_v25 }
 0x1d0   : > { %8921 = vmatpush3.bf16.msk.msra.mxu1 %vm10918_vm9, %v10257_v38 }
 0x1d1   : > { %8922 = vmatprep.subr.msk.bf16.mxu1 %vm10934_vm12, %v10257_v38 }
 0x1d3   : > { %8867 = vmatmul.mubr.bf16.gmra.mrb[40].mxu1 %v10034_v57  ;;  %8835 = vmatmul.mubr.bf16.gmra.mrb[40].mxu0 %v10046_v58 }
 0x1d4   : > { %8923 = vmatpush3.bf16.msk.msra.mxu1 %vm10934_vm12, %v10257_v38  ;;  %8870 = vmatprep.mubr.bf16.mxu1 %v10035_v59  ;;  %v10096_v59 = vld [vmem:[%s12809_s2 + $0x1f8] sm:$0xff]  }
 0x1d5   : > { %8924 = vmatprep.subr.msk.bf16.mxu1 %vm10950_vm0, %v10257_v38  ;;  %8838 = vmatprep.mubr.bf16.mxu0 %v10049_v60 }
 0x1d8   : > { %8925 = vmatpush3.bf16.msk.msra.mxu1 %vm10950_vm0, %v10257_v38 }
 0x1d9   : > { %8926 = vmatprep.subr.msk.bf16.mxu1 %vm10966_vm5, %v10257_v38 }
 0x1db   : > { %8871 = vmatmul.mubr.bf16.gmra.mrb[44].mxu1 %v10036_v61  ;;  %8839 = vmatmul.mubr.bf16.gmra.mrb[44].mxu0 %v10050_v62 }
 0x1dc   : > { %8927 = vmatpush3.bf16.msk.msra.mxu1 %vm10966_vm5, %v10257_v38  ;;  %8930 = vmatprep.mubr.bf16.mxu1 %v10039_v63 }
 0x1dd   : > { %8928 = vmatprep.subr.msk.bf16.mxu1 %vm10982_vm10, %v10257_v38 }
 0x1e0   : > { %8929 = vmatpush3.bf16.msk.msra.mxu1 %vm10982_vm10, %v10257_v38 }
 0x1e1   : > { %8966 = vmatprep.subr.msk.bf16.mxu1 %vm10870_vm15, %v10257_v38 }
 0x1e3   : > { %8931 = vmatmul.mubr.bf16.vlgmr.msra.gmra.mrb[48].mxu1 %v10040_v0 }
 0x1e4   : > { %8967 = vmatpush3.bf16.msk.msra.mxu1 %vm10870_vm15, %v10257_v38  ;;  %8934 = vmatprep.mubr.bf16.mxu1 %v10043_v1 }
 0x1e5   : > { %8968 = vmatprep.subr.msk.bf16.mxu1 %vm10886_vm2, %v10257_v38 }
 0x1e8   : > { %8969 = vmatpush3.bf16.msk.msra.mxu1 %vm10886_vm2, %v10257_v38 }
 0x1e9   : > { %8970 = vmatprep.subr.msk.bf16.mxu1 %vm10902_vm6, %v10257_v38 }
 0x1eb   : > { %8935 = vmatmul.mubr.bf16.gmra.mrb[52].mxu1 %v10044_v2 }
 0x1ec   : > { %8971 = vmatpush3.bf16.msk.msra.mxu1 %vm10902_vm6, %v10257_v38  ;;  %8938 = vmatprep.mubr.bf16.mxu1 %v10047_v4  ;;  %v10092_v4 = vld [vmem:[%s12810_s3 + $0x8] sm:$0xff]  }
 0x1ed   : > { %8972 = vmatprep.subr.msk.bf16.mxu1 %vm10918_vm9, %v10257_v38 }
 0x1f0   : > { %8973 = vmatpush3.bf16.msk.msra.mxu1 %vm10918_vm9, %v10257_v38 }
 0x1f1   : > { %8974 = vmatprep.subr.msk.bf16.mxu1 %vm10934_vm12, %v10257_v38 }
 0x1f3   : > { %8939 = vmatmul.mubr.bf16.gmra.mrb[56].mxu1 %v10048_v7 }
 0x1f4   : > { %8975 = vmatpush3.bf16.msk.msra.mxu1 %vm10934_vm12, %v10257_v38  ;;  %8942 = vmatprep.mubr.bf16.mxu1 %v10051_v8 }
 0x1f5   : > { %8976 = vmatprep.subr.msk.bf16.mxu1 %vm10950_vm0, %v10257_v38 }
 0x1f8   : > { %8977 = vmatpush3.bf16.msk.msra.mxu1 %vm10950_vm0, %v10257_v38 }
 0x1f9   : > { %8978 = vmatprep.subr.msk.bf16.mxu1 %vm10966_vm5, %v10257_v38 }
 0x1fb   : > { %8943 = vmatmul.mubr.bf16.gmra.mrb[60].mxu1 %v10052_v9 }
 0x1fc   : > { %8979 = vmatpush3.bf16.msk.msra.mxu1 %vm10966_vm5, %v10257_v38  ;;  %8982 = vmatprep.mubr.bf16.mxu1 %v10053_v10 }
 0x1fd   : > { %8980 = vmatprep.subr.msk.bf16.mxu1 %vm10982_vm10, %v10257_v38 }
 0x200   : > { %8981 = vmatpush3.bf16.msk.msra.mxu1 %vm10982_vm10, %v10257_v38 }
 0x201   : > { %9018 = vmatprep.subr.msk.bf16.mxu1 %vm10870_vm15, %v10257_v38 }
 0x203   : > { %8983 = vmatmul.mubr.bf16.vlgmr.msra.gmra.mrb[64].mxu1 %v10054_v11  ;;  %v10099_v11 = vld [vmem:[%s12809_s2 + $0x208] sm:$0xff]  }
 0x204   : > { %9019 = vmatpush3.bf16.msk.msra.mxu1 %vm10870_vm15, %v10257_v38  ;;  %8986 = vmatprep.mubr.bf16.mxu1 %v10055_v12 }
 0x205   : > { %9020 = vmatprep.subr.msk.bf16.mxu1 %vm10886_vm2, %v10257_v38 }
 0x208   : > { %9021 = vmatpush3.bf16.msk.msra.mxu1 %vm10886_vm2, %v10257_v38 }
 0x209   : > { %9022 = vmatprep.subr.msk.bf16.mxu1 %vm10902_vm6, %v10257_v38 }
 0x20b   : > { %8987 = vmatmul.mubr.bf16.gmra.mrb[68].mxu1 %v10056_v14  ;;  %v10100_v14 = vld [vmem:[%s12809_s2 + $0x210] sm:$0xff]  }
 0x20c   : > { %9023 = vmatpush3.bf16.msk.msra.mxu1 %vm10902_vm6, %v10257_v38  ;;  %8990 = vmatprep.mubr.bf16.mxu1 %v10057_v15 }
 0x20d   : > { %9024 = vmatprep.subr.msk.bf16.mxu1 %vm10918_vm9, %v10257_v38 }
 0x210   : > { %9025 = vmatpush3.bf16.msk.msra.mxu1 %vm10918_vm9, %v10257_v38 }
 0x211   : > { %9026 = vmatprep.subr.msk.bf16.mxu1 %vm10934_vm12, %v10257_v38 }
 0x213   : > { %8991 = vmatmul.mubr.bf16.gmra.mrb[72].mxu1 %v10058_v16 }
 0x214   : > { %9027 = vmatpush3.bf16.msk.msra.mxu1 %vm10934_vm12, %v10257_v38  ;;  %8994 = vmatprep.mubr.bf16.mxu1 %v10059_v17 }
 0x215   : > { %9028 = vmatprep.subr.msk.bf16.mxu1 %vm10950_vm0, %v10257_v38 }
 0x218   : > { %9029 = vmatpush3.bf16.msk.msra.mxu1 %vm10950_vm0, %v10257_v38 }
 0x219   : > { %9030 = vmatprep.subr.msk.bf16.mxu1 %vm10966_vm5, %v10257_v38 }
 0x21b   : > { %8995 = vmatmul.mubr.bf16.gmra.mrb[76].mxu1 %v10060_v19 }
 0x21c   : > { %9031 = vmatpush3.bf16.msk.msra.mxu1 %vm10966_vm5, %v10257_v38  ;;  %9034 = vmatprep.mubr.bf16.mxu1 %v10061_v22 }
 0x21d   : > { %9032 = vmatprep.subr.msk.bf16.mxu1 %vm10982_vm10, %v10257_v38 }
 0x220   : > { %9033 = vmatpush3.bf16.msk.msra.mxu1 %vm10982_vm10, %v10257_v38 }
 0x221   : > { %9070 = vmatprep.subr.msk.bf16.mxu1 %vm10870_vm15, %v10257_v38 }
 0x223   : > { %9035 = vmatmul.mubr.bf16.vlgmr.msra.gmra.mrb[80].mxu1 %v10062_v23 }
 0x224   : > { %9071 = vmatpush3.bf16.msk.msra.mxu1 %vm10870_vm15, %v10257_v38  ;;  %9038 = vmatprep.mubr.bf16.mxu1 %v10063_v24 }
 0x225   : > { %9072 = vmatprep.subr.msk.bf16.mxu1 %vm10886_vm2, %v10257_v38 }
 0x228   : > { %9073 = vmatpush3.bf16.msk.msra.mxu1 %vm10886_vm2, %v10257_v38 }
 0x229   : > { %9074 = vmatprep.subr.msk.bf16.mxu1 %vm10902_vm6, %v10257_v38 }
 0x22b   : > { %9039 = vmatmul.mubr.bf16.gmra.mrb[84].mxu1 %v10064_v26  ;;  %v10101_v26 = vld [vmem:[%s12809_s2 + $0x218] sm:$0xff]  }
 0x22c   : > { %9075 = vmatpush3.bf16.msk.msra.mxu1 %vm10902_vm6, %v10257_v38  ;;  %9042 = vmatprep.mubr.bf16.mxu1 %v10065_v27 }
 0x22d   : > { %9076 = vmatprep.subr.msk.bf16.mxu1 %vm10918_vm9, %v10257_v38 }
 0x230   : > { %9077 = vmatpush3.bf16.msk.msra.mxu1 %vm10918_vm9, %v10257_v38 }
 0x231   : > { %9078 = vmatprep.subr.msk.bf16.mxu1 %vm10934_vm12, %v10257_v38 }
 0x233   : > { %9043 = vmatmul.mubr.bf16.gmra.mrb[88].mxu1 %v10066_v28 }
 0x234   : > { %9079 = vmatpush3.bf16.msk.msra.mxu1 %vm10934_vm12, %v10257_v38  ;;  %9046 = vmatprep.mubr.bf16.mxu1 %v10067_v29  ;;  %v10103_v29 = vld [vmem:[%s12809_s2 + $0x220] sm:$0xff]  }
 0x235   : > { %9080 = vmatprep.subr.msk.bf16.mxu1 %vm10950_vm0, %v10257_v38 }
 0x238   : > { %9081 = vmatpush3.bf16.msk.msra.mxu1 %vm10950_vm0, %v10257_v38 }
 0x239   : > { %9082 = vmatprep.subr.msk.bf16.mxu1 %vm10966_vm5, %v10257_v38 }
 0x23b   : > { %9047 = vmatmul.mubr.bf16.gmra.mrb[92].mxu1 %v10068_v30 }
 0x23c   : > { %9083 = vmatpush3.bf16.msk.msra.mxu1 %vm10966_vm5, %v10257_v38  ;;  %9086 = vmatprep.mubr.bf16.mxu1 %v10069_v31 }
 0x23d   : > { %9084 = vmatprep.subr.msk.bf16.mxu1 %vm10982_vm10, %v10257_v38 }
 0x240   : > { %9085 = vmatpush3.bf16.msk.msra.mxu1 %vm10982_vm10, %v10257_v38 }
 0x241   : > { %9122 = vmatprep.subr.msk.bf16.mxu1 %vm10870_vm15, %v10257_v38 }
 0x243   : > { %9087 = vmatmul.mubr.bf16.vlgmr.msra.gmra.mrb[96].mxu1 %v10070_v32 }
 0x244   : > { %9123 = vmatpush3.bf16.msk.msra.mxu1 %vm10870_vm15, %v10257_v38  ;;  %9090 = vmatprep.mubr.bf16.mxu1 %v10071_v33 }
 0x245   : > { %9124 = vmatprep.subr.msk.bf16.mxu1 %vm10886_vm2, %v10257_v38 }
 0x248   : > { %9125 = vmatpush3.bf16.msk.msra.mxu1 %vm10886_vm2, %v10257_v38 }
 0x249   : > { %9126 = vmatprep.subr.msk.bf16.mxu1 %vm10902_vm6, %v10257_v38 }
 0x24b   : > { %9091 = vmatmul.mubr.bf16.gmra.mrb[100].mxu1 %v10072_v34 }
 0x24c   : > { %9127 = vmatpush3.bf16.msk.msra.mxu1 %vm10902_vm6, %v10257_v38  ;;  %9094 = vmatprep.mubr.bf16.mxu1 %v10073_v35 }
 0x24d   : > { %9128 = vmatprep.subr.msk.bf16.mxu1 %vm10918_vm9, %v10257_v38 }
 0x250   : > { %9129 = vmatpush3.bf16.msk.msra.mxu1 %vm10918_vm9, %v10257_v38 }
 0x251   : > { %9130 = vmatprep.subr.msk.bf16.mxu1 %vm10934_vm12, %v10257_v38 }
 0x253   : > { %9095 = vmatmul.mubr.bf16.gmra.mrb[104].mxu1 %v10074_v39 }
 0x254   : > { %9131 = vmatpush3.bf16.msk.msra.mxu1 %vm10934_vm12, %v10257_v38  ;;  %9098 = vmatprep.mubr.bf16.mxu1 %v10075_v40 }
 0x255   : > { %9132 = vmatprep.subr.msk.bf16.mxu1 %vm10950_vm0, %v10257_v38 }
 0x258   : > { %9133 = vmatpush3.bf16.msk.msra.mxu1 %vm10950_vm0, %v10257_v38 }
 0x259   : > { %9134 = vmatprep.subr.msk.bf16.mxu1 %vm10966_vm5, %v10257_v38 }
 0x25b   : > { %9099 = vmatmul.mubr.bf16.gmra.mrb[108].mxu1 %v10076_v41 }
 0x25c   : > { %9135 = vmatpush3.bf16.msk.msra.mxu1 %vm10966_vm5, %v10257_v38  ;;  %9138 = vmatprep.mubr.bf16.mxu1 %v10077_v42 }
 0x25d   : > { %9136 = vmatprep.subr.msk.bf16.mxu1 %vm10982_vm10, %v10257_v38 }
 0x260   : > { %9137 = vmatpush3.bf16.msk.msra.mxu1 %vm10982_vm10, %v10257_v38 }
 0x261   : > { %9174 = vmatprep.subr.msk.bf16.mxu1 %vm10870_vm15, %v10257_v38 }
 0x263   : > { %9139 = vmatmul.mubr.bf16.vlgmr.msra.gmra.mrb[112].mxu1 %v10078_v43  ;;  %v10104_v43 = vld [vmem:[%s12809_s2 + $0x228] sm:$0xff]  }
 0x264   : > { %9175 = vmatpush3.bf16.msk.msra.mxu1 %vm10870_vm15, %v10257_v38  ;;  %9142 = vmatprep.mubr.bf16.mxu1 %v10079_v44 }
 0x265   : > { %9176 = vmatprep.subr.msk.bf16.mxu1 %vm10886_vm2, %v10257_v38 }
 0x268   : > { %9177 = vmatpush3.bf16.msk.msra.mxu1 %vm10886_vm2, %v10257_v38 }
 0x269   : > { %9178 = vmatprep.subr.msk.bf16.mxu1 %vm10902_vm6, %v10257_v38 }
 0x26b   : > { %9143 = vmatmul.mubr.bf16.gmra.mrb[116].mxu1 %v10080_v45 }
 0x26c   : > { %9179 = vmatpush3.bf16.msk.msra.mxu1 %vm10902_vm6, %v10257_v38  ;;  %9146 = vmatprep.mubr.bf16.mxu1 %v10081_v46  ;;  %v10105_v46 = vld [vmem:[%s12809_s2 + $0x230] sm:$0xff]  }
 0x26d   : > { %9180 = vmatprep.subr.msk.bf16.mxu1 %vm10918_vm9, %v10257_v38 }
 0x270   : > { %9181 = vmatpush3.bf16.msk.msra.mxu1 %vm10918_vm9, %v10257_v38 }
 0x271   : > { %9182 = vmatprep.subr.msk.bf16.mxu1 %vm10934_vm12, %v10257_v38 }
 0x273   : > { %9147 = vmatmul.mubr.bf16.gmra.mrb[120].mxu1 %v10082_v48 }
 0x274   : > { %9183 = vmatpush3.bf16.msk.msra.mxu1 %vm10934_vm12, %v10257_v38  ;;  %9150 = vmatprep.mubr.bf16.mxu1 %v10083_v49 }
 0x275   : > { %9184 = vmatprep.subr.msk.bf16.mxu1 %vm10950_vm0, %v10257_v38 }
 0x278   : > { %9185 = vmatpush3.bf16.msk.msra.mxu1 %vm10950_vm0, %v10257_v38 }
 0x279   : > { %9186 = vmatprep.subr.msk.bf16.mxu1 %vm10966_vm5, %v10257_v38 }
 0x27b   : > { %9151 = vmatmul.mubr.bf16.gmra.mrb[124].mxu1 %v10084_v50 }
 0x27c   : > { %9187 = vmatpush3.bf16.msk.msra.mxu1 %vm10966_vm5, %v10257_v38  ;;  %9190 = vmatprep.mubr.bf16.mxu1 %v10086_v51 }
 0x27d   : > { %9188 = vmatprep.subr.msk.bf16.mxu1 %vm10982_vm10, %v10257_v38 }
 0x280   : > { %9189 = vmatpush3.bf16.msk.msra.mxu1 %vm10982_vm10, %v10257_v38 }
 0x281   : > { %9226 = vmatprep.subr.msk.bf16.mxu1 %vm10870_vm15, %v10257_v38 }
 0x283   : > { %9191 = vmatmul.mubr.bf16.vlgmr.msra.gmra.mrb[128].mxu1 %v10087_v53 }
 0x284   : > { %9227 = vmatpush3.bf16.msk.msra.mxu1 %vm10870_vm15, %v10257_v38  ;;  %9194 = vmatprep.mubr.bf16.mxu1 %v10090_v54  ;;  %vm10258_vm15 = vmmov 0  }
 0x285   : > { %9228 = vmatprep.subr.msk.bf16.mxu1 %vm10886_vm2, %v10257_v38 }
 0x288   : > { %9229 = vmatpush3.bf16.msk.msra.mxu1 %vm10886_vm2, %v10257_v38 }
 0x289   : > { %9230 = vmatprep.subr.msk.bf16.mxu1 %vm10902_vm6, %v10257_v38 }
 0x28b   : > { %9195 = vmatmul.mubr.bf16.gmra.mrb[132].mxu1 %v10091_v55 }
 0x28c   : > { %9231 = vmatpush3.bf16.msk.msra.mxu1 %vm10902_vm6, %v10257_v38  ;;  %9198 = vmatprep.mubr.bf16.mxu1 %v10093_v56 }
 0x28d   : > { %9232 = vmatprep.subr.msk.bf16.mxu1 %vm10918_vm9, %v10257_v38 }
 0x290   : > { %9233 = vmatpush3.bf16.msk.msra.mxu1 %vm10918_vm9, %v10257_v38 }
 0x291   : > { %9234 = vmatprep.subr.msk.bf16.mxu1 %vm10934_vm12, %v10257_v38 }
 0x293   : > { %9199 = vmatmul.mubr.bf16.gmra.mrb[136].mxu1 %v10094_v5  ;;  %v10106_v5 = vld [vmem:[%s12809_s2 + $0x238] sm:$0xff]  }
 0x294   : > { %9235 = vmatpush3.bf16.msk.msra.mxu1 %vm10934_vm12, %v10257_v38  ;;  %9202 = vmatprep.mubr.bf16.mxu1 %v10095_v21 }
 0x295   : > { %9236 = vmatprep.subr.msk.bf16.mxu1 %vm10950_vm0, %v10257_v38 }
 0x296   : > { %v8860_v36 = vpop.f32.mrb[32].mxu1  ;;  %v11514_v52 = vpop.f32.mrb[32].mxu0 }
 0x297   : > { %v1962_v57 = vpop.f32.mrb[33].mxu1  ;;  %v11516_v58 = vpop.f32.mrb[33].mxu0 }
 0x298   : > { %v8861_v60 = vpop.f32.mrb[34].mxu1  ;;  %9237 = vmatpush3.bf16.msk.msra.mxu1 %vm10950_vm0, %v10257_v38  ;;  %v11524_v3 = vpop.f32.mrb[34].mxu0 }
 0x299   : > { %v2026_v61 = vpack.c.bf16 %v8861_v60, %v8860_v36  ;;  %v1965_v62 = vpop.f32.mrb[35].mxu1  ;;  %9238 = vmatprep.subr.msk.bf16.mxu1 %vm10966_vm5, %v10257_v38  ;;  %v1852_v63 = vpack.c.bf16 %v11524_v3, %v11514_v52  ;;  %v11531_v0 = vpop.f32.mrb[35].mxu0  ;;  %v10102_v60 = vld [vmem:[%s12810_s3 + $0x28] sm:$0xff]  }
 0x29a   : > { %v2025_v1 = vpack.c.bf16 %v1965_v62, %v1962_v57  ;;  %v1851_v2 = vpack.c.bf16 %v11531_v0, %v11516_v58  ;;  %v10107_v62 = vld [vmem:[%s12810_s3 + $0x30] sm:$0xff]  }
 0x29b   : > { %9203 = vmatmul.mubr.bf16.gmra.mrb[140].mxu1 %v10096_v59 }
 0x29c   : > { %8878 = vmatprep.mubr.msk.bf16.mxu0 %vm959_vm4, %v2025_v1  ;;  %9239 = vmatpush3.bf16.msk.msra.mxu1 %vm10966_vm5, %v10257_v38 }
 0x29d   : > { %8879 = vmatmul.mubr.msk.bf16.vlgmr.msra.gmra.mrb[48].mxu0 %vm959_vm4, %v2026_v61  ;;  %9240 = vmatprep.subr.msk.bf16.mxu1 %vm10982_vm10, %v10257_v38 }
 0x29e   : > { %v8864_v7 = vpop.f32.mrb[36].mxu1  ;;  %8895 = vmatpush3.bf16.msra.mxu0 %v11253_v25  ;;  %v11550_v8 = vpop.f32.mrb[36].mxu0  ;;  %9242 = vmatprep.mubr.bf16.mxu1 %v10098_v20 }
 0x29f   : > { %v1978_v9 = vpop.f32.mrb[37].mxu1  ;;  %8896 = vmatprep.subr.bf16.mxu0 %v10092_v4  ;;  %v11552_v10 = vpop.f32.mrb[37].mxu0 }
 0x2a0   : > { %v8865_v12 = vpop.f32.mrb[38].mxu1  ;;  %9241 = vmatpush3.bf16.msk.msra.mxu1 %vm10982_vm10, %v10257_v38  ;;  %v11565_v13 = vpop.f32.mrb[38].mxu0 }
 0x2a1   : > { %v2028_v15 = vpack.c.bf16 %v8865_v12, %v8864_v7  ;;  %v1981_v16 = vpop.f32.mrb[39].mxu1  ;;  %v1854_v17 = vpack.c.bf16 %v11565_v13, %v11550_v8  ;;  %v1807_v18 = vpop.f32.mrb[39].mxu0  ;;  %9278 = vmatprep.subr.bf16.mxu1 %v10256_v6 }
 0x2a2   : > { %v2027_v19 = vpack.c.bf16 %v1981_v16, %v1978_v9  ;;  %8897 = vmatpush3.bf16.msra.mxu0 %v10092_v4  ;;  %v1853_v22 = vpack.c.bf16 %v1807_v18, %v11552_v10 }
 0x2a3   : > { %8946 = vmatprep.subr.bf16.mxu0 %v11557_v37  ;;  %9243 = vmatmul.mubr.bf16.vlgmr.msra.gmra.mrb[144].mxu1 %v10099_v11 }
 0x2a4   : > { %8882 = vmatprep.mubr.msk.bf16.mxu0 %vm959_vm4, %v2027_v19  ;;  %9246 = vmatprep.mubr.bf16.mxu1 %v10100_v14 }
 0x2a5   : > { %8883 = vmatmul.mubr.msk.bf16.gmra.mrb[52].mxu0 %vm959_vm4, %v2028_v15 }
 0x2a6   : > { %v8868_v47 = vpop.f32.mrb[40].mxu1  ;;  %v11577_v23 = vpop.f32.mrb[40].mxu0 }
 0x2a7   : > { %v1994_v24 = vpop.f32.mrb[41].mxu1  ;;  %v1820_v25 = vpop.f32.mrb[41].mxu0 }
 0x2a8   : > { %v8869_v27 = vpop.f32.mrb[42].mxu1  ;;  %v8837_v28 = vpop.f32.mrb[42].mxu0 }
 0x2a9   : > { %v2030_v30 = vpack.c.bf16 %v8869_v27, %v8868_v47  ;;  %v1997_v31 = vpop.f32.mrb[43].mxu1  ;;  %v1856_v32 = vpack.c.bf16 %v8837_v28, %v11577_v23  ;;  %v1823_v33 = vpop.f32.mrb[43].mxu0 }
 0x2aa   : > { %v2029_v34 = vpack.c.bf16 %v1997_v31, %v1994_v24  ;;  %v1855_v35 = vpack.c.bf16 %v1823_v33, %v1820_v25  ;;  %v10109_v24 = vld [vmem:[%s12810_s3 + $0x40] sm:$0xff]  }
 0x2ab   : > { %9247 = vmatmul.mubr.bf16.gmra.mrb[148].mxu1 %v10101_v26 }
 0x2ac   : > { %8886 = vmatprep.mubr.msk.bf16.mxu0 %vm959_vm4, %v2029_v34  ;;  %9250 = vmatprep.mubr.bf16.mxu1 %v10103_v29 }
 0x2ad   : > { %8887 = vmatmul.mubr.msk.bf16.gmra.mrb[56].mxu0 %vm959_vm4, %v2030_v30 }
 0x2ae   : > { %v8872_v39 = vpop.f32.mrb[44].mxu1  ;;  %v8840_v40 = vpop.f32.mrb[44].mxu0 }
 0x2af   : > { %v2010_v41 = vpop.f32.mrb[45].mxu1  ;;  %v1836_v42 = vpop.f32.mrb[45].mxu0 }
 0x2b0   : > { %v8873_v44 = vpop.f32.mrb[46].mxu1  ;;  %v8841_v45 = vpop.f32.mrb[46].mxu0 }
 0x2b1   : > { %v2032_v48 = vpack.c.bf16 %v8873_v44, %v8872_v39  ;;  %v2013_v49 = vpop.f32.mrb[47].mxu1  ;;  %v1858_v50 = vpack.c.bf16 %v8841_v45, %v8840_v40  ;;  %v1839_v51 = vpop.f32.mrb[47].mxu0 }
 0x2b2   : > { %v2031_v53 = vpack.c.bf16 %v2013_v49, %v2010_v41  ;;  %v1857_v54 = vpack.c.bf16 %v1839_v51, %v1836_v42  ;;  %v10110_v51 = vld [vmem:[%s12810_s3 + $0x48] sm:$0xff]  }
 0x2b3   : > { %9251 = vmatmul.mubr.bf16.gmra.mrb[152].mxu1 %v10104_v43 }
 0x2b4   : > { %8890 = vmatprep.mubr.msk.bf16.mxu0 %vm959_vm4, %v2031_v53  ;;  %9254 = vmatprep.mubr.bf16.mxu1 %v10105_v46 }
 0x2b5   : > { %8891 = vmatmul.mubr.msk.bf16.gmra.mrb[60].mxu0 %vm959_vm4, %v2032_v48 }
 0x2b6   : > { %8898 = vmatprep.mubr.msk.bf16.mxu0 %vm959_vm4, %v1851_v2  ;;  %v8932_v55 = vpop.f32.mrb[48].mxu1 }
 0x2b7   : > { %v2403_v56 = vpop.f32.mrb[49].mxu1 }
 0x2b8   : > { %v8933_v21 = vpop.f32.mrb[50].mxu1 }
 0x2b9   : > { %v2467_v36 = vpack.c.bf16 %v8933_v21, %v8932_v55  ;;  %v2406_v57 = vpop.f32.mrb[51].mxu1  ;;  %v10111_v55 = vld [vmem:[%s12810_s3 + $0x50] sm:$0xff]  }
 0x2ba   : > { %v2466_v59 = vpack.c.bf16 %v2406_v57, %v2403_v56 }
 0x2bb   : > { %9255 = vmatmul.mubr.bf16.gmra.mrb[156].mxu1 %v10106_v5 }
 0x2bc   : > { %9294 = vmatprep.mubr.msk.bf16.mxu1 %vm10258_vm15, %v10256_v6 }
 0x2bd   : > { %8899 = vmatmul.mubr.msk.bf16.vlgmr.msra.gmra.mrb[48].mxu0 %vm959_vm4, %v1852_v63 }
 0x2be   : > { %8947 = vmatpush3.bf16.msra.mxu0 %v11557_v37  ;;  %8902 = vmatprep.mubr.msk.bf16.mxu0 %vm959_vm4, %v1853_v22  ;;  %v8936_v58 = vpop.f32.mrb[52].mxu1  ;;  %v10108_v22 = vld [vmem:[%s12810_s3 + $0x38] sm:$0xff]  }
 0x2bf   : > { %8948 = vmatprep.subr.bf16.mxu0 %v10102_v60  ;;  %v2419_v61 = vpop.f32.mrb[53].mxu1 }
 0x2c0   : > { %v8937_v0 = vpop.f32.mrb[54].mxu1 }
 0x2c1   : > { %v2469_v1 = vpack.c.bf16 %v8937_v0, %v8936_v58  ;;  %v2422_v2 = vpop.f32.mrb[55].mxu1 }
 0x2c2   : > { %8949 = vmatpush3.bf16.msra.mxu0 %v10102_v60  ;;  %v2468_v20 = vpack.c.bf16 %v2422_v2, %v2419_v61 }
 0x2c3   : > { %8998 = vmatprep.subr.bf16.mxu0 %v10107_v62 }
 0x2c5   : > { %8903 = vmatmul.mubr.msk.bf16.gmra.mrb[52].mxu0 %vm959_vm4, %v1854_v17 }
 0x2c6   : > { %8906 = vmatprep.mubr.msk.bf16.mxu0 %vm959_vm4, %v1855_v35  ;;  %v8940_v52 = vpop.f32.mrb[56].mxu1 }
 0x2c7   : > { %v2435_v3 = vpop.f32.mrb[57].mxu1 }
 0x2c8   : > { %v8941_v63 = vpop.f32.mrb[58].mxu1 }
 0x2c9   : > { %v2471_v4 = vpack.c.bf16 %v8941_v63, %v8940_v52  ;;  %v2438_v7 = vpop.f32.mrb[59].mxu1 }
 0x2ca   : > { %v2470_v9 = vpack.c.bf16 %v2438_v7, %v2435_v3 }
 0x2cd   : > { %8907 = vmatmul.mubr.msk.bf16.gmra.mrb[56].mxu0 %vm959_vm4, %v1856_v32 }
 0x2ce   : > { %8910 = vmatprep.mubr.msk.bf16.mxu0 %vm959_vm4, %v1857_v54  ;;  %v8944_v10 = vpop.f32.mrb[60].mxu1 }
 0x2cf   : > { %v2451_v37 = vpop.f32.mrb[61].mxu1 }
 0x2d0   : > { %v8945_v11 = vpop.f32.mrb[62].mxu1 }
 0x2d1   : > { %v2473_v12 = vpack.c.bf16 %v8945_v11, %v8944_v10  ;;  %v2454_v14 = vpop.f32.mrb[63].mxu1  ;;  %v10112_v11 = vld [vmem:[%s12810_s3 + $0x58] sm:$0xff]  }
 0x2d2   : > { %v2472_v8 = vpack.c.bf16 %v2454_v14, %v2451_v37 }
 0x2d5   : > { %8911 = vmatmul.mubr.msk.bf16.gmra.mrb[60].mxu0 %vm959_vm4, %v1858_v50 }
 0x2d6   : > { %8950 = vmatprep.mubr.msk.bf16.mxu0 %vm959_vm4, %v2466_v59  ;;  %v8984_v13 = vpop.f32.mrb[64].mxu1 }
 0x2d7   : > { %v2727_v15 = vpop.f32.mrb[65].mxu1 }
 0x2d8   : > { %v8985_v16 = vpop.f32.mrb[66].mxu1 }
 0x2d9   : > { %v2791_v17 = vpack.c.bf16 %v8985_v16, %v8984_v13  ;;  %v2730_v18 = vpop.f32.mrb[67].mxu1 }
 0x2da   : > { %v2790_v19 = vpack.c.bf16 %v2730_v18, %v2727_v15 }
 0x2dd   : > { %8951 = vmatmul.mubr.msk.bf16.vlgmr.msra.gmra.mrb[48].mxu0 %vm959_vm4, %v2467_v36 }
 0x2de   : > { %8999 = vmatpush3.bf16.msra.mxu0 %v10107_v62  ;;  %8954 = vmatprep.mubr.msk.bf16.mxu0 %vm959_vm4, %v2468_v20  ;;  %v8988_v47 = vpop.f32.mrb[68].mxu1 }
 0x2df   : > { %9000 = vmatprep.subr.bf16.mxu0 %v10108_v22  ;;  %v2743_v23 = vpop.f32.mrb[69].mxu1 }
 0x2e0   : > { %v8989_v25 = vpop.f32.mrb[70].mxu1 }
 0x2e1   : > { %v2793_v26 = vpack.c.bf16 %v8989_v25, %v8988_v47  ;;  %v2746_v27 = vpop.f32.mrb[71].mxu1 }
 0x2e2   : > { %9001 = vmatpush3.bf16.msra.mxu0 %v10108_v22  ;;  %v2792_v28 = vpack.c.bf16 %v2746_v27, %v2743_v23 }
 0x2e3   : > { %9050 = vmatprep.subr.bf16.mxu0 %v10109_v24 }
 0x2e5   : > { %8955 = vmatmul.mubr.msk.bf16.gmra.mrb[52].mxu0 %vm959_vm4, %v2469_v1 }
 0x2e6   : > { %8958 = vmatprep.mubr.msk.bf16.mxu0 %vm959_vm4, %v2470_v9  ;;  %v8992_v29 = vpop.f32.mrb[72].mxu1 }
 0x2e7   : > { %v2759_v30 = vpop.f32.mrb[73].mxu1 }
 0x2e8   : > { %v8993_v31 = vpop.f32.mrb[74].mxu1 }
 0x2e9   : > { %v2795_v32 = vpack.c.bf16 %v8993_v31, %v8992_v29  ;;  %v2762_v33 = vpop.f32.mrb[75].mxu1 }
 0x2ea   : > { %v2794_v34 = vpack.c.bf16 %v2762_v33, %v2759_v30 }
 0x2ed   : > { %8959 = vmatmul.mubr.msk.bf16.gmra.mrb[56].mxu0 %vm959_vm4, %v2471_v4 }
 0x2ee   : > { %8962 = vmatprep.mubr.msk.bf16.mxu0 %vm959_vm4, %v2472_v8  ;;  %v8996_v35 = vpop.f32.mrb[76].mxu1  ;;  %v10113_v8 = vld [vmem:[%s12810_s3 + $0x60] sm:$0xff]  }
 0x2ef   : > { %v2775_v39 = vpop.f32.mrb[77].mxu1 }
 0x2f0   : > { %v8997_v40 = vpop.f32.mrb[78].mxu1 }
 0x2f1   : > { %v2797_v41 = vpack.c.bf16 %v8997_v40, %v8996_v35  ;;  %v2778_v42 = vpop.f32.mrb[79].mxu1  ;;  %v10114_v40 = vld [vmem:[%s12810_s3 + $0x68] sm:$0xff]  }
 0x2f2   : > { %v2796_v43 = vpack.c.bf16 %v2778_v42, %v2775_v39 }
 0x2f5   : > { %8963 = vmatmul.mubr.msk.bf16.gmra.mrb[60].mxu0 %vm959_vm4, %v2473_v12 }
 0x2f6   : > { %9002 = vmatprep.mubr.msk.bf16.mxu0 %vm959_vm4, %v2790_v19  ;;  %v9036_v44 = vpop.f32.mrb[80].mxu1 }
 0x2f7   : > { %v3051_v45 = vpop.f32.mrb[81].mxu1 }
 0x2f8   : > { %v9037_v46 = vpop.f32.mrb[82].mxu1 }
 0x2f9   : > { %v3115_v48 = vpack.c.bf16 %v9037_v46, %v9036_v44  ;;  %v3054_v49 = vpop.f32.mrb[83].mxu1 }
 0x2fa   : > { %v3114_v50 = vpack.c.bf16 %v3054_v49, %v3051_v45 }
 0x2fd   : > { %9003 = vmatmul.mubr.msk.bf16.vlgmr.msra.gmra.mrb[48].mxu0 %vm959_vm4, %v2791_v17 }
 0x2fe   : > { %9051 = vmatpush3.bf16.msra.mxu0 %v10109_v24  ;;  %9006 = vmatprep.mubr.msk.bf16.mxu0 %vm959_vm4, %v2792_v28  ;;  %v9040_v53 = vpop.f32.mrb[84].mxu1 }
 0x2ff   : > { %9052 = vmatprep.subr.bf16.mxu0 %v10110_v51  ;;  %v3067_v54 = vpop.f32.mrb[85].mxu1 }
 0x300   : > { %v9041_v56 = vpop.f32.mrb[86].mxu1 }
 0x301   : > { %v3117_v5 = vpack.c.bf16 %v9041_v56, %v9040_v53  ;;  %v3070_v21 = vpop.f32.mrb[87].mxu1 }
 0x302   : > { %9053 = vmatpush3.bf16.msra.mxu0 %v10110_v51  ;;  %v3116_v36 = vpack.c.bf16 %v3070_v21, %v3067_v54 }
 0x303   : > { %9102 = vmatprep.subr.bf16.mxu0 %v10111_v55 }
 0x305   : > { %9007 = vmatmul.mubr.msk.bf16.gmra.mrb[52].mxu0 %vm959_vm4, %v2793_v26 }
 0x306   : > { %9010 = vmatprep.mubr.msk.bf16.mxu0 %vm959_vm4, %v2794_v34  ;;  %v9044_v57 = vpop.f32.mrb[88].mxu1 }
 0x307   : > { %v3083_v59 = vpop.f32.mrb[89].mxu1 }
 0x308   : > { %v9045_v60 = vpop.f32.mrb[90].mxu1 }
 0x309   : > { %v3119_v58 = vpack.c.bf16 %v9045_v60, %v9044_v57  ;;  %v3086_v61 = vpop.f32.mrb[91].mxu1 }
 0x30a   : > { %v3118_v62 = vpack.c.bf16 %v3086_v61, %v3083_v59 }
 0x30d   : > { %9011 = vmatmul.mubr.msk.bf16.gmra.mrb[56].mxu0 %vm959_vm4, %v2795_v32 }
 0x30e   : > { %9014 = vmatprep.mubr.msk.bf16.mxu0 %vm959_vm4, %v2796_v43  ;;  %v9048_v0 = vpop.f32.mrb[92].mxu1  ;;  %v10115_v43 = vld [vmem:[%s12810_s3 + $0x70] sm:$0xff]  }
 0x30f   : > { %v3099_v1 = vpop.f32.mrb[93].mxu1 }
 0x310   : > { %v9049_v2 = vpop.f32.mrb[94].mxu1 }
 0x311   : > { %v3121_v20 = vpack.c.bf16 %v9049_v2, %v9048_v0  ;;  %v3102_v52 = vpop.f32.mrb[95].mxu1  ;;  %v10116_v2 = vld [vmem:[%s12810_s3 + $0x78] sm:$0xff]  }
 0x312   : > { %v3120_v3 = vpack.c.bf16 %v3102_v52, %v3099_v1 }
 0x315   : > { %9015 = vmatmul.mubr.msk.bf16.gmra.mrb[60].mxu0 %vm959_vm4, %v2797_v41 }
 0x316   : > { %9054 = vmatprep.mubr.msk.bf16.mxu0 %vm959_vm4, %v3114_v50  ;;  %v9088_v63 = vpop.f32.mrb[96].mxu1 }
 0x317   : > { %v3375_v4 = vpop.f32.mrb[97].mxu1 }
 0x318   : > { %v9089_v7 = vpop.f32.mrb[98].mxu1 }
 0x319   : > { %v3439_v9 = vpack.c.bf16 %v9089_v7, %v9088_v63  ;;  %v3378_v10 = vpop.f32.mrb[99].mxu1 }
 0x31a   : > { %v3438_v37 = vpack.c.bf16 %v3378_v10, %v3375_v4 }
 0x31d   : > { %9055 = vmatmul.mubr.msk.bf16.vlgmr.msra.gmra.mrb[48].mxu0 %vm959_vm4, %v3115_v48 }
 0x31e   : > { %9103 = vmatpush3.bf16.msra.mxu0 %v10111_v55  ;;  %9058 = vmatprep.mubr.msk.bf16.mxu0 %vm959_vm4, %v3116_v36  ;;  %v9092_v12 = vpop.f32.mrb[100].mxu1 }
 0x31f   : > { %9104 = vmatprep.subr.bf16.mxu0 %v10112_v11  ;;  %v3391_v14 = vpop.f32.mrb[101].mxu1 }
 0x320   : > { %v9093_v13 = vpop.f32.mrb[102].mxu1 }
 0x321   : > { %v3441_v15 = vpack.c.bf16 %v9093_v13, %v9092_v12  ;;  %v3394_v16 = vpop.f32.mrb[103].mxu1 }
 0x322   : > { %9105 = vmatpush3.bf16.msra.mxu0 %v10112_v11  ;;  %v3440_v17 = vpack.c.bf16 %v3394_v16, %v3391_v14 }
 0x323   : > { %9154 = vmatprep.subr.bf16.mxu0 %v10113_v8 }
 0x325   : > { %9059 = vmatmul.mubr.msk.bf16.gmra.mrb[52].mxu0 %vm959_vm4, %v3117_v5 }
 0x326   : > { %9062 = vmatprep.mubr.msk.bf16.mxu0 %vm959_vm4, %v3118_v62  ;;  %v9096_v18 = vpop.f32.mrb[104].mxu1 }
 0x327   : > { %v3407_v19 = vpop.f32.mrb[105].mxu1 }
 0x328   : > { %v9097_v22 = vpop.f32.mrb[106].mxu1 }
 0x329   : > { %v3443_v47 = vpack.c.bf16 %v9097_v22, %v9096_v18  ;;  %v3410_v23 = vpop.f32.mrb[107].mxu1 }
 0x32a   : > { %v3442_v24 = vpack.c.bf16 %v3410_v23, %v3407_v19 }
 0x32d   : > { %9063 = vmatmul.mubr.msk.bf16.gmra.mrb[56].mxu0 %vm959_vm4, %v3119_v58 }
 0x32e   : > { %9066 = vmatprep.mubr.msk.bf16.mxu0 %vm959_vm4, %v3120_v3  ;;  %v9100_v25 = vpop.f32.mrb[108].mxu1  ;;  %v10117_v3 = vld [vmem:[%s12810_s3 + $0x80] sm:$0xff]  }
 0x32f   : > { %v3423_v26 = vpop.f32.mrb[109].mxu1 }
 0x330   : > { %v9101_v27 = vpop.f32.mrb[110].mxu1 }
 0x331   : > { %v3445_v28 = vpack.c.bf16 %v9101_v27, %v9100_v25  ;;  %v3426_v29 = vpop.f32.mrb[111].mxu1  ;;  %v10118_v27 = vld [vmem:[%s12810_s3 + $0x88] sm:$0xff]  }
 0x332   : > { %v3444_v30 = vpack.c.bf16 %v3426_v29, %v3423_v26 }
 0x335   : > { %9067 = vmatmul.mubr.msk.bf16.gmra.mrb[60].mxu0 %vm959_vm4, %v3121_v20 }
 0x336   : > { %9106 = vmatprep.mubr.msk.bf16.mxu0 %vm959_vm4, %v3438_v37  ;;  %v9140_v31 = vpop.f32.mrb[112].mxu1 }
 0x337   : > { %v3699_v32 = vpop.f32.mrb[113].mxu1 }
 0x338   : > { %v9141_v33 = vpop.f32.mrb[114].mxu1 }
 0x339   : > { %v3763_v34 = vpack.c.bf16 %v9141_v33, %v9140_v31  ;;  %v3702_v35 = vpop.f32.mrb[115].mxu1 }
 0x33a   : > { %v3762_v39 = vpack.c.bf16 %v3702_v35, %v3699_v32 }
 0x33d   : > { %9107 = vmatmul.mubr.msk.bf16.vlgmr.msra.gmra.mrb[48].mxu0 %vm959_vm4, %v3439_v9 }
 0x33e   : > { %9155 = vmatpush3.bf16.msra.mxu0 %v10113_v8  ;;  %9110 = vmatprep.mubr.msk.bf16.mxu0 %vm959_vm4, %v3440_v17  ;;  %v9144_v41 = vpop.f32.mrb[116].mxu1 }
 0x33f   : > { %9156 = vmatprep.subr.bf16.mxu0 %v10114_v40  ;;  %v3715_v42 = vpop.f32.mrb[117].mxu1 }
 0x340   : > { %v9145_v44 = vpop.f32.mrb[118].mxu1 }
 0x341   : > { %v3765_v45 = vpack.c.bf16 %v9145_v44, %v9144_v41  ;;  %v3718_v46 = vpop.f32.mrb[119].mxu1 }
 0x342   : > { %9157 = vmatpush3.bf16.msra.mxu0 %v10114_v40  ;;  %v3764_v48 = vpack.c.bf16 %v3718_v46, %v3715_v42 }
 0x343   : > { %9206 = vmatprep.subr.bf16.mxu0 %v10115_v43 }
 0x345   : > { %9111 = vmatmul.mubr.msk.bf16.gmra.mrb[52].mxu0 %vm959_vm4, %v3441_v15 }
 0x346   : > { %9114 = vmatprep.mubr.msk.bf16.mxu0 %vm959_vm4, %v3442_v24  ;;  %v9148_v49 = vpop.f32.mrb[120].mxu1 }
 0x347   : > { %v3731_v50 = vpop.f32.mrb[121].mxu1 }
 0x348   : > { %v9149_v51 = vpop.f32.mrb[122].mxu1 }
 0x349   : > { %v3767_v53 = vpack.c.bf16 %v9149_v51, %v9148_v49  ;;  %v3734_v54 = vpop.f32.mrb[123].mxu1  ;;  %v10120_v51 = vld [vmem:[%s12813_s6 + $0x8] sm:$0xff]  }
 0x34a   : > { %v3766_v55 = vpack.c.bf16 %v3734_v54, %v3731_v50  ;;  %v10119_v50 = vld [vmem:[%s12813_s6] sm:$0xff]   ;;  %v4597_v54 = vld [vmem:[#allocation3 + $0x10] sm:$0xff] }
 0x34d   : > { %9115 = vmatmul.mubr.msk.bf16.gmra.mrb[56].mxu0 %vm959_vm4, %v3443_v47 }
 0x34e   : > { %9118 = vmatprep.mubr.msk.bf16.mxu0 %vm959_vm4, %v3444_v30  ;;  %v9152_v56 = vpop.f32.mrb[124].mxu1 }
 0x34f   : > { %v3747_v5 = vpop.f32.mrb[125].mxu1 }
 0x350   : > { %v9153_v21 = vpop.f32.mrb[126].mxu1 }
 0x351   : > { %v3769_v36 = vpack.c.bf16 %v9153_v21, %v9152_v56  ;;  %v3750_v57 = vpop.f32.mrb[127].mxu1  ;;  %v11732_v56 = vld [vmem:[%s12811_s4] ss:$0 sm:$0xff]  ;;  %v4661_v21 = vmul.f32 0.95, %v4597_v54 }
 0x352   : > { %v3768_v59 = vpack.c.bf16 %v3750_v57, %v3747_v5  ;;  %v4598_v5 = vld [vmem:[#allocation3 + $0x18] sm:$0xff] }
 0x353   : > { %vm4614_vm6 = vcmp.gt.f32.partialorder %v4598_v5, 1.0 }
 0x355   : > { %9119 = vmatmul.mubr.msk.bf16.gmra.mrb[60].mxu0 %vm959_vm4, %v3445_v28 }
 0x356   : > { %9158 = vmatprep.mubr.msk.bf16.mxu0 %vm959_vm4, %v3762_v39  ;;  %v9192_v60 = vpop.f32.mrb[128].mxu1 }
 0x357   : > { %v4023_v58 = vpop.f32.mrb[129].mxu1 }
 0x358   : > { %v9193_v61 = vpop.f32.mrb[130].mxu1 }
 0x359   : > { %v4087_v62 = vpack.c.bf16 %v9193_v61, %v9192_v60  ;;  %v4026_v0 = vpop.f32.mrb[131].mxu1  ;;  %v4662_v61 = vmul.f32 0.95, %v4598_v5 }
 0x35a   : > { %v4086_v1 = vpack.c.bf16 %v4026_v0, %v4023_v58 }
 0x35d   : > { %9159 = vmatmul.mubr.msk.bf16.vlgmr.msra.gmra.mrb[48].mxu0 %vm959_vm4, %v3763_v34 }
 0x35e   : > { %9207 = vmatpush3.bf16.msra.mxu0 %v10115_v43  ;;  %9162 = vmatprep.mubr.msk.bf16.mxu0 %vm959_vm4, %v3764_v48  ;;  %v9196_v20 = vpop.f32.mrb[132].mxu1 }
 0x35f   : > { %9208 = vmatprep.subr.bf16.mxu0 %v10116_v2  ;;  %v4039_v52 = vpop.f32.mrb[133].mxu1 }
 0x360   : > { %v9197_v63 = vpop.f32.mrb[134].mxu1 }
 0x361   : > { %v4089_v4 = vpack.c.bf16 %v9197_v63, %v9196_v20  ;;  %v4042_v7 = vpop.f32.mrb[135].mxu1 }
 0x362   : > { %9209 = vmatpush3.bf16.msra.mxu0 %v10116_v2  ;;  %v4088_v9 = vpack.c.bf16 %v4042_v7, %v4039_v52  ;;  %v7678_v7 = vsel %vm4614_vm6, 1.0, %v10256_v6 }
 0x363   : > { %9258 = vmatprep.subr.bf16.mxu0 %v10117_v3 }
 0x365   : > { %9163 = vmatmul.mubr.msk.bf16.gmra.mrb[52].mxu0 %vm959_vm4, %v3765_v45 }
 0x366   : > { %9166 = vmatprep.mubr.msk.bf16.mxu0 %vm959_vm4, %v3766_v55  ;;  %v9200_v10 = vpop.f32.mrb[136].mxu1  ;;  %v4595_v55 = vld [vmem:[#allocation3] sm:$0xff] }
 0x367   : > { %v4055_v37 = vpop.f32.mrb[137].mxu1  ;;  %vm4611_vm2 = vcmp.gt.f32.partialorder %v4595_v55, 1.0 }
 0x368   : > { %v9201_v11 = vpop.f32.mrb[138].mxu1  ;;  %v7675_v52 = vsel %vm4611_vm2, 1.0, %v10256_v6 }
 0x369   : > { %v4091_v12 = vpack.c.bf16 %v9201_v11, %v9200_v10  ;;  %v4058_v14 = vpop.f32.mrb[139].mxu1  ;;  %v4601_v10 = vld [vmem:[#allocation3 + $0x30] sm:$0xff]  ;;  %v4602_v11 = vld [vmem:[#allocation3 + $0x38] sm:$0xff] }
 0x36a   : > { %v4090_v8 = vpack.c.bf16 %v4058_v14, %v4055_v37  ;;  %v4599_v37 = vld [vmem:[#allocation3 + $0x20] sm:$0xff]  ;;  %vm4617_vm12 = vcmp.gt.f32.partialorder %v4601_v10, 1.0  ;;  %vm4618_vm1 = vcmp.gt.f32.partialorder %v4602_v11, 1.0 }
 0x36b   : > { %vm4615_vm13 = vcmp.gt.f32.partialorder %v4599_v37, 1.0 }
 0x36d   : > { %9167 = vmatmul.mubr.msk.bf16.gmra.mrb[56].mxu0 %vm959_vm4, %v3767_v53  ;;  %v10121_v53 = vld [vmem:[%s12813_s6 + $0x10] sm:$0xff]  }
 0x36e   : > { %9170 = vmatprep.mubr.msk.bf16.mxu0 %vm959_vm4, %v3768_v59  ;;  %v9204_v13 = vpop.f32.mrb[140].mxu1  ;;  %v4659_v59 = vmul.f32 0.95, %v4595_v55 }
 0x36f   : > { %v4071_v15 = vpop.f32.mrb[141].mxu1 }
 0x370   : > { %v9205_v16 = vpop.f32.mrb[142].mxu1 }
 0x371   : > { %v4093_v17 = vpack.c.bf16 %v9205_v16, %v9204_v13  ;;  %v4074_v18 = vpop.f32.mrb[143].mxu1  ;;  %v4600_v13 = vld [vmem:[#allocation3 + $0x28] sm:$0xff] }
 0x372   : > { %v4092_v19 = vpack.c.bf16 %v4074_v18, %v4071_v15  ;;  %v4665_v18 = vmul.f32 0.95, %v4601_v10  ;;  %vm4616_vm8 = vcmp.gt.f32.partialorder %v4600_v13, 1.0  ;;  %v4607_v10 = vld [vmem:[#allocation3 + $0x60] sm:$0xff] }
 0x375   : > { %9171 = vmatmul.mubr.msk.bf16.gmra.mrb[60].mxu0 %vm959_vm4, %v3769_v36  ;;  %v4596_v36 = vld [vmem:[#allocation3 + $0x8] sm:$0xff] }
 0x376   : > { %9210 = vmatprep.mubr.msk.bf16.mxu0 %vm959_vm4, %v4086_v1  ;;  %v9244_v22 = vpop.f32.mrb[144].mxu1  ;;  %vm4612_vm9 = vcmp.gt.f32.partialorder %v4596_v36, 1.0  ;;  %v4660_v2 = vmul.f32 0.95, %v4596_v36 }
 0x377   : > { %v4347_v47 = vpop.f32.mrb[145].mxu1 }
 0x378   : > { %v9245_v23 = vpop.f32.mrb[146].mxu1 }
 0x379   : > { %v4411_v24 = vpack.c.bf16 %v9245_v23, %v9244_v22  ;;  %v4350_v25 = vpop.f32.mrb[147].mxu1  ;;  %v4666_v22 = vmul.f32 0.95, %v4602_v11 }
 0x37a   : > { %v4410_v26 = vpack.c.bf16 %v4350_v25, %v4347_v47  ;;  %v4664_v25 = vmul.f32 0.95, %v4600_v13 }
 0x37d   : > { %9211 = vmatmul.mubr.msk.bf16.vlgmr.msra.gmra.mrb[48].mxu0 %vm959_vm4, %v4087_v62 }
 0x37e   : > { %9259 = vmatpush3.bf16.msra.mxu0 %v10117_v3  ;;  %9214 = vmatprep.mubr.msk.bf16.mxu0 %vm959_vm4, %v4088_v9  ;;  %v9248_v28 = vpop.f32.mrb[148].mxu1 }
 0x37f   : > { %9260 = vmatprep.subr.bf16.mxu0 %v10118_v27  ;;  %v4363_v29 = vpop.f32.mrb[149].mxu1 }
 0x380   : > { %v9249_v30 = vpop.f32.mrb[150].mxu1 }
 0x381   : > { %v4413_v31 = vpack.c.bf16 %v9249_v30, %v9248_v28  ;;  %v4366_v32 = vpop.f32.mrb[151].mxu1  ;;  %v8163_v28 = vld [vmem:[%s12812_s5 + $0xf] sm:$0x1] }
 0x382   : > { %9261 = vmatpush3.bf16.msra.mxu0 %v10118_v27  ;;  %v4412_v33 = vpack.c.bf16 %v4366_v32, %v4363_v29 }
 0x383   : > { %9330 = vmatprep.subr.bf16.mxu0 %v10256_v6 }
 0x385   : > { %9215 = vmatmul.mubr.msk.bf16.gmra.mrb[52].mxu0 %vm959_vm4, %v4089_v4 }
 0x386   : > { %9218 = vmatprep.mubr.msk.bf16.mxu0 %vm959_vm4, %v4090_v8  ;;  %v9252_v34 = vpop.f32.mrb[152].mxu1  ;;  %v7676_v8 = vsel %vm4612_vm9, 1.0, %v10256_v6 }
 0x387   : > { %v4379_v35 = vpop.f32.mrb[153].mxu1 }
 0x388   : > { %v9253_v39 = vpop.f32.mrb[154].mxu1 }
 0x389   : > { %v4415_v40 = vpack.c.bf16 %v9253_v39, %v9252_v34  ;;  %v4382_v41 = vpop.f32.mrb[155].mxu1 }
 0x38a   : > { %v4414_v42 = vpack.c.bf16 %v4382_v41, %v4379_v35 }
 0x38d   : > { %9219 = vmatmul.mubr.msk.bf16.gmra.mrb[56].mxu0 %vm959_vm4, %v4091_v12 }
 0x38e   : > { %9222 = vmatprep.mubr.msk.bf16.mxu0 %vm959_vm4, %v4092_v19  ;;  %v9256_v43 = vpop.f32.mrb[156].mxu1  ;;  %v4663_v19 = vmul.f32 0.95, %v4599_v37  ;;  %v4610_v37 = vld [vmem:[#allocation3 + $0x78] sm:$0xff] }
 0x38f   : > { %v4395_v44 = vpop.f32.mrb[157].mxu1 }
 0x390   : > { %v9257_v45 = vpop.f32.mrb[158].mxu1 }
 0x391   : > { %v4417_v46 = vpack.c.bf16 %v9257_v45, %v9256_v43  ;;  %v4398_v48 = vpop.f32.mrb[159].mxu1  ;;  %v4603_v43 = vld [vmem:[#allocation3 + $0x40] sm:$0xff] }
 0x392   : > { %v4416_v49 = vpack.c.bf16 %v4398_v48, %v4395_v44  ;;  %v4606_v44 = vld [vmem:[#allocation3 + $0x58] sm:$0xff]  ;;  %v7680_v48 = vsel %vm4616_vm8, 1.0, %v10256_v6  ;;  %v4667_v55 = vmul.f32 0.95, %v4603_v43  ;;  %vm4619_vm2 = vcmp.gt.f32.partialorder %v4603_v43, 1.0 }
 0x393   : > { %v4670_v5 = vmul.f32 0.95, %v4606_v44  ;;  %vm4623_vm8 = vcmp.gt.f32.partialorder %v4607_v10, 1.0 }
 0x395   : > { %9223 = vmatmul.mubr.msk.bf16.gmra.mrb[60].mxu0 %vm959_vm4, %v4093_v17 }
 0x396   : > { %9262 = vmatprep.mubr.msk.bf16.mxu0 %vm959_vm4, %v4410_v26 }
 0x39d   : > { %9263 = vmatmul.mubr.msk.bf16.vlgmr.msra.gmra.mrb[48].mxu0 %vm959_vm4, %v4411_v24  ;;  %v7681_v24 = vsel %vm4617_vm12, 1.0, %v10256_v6  ;;  %vm4622_vm12 = vcmp.gt.f32.partialorder %v4606_v44, 1.0 }
 0x39e   : > { %9266 = vmatprep.mubr.msk.bf16.mxu0 %vm959_vm4, %v4412_v33  ;;  %9331 = vmatpush3.bf16.msra.mxu0 %v10119_v50  ;;  %v7679_v33 = vsel %vm4615_vm13, 1.0, %v10256_v6 }
 0x39f   : > { %9332 = vmatprep.subr.bf16.mxu0 %v10256_v6 }
 0x3a2   : > { %9333 = vmatpush3.bf16.msra.mxu0 %v10120_v51 }
 0x3a3   : > { %9334 = vmatprep.subr.bf16.mxu0 %v10256_v6 }
 0x3a5   : > { %9267 = vmatmul.mubr.msk.bf16.gmra.mrb[52].mxu0 %vm959_vm4, %v4413_v31  ;;  %v10179_v31 = vld [vmem:[%s12813_s6 + $0x1e0] sm:$0xff]  }
 0x3a6   : > { %9270 = vmatprep.mubr.msk.bf16.mxu0 %vm959_vm4, %v4414_v42  ;;  %9335 = vmatpush3.bf16.msra.mxu0 %v10121_v53  ;;  %v4605_v42 = vld [vmem:[#allocation3 + $0x50] sm:$0xff] }
 0x3a7   : > { %9336 = vmatprep.subr.bf16.mxu0 %v10256_v6 }
 0x3ad   : > { %9271 = vmatmul.mubr.msk.bf16.gmra.mrb[56].mxu0 %vm959_vm4, %v4415_v40  ;;  %v7682_v40 = vsel %vm4618_vm1, 1.0, %v10256_v6 }
 0x3ae   : > { %9274 = vmatprep.mubr.msk.bf16.mxu0 %vm959_vm4, %v4416_v49  ;;  %v4604_v49 = vld [vmem:[#allocation3 + $0x48] sm:$0xff] }
 0x3af   : > { %vm4620_vm1 = vcmp.gt.f32.partialorder %v4604_v49, 1.0 }
 0x3b5   : > { %9275 = vmatmul.mubr.msk.bf16.gmra.mrb[60].mxu0 %vm959_vm4, %v4417_v46  ;;  %vm4613_vm4 = vcmp.gt.f32.partialorder %v4597_v54, 1.0  ;;  %v4669_v54 = vmul.f32 0.95, %v4605_v42 }
 0x3b6   : > { %9338 = vmatprep.mubr.msk.bf16.mxu0 %vm10258_vm15, %v10256_v6  ;;  %v7677_v62 = vsel %vm4613_vm4, 1.0, %v10256_v6  ;;  %vm4621_vm4 = vcmp.gt.f32.partialorder %v4605_v42, 1.0 }
 0x470   : > { %v9264_v57 = vpop.f32.mrb[48].mxu0 }
 0x471   : > { %v4581_v60 = vadd.f32 %v9264_v57, %v11732_v56  ;;  %v4493_v58 = vpop.f32.mrb[49].mxu0  ;;  %v7685_v57 = vsel %vm4621_vm4, 1.0, %v10256_v6 }
 0x472   : > { %v4579_v0 = vadd.f32 %v11732_v56, %v4493_v58  ;;  %v9265_v1 = vpop.f32.mrb[50].mxu0 }
 0x473   : > { %v4677_v20 = vadd.f32 %v4661_v21, %v4581_v60  ;;  %v4582_v3 = vadd.f32 %v9265_v1, %v11732_v56  ;;  %v4496_v63 = vpop.f32.mrb[51].mxu0  ;;  %v10181_v1 = vld [vmem:[%s12813_s6 + $0x1f0] sm:$0xff]  }
 0x474   : > { %v4675_v4 = vadd.f32 %v4659_v59, %v4579_v0  ;;  %v4580_v9 = vadd.f32 %v11732_v56, %v4496_v63  ;;  %v4668_v59 = vmul.f32 0.95, %v4604_v49 }
 0x475   : > { %v4693_v12 = vsub.f32 %v4677_v20, %v7677_v62  ;;  %v4678_v14 = vadd.f32 %v4662_v61, %v4582_v3  ;;  %v7683_v20 = vsel %vm4619_vm2, 1.0, %v10256_v6  ;;  %v10180_v61 = vld [vmem:[%s12813_s6 + $0x1e8] sm:$0xff]  }
 0x476   : > { %v4691_v15 = vsub.f32 %v4675_v4, %v7675_v52  ;;  %v4676_v16 = vadd.f32 %v4660_v2, %v4580_v9  ;;  %v7686_v4 = vsel %vm4622_vm12, 1.0, %v10256_v6  ;;  %v4609_v9 = vld [vmem:[#allocation3 + $0x70] sm:$0xff] }
 0x477   : > { %4710 = vst.msk [vmem:[#allocation3 + $0x10] sm:$0xff] %vm4707_vm11, %v4693_v12  ;;  %v4694_v17 = vsub.f32 %v4678_v14, %v7678_v7  ;;  %vm4726_vm14 = vcmp.gt.f32.partialorder %v4693_v12, 1.0  ;;  %v7684_v14 = vsel %vm4620_vm1, 1.0, %v10256_v6 }
 0x478   : > { %4708 = vst.msk [vmem:[#allocation3] sm:$0xff] %vm4707_vm11, %v4691_v15  ;;  %v4692_v47 = vsub.f32 %v4676_v16, %v7676_v8  ;;  %v9268_v23 = vpop.f32.mrb[52].mxu0  ;;  %vm4724_vm3 = vcmp.gt.f32.partialorder %v4691_v15, 1.0  ;;  %v4608_v8 = vld [vmem:[#allocation3 + $0x68] sm:$0xff] }
 0x479   : > { %4711 = vst.msk [vmem:[#allocation3 + $0x18] sm:$0xff] %vm4707_vm11, %v4694_v17  ;;  %vm4727_vm0 = vcmp.gt.f32.partialorder %v4694_v17, 1.0  ;;  %v4585_v26 = vadd.f32 %v9268_v23, %v11732_v56  ;;  %v4509_v27 = vpop.f32.mrb[53].mxu0  ;;  %v4673_v17 = vmul.f32 0.95, %v4609_v9 }
 0x47a   : > { %vm11747_vm5 = vmpackc.low %vm4727_vm0, %vm4726_vm14  ;;  %4709 = vst.msk [vmem:[#allocation3 + $0x8] sm:$0xff] %vm4707_vm11, %v4692_v47  ;;  %vm4725_vm7 = vcmp.gt.f32.partialorder %v4692_v47, 1.0  ;;  %v4583_v29 = vadd.f32 %v11732_v56, %v4509_v27  ;;  %v9269_v30 = vpop.f32.mrb[54].mxu0  ;;  %v10182_v27 = vld [vmem:[%s12813_s6 + $0x1f8] sm:$0xff]  }
 0x47b   : > { %vm11753_vm10 = vmpackc.low %vm4725_vm7, %vm4724_vm3  ;;  %v4681_v32 = vadd.f32 %v4665_v18, %v4585_v26  ;;  %v4586_v34 = vadd.f32 %v9269_v30, %v11732_v56  ;;  %v4512_v35 = vpop.f32.mrb[55].mxu0  ;;  %vm4625_vm7 = vcmp.gt.f32.partialorder %v4609_v9, 1.0  ;;  %v4671_v18 = vmul.f32 0.95, %v4607_v10  ;;  %v7760_v9 = vld [vmem:[%s12812_s5 + $0x2] sm:$0x1] }
 0x47c   : > { %v4679_v39 = vadd.f32 %v4663_v19, %v4583_v29  ;;  %v4584_v41 = vadd.f32 %v11732_v56, %v4512_v35  ;;  %9279 = vmatpush3.bf16.msk.msra.mxu1 %vm11753_vm10, %v10257_v38  ;;  %v4674_v19 = vmul.f32 0.95, %v4610_v37  ;;  %v7689_v23 = vsel %vm4625_vm7, 1.0, %v10256_v6  ;;  %v10127_v10 = vld [vmem:[%s12813_s6 + $0x40] sm:$0xff]  }
 0x47d   : > { %v4697_v45 = vsub.f32 %v4681_v32, %v7681_v24  ;;  %v4682_v46 = vadd.f32 %v4666_v22, %v4586_v34  ;;  %9280 = vmatprep.subr.bf16.mxu1 %v10256_v6  ;;  %v4672_v24 = vmul.f32 0.95, %v4608_v8  ;;  %v7687_v34 = vsel %vm4623_vm8, 1.0, %v10256_v6 }
 0x47e   : > { %v4695_v50 = vsub.f32 %v4679_v39, %v7679_v33  ;;  %v4680_v51 = vadd.f32 %v4664_v25, %v4584_v41 }
 0x47f   : > { %4714 = vst.msk [vmem:[#allocation3 + $0x30] sm:$0xff] %vm4707_vm11, %v4697_v45  ;;  %v4698_v53 = vsub.f32 %v4682_v46, %v7682_v40  ;;  %vm4730_vm6 = vcmp.gt.f32.partialorder %v4697_v45, 1.0 }
 0x480   : > { %4712 = vst.msk [vmem:[#allocation3 + $0x20] sm:$0xff] %vm4707_vm11, %v4695_v50  ;;  %v4696_v21 = vsub.f32 %v4680_v51, %v7680_v48  ;;  %v9272_v36 = vpop.f32.mrb[56].mxu0  ;;  %9281 = vmatpush3.bf16.msk.msra.mxu1 %vm11747_vm5, %v10257_v38  ;;  %vm4728_vm13 = vcmp.gt.f32.partialorder %v4695_v50, 1.0 }
 0x481   : > { %4715 = vst.msk [vmem:[#allocation3 + $0x38] sm:$0xff] %vm4707_vm11, %v4698_v53  ;;  %vm4731_vm9 = vcmp.gt.f32.partialorder %v4698_v53, 1.0  ;;  %v4589_v60 = vadd.f32 %v9272_v36, %v11732_v56  ;;  %v4525_v58 = vpop.f32.mrb[57].mxu0  ;;  %9282 = vmatprep.subr.bf16.mxu1 %v10256_v6  ;;  %v4780_v53 = vld [vmem:[%s12812_s5] sm:$0x1]  ;;  %v10125_v36 = vld [vmem:[%s12813_s6 + $0x30] sm:$0xff]  }
 0x482   : > { %vm11776_vm14 = vmpackc.low %vm4731_vm9, %vm4730_vm6  ;;  %4713 = vst.msk [vmem:[#allocation3 + $0x28] sm:$0xff] %vm4707_vm11, %v4696_v21  ;;  %vm4729_vm0 = vcmp.gt.f32.partialorder %v4696_v21, 1.0  ;;  %v4587_v62 = vadd.f32 %v11732_v56, %v4525_v58  ;;  %v9273_v0 = vpop.f32.mrb[58].mxu0  ;;  %vm4626_vm6 = vcmp.gt.f32.partialorder %v4610_v37, 1.0  ;;  %v10124_v21 = vld [vmem:[%s12813_s6 + $0x28] sm:$0xff]  }
 0x483   : > { %vm11782_vm3 = vmpackc.low %vm4729_vm0, %vm4728_vm13  ;;  %v4685_v2 = vadd.f32 %v4669_v54, %v4589_v60  ;;  %v4590_v52 = vadd.f32 %v9273_v0, %v11732_v56  ;;  %v4528_v3 = vpop.f32.mrb[59].mxu0  ;;  %vm4624_vm0 = vcmp.gt.f32.partialorder %v4608_v8, 1.0  ;;  %v7690_v41 = vsel %vm4626_vm6, 1.0, %v10256_v6  ;;  %v7724_v54 = vld [vmem:[%s12812_s5 + $0x1] sm:$0x1]  ;;  %v10128_v37 = vld [vmem:[%s12813_s6 + $0x48] sm:$0xff]  }
 0x484   : > { %v4683_v63 = vadd.f32 %v4667_v55, %v4587_v62  ;;  %v4588_v7 = vadd.f32 %v11732_v56, %v4528_v3  ;;  %9283 = vmatpush3.bf16.msk.msra.mxu1 %vm11782_vm3, %v10257_v38  ;;  %v7688_v45 = vsel %vm4624_vm0, 1.0, %v10256_v6  ;;  %v10122_v55 = vld [vmem:[%s12813_s6 + $0x18] sm:$0xff]  }
 0x485   : > { %v4701_v11 = vsub.f32 %v4685_v2, %v7685_v57  ;;  %v4686_v12 = vadd.f32 %v4670_v5, %v4590_v52  ;;  %9284 = vmatprep.subr.bf16.mxu1 %v10256_v6  ;;  %9337 = vmatpush3.bf16.msra.mxu0 %v10122_v55  ;;  %v10123_v5 = vld [vmem:[%s12813_s6 + $0x20] sm:$0xff]   ;;  %v10126_v57 = vld [vmem:[%s12813_s6 + $0x38] sm:$0xff]  }
 0x486   : > { %v4699_v13 = vsub.f32 %v4683_v63, %v7683_v20  ;;  %v4684_v15 = vadd.f32 %v4668_v59, %v4588_v7  ;;  %9362 = vmatprep.subr.bf16.mxu0 %v10256_v6  ;;  %v10135_v55 = vld [vmem:[%s12813_s6 + $0x80] sm:$0xff]  }
 0x487   : > { %4718 = vst.msk [vmem:[#allocation3 + $0x50] sm:$0xff] %vm4707_vm11, %v4701_v11  ;;  %v4702_v16 = vsub.f32 %v4686_v12, %v7686_v4  ;;  %vm4734_vm4 = vcmp.gt.f32.partialorder %v4701_v11, 1.0  ;;  %v10129_v11 = vld [vmem:[%s12813_s6 + $0x50] sm:$0xff]   ;;  %v10130_v12 = vld [vmem:[%s12813_s6 + $0x58] sm:$0xff]  }
 0x488   : > { %4716 = vst.msk [vmem:[#allocation3 + $0x40] sm:$0xff] %vm4707_vm11, %v4699_v13  ;;  %v4700_v22 = vsub.f32 %v4684_v15, %v7684_v14  ;;  %v9276_v47 = vpop.f32.mrb[60].mxu0  ;;  %9285 = vmatpush3.bf16.msk.msra.mxu1 %vm11776_vm14, %v10257_v38  ;;  %vm4732_vm9 = vcmp.gt.f32.partialorder %v4699_v13, 1.0 }
 0x489   : > { %4719 = vst.msk [vmem:[#allocation3 + $0x58] sm:$0xff] %vm4707_vm11, %v4702_v16  ;;  %vm4735_vm2 = vcmp.gt.f32.partialorder %v4702_v16, 1.0  ;;  %v4593_v25 = vadd.f32 %v9276_v47, %v11732_v56  ;;  %v4541_v26 = vpop.f32.mrb[61].mxu0  ;;  %9286 = vmatprep.subr.bf16.mxu1 %v10256_v6 }
 0x48a   : > { %vm11805_vm12 = vmpackc.low %vm4735_vm2, %vm4734_vm4  ;;  %4717 = vst.msk [vmem:[#allocation3 + $0x48] sm:$0xff] %vm4707_vm11, %v4700_v22  ;;  %vm4733_vm13 = vcmp.gt.f32.partialorder %v4700_v22, 1.0  ;;  %v4591_v29 = vadd.f32 %v11732_v56, %v4541_v26  ;;  %v9277_v30 = vpop.f32.mrb[62].mxu0 }
 0x48b   : > { %vm11811_vm1 = vmpackc.low %vm4733_vm13, %vm4732_vm9  ;;  %v4689_v33 = vadd.f32 %v4673_v17, %v4593_v25  ;;  %v4594_v35 = vadd.f32 %v9277_v30, %v11732_v56  ;;  %v4544_v39 = vpop.f32.mrb[63].mxu0  ;;  %v7791_v30 = vld [vmem:[%s12812_s5 + $0x3] sm:$0x1] }
 0x48c   : > { %v4687_v40 = vadd.f32 %v4671_v18, %v4591_v29  ;;  %v4592_v42 = vadd.f32 %v11732_v56, %v4544_v39  ;;  %9287 = vmatpush3.bf16.msk.msra.mxu1 %vm11811_vm1, %v10257_v38  ;;  %v10134_v39 = vld [vmem:[%s12813_s6 + $0x78] sm:$0xff]  }
 0x48d   : > { %v4705_v43 = vsub.f32 %v4689_v33, %v7689_v23  ;;  %v4690_v44 = vadd.f32 %v4674_v19, %v4594_v35  ;;  %9288 = vmatprep.subr.bf16.mxu1 %v10256_v6  ;;  %v10131_v33 = vld [vmem:[%s12813_s6 + $0x60] sm:$0xff]   ;;  %v10133_v35 = vld [vmem:[%s12813_s6 + $0x70] sm:$0xff]  }
 0x48e   : > { %v4703_v46 = vsub.f32 %v4687_v40, %v7687_v34  ;;  %v4688_v48 = vadd.f32 %v4672_v24, %v4592_v42  ;;  %v10132_v34 = vld [vmem:[%s12813_s6 + $0x68] sm:$0xff]  }
 0x48f   : > { %4722 = vst.msk [vmem:[#allocation3 + $0x70] sm:$0xff] %vm4707_vm11, %v4705_v43  ;;  %v4706_v49 = vsub.f32 %v4690_v44, %v7690_v41  ;;  %vm4738_vm7 = vcmp.gt.f32.partialorder %v4705_v43, 1.0 }
 0x490   : > { %4720 = vst.msk [vmem:[#allocation3 + $0x60] sm:$0xff] %vm4707_vm11, %v4703_v46  ;;  %v4704_v50 = vsub.f32 %v4688_v48, %v7688_v45  ;;  %9289 = vmatpush3.bf16.msk.msra.mxu1 %vm11805_vm12, %v10257_v38  ;;  %vm4736_vm4 = vcmp.gt.f32.partialorder %v4703_v46, 1.0 }
 0x491   : > { %4723 = vst.msk [vmem:[#allocation3 + $0x78] sm:$0xff] %vm4707_vm11, %v4706_v49  ;;  %vm4739_vm8 = vcmp.gt.f32.partialorder %v4706_v49, 1.0  ;;  %9290 = vmatprep.subr.bf16.mxu1 %v10256_v6 }
 0x492   : > { %vm11832_vm2 = vmpackc.low %vm4739_vm8, %vm4738_vm7  ;;  %4721 = vst.msk [vmem:[#allocation3 + $0x68] sm:$0xff] %vm4707_vm11, %v4704_v50  ;;  %vm4737_vm6 = vcmp.gt.f32.partialorder %v4704_v50, 1.0 }
 0x493   : > { %vm11837_vm9 = vmpackc.low %vm4737_vm6, %vm4736_vm4 }
 0x494   : > { %9291 = vmatpush3.bf16.msk.msra.mxu1 %vm11837_vm9, %v10257_v38 }
 0x495   : > { %9292 = vmatprep.subr.bf16.mxu1 %v10256_v6 }
 0x498   : > { %9293 = vmatpush3.bf16.msk.msra.mxu1 %vm11832_vm2, %v10257_v38 }
 0x499   : > { %9298 = vmatprep.subr.bf16.mxu1 %v10256_v6 }
 0x49b   : > { %9295 = vmatmul.mubr.bf16.vlgmr.msra.gmra.mrb[160].mxu1 %v4780_v53 }
 0x49c   : > { %9299 = vmatpush3.bf16.msk.msra.mxu1 %vm11753_vm10, %v10257_v38  ;;  %9314 = vmatprep.mubr.msk.bf16.mxu1 %vm10258_vm15, %v10256_v6 }
 0x49d   : > { %9300 = vmatprep.subr.bf16.mxu1 %v10256_v6 }
 0x4a0   : > { %9301 = vmatpush3.bf16.msk.msra.mxu1 %vm11747_vm5, %v10257_v38 }
 0x4a1   : > { %9302 = vmatprep.subr.bf16.mxu1 %v10256_v6 }
 0x4a4   : > { %9303 = vmatpush3.bf16.msk.msra.mxu1 %vm11782_vm3, %v10257_v38 }
 0x4a5   : > { %9304 = vmatprep.subr.bf16.mxu1 %v10256_v6 }
 0x4a8   : > { %9305 = vmatpush3.bf16.msk.msra.mxu1 %vm11776_vm14, %v10257_v38 }
 0x4a9   : > { %9306 = vmatprep.subr.bf16.mxu1 %v10256_v6 }
 0x4ac   : > { %9307 = vmatpush3.bf16.msk.msra.mxu1 %vm11811_vm1, %v10257_v38 }
 0x4ad   : > { %9308 = vmatprep.subr.bf16.mxu1 %v10256_v6 }
 0x4b0   : > { %9309 = vmatpush3.bf16.msk.msra.mxu1 %vm11805_vm12, %v10257_v38 }
 0x4b1   : > { %9310 = vmatprep.subr.bf16.mxu1 %v10256_v6 }
 0x4b4   : > { %9311 = vmatpush3.bf16.msk.msra.mxu1 %vm11837_vm9, %v10257_v38 }
 0x4b5   : > { %9312 = vmatprep.subr.bf16.mxu1 %v10256_v6 }
 0x4b8   : > { %9313 = vmatpush3.bf16.msk.msra.mxu1 %vm11832_vm2, %v10257_v38 }
 0x4b9   : > { %9318 = vmatprep.subr.bf16.mxu1 %v10256_v6 }
 0x4bb   : > { %9315 = vmatmul.mubr.bf16.vlgmr.msra.gmra.mrb[164].mxu1 %v7724_v54  ;;  %v7822_v54 = vld [vmem:[%s12812_s5 + $0x4] sm:$0x1] }
 0x4bc   : > { %9326 = vmatprep.mubr.msk.bf16.mxu1 %vm10258_vm15, %v10256_v6  ;;  %9319 = vmatpush3.bf16.msra.mxu1 %v10123_v5  ;;  %v10136_v5 = vld [vmem:[%s12813_s6 + $0x88] sm:$0xff]  }
 0x4bd   : > { %9320 = vmatprep.subr.bf16.mxu1 %v10256_v6 }
 0x4c0   : > { %9321 = vmatpush3.bf16.msra.mxu1 %v10124_v21  ;;  %v10137_v21 = vld [vmem:[%s12813_s6 + $0x90] sm:$0xff]  }
 0x4c1   : > { %9322 = vmatprep.subr.bf16.mxu1 %v10256_v6 }
 0x4c4   : > { %9323 = vmatpush3.bf16.msra.mxu1 %v10125_v36  ;;  %v10138_v36 = vld [vmem:[%s12813_s6 + $0x98] sm:$0xff]  }
 0x4c5   : > { %9324 = vmatprep.subr.bf16.mxu1 %v10256_v6 }
 0x4c8   : > { %9325 = vmatpush3.bf16.msra.mxu1 %v10126_v57 }
 0x4c9   : > { %9342 = vmatprep.subr.bf16.mxu1 %v10256_v6 }
 0x56e   : > { %v4815_v59 = vpop.f32.mrb[160].mxu1 }
 0x56f   : > { %vm4821_vm13 = vcmp.gt.f32.partialorder %v4815_v59, 0.5  ;;  %v9296_v60 = vpop.f32.mrb[161].mxu1 }
 0x570   : > { %v7723_v58 = vsel %vm4821_vm13, 1.0, %v10256_v6  ;;  %v4818_v62 = vpop.f32.mrb[162].mxu1 }
 0x571   : > { %v4824_v0 = vpack.c.bf16 %v7723_v58, %v7723_v58  ;;  %v9297_v2 = vpop.f32.mrb[163].mxu1 }
 0x573   : > { %9339 = vmatmul.mubr.msk.bf16.vlgmr.msra.gmra.mrb[64].mxu0 %vm4707_vm11, %v4824_v0 }
 0x574   : > { %9370 = vmatprep.mubr.msk.bf16.mxu0 %vm10258_vm15, %v10256_v6  ;;  %9363 = vmatpush3.bf16.msra.mxu0 %v10127_v10  ;;  %v10141_v10 = vld [vmem:[%s12813_s6 + $0xb0] sm:$0xff]  }
 0x575   : > { %9364 = vmatprep.subr.bf16.mxu0 %v10256_v6 }
 0x578   : > { %9365 = vmatpush3.bf16.msra.mxu0 %v10128_v37  ;;  %v10142_v37 = vld [vmem:[%s12813_s6 + $0xb8] sm:$0xff]  }
 0x579   : > { %9366 = vmatprep.subr.bf16.mxu0 %v10256_v6 }
 0x57c   : > { %9367 = vmatpush3.bf16.msra.mxu0 %v10129_v11 }
 0x57d   : > { %9368 = vmatprep.subr.bf16.mxu0 %v10256_v6 }
 0x580   : > { %9369 = vmatpush3.bf16.msra.mxu0 %v10130_v12 }
 0x581   : > { %9374 = vmatprep.subr.bf16.mxu0 %v10256_v6 }
 0x58e   : > { %v4869_v20 = vpop.f32.mrb[164].mxu1 }
 0x58f   : > { %vm4875_vm0 = vcmp.gt.f32.partialorder %v4869_v20, 0.5  ;;  %v9316_v52 = vpop.f32.mrb[165].mxu1 }
 0x590   : > { %v7741_v3 = vsel %vm4875_vm0, 1.0, %v10256_v6  ;;  %v4872_v63 = vpop.f32.mrb[166].mxu1 }
 0x591   : > { %v4878_v4 = vpack.c.bf16 %v7741_v3, %v7741_v3  ;;  %v9317_v7 = vpop.f32.mrb[167].mxu1 }
 0x592   : > { %v10139_v7 = vld [vmem:[%s12813_s6 + $0xa0] sm:$0xff]  }
 0x593   : > { %9327 = vmatmul.mubr.msk.bf16.vlgmr.msra.gmra.mrb[168].mxu1 %vm4707_vm11, %v4878_v4  ;;  %v7853_v4 = vld [vmem:[%s12812_s5 + $0x5] sm:$0x1] }
 0x594   : > { %9343 = vmatpush3.bf16.msk.msra.mxu1 %vm11753_vm10, %v10257_v38  ;;  %9358 = vmatprep.mubr.msk.bf16.mxu1 %vm10258_vm15, %v10256_v6 }
 0x595   : > { %9344 = vmatprep.subr.bf16.mxu1 %v10256_v6 }
 0x598   : > { %9345 = vmatpush3.bf16.msk.msra.mxu1 %vm11747_vm5, %v10257_v38 }
 0x599   : > { %9346 = vmatprep.subr.bf16.mxu1 %v10256_v6 }
 0x59c   : > { %9347 = vmatpush3.bf16.msk.msra.mxu1 %vm11782_vm3, %v10257_v38 }
 0x59d   : > { %9348 = vmatprep.subr.bf16.mxu1 %v10256_v6 }
 0x5a0   : > { %9349 = vmatpush3.bf16.msk.msra.mxu1 %vm11776_vm14, %v10257_v38 }
 0x5a1   : > { %9350 = vmatprep.subr.bf16.mxu1 %v10256_v6 }
 0x5a4   : > { %9351 = vmatpush3.bf16.msk.msra.mxu1 %vm11811_vm1, %v10257_v38 }
 0x5a5   : > { %9352 = vmatprep.subr.bf16.mxu1 %v10256_v6 }
 0x5a8   : > { %9353 = vmatpush3.bf16.msk.msra.mxu1 %vm11805_vm12, %v10257_v38 }
 0x5a9   : > { %9354 = vmatprep.subr.bf16.mxu1 %v10256_v6 }
 0x5ac   : > { %9355 = vmatpush3.bf16.msk.msra.mxu1 %vm11837_vm9, %v10257_v38 }
 0x5ad   : > { %9356 = vmatprep.subr.bf16.mxu1 %v10256_v6 }
 0x5b0   : > { %9357 = vmatpush3.bf16.msk.msra.mxu1 %vm11832_vm2, %v10257_v38 }
 0x5b1   : > { %9394 = vmatprep.subr.bf16.mxu1 %v10256_v6 }
 0x5b3   : > { %9359 = vmatmul.mubr.bf16.vlgmr.msra.gmra.mrb[172].mxu1 %v7760_v9  ;;  %v10140_v9 = vld [vmem:[%s12813_s6 + $0xa8] sm:$0xff]  }
 0x5b4   : > { %9402 = vmatprep.mubr.msk.bf16.mxu1 %vm10258_vm15, %v10256_v6  ;;  %9395 = vmatpush3.bf16.msra.mxu1 %v10131_v33 }
 0x5b5   : > { %9396 = vmatprep.subr.bf16.mxu1 %v10256_v6 }
 0x5b8   : > { %9397 = vmatpush3.bf16.msra.mxu1 %v10132_v34 }
 0x5b9   : > { %9398 = vmatprep.subr.bf16.mxu1 %v10256_v6 }
 0x5bc   : > { %9399 = vmatpush3.bf16.msra.mxu1 %v10133_v35 }
 0x5bd   : > { %9400 = vmatprep.subr.bf16.mxu1 %v10256_v6 }
 0x5c0   : > { %9401 = vmatpush3.bf16.msra.mxu1 %v10134_v39 }
 0x5c1   : > { %9406 = vmatprep.subr.bf16.mxu1 %v10256_v6 }
 0x646   : > { %v5016_v14 = vpop.f32.mrb[64].mxu0 }
 0x647   : > { %v9340_v8 = vpop.f32.mrb[65].mxu0 }
 0x648   : > { %v5019_v13 = vpop.f32.mrb[66].mxu0 }
 0x649   : > { %v9341_v15 = vpop.f32.mrb[67].mxu0 }
 0x666   : > { %v4949_v16 = vpop.f32.mrb[168].mxu1 }
 0x667   : > { %v5017_v17 = vadd.f32 %v5016_v14, %v4949_v16  ;;  %v9328_v18 = vpop.f32.mrb[169].mxu1 }
 0x668   : > { %v4952_v19 = vpop.f32.mrb[170].mxu1 }
 0x669   : > { %v9329_v22 = vpop.f32.mrb[171].mxu1 }
 0x686   : > { %v5058_v47 = vpop.f32.mrb[172].mxu1 }
 0x687   : > { %vm5064_vm7 = vcmp.gt.f32.partialorder %v5058_v47, 0.5  ;;  %v9360_v23 = vpop.f32.mrb[173].mxu1  ;;  %v7884_v47 = vld [vmem:[%s12812_s5 + $0x6] sm:$0x1] }
 0x688   : > { %v7777_v24 = vsel %vm5064_vm7, 1.0, %v10256_v6  ;;  %v5061_v25 = vpop.f32.mrb[174].mxu1  ;;  %v10143_v23 = vld [vmem:[%s12813_s6 + $0xc0] sm:$0xff]  }
 0x689   : > { %v5067_v26 = vpack.c.bf16 %v7777_v24, %v7777_v24  ;;  %v9361_v29 = vpop.f32.mrb[175].mxu1  ;;  %v10144_v24 = vld [vmem:[%s12813_s6 + $0xc8] sm:$0xff]   ;;  %v10145_v25 = vld [vmem:[%s12813_s6 + $0xd0] sm:$0xff]  }
 0x68b   : > { %9371 = vmatmul.mubr.msk.bf16.vlgmr.msra.gmra.mrb[68].mxu0 %vm4707_vm11, %v5067_v26  ;;  %v10146_v26 = vld [vmem:[%s12813_s6 + $0xd8] sm:$0xff]  }
 0x68c   : > { %9375 = vmatpush3.bf16.msk.msra.mxu0 %vm11753_vm10, %v10257_v38  ;;  %9390 = vmatprep.mubr.msk.bf16.mxu0 %vm10258_vm15, %v10256_v6 }
 0x68d   : > { %9376 = vmatprep.subr.bf16.mxu0 %v10256_v6 }
 0x690   : > { %9377 = vmatpush3.bf16.msk.msra.mxu0 %vm11747_vm5, %v10257_v38 }
 0x691   : > { %9378 = vmatprep.subr.bf16.mxu0 %v10256_v6 }
 0x694   : > { %9379 = vmatpush3.bf16.msk.msra.mxu0 %vm11782_vm3, %v10257_v38 }
 0x695   : > { %9380 = vmatprep.subr.bf16.mxu0 %v10256_v6 }
 0x698   : > { %9381 = vmatpush3.bf16.msk.msra.mxu0 %vm11776_vm14, %v10257_v38 }
 0x699   : > { %9382 = vmatprep.subr.bf16.mxu0 %v10256_v6 }
 0x69c   : > { %9383 = vmatpush3.bf16.msk.msra.mxu0 %vm11811_vm1, %v10257_v38 }
 0x69d   : > { %9384 = vmatprep.subr.bf16.mxu0 %v10256_v6 }
 0x6a0   : > { %9385 = vmatpush3.bf16.msk.msra.mxu0 %vm11805_vm12, %v10257_v38 }
 0x6a1   : > { %9386 = vmatprep.subr.bf16.mxu0 %v10256_v6 }
 0x6a4   : > { %9387 = vmatpush3.bf16.msk.msra.mxu0 %vm11837_vm9, %v10257_v38 }
 0x6a5   : > { %9388 = vmatprep.subr.bf16.mxu0 %v10256_v6 }
 0x6a8   : > { %9389 = vmatpush3.bf16.msk.msra.mxu0 %vm11832_vm2, %v10257_v38 }
 0x6a9   : > { %9426 = vmatprep.subr.bf16.mxu0 %v10256_v6 }
 0x6ab   : > { %9391 = vmatmul.mubr.bf16.vlgmr.msra.gmra.mrb[72].mxu0 %v7791_v30 }
 0x6ac   : > { %9434 = vmatprep.mubr.msk.bf16.mxu0 %vm10258_vm15, %v10256_v6  ;;  %9427 = vmatpush3.bf16.msra.mxu0 %v10135_v55 }
 0x6ad   : > { %9428 = vmatprep.subr.bf16.mxu0 %v10256_v6 }
 0x6b0   : > { %9429 = vmatpush3.bf16.msra.mxu0 %v10136_v5 }
 0x6b1   : > { %9430 = vmatprep.subr.bf16.mxu0 %v10256_v6 }
 0x6b4   : > { %9431 = vmatpush3.bf16.msra.mxu0 %v10137_v21 }
 0x6b5   : > { %9432 = vmatprep.subr.bf16.mxu0 %v10256_v6 }
 0x6b8   : > { %9433 = vmatpush3.bf16.msra.mxu0 %v10138_v36 }
 0x6b9   : > { %9438 = vmatprep.subr.bf16.mxu0 %v10256_v6 }
 0x75e   : > { %v5138_v40 = vpop.f32.mrb[68].mxu0 }
 0x75f   : > { %v5144_v41 = vadd.f32 %v5138_v40, %v5017_v17  ;;  %v9372_v42 = vpop.f32.mrb[69].mxu0 }
 0x760   : > { %v5141_v43 = vpop.f32.mrb[70].mxu0 }
 0x761   : > { %v9373_v44 = vpop.f32.mrb[71].mxu0 }
 0x77e   : > { %v5181_v45 = vpop.f32.mrb[72].mxu0 }
 0x77f   : > { %vm5187_vm8 = vcmp.gt.f32.partialorder %v5181_v45, 0.5  ;;  %v9392_v46 = vpop.f32.mrb[73].mxu0  ;;  %v7915_v45 = vld [vmem:[%s12812_s5 + $0x7] sm:$0x1] }
 0x780   : > { %v7808_v48 = vsel %vm5187_vm8, 1.0, %v10256_v6  ;;  %v5184_v49 = vpop.f32.mrb[74].mxu0  ;;  %v10147_v46 = vld [vmem:[%s12813_s6 + $0xe0] sm:$0xff]  }
 0x781   : > { %v5190_v50 = vpack.c.bf16 %v7808_v48, %v7808_v48  ;;  %v9393_v53 = vpop.f32.mrb[75].mxu0  ;;  %v10148_v48 = vld [vmem:[%s12813_s6 + $0xe8] sm:$0xff]   ;;  %v10149_v49 = vld [vmem:[%s12813_s6 + $0xf0] sm:$0xff]  }
 0x783   : > { %9403 = vmatmul.mubr.msk.bf16.vlgmr.msra.gmra.mrb[176].mxu1 %vm4707_vm11, %v5190_v50  ;;  %v10150_v50 = vld [vmem:[%s12813_s6 + $0xf8] sm:$0xff]  }
 0x784   : > { %9407 = vmatpush3.bf16.msk.msra.mxu1 %vm11753_vm10, %v10257_v38  ;;  %9422 = vmatprep.mubr.msk.bf16.mxu1 %vm10258_vm15, %v10256_v6 }
 0x785   : > { %9408 = vmatprep.subr.bf16.mxu1 %v10256_v6 }
 0x788   : > { %9409 = vmatpush3.bf16.msk.msra.mxu1 %vm11747_vm5, %v10257_v38 }
 0x789   : > { %9410 = vmatprep.subr.bf16.mxu1 %v10256_v6 }
 0x78c   : > { %9411 = vmatpush3.bf16.msk.msra.mxu1 %vm11782_vm3, %v10257_v38 }
 0x78d   : > { %9412 = vmatprep.subr.bf16.mxu1 %v10256_v6 }
 0x790   : > { %9413 = vmatpush3.bf16.msk.msra.mxu1 %vm11776_vm14, %v10257_v38 }
 0x791   : > { %9414 = vmatprep.subr.bf16.mxu1 %v10256_v6 }
 0x794   : > { %9415 = vmatpush3.bf16.msk.msra.mxu1 %vm11811_vm1, %v10257_v38 }
 0x795   : > { %9416 = vmatprep.subr.bf16.mxu1 %v10256_v6 }
 0x798   : > { %9417 = vmatpush3.bf16.msk.msra.mxu1 %vm11805_vm12, %v10257_v38 }
 0x799   : > { %9418 = vmatprep.subr.bf16.mxu1 %v10256_v6 }
 0x79c   : > { %9419 = vmatpush3.bf16.msk.msra.mxu1 %vm11837_vm9, %v10257_v38 }
 0x79d   : > { %9420 = vmatprep.subr.bf16.mxu1 %v10256_v6 }
 0x7a0   : > { %9421 = vmatpush3.bf16.msk.msra.mxu1 %vm11832_vm2, %v10257_v38 }
 0x7a1   : > { %9458 = vmatprep.subr.bf16.mxu1 %v10256_v6 }
 0x7a3   : > { %9423 = vmatmul.mubr.bf16.vlgmr.msra.gmra.mrb[180].mxu1 %v7822_v54 }
 0x7a4   : > { %9466 = vmatprep.mubr.msk.bf16.mxu1 %vm10258_vm15, %v10256_v6  ;;  %9459 = vmatpush3.bf16.msra.mxu1 %v10139_v7 }
 0x7a5   : > { %9460 = vmatprep.subr.bf16.mxu1 %v10256_v6 }
 0x7a8   : > { %9461 = vmatpush3.bf16.msra.mxu1 %v10140_v9 }
 0x7a9   : > { %9462 = vmatprep.subr.bf16.mxu1 %v10256_v6 }
 0x7ac   : > { %9463 = vmatpush3.bf16.msra.mxu1 %v10141_v10 }
 0x7ad   : > { %9464 = vmatprep.subr.bf16.mxu1 %v10256_v6 }
 0x7b0   : > { %9465 = vmatpush3.bf16.msra.mxu1 %v10142_v37 }
 0x7b1   : > { %9470 = vmatprep.subr.bf16.mxu1 %v10256_v6 }
 0x856   : > { %v5261_v57 = vpop.f32.mrb[176].mxu1 }
 0x857   : > { %v5267_v59 = vadd.f32 %v5261_v57, %v5144_v41  ;;  %v9404_v60 = vpop.f32.mrb[177].mxu1 }
 0x858   : > { %v5264_v58 = vpop.f32.mrb[178].mxu1 }
 0x859   : > { %v9405_v62 = vpop.f32.mrb[179].mxu1 }
 0x876   : > { %v5304_v0 = vpop.f32.mrb[180].mxu1 }
 0x877   : > { %vm5310_vm4 = vcmp.gt.f32.partialorder %v5304_v0, 0.5  ;;  %v9424_v2 = vpop.f32.mrb[181].mxu1  ;;  %v7946_v0 = vld [vmem:[%s12812_s5 + $0x8] sm:$0x1] }
 0x878   : > { %v7839_v20 = vsel %vm5310_vm4, 1.0, %v10256_v6  ;;  %v5307_v52 = vpop.f32.mrb[182].mxu1  ;;  %v10151_v2 = vld [vmem:[%s12813_s6 + $0x100] sm:$0xff]  }
 0x879   : > { %v5313_v3 = vpack.c.bf16 %v7839_v20, %v7839_v20  ;;  %v9425_v63 = vpop.f32.mrb[183].mxu1  ;;  %v10152_v20 = vld [vmem:[%s12813_s6 + $0x108] sm:$0xff]   ;;  %v10153_v52 = vld [vmem:[%s12813_s6 + $0x110] sm:$0xff]  }
 0x87b   : > { %9435 = vmatmul.mubr.msk.bf16.vlgmr.msra.gmra.mrb[76].mxu0 %vm4707_vm11, %v5313_v3  ;;  %v10154_v3 = vld [vmem:[%s12813_s6 + $0x118] sm:$0xff]  }
 0x87c   : > { %9439 = vmatpush3.bf16.msk.msra.mxu0 %vm11753_vm10, %v10257_v38  ;;  %9454 = vmatprep.mubr.msk.bf16.mxu0 %vm10258_vm15, %v10256_v6 }
 0x87d   : > { %9440 = vmatprep.subr.bf16.mxu0 %v10256_v6 }
 0x880   : > { %9441 = vmatpush3.bf16.msk.msra.mxu0 %vm11747_vm5, %v10257_v38 }
 0x881   : > { %9442 = vmatprep.subr.bf16.mxu0 %v10256_v6 }
 0x884   : > { %9443 = vmatpush3.bf16.msk.msra.mxu0 %vm11782_vm3, %v10257_v38 }
 0x885   : > { %9444 = vmatprep.subr.bf16.mxu0 %v10256_v6 }
 0x888   : > { %9445 = vmatpush3.bf16.msk.msra.mxu0 %vm11776_vm14, %v10257_v38 }
 0x889   : > { %9446 = vmatprep.subr.bf16.mxu0 %v10256_v6 }
 0x88c   : > { %9447 = vmatpush3.bf16.msk.msra.mxu0 %vm11811_vm1, %v10257_v38 }
 0x88d   : > { %9448 = vmatprep.subr.bf16.mxu0 %v10256_v6 }
 0x890   : > { %9449 = vmatpush3.bf16.msk.msra.mxu0 %vm11805_vm12, %v10257_v38 }
 0x891   : > { %9450 = vmatprep.subr.bf16.mxu0 %v10256_v6 }
 0x894   : > { %9451 = vmatpush3.bf16.msk.msra.mxu0 %vm11837_vm9, %v10257_v38 }
 0x895   : > { %9452 = vmatprep.subr.bf16.mxu0 %v10256_v6 }
 0x898   : > { %9453 = vmatpush3.bf16.msk.msra.mxu0 %vm11832_vm2, %v10257_v38 }
 0x899   : > { %9490 = vmatprep.subr.bf16.mxu0 %v10256_v6 }
 0x89b   : > { %9455 = vmatmul.mubr.bf16.vlgmr.msra.gmra.mrb[80].mxu0 %v7853_v4 }
 0x89c   : > { %9498 = vmatprep.mubr.msk.bf16.mxu0 %vm10258_vm15, %v10256_v6  ;;  %9491 = vmatpush3.bf16.msra.mxu0 %v10143_v23 }
 0x89d   : > { %9492 = vmatprep.subr.bf16.mxu0 %v10256_v6 }
 0x8a0   : > { %9493 = vmatpush3.bf16.msra.mxu0 %v10144_v24 }
 0x8a1   : > { %9494 = vmatprep.subr.bf16.mxu0 %v10256_v6 }
 0x8a4   : > { %9495 = vmatpush3.bf16.msra.mxu0 %v10145_v25 }
 0x8a5   : > { %9496 = vmatprep.subr.bf16.mxu0 %v10256_v6 }
 0x8a8   : > { %9497 = vmatpush3.bf16.msra.mxu0 %v10146_v26 }
 0x8a9   : > { %9502 = vmatprep.subr.bf16.mxu0 %v10256_v6 }
 0x94e   : > { %v5384_v11 = vpop.f32.mrb[76].mxu0 }
 0x94f   : > { %v5390_v12 = vadd.f32 %v5384_v11, %v5267_v59  ;;  %v9436_v14 = vpop.f32.mrb[77].mxu0 }
 0x950   : > { %v5387_v8 = vpop.f32.mrb[78].mxu0 }
 0x951   : > { %v9437_v13 = vpop.f32.mrb[79].mxu0 }
 0x96e   : > { %v5427_v15 = vpop.f32.mrb[80].mxu0 }
 0x96f   : > { %vm5433_vm6 = vcmp.gt.f32.partialorder %v5427_v15, 0.5  ;;  %v9456_v16 = vpop.f32.mrb[81].mxu0  ;;  %v7977_v15 = vld [vmem:[%s12812_s5 + $0x9] sm:$0x1] }
 0x970   : > { %v7870_v17 = vsel %vm5433_vm6, 1.0, %v10256_v6  ;;  %v5430_v18 = vpop.f32.mrb[82].mxu0  ;;  %v10155_v16 = vld [vmem:[%s12813_s6 + $0x120] sm:$0xff]  }
 0x971   : > { %v5436_v19 = vpack.c.bf16 %v7870_v17, %v7870_v17  ;;  %v9457_v22 = vpop.f32.mrb[83].mxu0  ;;  %v10156_v17 = vld [vmem:[%s12813_s6 + $0x128] sm:$0xff]   ;;  %v10157_v18 = vld [vmem:[%s12813_s6 + $0x130] sm:$0xff]  }
 0x973   : > { %9467 = vmatmul.mubr.msk.bf16.vlgmr.msra.gmra.mrb[184].mxu1 %vm4707_vm11, %v5436_v19  ;;  %v10158_v19 = vld [vmem:[%s12813_s6 + $0x138] sm:$0xff]  }
 0x974   : > { %9471 = vmatpush3.bf16.msk.msra.mxu1 %vm11753_vm10, %v10257_v38  ;;  %9486 = vmatprep.mubr.msk.bf16.mxu1 %vm10258_vm15, %v10256_v6 }
 0x975   : > { %9472 = vmatprep.subr.bf16.mxu1 %v10256_v6 }
 0x978   : > { %9473 = vmatpush3.bf16.msk.msra.mxu1 %vm11747_vm5, %v10257_v38 }
 0x979   : > { %9474 = vmatprep.subr.bf16.mxu1 %v10256_v6 }
 0x97c   : > { %9475 = vmatpush3.bf16.msk.msra.mxu1 %vm11782_vm3, %v10257_v38 }
 0x97d   : > { %9476 = vmatprep.subr.bf16.mxu1 %v10256_v6 }
 0x980   : > { %9477 = vmatpush3.bf16.msk.msra.mxu1 %vm11776_vm14, %v10257_v38 }
 0x981   : > { %9478 = vmatprep.subr.bf16.mxu1 %v10256_v6 }
 0x984   : > { %9479 = vmatpush3.bf16.msk.msra.mxu1 %vm11811_vm1, %v10257_v38 }
 0x985   : > { %9480 = vmatprep.subr.bf16.mxu1 %v10256_v6 }
 0x988   : > { %9481 = vmatpush3.bf16.msk.msra.mxu1 %vm11805_vm12, %v10257_v38 }
 0x989   : > { %9482 = vmatprep.subr.bf16.mxu1 %v10256_v6 }
 0x98c   : > { %9483 = vmatpush3.bf16.msk.msra.mxu1 %vm11837_vm9, %v10257_v38 }
 0x98d   : > { %9484 = vmatprep.subr.bf16.mxu1 %v10256_v6 }
 0x990   : > { %9485 = vmatpush3.bf16.msk.msra.mxu1 %vm11832_vm2, %v10257_v38 }
 0x991   : > { %9522 = vmatprep.subr.bf16.mxu1 %v10256_v6 }
 0x993   : > { %9487 = vmatmul.mubr.bf16.vlgmr.msra.gmra.mrb[188].mxu1 %v7884_v47 }
 0x994   : > { %9530 = vmatprep.mubr.msk.bf16.mxu1 %vm10258_vm15, %v10256_v6  ;;  %9523 = vmatpush3.bf16.msra.mxu1 %v10147_v46 }
 0x995   : > { %9524 = vmatprep.subr.bf16.mxu1 %v10256_v6 }
 0x998   : > { %9525 = vmatpush3.bf16.msra.mxu1 %v10148_v48 }
 0x999   : > { %9526 = vmatprep.subr.bf16.mxu1 %v10256_v6 }
 0x99c   : > { %9527 = vmatpush3.bf16.msra.mxu1 %v10149_v49 }
 0x99d   : > { %9528 = vmatprep.subr.bf16.mxu1 %v10256_v6 }
 0x9a0   : > { %9529 = vmatpush3.bf16.msra.mxu1 %v10150_v50 }
 0x9a1   : > { %9534 = vmatprep.subr.bf16.mxu1 %v10256_v6 }
 0xa46   : > { %v5507_v29 = vpop.f32.mrb[184].mxu1 }
 0xa47   : > { %v5513_v30 = vadd.f32 %v5507_v29, %v5390_v12  ;;  %v9468_v33 = vpop.f32.mrb[185].mxu1 }
 0xa48   : > { %v5510_v34 = vpop.f32.mrb[186].mxu1 }
 0xa49   : > { %v9469_v35 = vpop.f32.mrb[187].mxu1 }
 0xa66   : > { %v5550_v39 = vpop.f32.mrb[188].mxu1 }
 0xa67   : > { %vm5556_vm13 = vcmp.gt.f32.partialorder %v5550_v39, 0.5  ;;  %v9488_v40 = vpop.f32.mrb[189].mxu1  ;;  %v8008_v39 = vld [vmem:[%s12812_s5 + $0xa] sm:$0x1] }
 0xa68   : > { %v7901_v41 = vsel %vm5556_vm13, 1.0, %v10256_v6  ;;  %v5553_v42 = vpop.f32.mrb[190].mxu1  ;;  %v10159_v40 = vld [vmem:[%s12813_s6 + $0x140] sm:$0xff]  }
 0xa69   : > { %v5559_v43 = vpack.c.bf16 %v7901_v41, %v7901_v41  ;;  %v9489_v44 = vpop.f32.mrb[191].mxu1  ;;  %v10160_v41 = vld [vmem:[%s12813_s6 + $0x148] sm:$0xff]   ;;  %v10161_v42 = vld [vmem:[%s12813_s6 + $0x150] sm:$0xff]  }
 0xa6b   : > { %9499 = vmatmul.mubr.msk.bf16.vlgmr.msra.gmra.mrb[84].mxu0 %vm4707_vm11, %v5559_v43  ;;  %v10162_v43 = vld [vmem:[%s12813_s6 + $0x158] sm:$0xff]  }
 0xa6c   : > { %9503 = vmatpush3.bf16.msk.msra.mxu0 %vm11753_vm10, %v10257_v38  ;;  %9518 = vmatprep.mubr.msk.bf16.mxu0 %vm10258_vm15, %v10256_v6 }
 0xa6d   : > { %9504 = vmatprep.subr.bf16.mxu0 %v10256_v6 }
 0xa70   : > { %9505 = vmatpush3.bf16.msk.msra.mxu0 %vm11747_vm5, %v10257_v38 }
 0xa71   : > { %9506 = vmatprep.subr.bf16.mxu0 %v10256_v6 }
 0xa74   : > { %9507 = vmatpush3.bf16.msk.msra.mxu0 %vm11782_vm3, %v10257_v38 }
 0xa75   : > { %9508 = vmatprep.subr.bf16.mxu0 %v10256_v6 }
 0xa78   : > { %9509 = vmatpush3.bf16.msk.msra.mxu0 %vm11776_vm14, %v10257_v38 }
 0xa79   : > { %9510 = vmatprep.subr.bf16.mxu0 %v10256_v6 }
 0xa7c   : > { %9511 = vmatpush3.bf16.msk.msra.mxu0 %vm11811_vm1, %v10257_v38 }
 0xa7d   : > { %9512 = vmatprep.subr.bf16.mxu0 %v10256_v6 }
 0xa80   : > { %9513 = vmatpush3.bf16.msk.msra.mxu0 %vm11805_vm12, %v10257_v38 }
 0xa81   : > { %9514 = vmatprep.subr.bf16.mxu0 %v10256_v6 }
 0xa84   : > { %9515 = vmatpush3.bf16.msk.msra.mxu0 %vm11837_vm9, %v10257_v38 }
 0xa85   : > { %9516 = vmatprep.subr.bf16.mxu0 %v10256_v6 }
 0xa88   : > { %9517 = vmatpush3.bf16.msk.msra.mxu0 %vm11832_vm2, %v10257_v38 }
 0xa89   : > { %9554 = vmatprep.subr.bf16.mxu0 %v10256_v6 }
 0xa8b   : > { %9519 = vmatmul.mubr.bf16.vlgmr.msra.gmra.mrb[88].mxu0 %v7915_v45 }
 0xa8c   : > { %9562 = vmatprep.mubr.msk.bf16.mxu0 %vm10258_vm15, %v10256_v6  ;;  %9555 = vmatpush3.bf16.msra.mxu0 %v10151_v2 }
 0xa8d   : > { %9556 = vmatprep.subr.bf16.mxu0 %v10256_v6 }
 0xa90   : > { %9557 = vmatpush3.bf16.msra.mxu0 %v10152_v20 }
 0xa91   : > { %9558 = vmatprep.subr.bf16.mxu0 %v10256_v6 }
 0xa94   : > { %9559 = vmatpush3.bf16.msra.mxu0 %v10153_v52 }
 0xa95   : > { %9560 = vmatprep.subr.bf16.mxu0 %v10256_v6 }
 0xa98   : > { %9561 = vmatpush3.bf16.msra.mxu0 %v10154_v3 }
 0xa99   : > { %9566 = vmatprep.subr.bf16.mxu0 %v10256_v6 }
 0xb3e   : > { %v5630_v53 = vpop.f32.mrb[84].mxu0 }
 0xb3f   : > { %v5636_v54 = vadd.f32 %v5630_v53, %v5513_v30  ;;  %v9500_v55 = vpop.f32.mrb[85].mxu0 }
 0xb40   : > { %v5633_v5 = vpop.f32.mrb[86].mxu0 }
 0xb41   : > { %v9501_v21 = vpop.f32.mrb[87].mxu0 }
 0xb5e   : > { %v5673_v36 = vpop.f32.mrb[88].mxu0 }
 0xb5f   : > { %vm5679_vm0 = vcmp.gt.f32.partialorder %v5673_v36, 0.5  ;;  %v9520_v57 = vpop.f32.mrb[89].mxu0  ;;  %v8039_v36 = vld [vmem:[%s12812_s5 + $0xb] sm:$0x1] }
 0xb60   : > { %v7932_v59 = vsel %vm5679_vm0, 1.0, %v10256_v6  ;;  %v5676_v60 = vpop.f32.mrb[90].mxu0  ;;  %v10163_v57 = vld [vmem:[%s12813_s6 + $0x160] sm:$0xff]  }
 0xb61   : > { %v5682_v58 = vpack.c.bf16 %v7932_v59, %v7932_v59  ;;  %v9521_v62 = vpop.f32.mrb[91].mxu0  ;;  %v10164_v59 = vld [vmem:[%s12813_s6 + $0x168] sm:$0xff]   ;;  %v10165_v60 = vld [vmem:[%s12813_s6 + $0x170] sm:$0xff]  }
 0xb63   : > { %9531 = vmatmul.mubr.msk.bf16.vlgmr.msra.gmra.mrb[192].mxu1 %vm4707_vm11, %v5682_v58  ;;  %v10166_v58 = vld [vmem:[%s12813_s6 + $0x178] sm:$0xff]  }
 0xb64   : > { %9535 = vmatpush3.bf16.msk.msra.mxu1 %vm11753_vm10, %v10257_v38  ;;  %9550 = vmatprep.mubr.msk.bf16.mxu1 %vm10258_vm15, %v10256_v6 }
 0xb65   : > { %9536 = vmatprep.subr.bf16.mxu1 %v10256_v6 }
 0xb68   : > { %9537 = vmatpush3.bf16.msk.msra.mxu1 %vm11747_vm5, %v10257_v38 }
 0xb69   : > { %9538 = vmatprep.subr.bf16.mxu1 %v10256_v6 }
 0xb6c   : > { %9539 = vmatpush3.bf16.msk.msra.mxu1 %vm11782_vm3, %v10257_v38 }
 0xb6d   : > { %9540 = vmatprep.subr.bf16.mxu1 %v10256_v6 }
 0xb70   : > { %9541 = vmatpush3.bf16.msk.msra.mxu1 %vm11776_vm14, %v10257_v38 }
 0xb71   : > { %9542 = vmatprep.subr.bf16.mxu1 %v10256_v6 }
 0xb74   : > { %9543 = vmatpush3.bf16.msk.msra.mxu1 %vm11811_vm1, %v10257_v38 }
 0xb75   : > { %9544 = vmatprep.subr.bf16.mxu1 %v10256_v6 }
 0xb78   : > { %9545 = vmatpush3.bf16.msk.msra.mxu1 %vm11805_vm12, %v10257_v38 }
 0xb79   : > { %9546 = vmatprep.subr.bf16.mxu1 %v10256_v6 }
 0xb7c   : > { %9547 = vmatpush3.bf16.msk.msra.mxu1 %vm11837_vm9, %v10257_v38 }
 0xb7d   : > { %9548 = vmatprep.subr.bf16.mxu1 %v10256_v6 }
 0xb80   : > { %9549 = vmatpush3.bf16.msk.msra.mxu1 %vm11832_vm2, %v10257_v38 }
 0xb81   : > { %9586 = vmatprep.subr.bf16.mxu1 %v10256_v6 }
 0xb83   : > { %9551 = vmatmul.mubr.bf16.vlgmr.msra.gmra.mrb[196].mxu1 %v7946_v0 }
 0xb84   : > { %9594 = vmatprep.mubr.msk.bf16.mxu1 %vm10258_vm15, %v10256_v6  ;;  %9587 = vmatpush3.bf16.msra.mxu1 %v10155_v16 }
 0xb85   : > { %9588 = vmatprep.subr.bf16.mxu1 %v10256_v6 }
 0xb88   : > { %9589 = vmatpush3.bf16.msra.mxu1 %v10156_v17 }
 0xb89   : > { %9590 = vmatprep.subr.bf16.mxu1 %v10256_v6 }
 0xb8c   : > { %9591 = vmatpush3.bf16.msra.mxu1 %v10157_v18 }
 0xb8d   : > { %9592 = vmatprep.subr.bf16.mxu1 %v10256_v6 }
 0xb90   : > { %9593 = vmatpush3.bf16.msra.mxu1 %v10158_v19 }
 0xb91   : > { %9598 = vmatprep.subr.bf16.mxu1 %v10256_v6 }
 0xc36   : > { %v5753_v63 = vpop.f32.mrb[192].mxu1 }
 0xc37   : > { %v5759_v4 = vadd.f32 %v5753_v63, %v5636_v54  ;;  %v9532_v7 = vpop.f32.mrb[193].mxu1 }
 0xc38   : > { %v5756_v9 = vpop.f32.mrb[194].mxu1 }
 0xc39   : > { %v9533_v10 = vpop.f32.mrb[195].mxu1 }
 0xc56   : > { %v5796_v37 = vpop.f32.mrb[196].mxu1 }
 0xc57   : > { %vm5802_vm7 = vcmp.gt.f32.partialorder %v5796_v37, 0.5  ;;  %v9552_v11 = vpop.f32.mrb[197].mxu1  ;;  %v8070_v37 = vld [vmem:[%s12812_s5 + $0xc] sm:$0x1] }
 0xc58   : > { %v7963_v12 = vsel %vm5802_vm7, 1.0, %v10256_v6  ;;  %v5799_v14 = vpop.f32.mrb[198].mxu1  ;;  %v10167_v11 = vld [vmem:[%s12813_s6 + $0x180] sm:$0xff]  }
 0xc59   : > { %v5805_v8 = vpack.c.bf16 %v7963_v12, %v7963_v12  ;;  %v9553_v13 = vpop.f32.mrb[199].mxu1  ;;  %v10168_v12 = vld [vmem:[%s12813_s6 + $0x188] sm:$0xff]   ;;  %v10169_v14 = vld [vmem:[%s12813_s6 + $0x190] sm:$0xff]  }
 0xc5b   : > { %9563 = vmatmul.mubr.msk.bf16.vlgmr.msra.gmra.mrb[92].mxu0 %vm4707_vm11, %v5805_v8  ;;  %v10170_v8 = vld [vmem:[%s12813_s6 + $0x198] sm:$0xff]  }
 0xc5c   : > { %9567 = vmatpush3.bf16.msk.msra.mxu0 %vm11753_vm10, %v10257_v38  ;;  %9582 = vmatprep.mubr.msk.bf16.mxu0 %vm10258_vm15, %v10256_v6 }
 0xc5d   : > { %9568 = vmatprep.subr.bf16.mxu0 %v10256_v6 }
 0xc60   : > { %9569 = vmatpush3.bf16.msk.msra.mxu0 %vm11747_vm5, %v10257_v38 }
 0xc61   : > { %9570 = vmatprep.subr.bf16.mxu0 %v10256_v6 }
 0xc64   : > { %9571 = vmatpush3.bf16.msk.msra.mxu0 %vm11782_vm3, %v10257_v38 }
 0xc65   : > { %9572 = vmatprep.subr.bf16.mxu0 %v10256_v6 }
 0xc68   : > { %9573 = vmatpush3.bf16.msk.msra.mxu0 %vm11776_vm14, %v10257_v38 }
 0xc69   : > { %9574 = vmatprep.subr.bf16.mxu0 %v10256_v6 }
 0xc6c   : > { %9575 = vmatpush3.bf16.msk.msra.mxu0 %vm11811_vm1, %v10257_v38 }
 0xc6d   : > { %9576 = vmatprep.subr.bf16.mxu0 %v10256_v6 }
 0xc70   : > { %9577 = vmatpush3.bf16.msk.msra.mxu0 %vm11805_vm12, %v10257_v38 }
 0xc71   : > { %9578 = vmatprep.subr.bf16.mxu0 %v10256_v6 }
 0xc74   : > { %9579 = vmatpush3.bf16.msk.msra.mxu0 %vm11837_vm9, %v10257_v38 }
 0xc75   : > { %9580 = vmatprep.subr.bf16.mxu0 %v10256_v6 }
 0xc78   : > { %9581 = vmatpush3.bf16.msk.msra.mxu0 %vm11832_vm2, %v10257_v38 }
 0xc79   : > { %9618 = vmatprep.subr.bf16.mxu0 %v10256_v6 }
 0xc7b   : > { %9583 = vmatmul.mubr.bf16.vlgmr.msra.gmra.mrb[96].mxu0 %v7977_v15 }
 0xc7c   : > { %9626 = vmatprep.mubr.msk.bf16.mxu0 %vm10258_vm15, %v10256_v6  ;;  %9619 = vmatpush3.bf16.msra.mxu0 %v10159_v40 }
 0xc7d   : > { %9620 = vmatprep.subr.bf16.mxu0 %v10256_v6 }
 0xc80   : > { %9621 = vmatpush3.bf16.msra.mxu0 %v10160_v41 }
 0xc81   : > { %9622 = vmatprep.subr.bf16.mxu0 %v10256_v6 }
 0xc84   : > { %9623 = vmatpush3.bf16.msra.mxu0 %v10161_v42 }
 0xc85   : > { %9624 = vmatprep.subr.bf16.mxu0 %v10256_v6 }
 0xc88   : > { %9625 = vmatpush3.bf16.msra.mxu0 %v10162_v43 }
 0xc89   : > { %9630 = vmatprep.subr.bf16.mxu0 %v10256_v6 }
 0xd2e   : > { %v5876_v22 = vpop.f32.mrb[92].mxu0 }
 0xd2f   : > { %v5882_v47 = vadd.f32 %v5876_v22, %v5759_v4  ;;  %v9564_v23 = vpop.f32.mrb[93].mxu0 }
 0xd30   : > { %v5879_v24 = vpop.f32.mrb[94].mxu0 }
 0xd31   : > { %v9565_v25 = vpop.f32.mrb[95].mxu0 }
 0xd4e   : > { %v5919_v26 = vpop.f32.mrb[96].mxu0 }
 0xd4f   : > { %vm5925_vm8 = vcmp.gt.f32.partialorder %v5919_v26, 0.5  ;;  %v9584_v29 = vpop.f32.mrb[97].mxu0  ;;  %v8101_v26 = vld [vmem:[%s12812_s5 + $0xd] sm:$0x1] }
 0xd50   : > { %v7994_v30 = vsel %vm5925_vm8, 1.0, %v10256_v6  ;;  %v5922_v33 = vpop.f32.mrb[98].mxu0  ;;  %v10171_v29 = vld [vmem:[%s12813_s6 + $0x1a0] sm:$0xff]  }
 0xd51   : > { %v5928_v34 = vpack.c.bf16 %v7994_v30, %v7994_v30  ;;  %v9585_v35 = vpop.f32.mrb[99].mxu0  ;;  %v10172_v30 = vld [vmem:[%s12813_s6 + $0x1a8] sm:$0xff]   ;;  %v10173_v33 = vld [vmem:[%s12813_s6 + $0x1b0] sm:$0xff]  }
 0xd53   : > { %9595 = vmatmul.mubr.msk.bf16.vlgmr.msra.gmra.mrb[200].mxu1 %vm4707_vm11, %v5928_v34  ;;  %v10174_v34 = vld [vmem:[%s12813_s6 + $0x1b8] sm:$0xff]  }
 0xd54   : > { %9599 = vmatpush3.bf16.msk.msra.mxu1 %vm11753_vm10, %v10257_v38  ;;  %9614 = vmatprep.mubr.msk.bf16.mxu1 %vm10258_vm15, %v10256_v6 }
 0xd55   : > { %9600 = vmatprep.subr.bf16.mxu1 %v10256_v6 }
 0xd58   : > { %9601 = vmatpush3.bf16.msk.msra.mxu1 %vm11747_vm5, %v10257_v38 }
 0xd59   : > { %9602 = vmatprep.subr.bf16.mxu1 %v10256_v6 }
 0xd5c   : > { %9603 = vmatpush3.bf16.msk.msra.mxu1 %vm11782_vm3, %v10257_v38 }
 0xd5d   : > { %9604 = vmatprep.subr.bf16.mxu1 %v10256_v6 }
 0xd60   : > { %9605 = vmatpush3.bf16.msk.msra.mxu1 %vm11776_vm14, %v10257_v38 }
 0xd61   : > { %9606 = vmatprep.subr.bf16.mxu1 %v10256_v6 }
 0xd64   : > { %9607 = vmatpush3.bf16.msk.msra.mxu1 %vm11811_vm1, %v10257_v38 }
 0xd65   : > { %9608 = vmatprep.subr.bf16.mxu1 %v10256_v6 }
 0xd68   : > { %9609 = vmatpush3.bf16.msk.msra.mxu1 %vm11805_vm12, %v10257_v38 }
 0xd69   : > { %9610 = vmatprep.subr.bf16.mxu1 %v10256_v6 }
 0xd6c   : > { %9611 = vmatpush3.bf16.msk.msra.mxu1 %vm11837_vm9, %v10257_v38 }
 0xd6d   : > { %9612 = vmatprep.subr.bf16.mxu1 %v10256_v6 }
 0xd70   : > { %9613 = vmatpush3.bf16.msk.msra.mxu1 %vm11832_vm2, %v10257_v38 }
 0xd71   : > { %9650 = vmatprep.subr.bf16.mxu1 %v10256_v6 }
 0xd73   : > { %9615 = vmatmul.mubr.bf16.vlgmr.msra.gmra.mrb[204].mxu1 %v8008_v39 }
 0xd74   : > { %9658 = vmatprep.mubr.msk.bf16.mxu1 %vm10258_vm15, %v10256_v6  ;;  %9651 = vmatpush3.bf16.msra.mxu1 %v10163_v57 }
 0xd75   : > { %9652 = vmatprep.subr.bf16.mxu1 %v10256_v6 }
 0xd78   : > { %9653 = vmatpush3.bf16.msra.mxu1 %v10164_v59 }
 0xd79   : > { %9654 = vmatprep.subr.bf16.mxu1 %v10256_v6 }
 0xd7c   : > { %9655 = vmatpush3.bf16.msra.mxu1 %v10165_v60 }
 0xd7d   : > { %9656 = vmatprep.subr.bf16.mxu1 %v10256_v6 }
 0xd80   : > { %9657 = vmatpush3.bf16.msra.mxu1 %v10166_v58 }
 0xd81   : > { %9662 = vmatprep.subr.bf16.mxu1 %v10256_v6 }
 0xe26   : > { %v5999_v44 = vpop.f32.mrb[200].mxu1 }
 0xe27   : > { %v6005_v45 = vadd.f32 %v5999_v44, %v5882_v47  ;;  %v9596_v46 = vpop.f32.mrb[201].mxu1 }
 0xe28   : > { %v6002_v48 = vpop.f32.mrb[202].mxu1 }
 0xe29   : > { %v9597_v49 = vpop.f32.mrb[203].mxu1 }
 0xe46   : > { %v6042_v50 = vpop.f32.mrb[204].mxu1 }
 0xe47   : > { %vm6048_vm4 = vcmp.gt.f32.partialorder %v6042_v50, 0.5  ;;  %v9616_v53 = vpop.f32.mrb[205].mxu1  ;;  %v8132_v50 = vld [vmem:[%s12812_s5 + $0xe] sm:$0x1] }
 0xe48   : > { %v8025_v54 = vsel %vm6048_vm4, 1.0, %v10256_v6  ;;  %v6045_v55 = vpop.f32.mrb[206].mxu1  ;;  %v10175_v53 = vld [vmem:[%s12813_s6 + $0x1c0] sm:$0xff]  }
 0xe49   : > { %v6051_v5 = vpack.c.bf16 %v8025_v54, %v8025_v54  ;;  %v9617_v21 = vpop.f32.mrb[207].mxu1  ;;  %v10176_v54 = vld [vmem:[%s12813_s6 + $0x1c8] sm:$0xff]   ;;  %v10177_v55 = vld [vmem:[%s12813_s6 + $0x1d0] sm:$0xff]  }
 0xe4b   : > { %9627 = vmatmul.mubr.msk.bf16.vlgmr.msra.gmra.mrb[100].mxu0 %vm4707_vm11, %v6051_v5  ;;  %v10178_v5 = vld [vmem:[%s12813_s6 + $0x1d8] sm:$0xff]  }
 0xe4c   : > { %9631 = vmatpush3.bf16.msk.msra.mxu0 %vm11753_vm10, %v10257_v38  ;;  %9646 = vmatprep.mubr.msk.bf16.mxu0 %vm10258_vm15, %v10256_v6 }
 0xe4d   : > { %9632 = vmatprep.subr.bf16.mxu0 %v10256_v6 }
 0xe50   : > { %9633 = vmatpush3.bf16.msk.msra.mxu0 %vm11747_vm5, %v10257_v38 }
 0xe51   : > { %9634 = vmatprep.subr.bf16.mxu0 %v10256_v6 }
 0xe54   : > { %9635 = vmatpush3.bf16.msk.msra.mxu0 %vm11782_vm3, %v10257_v38 }
 0xe55   : > { %9636 = vmatprep.subr.bf16.mxu0 %v10256_v6 }
 0xe58   : > { %9637 = vmatpush3.bf16.msk.msra.mxu0 %vm11776_vm14, %v10257_v38 }
 0xe59   : > { %9638 = vmatprep.subr.bf16.mxu0 %v10256_v6 }
 0xe5c   : > { %9639 = vmatpush3.bf16.msk.msra.mxu0 %vm11811_vm1, %v10257_v38 }
 0xe5d   : > { %9640 = vmatprep.subr.bf16.mxu0 %v10256_v6 }
 0xe60   : > { %9641 = vmatpush3.bf16.msk.msra.mxu0 %vm11805_vm12, %v10257_v38 }
 0xe61   : > { %9642 = vmatprep.subr.bf16.mxu0 %v10256_v6 }
 0xe64   : > { %9643 = vmatpush3.bf16.msk.msra.mxu0 %vm11837_vm9, %v10257_v38 }
 0xe65   : > { %9644 = vmatprep.subr.bf16.mxu0 %v10256_v6 }
 0xe68   : > { %9645 = vmatpush3.bf16.msk.msra.mxu0 %vm11832_vm2, %v10257_v38 }
 0xe69   : > { %9682 = vmatprep.subr.bf16.mxu0 %v10256_v6 }
 0xe6b   : > { %9647 = vmatmul.mubr.bf16.vlgmr.msra.gmra.mrb[104].mxu0 %v8039_v36 }
 0xe6c   : > { %9690 = vmatprep.mubr.msk.bf16.mxu0 %vm10258_vm15, %v10256_v6  ;;  %9683 = vmatpush3.bf16.msra.mxu0 %v10167_v11 }
 0xe6d   : > { %9684 = vmatprep.subr.bf16.mxu0 %v10256_v6 }
 0xe70   : > { %9685 = vmatpush3.bf16.msra.mxu0 %v10168_v12 }
 0xe71   : > { %9686 = vmatprep.subr.bf16.mxu0 %v10256_v6 }
 0xe74   : > { %9687 = vmatpush3.bf16.msra.mxu0 %v10169_v14  ;;  %v10184_v14 = vld [vmem:[%s12815_s8 + $0x8] sm:$0xff]  }
 0xe75   : > { %9688 = vmatprep.subr.bf16.mxu0 %v10256_v6 }
 0xe78   : > { %9689 = vmatpush3.bf16.msra.mxu0 %v10170_v8  ;;  %v10185_v8 = vld [vmem:[%s12815_s8 + $0x10] sm:$0xff]  }
 0xe79   : > { %9694 = vmatprep.subr.bf16.mxu0 %v10256_v6 }
 0xf1e   : > { %v6122_v62 = vpop.f32.mrb[100].mxu0 }
 0xf1f   : > { %v6128_v0 = vadd.f32 %v6122_v62, %v6005_v45  ;;  %v9628_v2 = vpop.f32.mrb[101].mxu0 }
 0xf20   : > { %v6125_v20 = vpop.f32.mrb[102].mxu0 }
 0xf21   : > { %v9629_v52 = vpop.f32.mrb[103].mxu0 }
 0xf3e   : > { %v6165_v3 = vpop.f32.mrb[104].mxu0 }
 0xf3f   : > { %vm6171_vm6 = vcmp.gt.f32.partialorder %v6165_v3, 0.5  ;;  %v9648_v63 = vpop.f32.mrb[105].mxu0 }
 0xf40   : > { %v8056_v4 = vsel %vm6171_vm6, 1.0, %v10256_v6  ;;  %v6168_v7 = vpop.f32.mrb[106].mxu0 }
 0xf41   : > { %v6174_v9 = vpack.c.bf16 %v8056_v4, %v8056_v4  ;;  %v9649_v10 = vpop.f32.mrb[107].mxu0 }
 0xf43   : > { %9659 = vmatmul.mubr.msk.bf16.vlgmr.msra.gmra.mrb[208].mxu1 %vm4707_vm11, %v6174_v9 }
 0xf44   : > { %9663 = vmatpush3.bf16.msk.msra.mxu1 %vm11753_vm10, %v10257_v38  ;;  %9678 = vmatprep.mubr.msk.bf16.mxu1 %vm10258_vm15, %v10256_v6 }
 0xf45   : > { %9664 = vmatprep.subr.bf16.mxu1 %v10256_v6 }
 0xf48   : > { %9665 = vmatpush3.bf16.msk.msra.mxu1 %vm11747_vm5, %v10257_v38 }
 0xf49   : > { %9666 = vmatprep.subr.bf16.mxu1 %v10256_v6 }
 0xf4c   : > { %9667 = vmatpush3.bf16.msk.msra.mxu1 %vm11782_vm3, %v10257_v38 }
 0xf4d   : > { %9668 = vmatprep.subr.bf16.mxu1 %v10256_v6 }
 0xf50   : > { %9669 = vmatpush3.bf16.msk.msra.mxu1 %vm11776_vm14, %v10257_v38 }
 0xf51   : > { %9670 = vmatprep.subr.bf16.mxu1 %v10256_v6 }
 0xf54   : > { %9671 = vmatpush3.bf16.msk.msra.mxu1 %vm11811_vm1, %v10257_v38 }
 0xf55   : > { %9672 = vmatprep.subr.bf16.mxu1 %v10256_v6 }
 0xf58   : > { %9673 = vmatpush3.bf16.msk.msra.mxu1 %vm11805_vm12, %v10257_v38 }
 0xf59   : > { %9674 = vmatprep.subr.bf16.mxu1 %v10256_v6 }
 0xf5c   : > { %9675 = vmatpush3.bf16.msk.msra.mxu1 %vm11837_vm9, %v10257_v38 }
 0xf5d   : > { %9676 = vmatprep.subr.bf16.mxu1 %v10256_v6 }
 0xf60   : > { %9677 = vmatpush3.bf16.msk.msra.mxu1 %vm11832_vm2, %v10257_v38 }
 0xf61   : > { %9714 = vmatprep.subr.bf16.mxu1 %v10256_v6 }
 0xf63   : > { %9679 = vmatmul.mubr.bf16.vlgmr.msra.gmra.mrb[212].mxu1 %v8070_v37  ;;  %v10183_v37 = vld [vmem:[%s12815_s8] sm:$0xff]  }
 0xf64   : > { %9722 = vmatprep.mubr.msk.bf16.mxu1 %vm10258_vm15, %v10256_v6  ;;  %9715 = vmatpush3.bf16.msra.mxu1 %v10171_v29 }
 0xf65   : > { %9716 = vmatprep.subr.bf16.mxu1 %v10256_v6 }
 0xf68   : > { %9717 = vmatpush3.bf16.msra.mxu1 %v10172_v30 }
 0xf69   : > { %9718 = vmatprep.subr.bf16.mxu1 %v10256_v6 }
 0xf6c   : > { %9719 = vmatpush3.bf16.msra.mxu1 %v10173_v33 }
 0xf6d   : > { %9720 = vmatprep.subr.bf16.mxu1 %v10256_v6 }
 0xf70   : > { %9721 = vmatpush3.bf16.msra.mxu1 %v10174_v34 }
 0xf71   : > { %9726 = vmatprep.subr.bf16.mxu1 %v10256_v6 }
0x1016   : > { %v6245_v13 = vpop.f32.mrb[208].mxu1 }
0x1017   : > { %v6251_v15 = vadd.f32 %v6245_v13, %v6128_v0  ;;  %v9660_v16 = vpop.f32.mrb[209].mxu1  ;;  %v10186_v13 = vld [vmem:[%s12815_s8 + $0x18] sm:$0xff]  }
0x1018   : > { %v6248_v17 = vpop.f32.mrb[210].mxu1  ;;  %v10188_v16 = vld [vmem:[%s12815_s8 + $0x28] sm:$0xff]  }
0x1019   : > { %v9661_v18 = vpop.f32.mrb[211].mxu1  ;;  %v10189_v17 = vld [vmem:[%s12815_s8 + $0x30] sm:$0xff]  }
0x101a   : > { %v10190_v18 = vld [vmem:[%s12815_s8 + $0x38] sm:$0xff]  }
0x1036   : > { %v6288_v19 = vpop.f32.mrb[212].mxu1 }
0x1037   : > { %vm6294_vm13 = vcmp.gt.f32.partialorder %v6288_v19, 0.5  ;;  %v9680_v22 = vpop.f32.mrb[213].mxu1  ;;  %v6752_v19 = vld [vmem:[#allocation4] sm:$0x3] }
0x1038   : > { %v8087_v47 = vsel %vm6294_vm13, 1.0, %v10256_v6  ;;  %v6291_v23 = vpop.f32.mrb[214].mxu1 }
0x1039   : > { %v6297_v24 = vpack.c.bf16 %v8087_v47, %v8087_v47  ;;  %v9681_v25 = vpop.f32.mrb[215].mxu1  ;;  %v8194_v47 = vld [vmem:[%s12814_s7] ss:$0 sm:$0xff] }
0x103b   : > { %9691 = vmatmul.mubr.msk.bf16.vlgmr.msra.gmra.mrb[108].mxu0 %vm4707_vm11, %v6297_v24  ;;  %v6756_v24 = vmul.f32 0.95, %v6752_v19 }
0x103c   : > { %9695 = vmatpush3.bf16.msk.msra.mxu0 %vm11753_vm10, %v10257_v38  ;;  %9710 = vmatprep.mubr.msk.bf16.mxu0 %vm10258_vm15, %v10256_v6 }
0x103d   : > { %9696 = vmatprep.subr.bf16.mxu0 %v10256_v6 }
0x1040   : > { %9697 = vmatpush3.bf16.msk.msra.mxu0 %vm11747_vm5, %v10257_v38 }
0x1041   : > { %9698 = vmatprep.subr.bf16.mxu0 %v10256_v6 }
0x1044   : > { %9699 = vmatpush3.bf16.msk.msra.mxu0 %vm11782_vm3, %v10257_v38 }
0x1045   : > { %9700 = vmatprep.subr.bf16.mxu0 %v10256_v6 }
0x1048   : > { %9701 = vmatpush3.bf16.msk.msra.mxu0 %vm11776_vm14, %v10257_v38 }
0x1049   : > { %9702 = vmatprep.subr.bf16.mxu0 %v10256_v6 }
0x104c   : > { %9703 = vmatpush3.bf16.msk.msra.mxu0 %vm11811_vm1, %v10257_v38 }
0x104d   : > { %9704 = vmatprep.subr.bf16.mxu0 %v10256_v6 }
0x1050   : > { %9705 = vmatpush3.bf16.msk.msra.mxu0 %vm11805_vm12, %v10257_v38 }
0x1051   : > { %9706 = vmatprep.subr.bf16.mxu0 %v10256_v6 }
0x1054   : > { %9707 = vmatpush3.bf16.msk.msra.mxu0 %vm11837_vm9, %v10257_v38 }
0x1055   : > { %9708 = vmatprep.subr.bf16.mxu0 %v10256_v6 }
0x1058   : > { %9709 = vmatpush3.bf16.msk.msra.mxu0 %vm11832_vm2, %v10257_v38 }
0x1059   : > { %9746 = vmatprep.subr.bf16.mxu0 %v10256_v6 }
0x105b   : > { %9711 = vmatmul.mubr.bf16.vlgmr.msra.gmra.mrb[112].mxu0 %v8101_v26 }
0x105c   : > { %9754 = vmatprep.mubr.msk.bf16.mxu0 %vm10258_vm15, %v10256_v6  ;;  %9747 = vmatpush3.bf16.msra.mxu0 %v10175_v53 }
0x105d   : > { %9748 = vmatprep.subr.bf16.mxu0 %v10256_v6 }
0x1060   : > { %9749 = vmatpush3.bf16.msra.mxu0 %v10176_v54 }
0x1061   : > { %9750 = vmatprep.subr.bf16.mxu0 %v10256_v6 }
0x1064   : > { %9751 = vmatpush3.bf16.msra.mxu0 %v10177_v55 }
0x1065   : > { %9752 = vmatprep.subr.bf16.mxu0 %v10256_v6 }
0x1068   : > { %9753 = vmatpush3.bf16.msra.mxu0 %v10178_v5 }
0x1069   : > { %9758 = vmatprep.subr.bf16.mxu0 %v10256_v6 }
0x110e   : > { %v6368_v35 = vpop.f32.mrb[108].mxu0 }
0x110f   : > { %v6374_v39 = vadd.f32 %v6368_v35, %v6251_v15  ;;  %v9692_v40 = vpop.f32.mrb[109].mxu0  ;;  %v10187_v15 = vld [vmem:[%s12815_s8 + $0x20] sm:$0xff]  }
0x1110   : > { %v6371_v41 = vpop.f32.mrb[110].mxu0  ;;  %v8197_v40 = vld [vmem:[%s12816_s9] ss:$0 sm:$0xff] }
0x1111   : > { %v9693_v42 = vpop.f32.mrb[111].mxu0 }
0x112e   : > { %v6411_v43 = vpop.f32.mrb[112].mxu0 }
0x112f   : > { %vm6417_vm0 = vcmp.gt.f32.partialorder %v6411_v43, 0.5  ;;  %v9712_v44 = vpop.f32.mrb[113].mxu0 }
0x1130   : > { %v8118_v45 = vsel %vm6417_vm0, 1.0, %v10256_v6  ;;  %v6414_v46 = vpop.f32.mrb[114].mxu0 }
0x1131   : > { %v6420_v48 = vpack.c.bf16 %v8118_v45, %v8118_v45  ;;  %v9713_v49 = vpop.f32.mrb[115].mxu0 }
0x1133   : > { %9723 = vmatmul.mubr.msk.bf16.vlgmr.msra.gmra.mrb[216].mxu1 %vm4707_vm11, %v6420_v48 }
0x1134   : > { %9727 = vmatpush3.bf16.msk.msra.mxu1 %vm11753_vm10, %v10257_v38  ;;  %9742 = vmatprep.mubr.msk.bf16.mxu1 %vm10258_vm15, %v10256_v6 }
0x1135   : > { %9728 = vmatprep.subr.bf16.mxu1 %v10256_v6 }
0x1138   : > { %9729 = vmatpush3.bf16.msk.msra.mxu1 %vm11747_vm5, %v10257_v38 }
0x1139   : > { %9730 = vmatprep.subr.bf16.mxu1 %v10256_v6 }
0x113c   : > { %9731 = vmatpush3.bf16.msk.msra.mxu1 %vm11782_vm3, %v10257_v38 }
0x113d   : > { %9732 = vmatprep.subr.bf16.mxu1 %v10256_v6 }
0x1140   : > { %9733 = vmatpush3.bf16.msk.msra.mxu1 %vm11776_vm14, %v10257_v38 }
0x1141   : > { %9734 = vmatprep.subr.bf16.mxu1 %v10256_v6 }
0x1144   : > { %9735 = vmatpush3.bf16.msk.msra.mxu1 %vm11811_vm1, %v10257_v38 }
0x1145   : > { %9736 = vmatprep.subr.bf16.mxu1 %v10256_v6 }
0x1148   : > { %9737 = vmatpush3.bf16.msk.msra.mxu1 %vm11805_vm12, %v10257_v38 }
0x1149   : > { %9738 = vmatprep.subr.bf16.mxu1 %v10256_v6 }
0x114c   : > { %9739 = vmatpush3.bf16.msk.msra.mxu1 %vm11837_vm9, %v10257_v38 }
0x114d   : > { %9740 = vmatprep.subr.bf16.mxu1 %v10256_v6 }
0x1150   : > { %9741 = vmatpush3.bf16.msk.msra.mxu1 %vm11832_vm2, %v10257_v38 }
0x1151   : > { %9778 = vmatprep.subr.bf16.mxu1 %v10256_v6 }
0x1153   : > { %9743 = vmatmul.mubr.bf16.vlgmr.msra.gmra.mrb[220].mxu1 %v8132_v50 }
0x1154   : > { %9786 = vmatprep.mubr.msk.bf16.mxu1 %vm10258_vm15, %v10256_v6  ;;  %9779 = vmatpush3.bf16.msra.mxu1 %v10179_v31 }
0x1155   : > { %9780 = vmatprep.subr.bf16.mxu1 %v10256_v6 }
0x1158   : > { %9781 = vmatpush3.bf16.msra.mxu1 %v10180_v61 }
0x1159   : > { %9782 = vmatprep.subr.bf16.mxu1 %v10256_v6 }
0x115c   : > { %9783 = vmatpush3.bf16.msra.mxu1 %v10181_v1 }
0x115d   : > { %9784 = vmatprep.subr.bf16.mxu1 %v10256_v6 }
0x1160   : > { %9785 = vmatpush3.bf16.msra.mxu1 %v10182_v27 }
0x1161   : > { %9790 = vmatprep.subr.bf16.mxu1 %v10256_v6 }
0x1206   : > { %v6491_v21 = vpop.f32.mrb[216].mxu1 }
0x1207   : > { %v6497_v36 = vadd.f32 %v6491_v21, %v6374_v39  ;;  %v9724_v57 = vpop.f32.mrb[217].mxu1  ;;  %v6875_v39 = vld [vmem:[#allocation5] sm:$0x3] }
0x1208   : > { %v6494_v59 = vpop.f32.mrb[218].mxu1  ;;  %v6879_v41 = vmul.f32 0.95, %v6875_v39 }
0x1209   : > { %v9725_v60 = vpop.f32.mrb[219].mxu1 }
0x1226   : > { %v6534_v58 = vpop.f32.mrb[220].mxu1 }
0x1227   : > { %vm6540_vm7 = vcmp.gt.f32.partialorder %v6534_v58, 0.5  ;;  %v9744_v62 = vpop.f32.mrb[221].mxu1 }
0x1228   : > { %v8149_v0 = vsel %vm6540_vm7, 1.0, %v10256_v6  ;;  %v6537_v2 = vpop.f32.mrb[222].mxu1 }
0x1229   : > { %v6543_v20 = vpack.c.bf16 %v8149_v0, %v8149_v0  ;;  %v9745_v52 = vpop.f32.mrb[223].mxu1 }
0x122b   : > { %9755 = vmatmul.mubr.msk.bf16.vlgmr.msra.gmra.mrb[116].mxu0 %vm4707_vm11, %v6543_v20 }
0x122c   : > { %9759 = vmatpush3.bf16.msk.msra.mxu0 %vm11753_vm10, %v10257_v38  ;;  %9774 = vmatprep.mubr.msk.bf16.mxu0 %vm10258_vm15, %v10256_v6 }
0x122d   : > { %9760 = vmatprep.subr.bf16.mxu0 %v10256_v6 }
0x1230   : > { %9761 = vmatpush3.bf16.msk.msra.mxu0 %vm11747_vm5, %v10257_v38 }
0x1231   : > { %9762 = vmatprep.subr.bf16.mxu0 %v10256_v6 }
0x1234   : > { %9763 = vmatpush3.bf16.msk.msra.mxu0 %vm11782_vm3, %v10257_v38 }
0x1235   : > { %9764 = vmatprep.subr.bf16.mxu0 %v10256_v6 }
0x1238   : > { %9765 = vmatpush3.bf16.msk.msra.mxu0 %vm11776_vm14, %v10257_v38  ;;  %vm6876_vm14 = vcmp.gt.f32.partialorder %v6875_v39, 1.0 }
0x1239   : > { %9766 = vmatprep.subr.bf16.mxu0 %v10256_v6  ;;  %v8208_v45 = vsel %vm6876_vm14, 1.0, %v10256_v6 }
0x123c   : > { %9767 = vmatpush3.bf16.msk.msra.mxu0 %vm11811_vm1, %v10257_v38 }
0x123d   : > { %9768 = vmatprep.subr.bf16.mxu0 %v10256_v6 }
0x1240   : > { %9769 = vmatpush3.bf16.msk.msra.mxu0 %vm11805_vm12, %v10257_v38 }
0x1241   : > { %9770 = vmatprep.subr.bf16.mxu0 %v10256_v6 }
0x1244   : > { %9771 = vmatpush3.bf16.msk.msra.mxu0 %vm11837_vm9, %v10257_v38 }
0x1245   : > { %9772 = vmatprep.subr.bf16.mxu0 %v10256_v6 }
0x1248   : > { %9773 = vmatpush3.bf16.msk.msra.mxu0 %vm11832_vm2, %v10257_v38 }
0x124b   : > { %9775 = vmatmul.mubr.bf16.vlgmr.msra.gmra.mrb[120].mxu0 %v8163_v28 }
0x12fe   : > { %v6614_v32 = vpop.f32.mrb[116].mxu0 }
0x12ff   : > { %v6620_v56 = vadd.f32 %v6614_v32, %v6497_v36  ;;  %v9756_v51 = vpop.f32.mrb[117].mxu0 }
0x1300   : > { %v6617_v3 = vpop.f32.mrb[118].mxu0 }
0x1301   : > { %v9757_v63 = vpop.f32.mrb[119].mxu0 }
0x131e   : > { %v6657_v4 = vpop.f32.mrb[120].mxu0 }
0x131f   : > { %vm6663_vm5 = vcmp.gt.f32.partialorder %v6657_v4, 0.5  ;;  %v9776_v7 = vpop.f32.mrb[121].mxu0 }
0x1320   : > { %v8180_v9 = vsel %vm6663_vm5, 1.0, %v10256_v6  ;;  %v6660_v10 = vpop.f32.mrb[122].mxu0 }
0x1321   : > { %v6666_v11 = vpack.c.bf16 %v8180_v9, %v8180_v9  ;;  %v9777_v12 = vpop.f32.mrb[123].mxu0 }
0x1323   : > { %9787 = vmatmul.mubr.msk.bf16.vlgmr.msra.gmra.mrb[224].mxu1 %vm4707_vm11, %v6666_v11 }
0x1324   : > { %9791 = vmatpush3.bf16.msra.mxu1 %v10183_v37  ;;  %9806 = vmatprep.mubr.msk.bf16.mxu1 %vm10258_vm15, %v10256_v6  ;;  %vm6753_vm15 = vcmp.gt.f32.partialorder %v6752_v19, 1.0 }
0x1325   : > { %9792 = vmatprep.subr.bf16.mxu1 %v10256_v6  ;;  %v8195_v33 = vsel %vm6753_vm15, 1.0, %v10256_v6 }
0x1328   : > { %9793 = vmatpush3.bf16.msra.mxu1 %v10184_v14 }
0x1329   : > { %9794 = vmatprep.subr.bf16.mxu1 %v10256_v6 }
0x132c   : > { %9795 = vmatpush3.bf16.msra.mxu1 %v10185_v8 }
0x132d   : > { %9796 = vmatprep.subr.bf16.mxu1 %v10256_v6 }
0x1330   : > { %9797 = vmatpush3.bf16.msra.mxu1 %v10186_v13 }
0x1331   : > { %9798 = vmatprep.subr.bf16.mxu1 %v10256_v6 }
0x1334   : > { %9799 = vmatpush3.bf16.msra.mxu1 %v10187_v15 }
0x1335   : > { %9800 = vmatprep.subr.bf16.mxu1 %v10256_v6 }
0x1338   : > { %9801 = vmatpush3.bf16.msra.mxu1 %v10188_v16 }
0x1339   : > { %9802 = vmatprep.subr.bf16.mxu1 %v10256_v6 }
0x133c   : > { %9803 = vmatpush3.bf16.msra.mxu1 %v10189_v17 }
0x133d   : > { %9804 = vmatprep.subr.bf16.mxu1 %v10256_v6 }
0x1340   : > { %9805 = vmatpush3.bf16.msra.mxu1 %v10190_v18 }
0x13f6   : > { %v6737_v22 = vpop.f32.mrb[224].mxu1 }
0x13f7   : > { %v6743_v23 = vadd.f32 %v6737_v22, %v6620_v56  ;;  %v9788_v25 = vpop.f32.mrb[225].mxu1 }
0x13f8   : > { %v6740_v26 = vpop.f32.mrb[226].mxu1 }
0x13f9   : > { %v6751_v29 = vadd.f32 %v8194_v47, %v6743_v23  ;;  %v9789_v30 = vpop.f32.mrb[227].mxu1 }
0x13fb   : > { %v6757_v34 = vadd.f32 %v6756_v24, %v6751_v29 }
0x13fd   : > { %v6758_v35 = vsub.f32 %v6757_v34, %v8195_v33 }
0x13ff   : > { %6759 = vst [vmem:[#allocation4] sm:$0x3] %v6758_v35  ;;  %vm6760_vm11 = vcmp.gt.f32.partialorder %v6758_v35, 1.0 }
0x1400   : > { %vm8206_vm10 = vmpackc.low %vm6760_vm11, %vm6760_vm11 }
0x1401   : > { %9807 = vmatmul.mubr.msk.bf16.vlgmr.msra.gmra.mrb[228].mxu1 %vm8206_vm10, %v10257_v38 }
0x14d4   : > { %v6869_v42 = vpop.f32.mrb[228].mxu1 }
0x14d5   : > { %v6870_v43 = vadd.f32 %v8197_v40, %v6869_v42  ;;  %v9808_v44 = vpop.f32.mrb[229].mxu1 }
0x14d6   : > { %v6872_v46 = vpop.f32.mrb[230].mxu1 }
0x14d7   : > { %v6880_v48 = vadd.f32 %v6879_v41, %v6870_v43  ;;  %v9809_v49 = vpop.f32.mrb[231].mxu1 }
0x14d9   : > { %v6881_v38 = vsub.f32 %v6880_v48, %v8208_v45 }
0x14db   : > { %6882 = vst [vmem:[#allocation5] sm:$0x3] %v6881_v38  ;;  %vm6883_vm3 = vcmp.gt.f32.partialorder %v6881_v38, 1.0 }
0x14dc   : > { %v8209_v50 = vsel %vm6883_vm3, 1.0, %v10256_v6 }
0x14dd   : > { %6886 = vst [vmem:[%s12854_s28] sm:$0x3] %v8209_v50 }
0x14de   : > { %10204 = shalt.err (!%p10201_p4)
}
0x14df   : > { %s10205_s26 = scalar_lea.hbm %s12760_s12, 32  ;;  %s10209_s28 = scalar_lea.hbm %s12817_s10, 96 }
0x14e0   : > { %p10206_p7 = scmp.ne.s32.totalorder %s12760_s12, %s10205_s26  ;;  %p10210_p10 = scmp.lt.u32.totalorder %s12760_s12, %s12817_s10 }
0x14e1   : > { %p10211_p11 = scmp.lt.u32.totalorder %s10209_s28, %s10205_s26  ;;  %p10213_p13 = scmp.lt.u32.totalorder %s10205_s26, %s12760_s12 }
0x14e2   : > { %p10207_p8 = pnand %p10206_p7, %p10353_p5 }
0x14e3   : > { %p10212_p12 = por %p10211_p11, %p10210_p10 }
0x14e4   : > { %p10208_p9 = pneg %p10207_p8 }
0x14e5   : > { %p10214_p0 = por %p10213_p13, %p10212_p12 }
0x14e7   : > { %p10215_p1 = pnand %p10214_p0, %p10208_p9 }
0x14e9   : > { %10218 = shalt.err (!%p10215_p1)
}
0x14ea   : > { %9938 = dma.vmem_to_hbm [thread:$0]  (%p10353_p5), %s12762_s21, 32, %s12760_s12, %s6888_s29  }
0x14eb PF: > { %p9944_p2 = scmp.ge.s32.totalorder %s10253_s16, 2  ;;  %s6913_s30 = sand.u32 1, %s10241_s13  }
0x14ec   : > { %s6914_s20 = scalar_lea.sflag [#allocation7], %s6913_s30 }
0x14ed   : > { %p9941_p3 = pnand %p9944_p2, %p10357_p6 }
0x14ef   : > { %10236 = dma.done.wait (!%p9941_p3), %s6914_s20, 32  }
0x14f0   : > { %10238 = vsyncadd (!%p9941_p3), %s6914_s20, 4294967264  ;;  %p20_p4 = scmp.ge.s32.totalorder %s10340_s19, 5   ;;  %s12856_s13 = smov %s10245_s14 }
0x14f1   : > { %s12857_s14 = smov %s10249_s15  ;;  %s12858_s15 = smov %s10351_s22 }
0x14f2   : > { %s12859_s16 = smov %s10340_s19  ;;  %22 = sbr.rel (!%p20_p4) target bundleno = 3 (0x3), region = 145 }
0x14f9   :  { %6919 = vsyncpa [#allocation7], 1 }
0x14fa   :  { %6921 = vsyncpa [#allocation7 + $0x1], 1 }

</bundles_post_ra>
